<compile_context>
chip_gen: v7x
topology: tpu7x:2x2x1
jax: 0.10.0
libtpu: 0.0.40
codegen_flags: <defaults>
</compile_context>

<pallas_src>
import functools

import jax
import jax.numpy as jnp
import numpy as np
from jax.experimental import pallas as pl
from jax.experimental.pallas import tpu as pltpu


# ----------------------------- Pallas kernel --------------------------------

def _bottleneck_kernel(x_ref, w1_ref, b1_ref, w2_ref, b2_ref, w3_ref, b3_ref,
                       o_ref, pad_ref, col_ref, *, NB, H, W):
    """Fused conv1x1+bn+relu -> conv3x3+bn+relu -> conv1x1+bn -> +id -> relu.

    x_ref : (NB, H, W, Cin)        input tile (NHWC, f32)
    w1_ref: (Cin, Wd)    bf16      1x1 weights, BN1 scale folded in
    b1_ref: (1, Wd)      f32       folded BN1 bias
    w2_ref: (9*Wd, Wd)   bf16      3x3 taps flattened (dy,dx,c)-major, BN2 folded
    b2_ref: (1, Wd)      f32       folded BN2 bias
    w3_ref: (Wd, Cout)   bf16      1x1 weights, BN3 scale folded in
    b3_ref: (1, Cout)    f32       folded BN3 bias
    o_ref : (NB, H, W, Cout)       output tile
    pad_ref: (NB, H+2, W+2, Wd) bf16   zero-halo padded h1 (VMEM scratch)
    col_ref: (NB, H, W, 9*Wd)   bf16   im2col slab (VMEM scratch)
    """
    Cin = x_ref.shape[-1]
    Wd = w1_ref.shape[-1]
    Cout = w3_ref.shape[-1]
    HW = H * W
    M = NB * HW

    # ---- conv1 (1x1) + bn1 + relu  (bf16 MXU operands, f32 accumulate) -----
    x_bf = x_ref[...].reshape(M, Cin).astype(jnp.bfloat16)
    h1 = jnp.dot(x_bf, w1_ref[...], preferred_element_type=jnp.float32)
    h1 = jnp.maximum(h1 + b1_ref[...], 0.0)            # f32 (M, Wd)
    h1_bf = h1.astype(jnp.bfloat16)

    # ---- conv2 (3x3, pad=1) + bn2 + relu ------------------------------------
    # Zero only the 1-pixel halo border; the interior is fully overwritten
    # every grid step (safe under megacore sharding of the "parallel" axis).
    zrow = jnp.zeros((NB, 1, W + 2, Wd), jnp.bfloat16)
    pad_ref[:, 0:1, :, :] = zrow
    pad_ref[:, H + 1:H + 2, :, :] = zrow
    zcol = jnp.zeros((NB, H, 1, Wd), jnp.bfloat16)
    pad_ref[:, 1:H + 1, 0:1, :] = zcol
    pad_ref[:, 1:H + 1, W + 1:W + 2, :] = zcol
    pad_ref[:, 1:H + 1, 1:W + 1, :] = h1_bf.reshape(NB, H, W, Wd)

    # im2col slab: K ordered (dy, dx, c) to match w2_ref's (9*Wd, Wd) layout.
    for dy in range(3):
        for dx in range(3):
            t = dy * 3 + dx
            col_ref[:, :, :, t * Wd:(t + 1) * Wd] = pad_ref[:, dy:dy + H,
                                                            dx:dx + W, :]

    # One K = 9*Wd GEMM instead of nine K = Wd GEMMs.
    h2 = jnp.dot(col_ref[...].reshape(M, 9 * Wd), w2_ref[...],
                 preferred_element_type=jnp.float32)
    h2 = jnp.maximum(h2 + b2_ref[...], 0.0)             # f32 (M, Wd)
    h2_bf = h2.astype(jnp.bfloat16)

    # ---- conv3 (1x1) + bn3 + identity residual + relu -----------------------
    # Per-image epilogue; identity is re-read from the VMEM input tile at the
    # point of use instead of being kept live from the top of the kernel.
    for b in range(NB):
        outb = jnp.dot(h2_bf[b * HW:(b + 1) * HW], w3_ref[...],
                       preferred_element_type=jnp.float32)
        outb = outb + b3_ref[...] + x_ref[b].reshape(HW, Cout).astype(jnp.float32)
        o_ref[b] = jnp.maximum(outb, 0.0).reshape(H, W, Cout).astype(o_ref.dtype)


def _pick_batch_tile(N, H, W, Cin, bytes_target=2 * 1024 * 1024):
    """Images per grid step: ~bytes_target of input, but keep >= ~4 grid steps."""
    per_img = H * W * Cin * 4
    nb = max(1, min(N, bytes_target // per_img, max(1, N // 4)))
    while N % nb:
        nb -= 1
    return int(nb)


def _bottleneck_pallas(x_nhwc, w1s, b1, w2s, b2, w3s, b3, nb):
    N, H, W, Cin = x_nhwc.shape
    Wd = w1s.shape[-1]
    Cout = w3s.shape[-1]
    assert N % nb == 0

    kernel = functools.partial(_bottleneck_kernel, NB=nb, H=H, W=W)

    return pl.pallas_call(
        kernel,
        out_shape=jax.ShapeDtypeStruct((N, H, W, Cout), x_nhwc.dtype),
        grid_spec=pltpu.PrefetchScalarGridSpec(
            num_scalar_prefetch=0,
            grid=(N // nb,),
            in_specs=[
                pl.BlockSpec((nb, H, W, Cin), lambda n: (n, 0, 0, 0)),
                pl.BlockSpec((Cin, Wd), lambda n: (0, 0)),        # grid-invariant
                pl.BlockSpec((1, Wd), lambda n: (0, 0)),
                pl.BlockSpec((9 * Wd, Wd), lambda n: (0, 0)),
                pl.BlockSpec((1, Wd), lambda n: (0, 0)),
                pl.BlockSpec((Wd, Cout), lambda n: (0, 0)),
                pl.BlockSpec((1, Cout), lambda n: (0, 0)),
            ],
            out_specs=pl.BlockSpec((nb, H, W, Cout), lambda n: (n, 0, 0, 0)),
            scratch_shapes=[
                pltpu.VMEM((nb, H + 2, W + 2, Wd), jnp.bfloat16),   # halo
                pltpu.VMEM((nb, H, W, 9 * Wd), jnp.bfloat16),       # im2col slab
            ],
        ),
        compiler_params=pltpu.CompilerParams(
            dimension_semantics=("parallel",),
            vmem_limit_bytes=32 * 1024 * 1024,
        ),
    )(x_nhwc, w1s, b1, w2s, b2, w3s, b3)


# ------------------------------- JAX glue ------------------------------------

def _fold_bn(gamma, beta, mean, var, eps=1e-5):
    scale = gamma / jnp.sqrt(var + eps)
    bias = beta - mean * scale
    return scale, bias


def bottleneck_forward(x_nchw, params, eps=1e-5):
    """Pallas Bottleneck forward (stride=1, downsample=None, groups=1, dil=1)."""
    # Layout glue only: a full network would stay NHWC between blocks.
    x = jnp.transpose(x_nchw, (0, 2, 3, 1))            # NCHW -> NHWC
    N, H, W, Cin = x.shape

    w1 = params["w1"]                                   # (Cin, width)
    w2 = params["w2"]                                   # (3, 3, width, width) HWIO
    w3 = params["w3"]                                   # (width, Cout)
    width = w1.shape[-1]
    Cout = w3.shape[-1]
    assert Cin == Cout, "identity residual requires inplanes == planes * expansion"

    s1, b1 = _fold_bn(params["gamma1"], params["beta1"],
                      params["mean1"], params["var1"], eps)
    s2, b2 = _fold_bn(params["gamma2"], params["beta2"],
                      params["mean2"], params["var2"], eps)
    s3, b3 = _fold_bn(params["gamma3"], params["beta3"],
                      params["mean3"], params["var3"], eps)

    # Fold BN scales into the conv weights (f32), then cast MXU operands to bf16.
    w1s = (w1 * s1[None, :]).astype(jnp.bfloat16)                       # (Cin, Wd)
    w2s = (w2 * s2[None, None, None, :]).reshape(9 * width, width)      # (9Wd, Wd)
    w2s = w2s.astype(jnp.bfloat16)
    w3s = (w3 * s3[None, :]).astype(jnp.bfloat16)                       # (Wd, Cout)

    nb = _pick_batch_tile(N, H, W, Cin)
    out_nhwc = _bottleneck_pallas(
        x, w1s, b1.reshape(1, width),
        w2s, b2.reshape(1, width),
        w3s, b3.reshape(1, Cout), nb)

    return jnp.transpose(out_nhwc, (0, 3, 1, 2))        # NHWC -> NCHW


# -------------------------- pure-JAX reference -------------------------------

def reference_forward(x_nchw, params, eps=1e-5):
    def bn(x, g, b, m, v):
        s = (g / jnp.sqrt(v + eps))[None, :, None, None]
        return (x - m[None, :, None, None]) * s + b[None, :, None, None]

    def conv1x1(x, w_mat):                              # w_mat: (Cin, Cout)
        w = jnp.transpose(w_mat, (1, 0))[:, :, None, None]      # OIHW
        return jax.lax.conv_general_dilated(
            x, w, window_strides=(1, 1), padding="VALID",
            dimension_numbers=("NCHW", "OIHW", "NCHW"))

    def conv3x3(x, w_hwio):                             # (3,3,Cin,Cout)
        w = jnp.transpose(w_hwio, (3, 2, 0, 1))                  # OIHW
        return jax.lax.conv_general_dilated(
            x, w, window_strides=(1, 1), padding=((1, 1), (1, 1)),
            dimension_numbers=("NCHW", "OIHW", "NCHW"))

    out = jax.nn.relu(bn(conv1x1(x_nchw, params["w1"]),
                         params["gamma1"], params["beta1"],
                         params["mean1"], params["var1"]))
    out = jax.nn.relu(bn(conv3x3(out, params["w2"]),
                         params["gamma2"], params["beta2"],
                         params["mean2"], params["var2"]))
    out = bn(conv1x1(out, params["w3"]),
             params["gamma3"], params["beta3"],
             params["mean3"], params["var3"])
    return jax.nn.relu(out + x_nchw)


# --------------------------------- main ---------------------------------------

if __name__ == "__main__":
    key = jax.random.PRNGKey(0)
    ks = jax.random.split(key, 20)

    # Bottleneck(inplanes=128, planes=32): width = 32, out = planes*4 = 128,
    # stride=1, downsample=None (identity residual). 128-channel boundaries keep
    # the Pallas input/output tiles lane-dense.  N=8 -> 4 grid steps of 2 images
    # each (>= 2 steps per TensorCore on v7x).
    N, H, W = 8, 16, 16
    planes = 32
    width = planes
    Cin = planes * 4          # inplanes == planes * expansion
    Cout = planes * 4

    x = jax.random.normal(ks[0], (N, Cin, H, W), jnp.float32)

    def bn_params(i, c):
        return {
            f"gamma{i}": 1.0 + 0.1 * jax.random.normal(ks[4 * i], (c,), jnp.float32),
            f"beta{i}": 0.1 * jax.random.normal(ks[4 * i + 1], (c,), jnp.float32),
            f"mean{i}": 0.1 * jax.random.normal(ks[4 * i + 2], (c,), jnp.float32),
            f"var{i}": 0.5 + jnp.abs(jax.random.normal(ks[4 * i + 3], (c,), jnp.float32)),
        }

    params = {
        # conv weights stored as matmul-ready matrices / HWIO taps
        "w1": jax.random.normal(ks[16], (Cin, width), jnp.float32) * (Cin ** -0.5),
        "w2": jax.random.normal(ks[17], (3, 3, width, width), jnp.float32) * ((9 * width) ** -0.5),
        "w3": jax.random.normal(ks[18], (width, Cout), jnp.float32) * (width ** -0.5),
    }
    params.update(bn_params(1, width))
    params.update(bn_params(2, width))
    params.update(bn_params(3, Cout))

    out = jax.block_until_ready(jax.jit(bottleneck_forward)(x, params))
    ref = jax.block_until_ready(reference_forward(x, params))

    assert out.shape == (N, Cout, H, W), out.shape
    # bf16 MXU operands (f32 accumulation) vs the f32 XLA reference.
    np.testing.assert_allclose(np.asarray(out), np.asarray(ref),
                               rtol=3e-2, atol=3e-2)
    print("KERNEL_OK")
</pallas_src>

<mosaic_0001>
module attributes {stable_mosaic.version = 11 : i64} {
  func.func @_bottleneck_kernel(%arg0: i32, %arg1: memref<2x16x16x128xf32, #tpu.memory_space<vmem>>, %arg2: memref<128x32xbf16, #tpu.memory_space<vmem>>, %arg3: memref<1x32xf32, #tpu.memory_space<vmem>>, %arg4: memref<288x32xbf16, #tpu.memory_space<vmem>>, %arg5: memref<1x32xf32, #tpu.memory_space<vmem>>, %arg6: memref<32x128xbf16, #tpu.memory_space<vmem>>, %arg7: memref<1x128xf32, #tpu.memory_space<vmem>>, %arg8: memref<2x16x16x128xf32, #tpu.memory_space<vmem>>, %arg9: memref<2x18x18x32xbf16, #tpu.memory_space<vmem>>, %arg10: memref<2x16x16x288xbf16, #tpu.memory_space<vmem>>) attributes {dimension_semantics = [#tpu.dimension_semantics<parallel>], iteration_bounds = array<i64: 4>, scalar_prefetch = 0 : i64, scratch_operands = 2 : i64, tpu.core_type = #tpu.core_type<tc>, window_params = [{transform_indices = @transform_0, window_bounds = array<i64: 2, 16, 16, 128>}, {pipeline_mode = #tpu.pipeline_mode<synchronous>, transform_indices = @transform_1, window_bounds = array<i64: 128, 32>}, {pipeline_mode = #tpu.pipeline_mode<synchronous>, transform_indices = @transform_2, window_bounds = array<i64: 1, 32>}, {pipeline_mode = #tpu.pipeline_mode<synchronous>, transform_indices = @transform_3, window_bounds = array<i64: 288, 32>}, {pipeline_mode = #tpu.pipeline_mode<synchronous>, transform_indices = @transform_4, window_bounds = array<i64: 1, 32>}, {pipeline_mode = #tpu.pipeline_mode<synchronous>, transform_indices = @transform_5, window_bounds = array<i64: 32, 128>}, {pipeline_mode = #tpu.pipeline_mode<synchronous>, transform_indices = @transform_6, window_bounds = array<i64: 1, 128>}, {transform_indices = @transform_7, window_bounds = array<i64: 2, 16, 16, 128>}]} {
    %c0 = arith.constant 0 : index
    %c0_0 = arith.constant 0 : index
    %c0_1 = arith.constant 0 : index
    %c0_2 = arith.constant 0 : index
    %0 = vector.load %arg1[%c0, %c0_0, %c0_1, %c0_2] : memref<2x16x16x128xf32, #tpu.memory_space<vmem>>, vector<2x16x16x128xf32>
    %1 = vector.shape_cast %0 : vector<2x16x16x128xf32> to vector<512x128xf32>
    %2 = arith.truncf %1 : vector<512x128xf32> to vector<512x128xbf16>
    %c0_3 = arith.constant 0 : index
    %c0_4 = arith.constant 0 : index
    %3 = vector.load %arg2[%c0_3, %c0_4] : memref<128x32xbf16, #tpu.memory_space<vmem>>, vector<128x32xbf16>
    %cst = arith.constant dense<0.000000e+00> : vector<512x32xf32>
    %4 = tpu.matmul %2, %3, %cst {dimension_numbers = #tpu.dot_dimension_numbers<[1], [0], [0], [1], [0, 0, 1, 1], [], []>} : vector<512x128xbf16>, vector<128x32xbf16>, vector<512x32xf32> -> vector<512x32xf32>
    %c0_5 = arith.constant 0 : index
    %c0_6 = arith.constant 0 : index
    %5 = vector.load %arg3[%c0_5, %c0_6] : memref<1x32xf32, #tpu.memory_space<vmem>>, vector<1x32xf32>
    %6 = vector.broadcast %5 : vector<1x32xf32> to vector<512x32xf32>
    %7 = arith.addf %4, %6 : vector<512x32xf32>
    %cst_7 = arith.constant 0.000000e+00 : f32
    %8 = vector.broadcast %cst_7 : f32 to vector<512x32xf32>
    %9 = arith.maximumf %7, %8 : vector<512x32xf32>
    %10 = arith.truncf %9 : vector<512x32xf32> to vector<512x32xbf16>
    %cst_8 = arith.constant 0.000000e+00 : bf16
    %11 = vector.broadcast %cst_8 : bf16 to vector<2x1x18x32xbf16>
    %c0_9 = arith.constant 0 : index
    %c0_10 = arith.constant 0 : index
    %c0_11 = arith.constant 0 : index
    %c0_12 = arith.constant 0 : index
    %12 = vector.load %arg9[%c0_9, %c0_10, %c0_11, %c0_12] : memref<2x18x18x32xbf16, #tpu.memory_space<vmem>>, vector<2x1x18x32xbf16>
    tpu.vector_store %arg9[%c0_9, %c0_10, %c0_11, %c0_12], %11 {strides = array<i32>} : memref<2x18x18x32xbf16, #tpu.memory_space<vmem>>, vector<2x1x18x32xbf16>,
    %c0_13 = arith.constant 0 : index
    %c17 = arith.constant 17 : index
    %c0_14 = arith.constant 0 : index
    %c0_15 = arith.constant 0 : index
    %13 = vector.load %arg9[%c0_13, %c17, %c0_14, %c0_15] : memref<2x18x18x32xbf16, #tpu.memory_space<vmem>>, vector<2x1x18x32xbf16>
    tpu.vector_store %arg9[%c0_13, %c17, %c0_14, %c0_15], %11 {strides = array<i32>} : memref<2x18x18x32xbf16, #tpu.memory_space<vmem>>, vector<2x1x18x32xbf16>,
    %cst_16 = arith.constant 0.000000e+00 : bf16
    %14 = vector.broadcast %cst_16 : bf16 to vector<2x16x1x32xbf16>
    %c0_17 = arith.constant 0 : index
    %c1 = arith.constant 1 : index
    %c0_18 = arith.constant 0 : index
    %c0_19 = arith.constant 0 : index
    %15 = vector.load %arg9[%c0_17, %c1, %c0_18, %c0_19] : memref<2x18x18x32xbf16, #tpu.memory_space<vmem>>, vector<2x16x1x32xbf16>
    tpu.vector_store %arg9[%c0_17, %c1, %c0_18, %c0_19], %14 {strides = array<i32>} : memref<2x18x18x32xbf16, #tpu.memory_space<vmem>>, vector<2x16x1x32xbf16>,
    %c0_20 = arith.constant 0 : index
    %c1_21 = arith.constant 1 : index
    %c17_22 = arith.constant 17 : index
    %c0_23 = arith.constant 0 : index
    %16 = vector.load %arg9[%c0_20, %c1_21, %c17_22, %c0_23] : memref<2x18x18x32xbf16, #tpu.memory_space<vmem>>, vector<2x16x1x32xbf16>
    tpu.vector_store %arg9[%c0_20, %c1_21, %c17_22, %c0_23], %14 {strides = array<i32>} : memref<2x18x18x32xbf16, #tpu.memory_space<vmem>>, vector<2x16x1x32xbf16>,
    %17 = vector.shape_cast %10 : vector<512x32xbf16> to vector<2x16x16x32xbf16>
    %c0_24 = arith.constant 0 : index
    %c1_25 = arith.constant 1 : index
    %c1_26 = arith.constant 1 : index
    %c0_27 = arith.constant 0 : index
    %18 = vector.load %arg9[%c0_24, %c1_25, %c1_26, %c0_27] : memref<2x18x18x32xbf16, #tpu.memory_space<vmem>>, vector<2x16x16x32xbf16>
    tpu.vector_store %arg9[%c0_24, %c1_25, %c1_26, %c0_27], %17 {strides = array<i32>} : memref<2x18x18x32xbf16, #tpu.memory_space<vmem>>, vector<2x16x16x32xbf16>,
    %c0_28 = arith.constant 0 : index
    %c0_29 = arith.constant 0 : index
    %c0_30 = arith.constant 0 : index
    %c0_31 = arith.constant 0 : index
    %19 = vector.load %arg9[%c0_28, %c0_29, %c0_30, %c0_31] : memref<2x18x18x32xbf16, #tpu.memory_space<vmem>>, vector<2x16x16x32xbf16>
    %c0_32 = arith.constant 0 : index
    %c0_33 = arith.constant 0 : index
    %c0_34 = arith.constant 0 : index
    %c0_35 = arith.constant 0 : index
    %20 = vector.load %arg10[%c0_32, %c0_33, %c0_34, %c0_35] : memref<2x16x16x288xbf16, #tpu.memory_space<vmem>>, vector<2x16x16x32xbf16>
    tpu.vector_store %arg10[%c0_32, %c0_33, %c0_34, %c0_35], %19 {strides = array<i32>} : memref<2x16x16x288xbf16, #tpu.memory_space<vmem>>, vector<2x16x16x32xbf16>,
    %c0_36 = arith.constant 0 : index
    %c0_37 = arith.constant 0 : index
    %c1_38 = arith.constant 1 : index
    %c0_39 = arith.constant 0 : index
    %21 = vector.load %arg9[%c0_36, %c0_37, %c1_38, %c0_39] : memref<2x18x18x32xbf16, #tpu.memory_space<vmem>>, vector<2x16x16x32xbf16>
    %c0_40 = arith.constant 0 : index
    %c0_41 = arith.constant 0 : index
    %c0_42 = arith.constant 0 : index
    %c32 = arith.constant 32 : index
    %22 = vector.load %arg10[%c0_40, %c0_41, %c0_42, %c32] : memref<2x16x16x288xbf16, #tpu.memory_space<vmem>>, vector<2x16x16x32xbf16>
    tpu.vector_store %arg10[%c0_40, %c0_41, %c0_42, %c32], %21 {strides = array<i32>} : memref<2x16x16x288xbf16, #tpu.memory_space<vmem>>, vector<2x16x16x32xbf16>,
    %c0_43 = arith.constant 0 : index
    %c0_44 = arith.constant 0 : index
    %c2 = arith.constant 2 : index
    %c0_45 = arith.constant 0 : index
    %23 = vector.load %arg9[%c0_43, %c0_44, %c2, %c0_45] : memref<2x18x18x32xbf16, #tpu.memory_space<vmem>>, vector<2x16x16x32xbf16>
    %c0_46 = arith.constant 0 : index
    %c0_47 = arith.constant 0 : index
    %c0_48 = arith.constant 0 : index
    %c64 = arith.constant 64 : index
    %24 = vector.load %arg10[%c0_46, %c0_47, %c0_48, %c64] : memref<2x16x16x288xbf16, #tpu.memory_space<vmem>>, vector<2x16x16x32xbf16>
    tpu.vector_store %arg10[%c0_46, %c0_47, %c0_48, %c64], %23 {strides = array<i32>} : memref<2x16x16x288xbf16, #tpu.memory_space<vmem>>, vector<2x16x16x32xbf16>,
    %c0_49 = arith.constant 0 : index
    %c1_50 = arith.constant 1 : index
    %c0_51 = arith.constant 0 : index
    %c0_52 = arith.constant 0 : index
    %25 = vector.load %arg9[%c0_49, %c1_50, %c0_51, %c0_52] : memref<2x18x18x32xbf16, #tpu.memory_space<vmem>>, vector<2x16x16x32xbf16>
    %c0_53 = arith.constant 0 : index
    %c0_54 = arith.constant 0 : index
    %c0_55 = arith.constant 0 : index
    %c96 = arith.constant 96 : index
    %26 = vector.load %arg10[%c0_53, %c0_54, %c0_55, %c96] : memref<2x16x16x288xbf16, #tpu.memory_space<vmem>>, vector<2x16x16x32xbf16>
    tpu.vector_store %arg10[%c0_53, %c0_54, %c0_55, %c96], %25 {strides = array<i32>} : memref<2x16x16x288xbf16, #tpu.memory_space<vmem>>, vector<2x16x16x32xbf16>,
    %c0_56 = arith.constant 0 : index
    %c1_57 = arith.constant 1 : index
    %c1_58 = arith.constant 1 : index
    %c0_59 = arith.constant 0 : index
    %27 = vector.load %arg9[%c0_56, %c1_57, %c1_58, %c0_59] : memref<2x18x18x32xbf16, #tpu.memory_space<vmem>>, vector<2x16x16x32xbf16>
    %c0_60 = arith.constant 0 : index
    %c0_61 = arith.constant 0 : index
    %c0_62 = arith.constant 0 : index
    %c128 = arith.constant 128 : index
    %28 = vector.load %arg10[%c0_60, %c0_61, %c0_62, %c128] : memref<2x16x16x288xbf16, #tpu.memory_space<vmem>>, vector<2x16x16x32xbf16>
    tpu.vector_store %arg10[%c0_60, %c0_61, %c0_62, %c128], %27 {strides = array<i32>} : memref<2x16x16x288xbf16, #tpu.memory_space<vmem>>, vector<2x16x16x32xbf16>,
    %c0_63 = arith.constant 0 : index
    %c1_64 = arith.constant 1 : index
    %c2_65 = arith.constant 2 : index
    %c0_66 = arith.constant 0 : index
    %29 = vector.load %arg9[%c0_63, %c1_64, %c2_65, %c0_66] : memref<2x18x18x32xbf16, #tpu.memory_space<vmem>>, vector<2x16x16x32xbf16>
    %c0_67 = arith.constant 0 : index
    %c0_68 = arith.constant 0 : index
    %c0_69 = arith.constant 0 : index
    %c160 = arith.constant 160 : index
    %30 = vector.load %arg10[%c0_67, %c0_68, %c0_69, %c160] : memref<2x16x16x288xbf16, #tpu.memory_space<vmem>>, vector<2x16x16x32xbf16>
    tpu.vector_store %arg10[%c0_67, %c0_68, %c0_69, %c160], %29 {strides = array<i32>} : memref<2x16x16x288xbf16, #tpu.memory_space<vmem>>, vector<2x16x16x32xbf16>,
    %c0_70 = arith.constant 0 : index
    %c2_71 = arith.constant 2 : index
    %c0_72 = arith.constant 0 : index
    %c0_73 = arith.constant 0 : index
    %31 = vector.load %arg9[%c0_70, %c2_71, %c0_72, %c0_73] : memref<2x18x18x32xbf16, #tpu.memory_space<vmem>>, vector<2x16x16x32xbf16>
    %c0_74 = arith.constant 0 : index
    %c0_75 = arith.constant 0 : index
    %c0_76 = arith.constant 0 : index
    %c192 = arith.constant 192 : index
    %32 = vector.load %arg10[%c0_74, %c0_75, %c0_76, %c192] : memref<2x16x16x288xbf16, #tpu.memory_space<vmem>>, vector<2x16x16x32xbf16>
    tpu.vector_store %arg10[%c0_74, %c0_75, %c0_76, %c192], %31 {strides = array<i32>} : memref<2x16x16x288xbf16, #tpu.memory_space<vmem>>, vector<2x16x16x32xbf16>,
    %c0_77 = arith.constant 0 : index
    %c2_78 = arith.constant 2 : index
    %c1_79 = arith.constant 1 : index
    %c0_80 = arith.constant 0 : index
    %33 = vector.load %arg9[%c0_77, %c2_78, %c1_79, %c0_80] : memref<2x18x18x32xbf16, #tpu.memory_space<vmem>>, vector<2x16x16x32xbf16>
    %c0_81 = arith.constant 0 : index
    %c0_82 = arith.constant 0 : index
    %c0_83 = arith.constant 0 : index
    %c224 = arith.constant 224 : index
    %34 = vector.load %arg10[%c0_81, %c0_82, %c0_83, %c224] : memref<2x16x16x288xbf16, #tpu.memory_space<vmem>>, vector<2x16x16x32xbf16>
    tpu.vector_store %arg10[%c0_81, %c0_82, %c0_83, %c224], %33 {strides = array<i32>} : memref<2x16x16x288xbf16, #tpu.memory_space<vmem>>, vector<2x16x16x32xbf16>,
    %c0_84 = arith.constant 0 : index
    %c2_85 = arith.constant 2 : index
    %c2_86 = arith.constant 2 : index
    %c0_87 = arith.constant 0 : index
    %35 = vector.load %arg9[%c0_84, %c2_85, %c2_86, %c0_87] : memref<2x18x18x32xbf16, #tpu.memory_space<vmem>>, vector<2x16x16x32xbf16>
    %c0_88 = arith.constant 0 : index
    %c0_89 = arith.constant 0 : index
    %c0_90 = arith.constant 0 : index
    %c256 = arith.constant 256 : index
    %36 = vector.load %arg10[%c0_88, %c0_89, %c0_90, %c256] : memref<2x16x16x288xbf16, #tpu.memory_space<vmem>>, vector<2x16x16x32xbf16>
    tpu.vector_store %arg10[%c0_88, %c0_89, %c0_90, %c256], %35 {strides = array<i32>} : memref<2x16x16x288xbf16, #tpu.memory_space<vmem>>, vector<2x16x16x32xbf16>,
    %c0_91 = arith.constant 0 : index
    %c0_92 = arith.constant 0 : index
    %c0_93 = arith.constant 0 : index
    %c0_94 = arith.constant 0 : index
    %37 = vector.load %arg10[%c0_91, %c0_92, %c0_93, %c0_94] : memref<2x16x16x288xbf16, #tpu.memory_space<vmem>>, vector<2x16x16x288xbf16>
    %38 = vector.shape_cast %37 : vector<2x16x16x288xbf16> to vector<512x288xbf16>
    %c0_95 = arith.constant 0 : index
    %c0_96 = arith.constant 0 : index
    %39 = vector.load %arg4[%c0_95, %c0_96] : memref<288x32xbf16, #tpu.memory_space<vmem>>, vector<288x32xbf16>
    %cst_97 = arith.constant dense<0.000000e+00> : vector<512x32xf32>
    %40 = tpu.matmul %38, %39, %cst_97 {dimension_numbers = #tpu.dot_dimension_numbers<[1], [0], [0], [1], [0, 0, 1, 1], [], []>} : vector<512x288xbf16>, vector<288x32xbf16>, vector<512x32xf32> -> vector<512x32xf32>
    %c0_98 = arith.constant 0 : index
    %c0_99 = arith.constant 0 : index
    %41 = vector.load %arg5[%c0_98, %c0_99] : memref<1x32xf32, #tpu.memory_space<vmem>>, vector<1x32xf32>
    %42 = vector.broadcast %41 : vector<1x32xf32> to vector<512x32xf32>
    %43 = arith.addf %40, %42 : vector<512x32xf32>
    %cst_100 = arith.constant 0.000000e+00 : f32
    %44 = vector.broadcast %cst_100 : f32 to vector<512x32xf32>
    %45 = arith.maximumf %43, %44 : vector<512x32xf32>
    %46 = arith.truncf %45 : vector<512x32xf32> to vector<512x32xbf16>
    %47 = vector.extract_strided_slice %46 {offsets = [0, 0], sizes = [256, 32], strides = [1, 1]} : vector<512x32xbf16> to vector<256x32xbf16>
    %c0_101 = arith.constant 0 : index
    %c0_102 = arith.constant 0 : index
    %48 = vector.load %arg6[%c0_101, %c0_102] : memref<32x128xbf16, #tpu.memory_space<vmem>>, vector<32x128xbf16>
    %cst_103 = arith.constant dense<0.000000e+00> : vector<256x128xf32>
    %49 = tpu.matmul %47, %48, %cst_103 {dimension_numbers = #tpu.dot_dimension_numbers<[1], [0], [0], [1], [0, 0, 1, 1], [], []>} : vector<256x32xbf16>, vector<32x128xbf16>, vector<256x128xf32> -> vector<256x128xf32>
    %c0_104 = arith.constant 0 : index
    %c0_105 = arith.constant 0 : index
    %50 = vector.load %arg7[%c0_104, %c0_105] : memref<1x128xf32, #tpu.memory_space<vmem>>, vector<1x128xf32>
    %51 = vector.broadcast %50 : vector<1x128xf32> to vector<256x128xf32>
    %52 = arith.addf %49, %51 : vector<256x128xf32>
    %c0_106 = arith.constant 0 : index
    %c0_107 = arith.constant 0 : index
    %c0_108 = arith.constant 0 : index
    %c0_109 = arith.constant 0 : index
    %53 = vector.load %arg1[%c0_106, %c0_107, %c0_108, %c0_109] : memref<2x16x16x128xf32, #tpu.memory_space<vmem>>, vector<1x16x16x128xf32>
    %54 = vector.shape_cast %53 : vector<1x16x16x128xf32> to vector<16x16x128xf32>
    %55 = vector.shape_cast %54 : vector<16x16x128xf32> to vector<256x128xf32>
    %56 = arith.addf %52, %55 : vector<256x128xf32>
    %cst_110 = arith.constant 0.000000e+00 : f32
    %57 = vector.broadcast %cst_110 : f32 to vector<256x128xf32>
    %58 = arith.maximumf %56, %57 : vector<256x128xf32>
    %59 = vector.shape_cast %58 : vector<256x128xf32> to vector<16x16x128xf32>
    %c0_111 = arith.constant 0 : index
    %c0_112 = arith.constant 0 : index
    %c0_113 = arith.constant 0 : index
    %c0_114 = arith.constant 0 : index
    %60 = vector.load %arg8[%c0_111, %c0_112, %c0_113, %c0_114] : memref<2x16x16x128xf32, #tpu.memory_space<vmem>>, vector<1x16x16x128xf32>
    %61 = vector.shape_cast %60 : vector<1x16x16x128xf32> to vector<16x16x128xf32>
    %62 = vector.shape_cast %59 : vector<16x16x128xf32> to vector<1x16x16x128xf32>
    tpu.vector_store %arg8[%c0_111, %c0_112, %c0_113, %c0_114], %62 {strides = array<i32>} : memref<2x16x16x128xf32, #tpu.memory_space<vmem>>, vector<1x16x16x128xf32>,
    %63 = vector.extract_strided_slice %46 {offsets = [256, 0], sizes = [256, 32], strides = [1, 1]} : vector<512x32xbf16> to vector<256x32xbf16>
    %c0_115 = arith.constant 0 : index
    %c0_116 = arith.constant 0 : index
    %64 = vector.load %arg6[%c0_115, %c0_116] : memref<32x128xbf16, #tpu.memory_space<vmem>>, vector<32x128xbf16>
    %cst_117 = arith.constant dense<0.000000e+00> : vector<256x128xf32>
    %65 = tpu.matmul %63, %64, %cst_117 {dimension_numbers = #tpu.dot_dimension_numbers<[1], [0], [0], [1], [0, 0, 1, 1], [], []>} : vector<256x32xbf16>, vector<32x128xbf16>, vector<256x128xf32> -> vector<256x128xf32>
    %c0_118 = arith.constant 0 : index
    %c0_119 = arith.constant 0 : index
    %66 = vector.load %arg7[%c0_118, %c0_119] : memref<1x128xf32, #tpu.memory_space<vmem>>, vector<1x128xf32>
    %67 = vector.broadcast %66 : vector<1x128xf32> to vector<256x128xf32>
    %68 = arith.addf %65, %67 : vector<256x128xf32>
    %c1_120 = arith.constant 1 : index
    %c0_121 = arith.constant 0 : index
    %c0_122 = arith.constant 0 : index
    %c0_123 = arith.constant 0 : index
    %69 = vector.load %arg1[%c1_120, %c0_121, %c0_122, %c0_123] : memref<2x16x16x128xf32, #tpu.memory_space<vmem>>, vector<1x16x16x128xf32>
    %70 = vector.shape_cast %69 : vector<1x16x16x128xf32> to vector<16x16x128xf32>
    %71 = vector.shape_cast %70 : vector<16x16x128xf32> to vector<256x128xf32>
    %72 = arith.addf %68, %71 : vector<256x128xf32>
    %cst_124 = arith.constant 0.000000e+00 : f32
    %73 = vector.broadcast %cst_124 : f32 to vector<256x128xf32>
    %74 = arith.maximumf %72, %73 : vector<256x128xf32>
    %75 = vector.shape_cast %74 : vector<256x128xf32> to vector<16x16x128xf32>
    %c1_125 = arith.constant 1 : index
    %c0_126 = arith.constant 0 : index
    %c0_127 = arith.constant 0 : index
    %c0_128 = arith.constant 0 : index
    %76 = vector.load %arg8[%c1_125, %c0_126, %c0_127, %c0_128] : memref<2x16x16x128xf32, #tpu.memory_space<vmem>>, vector<1x16x16x128xf32>
    %77 = vector.shape_cast %76 : vector<1x16x16x128xf32> to vector<16x16x128xf32>
    %78 = vector.shape_cast %75 : vector<16x16x128xf32> to vector<1x16x16x128xf32>
    tpu.vector_store %arg8[%c1_125, %c0_126, %c0_127, %c0_128], %78 {strides = array<i32>} : memref<2x16x16x128xf32, #tpu.memory_space<vmem>>, vector<1x16x16x128xf32>,
    return
  }
  func.func @transform_0(%arg0: i32) -> (i32, i32, i32, i32) {
    %c0_i32 = arith.constant 0 : i32
    %c0_i32_0 = arith.constant 0 : i32
    %c0_i32_1 = arith.constant 0 : i32
    %c0_i32_2 = arith.constant 0 : i32
    return %arg0, %c0_i32, %c0_i32_0, %c0_i32_1 : i32, i32, i32, i32
  }
  func.func @transform_1(%arg0: i32) -> (i32, i32) {
    %c0_i32 = arith.constant 0 : i32
    %c0_i32_0 = arith.constant 0 : i32
    %c0_i32_1 = arith.constant 0 : i32
    return %c0_i32, %c0_i32_0 : i32, i32
  }
  func.func @transform_2(%arg0: i32) -> (i32, i32) {
    %c0_i32 = arith.constant 0 : i32
    %c0_i32_0 = arith.constant 0 : i32
    %c0_i32_1 = arith.constant 0 : i32
    return %c0_i32, %c0_i32_0 : i32, i32
  }
  func.func @transform_3(%arg0: i32) -> (i32, i32) {
    %c0_i32 = arith.constant 0 : i32
    %c0_i32_0 = arith.constant 0 : i32
    %c0_i32_1 = arith.constant 0 : i32
    return %c0_i32, %c0_i32_0 : i32, i32
  }
  func.func @transform_4(%arg0: i32) -> (i32, i32) {
    %c0_i32 = arith.constant 0 : i32
    %c0_i32_0 = arith.constant 0 : i32
    %c0_i32_1 = arith.constant 0 : i32
    return %c0_i32, %c0_i32_0 : i32, i32
  }
  func.func @transform_5(%arg0: i32) -> (i32, i32) {
    %c0_i32 = arith.constant 0 : i32
    %c0_i32_0 = arith.constant 0 : i32
    %c0_i32_1 = arith.constant 0 : i32
    return %c0_i32, %c0_i32_0 : i32, i32
  }
  func.func @transform_6(%arg0: i32) -> (i32, i32) {
    %c0_i32 = arith.constant 0 : i32
    %c0_i32_0 = arith.constant 0 : i32
    %c0_i32_1 = arith.constant 0 : i32
    return %c0_i32, %c0_i32_0 : i32, i32
  }
  func.func @transform_7(%arg0: i32) -> (i32, i32, i32, i32) {
    %c0_i32 = arith.constant 0 : i32
    %c0_i32_0 = arith.constant 0 : i32
    %c0_i32_1 = arith.constant 0 : i32
    %c0_i32_2 = arith.constant 0 : i32
    return %arg0, %c0_i32, %c0_i32_0, %c0_i32_1 : i32, i32, i32, i32
  }
}

</mosaic_0001>

<bundles_post_ra>
// kernel: bottleneck_forward.1
= control target key start
LH: loop header
LB: loop body
LE: loop exit
PB: predicated region body
PF: predicated region fallthrough
CT: control target
= control target key end

     0   :  { %12 = vsyncpa [#allocation5], 0  ;;  %s13565_s0 = inlined_call_operand.hbm [shape: f32[8,16,16,128], index: 0, kind: input, shape index: {}]   ;;  %s13566_s1 = inlined_call_operand.vmem [shape: bf16[128,32], index: 1, kind: input, shape index: {}]   ;;  %s13567_s2 = inlined_call_operand.vmem [shape: f32[1,32], index: 2, kind: input, shape index: {}]   ;;  %s13568_s3 = inlined_call_operand.vmem [shape: bf16[288,32], index: 3, kind: input, shape index: {}]   ;;  %s13569_s4 = inlined_call_operand.vmem [shape: f32[1,32], index: 4, kind: input, shape index: {}]   ;;  %s13570_s5 = inlined_call_operand.vmem [shape: bf16[32,128], index: 5, kind: input, shape index: {}]   ;;  %s13571_s6 = inlined_call_operand.vmem [shape: f32[1,128], index: 6, kind: input, shape index: {}]   ;;  %s13572_s7 = inlined_call_operand.hbm [shape: f32[8,16,16,128], index: 7, kind: output, shape index: {}]  }
   0x1   :  { %14 = vsyncpa [#allocation5 + $0x1], 0 }
   0x2   :  { %15 = vsyncpa [#allocation6], 0 }
   0x3   :  { %17 = vsyncpa [#allocation6 + $0x1], 0  ;;  %s10982_s24 = smov 0   ;;  %s10984_s25 = smov 0  }
   0x4   :  { %s10986_s26 = smov 0   ;;  %s10988_s27 = smov 0  }
   0x5 LB: > { %s11003_s28 = sadd.s32 4294967295, %s10930_s27   ;;  %s9112_s29 = sadd.s32 4294967294, %s10930_s27   ;;  %s10930_s27 = sphi %s10988_s27, %s13592_s27   ;;  %s10926_s26 = sphi %s10986_s26, %s13591_s26   ;;  %s10922_s25 = sphi %s10984_s25, %s13590_s25   ;;  %s10918_s24 = sphi %s10982_s24, %s13589_s24  }
   0x6   : > { %s11007_s30 = sadd.s32 1, %s10930_s27   ;;  %s30_s8 = sadd.s32 1, %s10926_s26 }
   0x7   : > { %s27_s9 = ssub.s32 %s10930_s27, %s11007_s30  ;;  %p37_p0 = scmp.ne.s32.totalorder %s10926_s26, %s10922_s25 }
   0x8   : > { %p28_p1 = scmp.eq.s32.totalorder %s27_s9, 0  ;;  %p38_p2 = scmp.eq.s32.totalorder %s10930_s27, 0 }
   0x9   : > { %p43_p3 = scmp.ne.s32.totalorder %s10922_s25, %s10918_s24  ;;  %p44_p4 = scmp.eq.s32.totalorder %s11003_s28, 0 }
   0xa   : > { %s11019_s10 = scalar_select %p28_p1, %s10926_s26, %s30_s8  }
   0xb   : > { %p11021_p5 = por %p38_p2, %p37_p0  ;;  %p11025_p6 = por %p44_p4, %p43_p3 }
   0xc   : > { %p193_p7 = scmp.eq.s32.totalorder %s11003_s28, 3  ;;  %p199_p8 = scmp.eq.s32.totalorder %s9112_s29, 3 }
   0xd   : > { %p10276_p9 = scmp.lt.s32.totalorder %s10930_s27, 4  ;;  %s237_s15 = sand.u32 1, %s10926_s26  }
   0xe   : > { %p11031_p10 = por %p193_p7, %p37_p0  ;;  %p11035_p11 = por %p199_p8, %p43_p3 }
   0xf   : > { %s9835_s16 = sshll.u32 %s10930_s27, 13  ;;  %s9115_s17 = sshll.u32 %s237_s15, 9 }
  0x10   : > { %s13576_s13 = scalar_select %p11031_p10, 1, 0 }
  0x11   : > { %s13577_s14 = scalar_select %p11035_p11, 1, 0 }
  0x12   : > { %s11044_s20 = scalar_lea.hbm %s13565_s0, %s9835_s16  ;;  %s241_s21 = scalar_lea.vmem [#allocation4], %s9115_s17 }
  0x13   : > { %s249_s22 = sshll.u32 %s241_s21, 4  ;;  %p11048_p12 = pnand %p10276_p9, %p11021_p5  ;;  %s11052_s22 = int_to_ptr.vmem [resolvable:$true] %s249_s22 }
  0x14   : > { %s11054_s29 = scalar_lea.sflag [#allocation5], %s237_s15  ;;  %s10834_s8 = scalar_lea.hbm %s11044_s20, 8192 }
  0x15   : > { %p10835_p13 = scmp.ne.s32.totalorder %s11044_s20, %s10834_s8  ;;  %p10836_p0 = pneg %p11048_p12 }
  0x16   : > { %s10839_s16 = scalar_lea.hbm %s13565_s0, 32768  ;;  %p10840_p3 = scmp.lt.u32.totalorder %s11044_s20, %s13565_s0 }
  0x17   : > { %p10837_p1 = pnand %p10836_p0, %p10835_p13  ;;  %p10841_p4 = scmp.lt.u32.totalorder %s10839_s16, %s10834_s8 }
  0x18   : > { %p10843_p7 = scmp.lt.u32.totalorder %s10834_s8, %s11044_s20 }
  0x19   : > { %p10838_p2 = pneg %p10837_p1  ;;  %p10842_p5 = por %p10841_p4, %p10840_p3 }
  0x1b   : > { %p10844_p8 = por %p10843_p7, %p10842_p5 }
  0x1d   : > { %p10845_p9 = pnand %p10844_p8, %p10838_p2 }
  0x1f   : > { %10848 = shalt.err (!%p10845_p9)
}
  0x20   : > { %s10849_s15 = scalar_lea.vmem %s11052_s22, 8192  ;;  %s10932_s19 = smov [#allocation4]  }
  0x21   : > { %p10850_p13 = scmp.ne.s32.totalorder %s11052_s22, %s10849_s15  ;;  %s10854_s21 = sshll.u32 %s10932_s19, 4  ;;  %s10855_s21 = int_to_ptr.vmem [resolvable:$false] %s10854_s21 }
  0x22   : > { %s10856_s9 = scalar_lea.vmem %s10855_s21, 16384  ;;  %p10857_p10 = scmp.lt.s32.totalorder %s11052_s22, %s10855_s21 }
  0x23   : > { %p10852_p1 = pnand %p10850_p13, %p10836_p0  ;;  %p10858_p3 = scmp.lt.s32.totalorder %s10856_s9, %s10849_s15 }
  0x25   : > { %p10853_p11 = pneg %p10852_p1  ;;  %p10859_p4 = por %p10858_p3, %p10857_p10 }
  0x27   : > { %p10860_p5 = pnand %p10859_p4, %p10853_p11 }
  0x29   : > { %10863 = shalt.err (!%p10860_p5)
}
  0x2a   : > { %s10933_s8 = smov 128   ;;  %s10934_s11 = smov 8  }
  0x2b   : > { %10271 = dma.hbm_to_vmem [thread:$0]  (!%p11048_p12), %s11044_s20, 8192, %s11052_s22, %s11054_s29, %s10933_s8, %s10933_s8, %s10934_s11  }
  0x2c   : > { %p9119_p0 = scmp.ge.s32.totalorder %s10930_s27, 1  ;;  %p257_p2 = scmp.lt.s32.totalorder %s10930_s27, 5 }
  0x2e   : > { %p258_p7 = pnand %p9119_p0, %p257_p2 }
  0x2f   : > { %s11085_s16 = sand.u32 (!%p258_p7), 1, %s10922_s25  }
  0x30   : > { %261 = sbr.rel (%p258_p7) target bundleno = 1408 (0x580), region = 48  ;;  %s9120_s17 = sshll.u32 (!%p258_p7), %s11085_s16, 9 }
  0x31   : > { %s264_s18 = scalar_lea.sflag (!%p258_p7), [#allocation5], %s11085_s16  ;;  %s11091_s15 = scalar_lea.vmem (!%p258_p7), [#allocation4], %s9120_s17 }
  0x37   : > { %10909 = dma.done.wait (%p11025_p6), %s264_s18, 8192  }
  0x38   : > { %10911 = vsyncadd (%p11025_p6), %s264_s18, 4294959104  ;;  %v10318_v0 = vld [vmem:[%s13566_s1] sm:$0xff]   ;;  %v10319_v1 = vld [vmem:[%s13566_s1 + $0x8] sm:$0xff]   ;;  %vm853_vm0 = vcmask 257024   ;;  %vm856_vm1 = vcmask 253952   ;;  %s10936_s21 = smov 64  }
  0x39   : > { %10012 = vmatprep.subr.bf16.mxu0 %v10318_v0  ;;  %v10320_v2 = vld [vmem:[%s13566_s1 + $0x10] sm:$0xff]   ;;  %v10321_v3 = vld [vmem:[%s13566_s1 + $0x18] sm:$0xff]   ;;  %v10322_v7 = vld [vmem:[%s13566_s1 + $0x20] sm:$0xff]   ;;  %vm870_vm2 = vsmask.f32 256  ;;  %vm3601_vm6 = vcmask 1046528  }
  0x3a   : > { %10013 = vmatpush3.bf16.msra.mxu0 %v10318_v0  ;;  %v301_v4 = vld [vmem:[%s11091_s15] sm:$0xff]  ;;  %v302_v5 = vld [vmem:[%s11091_s15 + $0x8] sm:$0xff]  ;;  %v10323_v8 = vld [vmem:[%s13566_s1 + $0x28] sm:$0xff]   ;;  %vm968_vm4 = vsmask.f32 7938  ;;  %s10937_s12 = smov 32  }
  0x3b   : > { %10014 = vmatprep.subr.bf16.mxu0 %v10319_v1  ;;  %v365_v6 = vpack.c.bf16 %v302_v5, %v301_v4  ;;  %v10324_v9 = vld [vmem:[%s13566_s1 + $0x30] sm:$0xff]   ;;  %v10325_v10 = vld [vmem:[%s13566_s1 + $0x38] sm:$0xff]   ;;  %v303_v11 = vld [vmem:[%s11091_s15 + $0x10] sm:$0xff]  ;;  %v10935_v4 = vmov 0   ;;  %vm2735_vm7 = vsmask.f32 7424 }
  0x3c   : > { %v304_v12 = vld [vmem:[%s11091_s15 + $0x18] sm:$0xff]  ;;  %v305_v13 = vld [vmem:[%s11091_s15 + $0x20] sm:$0xff]  ;;  %v306_v14 = vld [vmem:[%s11091_s15 + $0x28] sm:$0xff]  ;;  %862 = vst.msk [vmem:[#allocation2 + $0xcc] sm:$0xf] %vm853_vm0, %v10935_v4  ;;  %10232 = vmatprep.subr.bf16.mxu1 %v10935_v4  ;;  %s10938_s9 = smov 96  }
  0x3d   : > { %10028 = vmatprep.mubr.bf16.mxu0 %v365_v6  ;;  %v366_v15 = vpack.c.bf16 %v304_v12, %v303_v11  ;;  %v367_v16 = vpack.c.bf16 %v306_v14, %v305_v13  ;;  %v307_v17 = vld [vmem:[%s11091_s15 + $0x30] sm:$0xff]  ;;  %v308_v18 = vld [vmem:[%s11091_s15 + $0x38] sm:$0xff]  ;;  %v309_v19 = vld [vmem:[%s11091_s15 + $0x40] sm:$0xff]  ;;  %863 = vst.msk [vmem:[#allocation2 + $0xd0] sm:$0xf] %vm853_vm0, %v10935_v4  ;;  %vm2350_vm10 = vcmask 261120  }
  0x3e   : > { %10015 = vmatpush3.bf16.msra.mxu0 %v10319_v1  ;;  %v310_v20 = vld [vmem:[%s11091_s15 + $0x48] sm:$0xff]  ;;  %v368_v21 = vpack.c.bf16 %v308_v18, %v307_v17  ;;  %v311_v23 = vld [vmem:[%s11091_s15 + $0x50] sm:$0xff]  ;;  %v312_v24 = vld [vmem:[%s11091_s15 + $0x58] sm:$0xff]  ;;  %854 = vst.msk [vmem:[#allocation2] sm:$0xf] %vm853_vm0, %v10935_v4  ;;  %vm3216_vm12 = vcmask 523520  }
  0x3f   : > { %10016 = vmatprep.subr.bf16.mxu0 %v10320_v2  ;;  %v369_v22 = vpack.c.bf16 %v310_v20, %v309_v19  ;;  %v313_v25 = vld [vmem:[%s11091_s15 + $0x60] sm:$0xff]  ;;  %v314_v26 = vld [vmem:[%s11091_s15 + $0x68] sm:$0xff]  ;;  %v370_v27 = vpack.c.bf16 %v312_v24, %v311_v23  ;;  %v315_v29 = vld [vmem:[%s11091_s15 + $0x70] sm:$0xff]  ;;  %855 = vst.msk [vmem:[#allocation2 + $0x4] sm:$0xf] %vm853_vm0, %v10935_v4  ;;  %vm3794_vm13 = vcmask 785920  }
  0x40   : > { %v371_v28 = vpack.c.bf16 %v314_v26, %v313_v25  ;;  %v316_v30 = vld [vmem:[%s11091_s15 + $0x78] sm:$0xff]  ;;  %v317_v31 = vld [vmem:[%s11091_s15 + $0x80] sm:$0xff]  ;;  %v318_v32 = vld [vmem:[%s11091_s15 + $0x88] sm:$0xff]  ;;  %857 = vst.msk [vmem:[#allocation2 + $0x8] sm:$0x1] %vm856_vm1, %v10935_v4  ;;  %vm4147_vm14 = vcmask 1048320  }
  0x41   : > { %v372_v33 = vpack.c.bf16 %v316_v30, %v315_v29  ;;  %v373_v34 = vpack.c.bf16 %v318_v32, %v317_v31  ;;  %v319_v35 = vld [vmem:[%s11091_s15 + $0x90] sm:$0xff]  ;;  %v320_v36 = vld [vmem:[%s11091_s15 + $0x98] sm:$0xff]  ;;  %v321_v37 = vld [vmem:[%s11091_s15 + $0xa0] sm:$0xff]  ;;  %858 = vst.msk [vmem:[#allocation2 + $0xd8] sm:$0xf] %vm853_vm0, %v10935_v4  ;;  %p13587_p10 = scmp.ne.s32.totalorder %s13576_s13, 0 }
  0x42   : > { %10017 = vmatpush3.bf16.msra.mxu0 %v10320_v2  ;;  %v322_v38 = vld [vmem:[%s11091_s15 + $0xa8] sm:$0xff]  ;;  %v374_v39 = vpack.c.bf16 %v320_v36, %v319_v35  ;;  %v323_v41 = vld [vmem:[%s11091_s15 + $0xb0] sm:$0xff]  ;;  %v324_v42 = vld [vmem:[%s11091_s15 + $0xb8] sm:$0xff]  ;;  %859 = vst.msk [vmem:[#allocation2 + $0xdc] sm:$0xf] %vm853_vm0, %v10935_v4  ;;  %s10939_s23 = smov [#allocation7]  }
  0x43   : > { %10018 = vmatprep.subr.bf16.mxu0 %v10321_v3  ;;  %v375_v40 = vpack.c.bf16 %v322_v38, %v321_v37  ;;  %v325_v43 = vld [vmem:[%s11091_s15 + $0xc0] sm:$0xff]  ;;  %v326_v44 = vld [vmem:[%s11091_s15 + $0xc8] sm:$0xff]  ;;  %v376_v45 = vpack.c.bf16 %v324_v42, %v323_v41  ;;  %v327_v47 = vld [vmem:[%s11091_s15 + $0xd0] sm:$0xff]  ;;  %860 = vst.msk [vmem:[#allocation2 + $0xe0] sm:$0x1] %vm856_vm1, %v10935_v4  ;;  %s10868_s29 = sshll.u32 %s10939_s23, 4  ;;  %s10869_s29 = int_to_ptr.vmem [resolvable:$false] %s10868_s29 }
  0x44   : > { %v377_v46 = vpack.c.bf16 %v326_v44, %v325_v43  ;;  %v328_v48 = vld [vmem:[%s11091_s15 + $0xd8] sm:$0xff]  ;;  %v329_v49 = vld [vmem:[%s11091_s15 + $0xe0] sm:$0xff]  ;;  %v330_v50 = vld [vmem:[%s11091_s15 + $0xe8] sm:$0xff]  ;;  %864 = vst.msk [vmem:[#allocation2 + $0xd4] sm:$0x1] %vm856_vm1, %v10935_v4  ;;  %s10870_s19 = scalar_lea.vmem %s10869_s29, 16384 }
  0x45   : > { %v378_v51 = vpack.c.bf16 %v328_v48, %v327_v47  ;;  %v379_v52 = vpack.c.bf16 %v330_v50, %v329_v49  ;;  %v331_v53 = vld [vmem:[%s11091_s15 + $0xf0] sm:$0xff]  ;;  %v332_v54 = vld [vmem:[%s11091_s15 + $0xf8] sm:$0xff]  ;;  %v333_v55 = vld [vmem:[%s11091_s15 + $0x100] sm:$0xff]  ;;  %865 = vst.msk [vmem:[#allocation2 + $0x1a4] sm:$0xf] %vm853_vm0, %v10935_v4 }
  0x46   : > { %10019 = vmatpush3.bf16.msra.mxu0 %v10321_v3  ;;  %v334_v56 = vld [vmem:[%s11091_s15 + $0x108] sm:$0xff]  ;;  %v380_v57 = vpack.c.bf16 %v332_v54, %v331_v53  ;;  %v335_v59 = vld [vmem:[%s11091_s15 + $0x110] sm:$0xff]  ;;  %v336_v60 = vld [vmem:[%s11091_s15 + $0x118] sm:$0xff]  ;;  %866 = vst.msk [vmem:[#allocation2 + $0x1a8] sm:$0xf] %vm853_vm0, %v10935_v4 }
  0x47   : > { %10020 = vmatprep.subr.bf16.mxu0 %v10322_v7  ;;  %v381_v58 = vpack.c.bf16 %v334_v56, %v333_v55  ;;  %v337_v61 = vld [vmem:[%s11091_s15 + $0x120] sm:$0xff]  ;;  %v338_v62 = vld [vmem:[%s11091_s15 + $0x128] sm:$0xff]  ;;  %v382_v63 = vpack.c.bf16 %v336_v60, %v335_v59  ;;  %v339_v1 = vld [vmem:[%s11091_s15 + $0x130] sm:$0xff]  ;;  %867 = vst.msk [vmem:[#allocation2 + $0x1ac] sm:$0x1] %vm856_vm1, %v10935_v4 }
  0x48   : > { %v383_v0 = vpack.c.bf16 %v338_v62, %v337_v61  ;;  %v340_v2 = vld [vmem:[%s11091_s15 + $0x138] sm:$0xff]  ;;  %v341_v5 = vld [vmem:[%s11091_s15 + $0x140] sm:$0xff]  ;;  %v342_v6 = vld [vmem:[%s11091_s15 + $0x148] sm:$0xff]  ;;  %vm1226_vm8 = vsmask.f32 4368 }
  0x49   : > { %v384_v3 = vpack.c.bf16 %v340_v2, %v339_v1  ;;  %vm11191_vm3 = vmand %vm856_vm1, %vm870_vm2  ;;  %v872_v12 = vld [vmem:[#allocation2 + $0xc] sm:$0x1]  ;;  %v970_v19 = vld [vmem:[#allocation2 + $0x14] sm:$0x1] }
  0x4a   : > { %10021 = vmatpush3.bf16.msra.mxu0 %v10322_v7  ;;  %v344_v13 = vld [vmem:[%s11091_s15 + $0x158] sm:$0xff]  ;;  %v873_v14 = vsel %vm11191_vm3, 0, %v872_v12  ;;  %vm11203_vm5 = vmand %vm856_vm1, %vm968_vm4  ;;  %v878_v24 = vld [vmem:[#allocation2 + $0x24] sm:$0x1] }
  0x4b   : > { %10022 = vmatprep.subr.bf16.mxu0 %v10323_v8  ;;  %874 = vst [vmem:[#allocation2 + $0xc] sm:$0x1] %v873_v14  ;;  %v971_v20 = vsel %vm11203_vm5, 0, %v970_v19  ;;  %v879_v25 = vsel %vm11191_vm3, 0, %v878_v24  ;;  %v10328_v26 = vld [vmem:[#allocation2] sm:$0xfe]   ;;  %vm11312_vm9 = vmand %vm853_vm0, %vm968_vm4 }
  0x4c   : > { %972 = vst [vmem:[#allocation2 + $0x14] sm:$0x1] %v971_v20  ;;  %880 = vst [vmem:[#allocation2 + $0x24] sm:$0x1] %v879_v25  ;;  %v10330_v29 = vld [vmem:[#allocation2 + $0xd8] sm:$0xfe]  }
  0x4d   : > { %v3602_v30 = vrot.slane %v10328_v26, 1  ;;  %v10331_v31 = vld [vmem:[#allocation2 + $0xe0] ss:$0 sps:$4 sm:$0x11]   ;;  %v3650_v35 = vrot.slane %v10330_v29, 1  ;;  %v10334_v37 = vld [vmem:[#allocation2 + $0xcc] sm:$0xff]   ;;  %vm11319_vm11 = vmor %vm870_vm2, %vm1226_vm8 }
  0x4e   : > { %10023 = vmatpush3.bf16.msra.mxu0 %v10323_v8  ;;  %v875_v8 = vld [vmem:[#allocation2 + $0x18] sm:$0x1]  ;;  %v10333_v36 = vld [vmem:[#allocation2 + $0x8] ss:$0 sps:$4 sm:$0x11]   ;;  %v3651_v38 = vrot.slane %v10331_v31, 1 }
  0x4f   : > { %10024 = vmatprep.subr.bf16.mxu0 %v10324_v9  ;;  %v876_v11 = vsel %vm11191_vm3, 0, %v875_v8  ;;  %v979_v41 = vld [vmem:[#allocation2 + $0x38] sm:$0x1]  ;;  %v976_v42 = vld [vmem:[#allocation2 + $0x2c] sm:$0x1]  ;;  %v2744_v49 = vshll.u32 %v10333_v36, 16 }
  0x50   : > { %877 = vst [vmem:[#allocation2 + $0x18] sm:$0x1] %v876_v11  ;;  %v10336_v44 = vld [vmem:[#allocation2 + $0xd8] sm:$0xff]   ;;  %v3652_v47 = vsel %vm3601_vm6, %v3650_v35, %v3651_v38  ;;  %v6442_v50 = vshrl.u32 %v10334_v37, 16  ;;  %v347_v8 = vld [vmem:[%s11091_s15 + $0x170] sm:$0xff]  ;;  %v349_v20 = vld [vmem:[%s11091_s15 + $0x180] sm:$0xff] }
  0x51   : > { %v2746_v53 = vrot.slane %v2744_v49, 1  ;;  %v2929_v55 = vshrl.u32 %v10336_v44, 16  ;;  %v2931_v56 = vshll.u32 %v10336_v44, 16  ;;  %v887_v11 = vld [vmem:[#allocation2 + $0x48] sm:$0x1]  ;;  %v354_v35 = vld [vmem:[%s11091_s15 + $0x1a8] sm:$0xff] }
  0x52   : > { %10025 = vmatpush3.bf16.msra.mxu0 %v10324_v9  ;;  %v385_v9 = vpack.c.bf16 %v342_v6, %v341_v5  ;;  %v346_v5 = vld [vmem:[%s11091_s15 + $0x168] sm:$0xff]  ;;  %v888_v14 = vsel %vm11191_vm3, 0, %v887_v11  ;;  %v352_v24 = vld [vmem:[%s11091_s15 + $0x198] sm:$0xff]  ;;  %v893_v26 = vld [vmem:[#allocation2 + $0x60] sm:$0x1] }
  0x53   : > { %10026 = vmatprep.subr.bf16.mxu0 %v10325_v10  ;;  %v2933_v61 = vrot.slane %v2931_v56, 1  ;;  %v884_v12 = vld [vmem:[#allocation2 + $0x3c] sm:$0x1]  ;;  %889 = vst [vmem:[#allocation2 + $0x48] sm:$0x1] %v888_v14  ;;  %v355_v36 = vld [vmem:[%s11091_s15 + $0x1b0] sm:$0xff] }
  0x54   : > { %v988_v31 = vld [vmem:[#allocation2 + $0x5c] sm:$0x1]  ;;  %v997_v44 = vld [vmem:[#allocation2 + $0x80] sm:$0x1]  ;;  %v902_v56 = vld [vmem:[#allocation2 + $0x84] sm:$0x1] }
  0x55   : > { %v358_v49 = vld [vmem:[%s11091_s15 + $0x1c8] sm:$0xff] }
  0x56   : > { %10027 = vmatpush3.bf16.msra.mxu0 %v10325_v10  ;;  %v343_v10 = vld [vmem:[%s11091_s15 + $0x150] sm:$0xff] }
  0x57   : > { %7628 = vmatprep.subr.bf16.mxu0 %v10935_v4  ;;  %v386_v17 = vpack.c.bf16 %v344_v13, %v343_v10  ;;  %v985_v13 = vld [vmem:[#allocation2 + $0x50] sm:$0x1] }
  0x59   : > { %10029 = vmatmul.mubr.bf16.vlgmr.msra.gmra.mrb[0].mxu0 %v366_v15 }
  0x5a   : > { %10032 = vmatprep.mubr.bf16.mxu0 %v367_v16  ;;  %v973_v16 = vld [vmem:[#allocation2 + $0x20] sm:$0x1] }
  0x5b   : > { %v974_v18 = vsel %vm11203_vm5, 0, %v973_v16  ;;  %v885_v16 = vsel %vm11191_vm3, 0, %v884_v12 }
  0x5c   : > { %975 = vst [vmem:[#allocation2 + $0x20] sm:$0x1] %v974_v18  ;;  %886 = vst [vmem:[#allocation2 + $0x3c] sm:$0x1] %v885_v16  ;;  %v982_v18 = vld [vmem:[#allocation2 + $0x44] sm:$0x1] }
  0x5d   : > { %v983_v19 = vsel %vm11203_vm5, 0, %v982_v18  ;;  %v10421_v16 = vld [vmem:[%s13568_s3 + $0x10] sm:$0xff]   ;;  %v362_v18 = vld [vmem:[%s11091_s15 + $0x1e8] sm:$0xff] }
  0x5e   : > { %984 = vst [vmem:[#allocation2 + $0x44] sm:$0x1] %v983_v19 }
  0x61   : > { %10033 = vmatmul.mubr.bf16.gmra.mrb[4].mxu0 %v368_v21  ;;  %v10326_v21 = vld [vmem:[#allocation2 + $0xcc] sm:$0xff]  }
  0x62   : > { %10036 = vmatprep.mubr.bf16.mxu0 %v369_v22  ;;  %5811 = vrot.lane.b32.xlu1 %v10326_v21, %s10936_s21  ;;  %v881_v22 = vld [vmem:[#allocation2 + $0x30] sm:$0x1]  ;;  %v350_v21 = vld [vmem:[%s11091_s15 + $0x188] sm:$0xff] }
  0x63   : > { %v882_v23 = vsel %vm11191_vm3, 0, %v881_v22  ;;  %v351_v22 = vld [vmem:[%s11091_s15 + $0x190] sm:$0xff] }
  0x64   : > { %883 = vst [vmem:[#allocation2 + $0x30] sm:$0x1] %v882_v23  ;;  %v389_v23 = vpack.c.bf16 %v350_v21, %v349_v20  ;;  %v390_v25 = vpack.c.bf16 %v352_v24, %v351_v22  ;;  %v363_v22 = vld [vmem:[%s11091_s15 + $0x1f0] sm:$0xff] }
  0x66   : > { %3730 = vrot.lane.b32.xlu1 %v3652_v47, %s10936_s21 }
  0x69   : > { %10037 = vmatmul.mubr.bf16.gmra.mrb[8].mxu0 %v370_v27  ;;  %v10332_v27 = vld [vmem:[#allocation2] sm:$0xff]  }
  0x6a   : > { %10040 = vmatprep.mubr.bf16.mxu0 %v371_v28  ;;  %v10329_v28 = vld [vmem:[#allocation2 + $0x8] ss:$0 sps:$4 sm:$0x11]   ;;  %v2737_v32 = vshrl.u32 %v10332_v27, 16 }
  0x71   : > { %10041 = vmatmul.mubr.bf16.gmra.mrb[12].mxu0 %v372_v33  ;;  %v2739_v33 = vshll.u32 %v10332_v27, 16  ;;  %v894_v27 = vsel %vm11191_vm3, 0, %v893_v26 }
  0x72   : > { %10044 = vmatprep.mubr.bf16.mxu0 %v373_v34  ;;  %v3603_v34 = vrot.slane %v10329_v28, 1  ;;  %895 = vst [vmem:[#allocation2 + $0x60] sm:$0x1] %v894_v27  ;;  %v890_v28 = vld [vmem:[#allocation2 + $0x54] sm:$0x1] }
  0x73   : > { %v891_v29 = vsel %vm11191_vm3, 0, %v890_v28 }
  0x74   : > { %v3604_v43 = vsel %vm3601_vm6, %v3602_v30, %v3603_v34  ;;  %892 = vst [vmem:[#allocation2 + $0x54] sm:$0x1] %v891_v29  ;;  %v991_v30 = vld [vmem:[#allocation2 + $0x68] sm:$0x1]  ;;  %v353_v34 = vld [vmem:[%s11091_s15 + $0x1a0] sm:$0xff] }
  0x75   : > { %3698 = vrot.lane.b32.xlu0 %v3604_v43, %s10936_s21  ;;  %v391_v38 = vpack.c.bf16 %v354_v35, %v353_v34 }
  0x79   : > { %10045 = vmatmul.mubr.bf16.gmra.mrb[16].mxu0 %v374_v39  ;;  %v2741_v39 = vrot.slane %v2739_v33, 1  ;;  %v989_v33 = vsel %vm11203_vm5, 0, %v988_v31 }
  0x7a   : > { %10048 = vmatprep.mubr.bf16.mxu0 %v375_v40  ;;  %v10335_v40 = vld [vmem:[#allocation2 + $0xd4] ss:$0 sps:$4 sm:$0x11]   ;;  %990 = vst [vmem:[#allocation2 + $0x5c] sm:$0x1] %v989_v33 }
  0x7b   : > { %v2742_v48 = vor.u32 %v2741_v39, %v2737_v32  ;;  %v992_v32 = vsel %vm11203_vm5, 0, %v991_v30 }
  0x7c   : > { %993 = vst [vmem:[#allocation2 + $0x68] sm:$0x1] %v992_v32 }
  0x7d   : > { %v2747_v59 = vsel %vm2735_vm7, %v2742_v48, %v2746_v53  ;;  %v357_v48 = vld [vmem:[%s11091_s15 + $0x1c0] sm:$0xff] }
  0x7e   : > { %3120 = vrot.lane.b32.xlu0 %v2747_v59, %s10937_s12 }
  0x81   : > { %10049 = vmatmul.mubr.bf16.gmra.mrb[20].mxu0 %v376_v45  ;;  %v980_v45 = vsel %vm11203_vm5, 0, %v979_v41 }
  0x82   : > { %10052 = vmatprep.mubr.bf16.mxu0 %v377_v46  ;;  %v977_v46 = vsel %vm11203_vm5, 0, %v976_v42  ;;  %981 = vst [vmem:[#allocation2 + $0x38] sm:$0x1] %v980_v45  ;;  %v896_v42 = vld [vmem:[#allocation2 + $0x6c] sm:$0x1]  ;;  %v998_v45 = vsel %vm11203_vm5, 0, %v997_v44 }
  0x83   : > { %978 = vst [vmem:[#allocation2 + $0x2c] sm:$0x1] %v977_v46  ;;  %v897_v43 = vsel %vm11191_vm3, 0, %v896_v42  ;;  %999 = vst [vmem:[#allocation2 + $0x80] sm:$0x1] %v998_v45 }
  0x84   : > { %898 = vst [vmem:[#allocation2 + $0x6c] sm:$0x1] %v897_v43  ;;  %v994_v46 = vld [vmem:[#allocation2 + $0x74] sm:$0x1] }
  0x85   : > { %v995_v47 = vsel %vm11203_vm5, 0, %v994_v46 }
  0x86   : > { %996 = vst [vmem:[#allocation2 + $0x74] sm:$0x1] %v995_v47  ;;  %v1870_v47 = vld [vmem:[#allocation2 + $0xc] sm:$0xf] }
  0x89   : > { %10053 = vmatmul.mubr.bf16.gmra.mrb[24].mxu0 %v378_v51  ;;  %v6444_v51 = vshll.u32 %v10334_v37, 16  ;;  %v356_v37 = vld [vmem:[%s11091_s15 + $0x1b8] sm:$0xff] }
  0x8a   : > { %10056 = vmatprep.mubr.bf16.mxu0 %v379_v52  ;;  %v6449_v52 = vshll.u32 %v10335_v40, 16  ;;  %v392_v39 = vpack.c.bf16 %v356_v37, %v355_v36  ;;  %v899_v40 = vld [vmem:[#allocation2 + $0x78] sm:$0x1] }
  0x8b   : > { %v6446_v54 = vrot.slane %v6444_v51, 1  ;;  %v900_v41 = vsel %vm11191_vm3, 0, %v899_v40  ;;  %v359_v51 = vld [vmem:[%s11091_s15 + $0x1d0] sm:$0xff]  ;;  %v10426_v37 = vld [vmem:[%s13568_s3 + $0x18] sm:$0xff]  }
  0x8c   : > { %901 = vst [vmem:[#allocation2 + $0x78] sm:$0x1] %v900_v41 }
  0x8d   : > { %v6447_v60 = vor.u32 %v6446_v54, %v6442_v50  ;;  %v393_v50 = vpack.c.bf16 %v358_v49, %v357_v48  ;;  %v905_v54 = vld [vmem:[#allocation2 + $0x90] sm:$0x1] }
  0x91   : > { %10057 = vmatmul.mubr.bf16.gmra.mrb[28].mxu0 %v380_v57  ;;  %v6451_v57 = vrot.slane %v6449_v52, 1  ;;  %v360_v52 = vld [vmem:[%s11091_s15 + $0x1d8] sm:$0xff] }
  0x92   : > { %10060 = vmatprep.mubr.bf16.mxu0 %v381_v58  ;;  %v10337_v58 = vld [vmem:[#allocation2 + $0xe0] ss:$0 sps:$4 sm:$0x11]   ;;  %v394_v53 = vpack.c.bf16 %v360_v52, %v359_v51 }
  0x93   : > { %v2936_v62 = vshll.u32 %v10337_v58, 16  ;;  %v1003_v58 = vld [vmem:[#allocation2 + $0x98] sm:$0x1] }
  0x94   : > { %v1004_v59 = vsel %vm11203_vm5, 0, %v1003_v58 }
  0x95   : > { %v2938_v1 = vrot.slane %v2936_v62, 1  ;;  %1005 = vst [vmem:[#allocation2 + $0x98] sm:$0x1] %v1004_v59  ;;  %v10411_v62 = vld [vmem:[%s13568_s3] sm:$0xff]  }
  0x96   : > { %7629 = vmatpush1.bf16.msra.mxu0 %v10411_v62  ;;  %10248 = vmatpush1.bf16.msra.mxu1 %v10411_v62 }
  0x97   : > { %7630 = vmatprep.subr.bf16.mxu0 %v10935_v4  ;;  %10233 = vmatprep.subr.bf16.mxu1 %v10935_v4 }
  0x99   : > { %10061 = vmatmul.mubr.bf16.gmra.mrb[32].mxu0 %v382_v63  ;;  %v6452_v63 = vsel %vm2735_vm7, %v6447_v60, %v6451_v57  ;;  %v903_v57 = vsel %vm11191_vm3, 0, %v902_v56  ;;  %v1000_v60 = vld [vmem:[#allocation2 + $0x8c] sm:$0x1] }
  0x9a   : > { %10064 = vmatprep.mubr.bf16.mxu0 %v383_v0  ;;  %v2934_v0 = vor.u32 %v2933_v61, %v2929_v55  ;;  %6675 = vrot.lane.b32.xlu1 %v6452_v63, %s10938_s9  ;;  %v906_v55 = vsel %vm11191_vm3, 0, %v905_v54  ;;  %904 = vst [vmem:[#allocation2 + $0x84] sm:$0x1] %v903_v57  ;;  %v1001_v61 = vsel %vm11203_vm5, 0, %v1000_v60  ;;  %v11284_v63 = vld [vmem:[%s13567_s2] ss:$0 sm:$0xff] }
  0x9b   : > { %907 = vst [vmem:[#allocation2 + $0x90] sm:$0x1] %v906_v55  ;;  %1002 = vst [vmem:[#allocation2 + $0x8c] sm:$0x1] %v1001_v61  ;;  %v1881_v54 = vld [vmem:[#allocation2 + $0x20] sm:$0x1] }
  0x9c   : > { %v2939_v2 = vsel %vm2735_vm7, %v2934_v0, %v2938_v1  ;;  %v10416_v0 = vld [vmem:[%s13568_s3 + $0x8] sm:$0xff]   ;;  %v1874_v61 = vld [vmem:[#allocation2 + $0x14] sm:$0x1] }
  0x9d   : > { %7631 = vmatpush1.bf16.msra.mxu0 %v10416_v0  ;;  %10249 = vmatpush1.bf16.msra.mxu1 %v10416_v0 }
  0x9e   : > { %3152 = vrot.lane.b32.xlu1 %v2939_v2, %s10937_s12  ;;  %7632 = vmatprep.subr.bf16.mxu0 %v10935_v4 }
  0x9f   : > { %10234 = vmatprep.subr.bf16.mxu1 %v10935_v4 }
  0xa1   : > { %10065 = vmatmul.mubr.bf16.gmra.mrb[36].mxu0 %v384_v3  ;;  %v345_v3 = vld [vmem:[%s11091_s15 + $0x160] sm:$0xff]  ;;  %10250 = vmatpush1.bf16.msra.mxu1 %v10421_v16 }
  0xa2   : > { %10068 = vmatprep.mubr.bf16.mxu0 %v385_v9  ;;  %v387_v6 = vpack.c.bf16 %v346_v5, %v345_v3  ;;  %v348_v9 = vld [vmem:[%s11091_s15 + $0x178] sm:$0xff]  ;;  %7633 = vmatpush1.bf16.msra.mxu0 %v10421_v16 }
  0xa3   : > { %v388_v10 = vpack.c.bf16 %v348_v9, %v347_v8  ;;  %7634 = vmatprep.subr.bf16.mxu0 %v10935_v4  ;;  %10235 = vmatprep.subr.bf16.mxu1 %v10935_v4 }
  0xa5   : > { %10251 = vmatpush1.bf16.msra.mxu1 %v10426_v37 }
  0xa6   : > { %7635 = vmatpush1.bf16.msra.mxu0 %v10426_v37  ;;  %10236 = vmatprep.subr.bf16.mxu1 %v10935_v4 }
  0xa7   : > { %7636 = vmatprep.subr.bf16.mxu0 %v10935_v4 }
  0xa9   : > { %10069 = vmatmul.mubr.bf16.gmra.mrb[40].mxu0 %v386_v17  ;;  %v986_v17 = vsel %vm11203_vm5, 0, %v985_v13 }
  0xaa   : > { %10072 = vmatprep.mubr.bf16.mxu0 %v387_v6  ;;  %987 = vst [vmem:[#allocation2 + $0x50] sm:$0x1] %v986_v17  ;;  %v361_v17 = vld [vmem:[%s11091_s15 + $0x1e0] sm:$0xff] }
  0xab   : > { %v395_v21 = vpack.c.bf16 %v362_v18, %v361_v17  ;;  %v1891_v18 = vld [vmem:[#allocation2 + $0x30] sm:$0xf] }
  0xb1   : > { %10073 = vmatmul.mubr.bf16.gmra.mrb[44].mxu0 %v388_v10 }
  0xb2   : > { %10076 = vmatprep.mubr.bf16.mxu0 %v389_v23  ;;  %v364_v23 = vld [vmem:[%s11091_s15 + $0x1f8] sm:$0xff] }
  0xb3   : > { %v396_v26 = vpack.c.bf16 %v364_v23, %v363_v22 }
  0xb9   : > { %10077 = vmatmul.mubr.bf16.gmra.mrb[48].mxu0 %v390_v25 }
  0xba   : > { %10080 = vmatprep.mubr.bf16.mxu0 %v391_v38 }
  0xc1   : > { %10081 = vmatmul.mubr.bf16.gmra.mrb[52].mxu0 %v392_v39  ;;  %v1877_v39 = vld [vmem:[#allocation2 + $0x18] sm:$0xf] }
  0xc2   : > { %10084 = vmatprep.mubr.bf16.mxu0 %v393_v50 }
  0xc9   : > { %10085 = vmatmul.mubr.bf16.gmra.mrb[56].mxu0 %v394_v53 }
  0xca   : > { %10088 = vmatprep.mubr.bf16.mxu0 %v395_v21 }
  0xd1   : > { %10089 = vmatmul.mubr.bf16.gmra.mrb[60].mxu0 %v396_v26 }
  0xe7   : > { %v11323_v57 = vpop.permute.xlu0 %3698 }
 0x12c   : > { %v10030_v1 = vpop.f32.mrb[0].mxu0 }
 0x12d   : > { %v511_v2 = vadd.f32 %v10030_v1, %v11284_v63  ;;  %v502_v3 = vpop.f32.mrb[1].mxu0 }
 0x12e   : > { %v503_v5 = vadd.f32 %v11284_v63, %v502_v3  ;;  %v10031_v6 = vpop.f32.mrb[2].mxu0 }
 0x12f   : > { %v759_v8 = vmax.f32 %v511_v2, 0.0  ;;  %v514_v9 = vadd.f32 %v10031_v6, %v11284_v63  ;;  %v505_v10 = vpop.f32.mrb[3].mxu0 }
 0x130   : > { %v757_v11 = vmax.f32 %v503_v5, 0.0  ;;  %v506_v12 = vadd.f32 %v11284_v63, %v505_v10  ;;  %v911_v10 = vld [vmem:[#allocation2 + $0xa8] sm:$0x1] }
 0x131   : > { %v9838_v13 = vpack.c.bf16 %v759_v8, %v759_v8  ;;  %v760_v14 = vmax.f32 %v514_v9, 0.0  ;;  %v912_v26 = vsel %vm11191_vm3, 0, %v911_v10 }
 0x132   : > { %v9836_v19 = vpack.c.bf16 %v757_v11, %v757_v11  ;;  %v758_v20 = vmax.f32 %v506_v12, 0.0  ;;  %913 = vst [vmem:[#allocation2 + $0xa8] sm:$0x1] %v912_v26 }
 0x133   : > { %v1246_v24 = vshrl.u32 %v9838_v13, 16  ;;  %v9839_v25 = vpack.c.bf16 %v760_v14, %v760_v14  ;;  %v1249_v27 = vshll.u32 %v9838_v13, 16 }
 0x134   : > { %v1229_v28 = vshrl.u32 %v9836_v19, 16  ;;  %v1232_v29 = vshll.u32 %v9836_v19, 16  ;;  %v9837_v30 = vpack.c.bf16 %v758_v20, %v758_v20  ;;  %v10034_v31 = vpop.f32.mrb[4].mxu0 }
 0x135   : > { %v1248_v32 = vrot.slane %v1246_v24, 7  ;;  %v1254_v33 = vshrl.u32 %v9839_v25, 16  ;;  %v1257_v34 = vshll.u32 %v9839_v25, 16  ;;  %v527_v35 = vadd.f32 %v10034_v31, %v11284_v63  ;;  %v518_v36 = vpop.f32.mrb[5].mxu0  ;;  %v1884_v31 = vld [vmem:[#allocation2 + $0x24] sm:$0xf] }
 0x136   : > { %v1231_v40 = vrot.slane %v1229_v28, 7  ;;  %v1237_v41 = vshrl.u32 %v9837_v30, 16  ;;  %v1240_v42 = vshll.u32 %v9837_v30, 16  ;;  %v519_v43 = vadd.f32 %v11284_v63, %v518_v36  ;;  %v10035_v44 = vpop.f32.mrb[6].mxu0  ;;  %v10430_v28 = vld [vmem:[#allocation2] sm:$0xff]  }
 0x137   : > { %v1251_v45 = vor.u32 %v1249_v27, %v1248_v32  ;;  %v1252_v46 = vrot.slane %v1248_v32, 4  ;;  %v1256_v48 = vrot.slane %v1254_v33, 7  ;;  %v763_v49 = vmax.f32 %v527_v35, 0.0  ;;  %v521_v50 = vpop.f32.mrb[7].mxu0  ;;  %v3121_v27 = vpop.permute.xlu0 %3120  ;;  %2351 = vst.msk [vmem:[#allocation3] sm:$0xff] %vm2350_vm10, %v10430_v28 }
 0x138   : > { %v1234_v51 = vor.u32 %v1232_v29, %v1231_v40  ;;  %v1235_v52 = vrot.slane %v1231_v40, 4  ;;  %v1239_v55 = vrot.slane %v1237_v41, 7  ;;  %v761_v56 = vmax.f32 %v519_v43, 0.0  ;;  %3217 = vst.msk [vmem:[#allocation3] sm:$0xff] %vm3216_vm12, %v3121_v27 }
 0x139   : > { %v1878_v58 = vsel %vm11312_vm9, %v1251_v45, %v1877_v39  ;;  %v1259_v59 = vor.u32 %v1257_v34, %v1256_v48  ;;  %v1261_v60 = vrot.slane %v1256_v48, 4  ;;  %v9842_v62 = vpack.c.bf16 %v763_v49, %v763_v49  ;;  %v1895_v49 = vld [vmem:[#allocation2 + $0x38] sm:$0x1]  ;;  %3795 = vst.msk [vmem:[#allocation3] sm:$0xff] %vm3794_vm13, %v11323_v57 }
 0x13a   : > { %1879 = vst [vmem:[#allocation2 + $0x18] sm:$0xf] %v1878_v58  ;;  %v1871_v0 = vsel %vm11312_vm9, %v1234_v51, %v1870_v47  ;;  %v1242_v1 = vor.u32 %v1240_v42, %v1239_v55  ;;  %v1244_v2 = vrot.slane %v1239_v55, 4  ;;  %v9840_v3 = vpack.c.bf16 %v761_v56, %v761_v56 }
 0x13b   : > { %1872 = vst [vmem:[#allocation2 + $0xc] sm:$0xf] %v1871_v0  ;;  %v1260_v5 = vsel %vm11319_vm11, %v1252_v46, %v1259_v59  ;;  %v1882_v6 = vsel %vm11191_vm3, %v1261_v60, %v1881_v54  ;;  %v1280_v8 = vshrl.u32 %v9842_v62, 16  ;;  %v1283_v9 = vshll.u32 %v9842_v62, 16 }
 0x13c   : > { %1880 = vst.msk [vmem:[#allocation2 + $0x1c] sm:$0xf] %vm853_vm0, %v1260_v5  ;;  %1883 = vst [vmem:[#allocation2 + $0x20] sm:$0x1] %v1882_v6  ;;  %v1243_v11 = vsel %vm11319_vm11, %v1235_v52, %v1242_v1  ;;  %v1875_v12 = vsel %vm11191_vm3, %v1244_v2, %v1874_v61  ;;  %v1263_v13 = vshrl.u32 %v9840_v3, 16  ;;  %v1266_v14 = vshll.u32 %v9840_v3, 16 }
 0x13d   : > { %v10038_v16 = vpop.f32.mrb[8].mxu0  ;;  %1873 = vst.msk [vmem:[#allocation2 + $0x10] sm:$0xf] %vm853_vm0, %v1243_v11  ;;  %1876 = vst [vmem:[#allocation2 + $0x14] sm:$0x1] %v1875_v12  ;;  %v1282_v17 = vrot.slane %v1280_v8, 7  ;;  %v530_v19 = vadd.f32 %v10035_v44, %v11284_v63  ;;  %v522_v20 = vadd.f32 %v11284_v63, %v521_v50 }
 0x13e   : > { %v543_v21 = vadd.f32 %v10038_v16, %v11284_v63  ;;  %v534_v22 = vpop.f32.mrb[9].mxu0  ;;  %v1265_v23 = vrot.slane %v1263_v13, 7  ;;  %v1888_v50 = vld [vmem:[#allocation2 + $0x2c] sm:$0x1]  ;;  %v1905_v6 = vld [vmem:[#allocation2 + $0x48] sm:$0xf] }
 0x13f   : > { %v535_v24 = vadd.f32 %v11284_v63, %v534_v22  ;;  %v10039_v25 = vpop.f32.mrb[10].mxu0  ;;  %v1285_v29 = vor.u32 %v1283_v9, %v1282_v17  ;;  %v1286_v30 = vrot.slane %v1282_v17, 4  ;;  %v764_v32 = vmax.f32 %v530_v19, 0.0  ;;  %v1898_v22 = vld [vmem:[#allocation2 + $0x3c] sm:$0xf] }
 0x140   : > { %v762_v33 = vmax.f32 %v522_v20, 0.0  ;;  %v537_v34 = vpop.f32.mrb[11].mxu0  ;;  %v1268_v35 = vor.u32 %v1266_v14, %v1265_v23  ;;  %v1269_v36 = vrot.slane %v1265_v23, 4  ;;  %v767_v37 = vmax.f32 %v543_v21, 0.0 }
 0x141   : > { %v765_v39 = vmax.f32 %v535_v24, 0.0  ;;  %v1892_v40 = vsel %vm11312_vm9, %v1285_v29, %v1891_v18  ;;  %v9843_v41 = vpack.c.bf16 %v764_v32, %v764_v32  ;;  %v546_v58 = vadd.f32 %v10039_v25, %v11284_v63 }
 0x142   : > { %v9841_v42 = vpack.c.bf16 %v762_v33, %v762_v33  ;;  %1893 = vst [vmem:[#allocation2 + $0x30] sm:$0xf] %v1892_v40  ;;  %v1885_v43 = vsel %vm11312_vm9, %v1268_v35, %v1884_v31  ;;  %v9846_v44 = vpack.c.bf16 %v767_v37, %v767_v37  ;;  %v538_v0 = vadd.f32 %v11284_v63, %v537_v34 }
 0x143   : > { %1886 = vst [vmem:[#allocation2 + $0x24] sm:$0xf] %v1885_v43  ;;  %v1288_v45 = vshrl.u32 %v9843_v41, 16  ;;  %v1291_v46 = vshll.u32 %v9843_v41, 16  ;;  %v10338_v51 = vld [vmem:[#allocation2 + $0x18] sm:$0xff]   ;;  %v9844_v62 = vpack.c.bf16 %v765_v39, %v765_v39  ;;  %v768_v23 = vmax.f32 %v546_v58, 0.0 }
 0x144   : > { %v1271_v47 = vshrl.u32 %v9841_v42, 16  ;;  %v1274_v48 = vshll.u32 %v9841_v42, 16  ;;  %v1314_v52 = vshrl.u32 %v9846_v44, 16  ;;  %v10339_v56 = vld [vmem:[#allocation2 + $0x18] sm:$0xfe]   ;;  %5781 = vrot.lane.b32.xlu0 %v10338_v51, %s10936_s21  ;;  %v1317_v61 = vshll.u32 %v9846_v44, 16 }
 0x145   : > { %v1290_v54 = vrot.slane %v1288_v45, 7  ;;  %v10340_v59 = vld [vmem:[#allocation2 + $0x20] ss:$0 sps:$4 sm:$0x11]   ;;  %v3608_v8 = vrot.slane %v10339_v56, 1  ;;  %v10341_v10 = vld [vmem:[#allocation2 + $0x18] sm:$0xff]   ;;  %v9847_v29 = vpack.c.bf16 %v768_v23, %v768_v23 }
 0x146   : > { %v1273_v55 = vrot.slane %v1271_v47, 7  ;;  %v11355_v60 = vrot.slane %v1314_v52, 7  ;;  %v3609_v9 = vrot.slane %v10340_v59, 1  ;;  %v1297_v19 = vshrl.u32 %v9844_v62, 16  ;;  %v10345_v21 = vld [vmem:[#allocation2 + $0x18] sm:$0xfe]  }
 0x147   : > { %v1293_v1 = vor.u32 %v1291_v46, %v1290_v54  ;;  %v1295_v2 = vrot.slane %v1290_v54, 4  ;;  %v1300_v20 = vshll.u32 %v9844_v62, 16  ;;  %v766_v24 = vmax.f32 %v538_v0, 0.0  ;;  %v10346_v25 = vld [vmem:[#allocation2 + $0x20] ss:$0 sps:$4 sm:$0x11]  }
 0x148   : > { %v1276_v3 = vor.u32 %v1274_v48, %v1273_v55  ;;  %v1278_v5 = vrot.slane %v1273_v55, 4  ;;  %v1319_v11 = vor.u32 %v1317_v61, %v11355_v60  ;;  %v3610_v17 = vsel %vm3601_vm6, %v3608_v8, %v3609_v9  ;;  %4053 = vrot.lane.b32.xlu0 %v10341_v10, %s10938_s9  ;;  %v11374_v26 = vld [vmem:[#allocation2 + $0x18] sm:$0xff]   ;;  %v10343_v27 = vld [vmem:[#allocation2 + $0xc] sm:$0xff]   ;;  %v10349_v35 = vld [vmem:[#allocation2 + $0x14] ss:$0 sps:$4 sm:$0x11]  }
 0x149   : > { %v1294_v12 = vsel %vm11319_vm11, %v1286_v30, %v1293_v1  ;;  %v1896_v13 = vsel %vm11191_vm3, %v1295_v2, %v1895_v49  ;;  %3702 = vrot.lane.b32.xlu1 %v3610_v17, %s10936_s21  ;;  %v1299_v28 = vrot.slane %v1297_v19, 7  ;;  %v9845_v30 = vpack.c.bf16 %v766_v24, %v766_v24  ;;  %v10348_v33 = vld [vmem:[#allocation2 + $0xc] sm:$0xfe]   ;;  %v1902_v45 = vld [vmem:[#allocation2 + $0x44] sm:$0x1]  ;;  %v10360_v62 = vld [vmem:[#allocation2 + $0x18] sm:$0xff]  }
 0x14a   : > { %v1277_v14 = vsel %vm11319_vm11, %v1269_v36, %v1276_v3  ;;  %v1889_v16 = vsel %vm11191_vm3, %v1278_v5, %v1888_v50  ;;  %1894 = vst.msk [vmem:[#allocation2 + $0x34] sm:$0xf] %vm853_vm0, %v1294_v12  ;;  %1897 = vst [vmem:[#allocation2 + $0x38] sm:$0x1] %v1896_v13  ;;  %v1906_v18 = vsel %vm11312_vm9, %v1319_v11, %v1905_v6  ;;  %v5335_v31 = vrot.slane %v10345_v21, 1 }
 0x14b   : > { %1887 = vst.msk [vmem:[#allocation2 + $0x28] sm:$0xf] %vm853_vm0, %v1277_v14  ;;  %1890 = vst [vmem:[#allocation2 + $0x2c] sm:$0x1] %v1889_v16  ;;  %v5336_v32 = vrot.slane %v10346_v25, 1  ;;  %v1302_v34 = vor.u32 %v1300_v20, %v1299_v28  ;;  %v1320_v36 = vrot.slane %v11355_v60, 4 }
 0x14c   : > { %1907 = vst [vmem:[#allocation2 + $0x48] sm:$0xf] %v1906_v18  ;;  %4051 = vrot.lane.b32.xlu0 %v10343_v27, %s10938_s9  ;;  %v1322_v37 = vshrl.u32 %v9847_v29, 16  ;;  %v1305_v39 = vshrl.u32 %v9845_v30, 16  ;;  %v2763_v40 = vshll.u32 %v11374_v26, 16  ;;  %v1325_v42 = vshll.u32 %v9847_v29, 16 }
 0x14d   : > { %v1899_v41 = vsel %vm11312_vm9, %v1302_v34, %v1898_v22  ;;  %v1308_v43 = vshll.u32 %v9845_v30, 16  ;;  %v1909_v44 = vld [vmem:[#allocation2 + $0x50] sm:$0x1]  ;;  %v5337_v46 = vsel %vm3601_vm6, %v5335_v31, %v5336_v32  ;;  %v5332_v47 = vrot.slane %v10348_v33, 1  ;;  %v10042_v16 = vpop.f32.mrb[12].mxu0 }
 0x14e   : > { %1900 = vst [vmem:[#allocation2 + $0x3c] sm:$0xf] %v1899_v41  ;;  %v5333_v48 = vrot.slane %v10349_v35, 1  ;;  %v1303_v50 = vrot.slane %v1299_v28, 4  ;;  %v1324_v51 = vrot.slane %v1322_v37, 7  ;;  %v1307_v52 = vrot.slane %v1305_v39, 7 }
 0x14f   : > { %v2761_v54 = vshrl.u32 %v11374_v26, 16  ;;  %v10352_v2 = vld [vmem:[#allocation2 + $0xc] sm:$0xfe]   ;;  %v2765_v3 = vrot.slane %v2763_v40, 1  ;;  %v6262_v25 = vshrl.u32 %v10360_v62, 16  ;;  %v559_v26 = vadd.f32 %v10042_v16, %v11284_v63 }
 0x150   : > { %5430 = vrot.lane.b32.xlu0 %v5337_v46, %s10937_s12  ;;  %v1327_v55 = vor.u32 %v1325_v42, %v1324_v51  ;;  %v1329_v56 = vrot.slane %v1324_v51, 4  ;;  %v1310_v58 = vor.u32 %v1308_v43, %v1307_v52  ;;  %v1312_v59 = vrot.slane %v1307_v52, 4  ;;  %v10353_v10 = vld [vmem:[#allocation2 + $0x14] ss:$0 sps:$4 sm:$0x11]   ;;  %v10364_v52 = vld [vmem:[#allocation2 + $0xc] sm:$0xff]  }
 0x151   : > { %v10342_v49 = vld [vmem:[#allocation2 + $0x30] sm:$0xff]   ;;  %v5334_v0 = vsel %vm3601_vm6, %v5332_v47, %v5333_v48  ;;  %v10351_v1 = vld [vmem:[#allocation2 + $0x38] ss:$0 sps:$4 sm:$0x11]   ;;  %v3605_v14 = vrot.slane %v10352_v2, 1  ;;  %v3606_v18 = vrot.slane %v10353_v10, 1  ;;  %v2766_v31 = vor.u32 %v2765_v3, %v2761_v54 }
 0x152   : > { %5785 = vrot.lane.b32.xlu1 %v10342_v49, %s10936_s21  ;;  %v10344_v60 = vld [vmem:[#allocation2 + $0x30] sm:$0xff]   ;;  %v1328_v5 = vsel %vm11319_vm11, %v1320_v36, %v1327_v55  ;;  %v1910_v6 = vsel %vm11191_vm3, %v1329_v56, %v1909_v44  ;;  %v1311_v8 = vsel %vm11319_vm11, %v1303_v50, %v1310_v58  ;;  %v1903_v9 = vsel %vm11191_vm3, %v1312_v59, %v1902_v45  ;;  %v10347_v17 = vld [vmem:[#allocation2 + $0x24] sm:$0xff]   ;;  %v10355_v21 = vld [vmem:[#allocation2 + $0x2c] ss:$0 sps:$4 sm:$0x11]   ;;  %v550_v3 = vpop.f32.mrb[13].mxu0 }
 0x153   : > { %v10350_v61 = vld [vmem:[#allocation2 + $0x30] sm:$0xfe]   ;;  %1908 = vst.msk [vmem:[#allocation2 + $0x4c] sm:$0xf] %vm853_vm0, %v1328_v5  ;;  %1911 = vst [vmem:[#allocation2 + $0x50] sm:$0x1] %v1910_v6  ;;  %v3607_v23 = vsel %vm3601_vm6, %v3605_v14, %v3606_v18 }
 0x154   : > { %5428 = vrot.lane.b32.xlu0 %v5334_v0, %s10937_s12  ;;  %v10358_v11 = vld [vmem:[#allocation2 + $0x30] sm:$0xff]   ;;  %1901 = vst.msk [vmem:[#allocation2 + $0x40] sm:$0xf] %vm853_vm0, %v1311_v8  ;;  %1904 = vst [vmem:[#allocation2 + $0x44] sm:$0x1] %v1903_v9  ;;  %v3614_v12 = vrot.slane %v10350_v61, 1 }
 0x155   : > { %v3615_v13 = vrot.slane %v10351_v1, 1  ;;  %v10354_v19 = vld [vmem:[#allocation2 + $0x24] sm:$0xfe]   ;;  %v2785_v20 = vshrl.u32 %v10358_v11, 16  ;;  %v2787_v22 = vshll.u32 %v10358_v11, 16  ;;  %v3612_v27 = vrot.slane %v10355_v21, 1 }
 0x156   : > { %4057 = vrot.lane.b32.xlu1 %v10344_v60, %s10938_s9  ;;  %v3611_v24 = vrot.slane %v10354_v19, 1  ;;  %v10357_v28 = vld [vmem:[#allocation2 + $0x20] ss:$0 sps:$4 sm:$0x11]   ;;  %v6264_v30 = vshll.u32 %v10360_v62, 16  ;;  %v771_v35 = vmax.f32 %v559_v26, 0.0 }
 0x157   : > { %v2789_v29 = vrot.slane %v2787_v22, 1  ;;  %v2768_v32 = vshll.u32 %v10357_v28, 16  ;;  %v10359_v33 = vld [vmem:[#allocation2 + $0x38] ss:$0 sps:$4 sm:$0x11]   ;;  %v3616_v36 = vsel %vm3601_vm6, %v3614_v12, %v3615_v13  ;;  %v10362_v41 = vld [vmem:[#allocation2 + $0x24] sm:$0xff]   ;;  %v551_v13 = vadd.f32 %v11284_v63, %v550_v3 }
 0x158   : > { %3700 = vrot.lane.b32.xlu0 %v3607_v23, %s10936_s21  ;;  %v6266_v34 = vrot.slane %v6264_v30, 1  ;;  %v2792_v39 = vshll.u32 %v10359_v33, 16  ;;  %v10361_v40 = vld [vmem:[#allocation2 + $0x20] ss:$0 sps:$4 sm:$0x11]   ;;  %v9850_v43 = vpack.c.bf16 %v771_v35, %v771_v35  ;;  %v2775_v51 = vshll.u32 %v10362_v41, 16 }
 0x159   : > { %v2770_v37 = vrot.slane %v2768_v32, 1  ;;  %v2790_v42 = vor.u32 %v2789_v29, %v2785_v20  ;;  %v6269_v47 = vshll.u32 %v10361_v40, 16  ;;  %v10363_v48 = vld [vmem:[#allocation2 + $0x2c] ss:$0 sps:$4 sm:$0x11]   ;;  %v3613_v54 = vsel %vm3601_vm6, %v3611_v24, %v3612_v27  ;;  %v10043_v10 = vpop.f32.mrb[14].mxu0 }
 0x15a   : > { %4055 = vrot.lane.b32.xlu1 %v10347_v17, %s10938_s9  ;;  %v2794_v45 = vrot.slane %v2792_v39, 1  ;;  %v6267_v46 = vor.u32 %v6266_v34, %v6262_v25  ;;  %v1348_v49 = vshrl.u32 %v9850_v43, 16  ;;  %v1351_v50 = vshll.u32 %v9850_v43, 16  ;;  %v1919_v56 = vld [vmem:[#allocation2 + $0x60] sm:$0xf]  ;;  %v553_v16 = vpop.f32.mrb[15].mxu0 }
 0x15b   : > { %v2771_v44 = vsel %vm2735_vm7, %v2766_v31, %v2770_v37  ;;  %v6271_v55 = vrot.slane %v6269_v47, 1  ;;  %v2780_v58 = vshll.u32 %v10363_v48, 16  ;;  %v2777_v60 = vrot.slane %v2775_v51, 1  ;;  %v10365_v61 = vld [vmem:[#allocation2 + $0x14] ss:$0 sps:$4 sm:$0x11]  }
 0x15c   : > { %3124 = vrot.lane.b32.xlu0 %v2771_v44, %s10937_s12  ;;  %v11408_v59 = vrot.slane %v1348_v49, 7  ;;  %v2795_v62 = vsel %vm2735_vm7, %v2790_v42, %v2794_v45  ;;  %v2773_v1 = vshrl.u32 %v10362_v41, 16  ;;  %v2751_v2 = vshll.u32 %v10364_v52, 16  ;;  %v10369_v25 = vld [vmem:[#allocation2 + $0x30] sm:$0xfe]   ;;  %v10366_v31 = vld [vmem:[#allocation2 + $0x48] sm:$0xff]  }
 0x15d   : > { %v6272_v0 = vsel %vm2735_vm7, %v6267_v46, %v6271_v55  ;;  %v2782_v6 = vrot.slane %v2780_v58, 1  ;;  %v2749_v8 = vshrl.u32 %v10364_v52, 16  ;;  %v2756_v9 = vshll.u32 %v10365_v61, 16  ;;  %v11421_v26 = vld [vmem:[#allocation2 + $0x30] sm:$0xff]   ;;  %v10367_v34 = vld [vmem:[#allocation2 + $0x24] sm:$0xff]  }
 0x15e   : > { %3706 = vrot.lane.b32.xlu1 %v3616_v36, %s10936_s21  ;;  %v1353_v5 = vor.u32 %v1351_v50, %v11408_v59  ;;  %v2778_v11 = vor.u32 %v2777_v60, %v2773_v1  ;;  %v2753_v12 = vrot.slane %v2751_v2, 1  ;;  %v562_v14 = vadd.f32 %v10043_v10, %v11284_v63  ;;  %v10370_v32 = vld [vmem:[#allocation2 + $0x38] ss:$0 sps:$4 sm:$0x11]   ;;  %v10371_v42 = vld [vmem:[#allocation2 + $0x48] sm:$0xfe]  }
 0x15f   : > { %v1354_v17 = vrot.slane %v11408_v59, 4  ;;  %v2758_v19 = vrot.slane %v2756_v9, 1  ;;  %v554_v20 = vadd.f32 %v11284_v63, %v553_v16  ;;  %v769_v22 = vmax.f32 %v551_v13, 0.0  ;;  %v1912_v43 = vld [vmem:[#allocation2 + $0x54] sm:$0xf] }
 0x160   : > { %6645 = vrot.lane.b32.xlu0 %v6272_v0, %s10938_s9  ;;  %v1920_v18 = vsel %vm11312_vm9, %v1353_v5, %v1919_v56  ;;  %v2754_v21 = vor.u32 %v2753_v12, %v2749_v8  ;;  %v772_v23 = vmax.f32 %v562_v14, 0.0  ;;  %v2783_v27 = vsel %vm2735_vm7, %v2778_v11, %v2782_v6  ;;  %v1923_v44 = vld [vmem:[#allocation2 + $0x68] sm:$0x1]  ;;  %v10372_v48 = vld [vmem:[#allocation2 + $0x50] ss:$0 sps:$4 sm:$0x11]  }
 0x161   : > { %1921 = vst [vmem:[#allocation2 + $0x60] sm:$0xf] %v1920_v18  ;;  %v770_v24 = vmax.f32 %v554_v20, 0.0  ;;  %v9848_v29 = vpack.c.bf16 %v769_v22, %v769_v22  ;;  %v5341_v35 = vrot.slane %v10369_v25, 1  ;;  %v6286_v36 = vshrl.u32 %v11421_v26, 16  ;;  %v10368_v56 = vld [vmem:[#allocation2 + $0x3c] sm:$0xff]  }
 0x162   : > { %3704 = vrot.lane.b32.xlu1 %v3613_v54, %s10936_s21  ;;  %v2759_v28 = vsel %vm2735_vm7, %v2754_v21, %v2758_v19  ;;  %v9851_v30 = vpack.c.bf16 %v772_v23, %v772_v23  ;;  %v5342_v47 = vrot.slane %v10370_v32, 1  ;;  %v1916_v51 = vld [vmem:[#allocation2 + $0x5c] sm:$0x1]  ;;  %v3620_v52 = vrot.slane %v10371_v42, 1  ;;  %v10373_v0 = vld [vmem:[#allocation2 + $0x24] sm:$0xfe]  }
 0x163   : > { %v9849_v33 = vpack.c.bf16 %v770_v24, %v770_v24  ;;  %v1331_v37 = vshrl.u32 %v9848_v29, 16  ;;  %v1334_v39 = vshll.u32 %v9848_v29, 16  ;;  %v6288_v54 = vshll.u32 %v11421_v26, 16  ;;  %v10374_v5 = vld [vmem:[#allocation2 + $0x2c] ss:$0 sps:$4 sm:$0x11]  }
 0x164   : > { %3122 = vrot.lane.b32.xlu0 %v2759_v28, %s10937_s12  ;;  %v1356_v40 = vshrl.u32 %v9851_v30, 16  ;;  %v1359_v41 = vshll.u32 %v9851_v30, 16  ;;  %v3621_v58 = vrot.slane %v10372_v48, 1  ;;  %v5343_v3 = vsel %vm3601_vm6, %v5341_v35, %v5342_v47  ;;  %v10375_v11 = vld [vmem:[#allocation2 + $0x3c] sm:$0xfe]   ;;  %v10379_v12 = vld [vmem:[#allocation2 + $0x48] sm:$0xff]  }
 0x165   : > { %v1339_v45 = vshrl.u32 %v9849_v33, 16  ;;  %v1342_v46 = vshll.u32 %v9849_v33, 16  ;;  %v1333_v49 = vrot.slane %v1331_v37, 7  ;;  %v5338_v10 = vrot.slane %v10373_v0, 1  ;;  %v10046_v30 = vpop.f32.mrb[16].mxu0  ;;  %v10382_v37 = vld [vmem:[#allocation2 + $0x3c] sm:$0xff]  }
 0x166   : > { %3128 = vrot.lane.b32.xlu1 %v2795_v62, %s10937_s12  ;;  %v1358_v50 = vrot.slane %v1356_v40, 7  ;;  %v5339_v16 = vrot.slane %v10374_v5, 1  ;;  %v3617_v18 = vrot.slane %v10375_v11, 1  ;;  %v6290_v19 = vrot.slane %v6288_v54, 1 }
 0x167   : > { %v1341_v55 = vrot.slane %v1339_v45, 7  ;;  %v1336_v59 = vor.u32 %v1334_v39, %v1333_v49  ;;  %v1337_v60 = vrot.slane %v1333_v49, 4  ;;  %v10378_v21 = vld [vmem:[#allocation2 + $0x38] ss:$0 sps:$4 sm:$0x11]   ;;  %v3622_v22 = vsel %vm3601_vm6, %v3620_v52, %v3621_v58  ;;  %v10384_v45 = vld [vmem:[#allocation2 + $0x24] sm:$0xff]  }
 0x168   : > { %5783 = vrot.lane.b32.xlu0 %v10367_v34, %s10936_s21  ;;  %v1361_v61 = vor.u32 %v1359_v41, %v1358_v50  ;;  %v1363_v62 = vrot.slane %v1358_v50, 4  ;;  %v5340_v23 = vsel %vm3601_vm6, %v5338_v10, %v5339_v16  ;;  %v2809_v24 = vshrl.u32 %v10379_v12, 16  ;;  %v10380_v28 = vld [vmem:[#allocation2 + $0x50] ss:$0 sps:$4 sm:$0x11]   ;;  %v10381_v52 = vld [vmem:[#allocation2 + $0x48] sm:$0xff]  }
 0x169   : > { %v1344_v1 = vor.u32 %v1342_v46, %v1341_v55  ;;  %v1346_v2 = vrot.slane %v1341_v55, 4  ;;  %v1913_v6 = vsel %vm11312_vm9, %v1336_v59, %v1912_v43  ;;  %v2811_v25 = vshll.u32 %v10379_v12, 16  ;;  %v10383_v39 = vld [vmem:[#allocation2 + $0x44] ss:$0 sps:$4 sm:$0x11]   ;;  %v566_v46 = vpop.f32.mrb[17].mxu0 }
 0x16a   : > { %3126 = vrot.lane.b32.xlu1 %v2783_v27, %s10937_s12  ;;  %v1362_v8 = vsel %vm11319_vm11, %v1354_v17, %v1361_v61  ;;  %v1924_v9 = vsel %vm11191_vm3, %v1363_v62, %v1923_v44  ;;  %1914 = vst [vmem:[#allocation2 + $0x54] sm:$0xf] %v1913_v6  ;;  %v10376_v17 = vld [vmem:[#allocation2 + $0x44] ss:$0 sps:$4 sm:$0x11]   ;;  %v6291_v26 = vor.u32 %v6290_v19, %v6286_v36  ;;  %v6293_v27 = vshll.u32 %v10378_v21, 16 }
 0x16b   : > { %1922 = vst.msk [vmem:[#allocation2 + $0x64] sm:$0xf] %vm853_vm0, %v1362_v8  ;;  %1925 = vst [vmem:[#allocation2 + $0x68] sm:$0x1] %v1924_v9  ;;  %v1345_v13 = vsel %vm11319_vm11, %v1337_v60, %v1344_v1  ;;  %v1917_v14 = vsel %vm11191_vm3, %v1346_v2, %v1916_v51  ;;  %v3618_v20 = vrot.slane %v10376_v17, 1  ;;  %v2813_v29 = vrot.slane %v2811_v25, 1 }
 0x16c   : > { %5434 = vrot.lane.b32.xlu0 %v5343_v3, %s10937_s12  ;;  %1915 = vst.msk [vmem:[#allocation2 + $0x58] sm:$0xf] %vm853_vm0, %v1345_v13  ;;  %1918 = vst [vmem:[#allocation2 + $0x5c] sm:$0x1] %v1917_v14  ;;  %v2816_v32 = vshll.u32 %v10380_v28, 16  ;;  %v575_v33 = vadd.f32 %v10046_v30, %v11284_v63  ;;  %v2797_v36 = vshrl.u32 %v10382_v37, 16  ;;  %v567_v50 = vadd.f32 %v11284_v63, %v566_v46 }
 0x16d   : > { %v3619_v34 = vsel %vm3601_vm6, %v3617_v18, %v3618_v20  ;;  %v2814_v35 = vor.u32 %v2813_v29, %v2809_v24  ;;  %v2799_v43 = vshll.u32 %v10382_v37, 16  ;;  %v2804_v44 = vshll.u32 %v10383_v39, 16  ;;  %v10385_v49 = vld [vmem:[#allocation2 + $0x2c] ss:$0 sps:$4 sm:$0x11]   ;;  %v10047_v51 = vpop.f32.mrb[18].mxu0 }
 0x16e   : > { %4061 = vrot.lane.b32.xlu1 %v10366_v31, %s10938_s9  ;;  %v6295_v31 = vrot.slane %v6293_v27, 1  ;;  %v2818_v41 = vrot.slane %v2816_v32, 1  ;;  %v775_v42 = vmax.f32 %v575_v33, 0.0  ;;  %v6276_v58 = vshll.u32 %v10384_v45, 16  ;;  %v569_v59 = vpop.f32.mrb[19].mxu0  ;;  %v11463_v20 = vld [vmem:[#allocation2 + $0x48] sm:$0xff]  }
 0x16f   : > { %v2801_v54 = vrot.slane %v2799_v43, 1  ;;  %v2806_v55 = vrot.slane %v2804_v44, 1  ;;  %v6281_v62 = vshll.u32 %v10385_v49, 16  ;;  %v773_v0 = vmax.f32 %v567_v50, 0.0  ;;  %v1933_v1 = vld [vmem:[#allocation2 + $0x78] sm:$0xf] }
 0x170   : > { %5432 = vrot.lane.b32.xlu0 %v5340_v23, %s10937_s12  ;;  %v6296_v40 = vsel %vm2735_vm7, %v6291_v26, %v6295_v31  ;;  %v2819_v47 = vsel %vm2735_vm7, %v2814_v35, %v2818_v41  ;;  %v9854_v48 = vpack.c.bf16 %v775_v42, %v775_v42  ;;  %v6278_v3 = vrot.slane %v6276_v58, 1  ;;  %v10389_v25 = vld [vmem:[#allocation2 + $0x48] sm:$0xfe]   ;;  %v10390_v26 = vld [vmem:[#allocation2 + $0x50] ss:$0 sps:$4 sm:$0x11]  }
 0x171   : > { %v2802_v2 = vor.u32 %v2801_v54, %v2797_v36  ;;  %v578_v5 = vadd.f32 %v10047_v51, %v11284_v63  ;;  %v570_v6 = vadd.f32 %v11284_v63, %v569_v59  ;;  %v6283_v9 = vrot.slane %v6281_v62, 1  ;;  %v1926_v63 = vld [vmem:[#allocation2 + $0x6c] sm:$0xf]  ;;  %v10387_v29 = vld [vmem:[#allocation2 + $0x3c] sm:$0xff]  }
 0x172   : > { %4059 = vrot.lane.b32.xlu1 %v10368_v56, %s10938_s9  ;;  %v6274_v56 = vshrl.u32 %v10384_v45, 16  ;;  %v1382_v60 = vshrl.u32 %v9854_v48, 16  ;;  %v1385_v61 = vshll.u32 %v9854_v48, 16  ;;  %v9852_v10 = vpack.c.bf16 %v773_v0, %v773_v0  ;;  %v10386_v19 = vld [vmem:[#allocation2 + $0x60] sm:$0xff]  }
 0x173   : > { %v2807_v11 = vsel %vm2735_vm7, %v2802_v2, %v2806_v55  ;;  %v776_v13 = vmax.f32 %v578_v5, 0.0  ;;  %v774_v14 = vmax.f32 %v570_v6, 0.0  ;;  %v6310_v30 = vshrl.u32 %v11463_v20, 16  ;;  %v1937_v39 = vld [vmem:[#allocation2 + $0x80] sm:$0x1]  ;;  %v10388_v41 = vld [vmem:[#allocation2 + $0x54] sm:$0xff]  }
 0x174   : > { %6649 = vrot.lane.b32.xlu0 %v6296_v40, %s10938_s9  ;;  %v1384_v8 = vrot.slane %v1382_v60, 7  ;;  %v6279_v12 = vor.u32 %v6278_v3, %v6274_v56  ;;  %v1365_v17 = vshrl.u32 %v9852_v10, 16  ;;  %v1368_v18 = vshll.u32 %v9852_v10, 16  ;;  %v1930_v40 = vld [vmem:[#allocation2 + $0x74] sm:$0x1]  ;;  %v10399_v44 = vld [vmem:[#allocation2 + $0x60] sm:$0xff]  }
 0x175   : > { %v9855_v23 = vpack.c.bf16 %v776_v13, %v776_v13  ;;  %v9853_v24 = vpack.c.bf16 %v774_v14, %v774_v14  ;;  %v5347_v42 = vrot.slane %v10389_v25, 1  ;;  %v5348_v36 = vrot.slane %v10390_v26, 1  ;;  %v10391_v43 = vld [vmem:[#allocation2 + $0x60] sm:$0xfe]   ;;  %v10395_v3 = vld [vmem:[#allocation2 + $0x54] sm:$0xfe]  }
 0x176   : > { %3710 = vrot.lane.b32.xlu1 %v3622_v22, %s10936_s21  ;;  %v1387_v16 = vor.u32 %v1385_v61, %v1384_v8  ;;  %v1388_v21 = vrot.slane %v1384_v8, 4  ;;  %v6284_v22 = vsel %vm2735_vm7, %v6279_v12, %v6283_v9  ;;  %v1367_v28 = vrot.slane %v1365_v17, 7  ;;  %v10393_v58 = vld [vmem:[#allocation2 + $0x3c] sm:$0xfe]  }
 0x177   : > { %v1390_v31 = vshrl.u32 %v9855_v23, 16  ;;  %v1393_v32 = vshll.u32 %v9855_v23, 16  ;;  %v1373_v33 = vshrl.u32 %v9853_v24, 16  ;;  %v6312_v48 = vshll.u32 %v11463_v20, 16  ;;  %v10401_v10 = vld [vmem:[#allocation2 + $0x3c] sm:$0xff]  }
 0x178   : > { %5789 = vrot.lane.b32.xlu0 %v10381_v52, %s10936_s21  ;;  %v1934_v27 = vsel %vm11312_vm9, %v1387_v16, %v1933_v1  ;;  %v1370_v35 = vor.u32 %v1368_v18, %v1367_v28  ;;  %v1371_v37 = vrot.slane %v1367_v28, 4  ;;  %v3626_v50 = vrot.slane %v10391_v43, 1  ;;  %v10394_v61 = vld [vmem:[#allocation2 + $0x44] ss:$0 sps:$4 sm:$0x11]   ;;  %v10050_v28 = vpop.f32.mrb[20].mxu0 }
 0x179   : > { %1935 = vst [vmem:[#allocation2 + $0x78] sm:$0xf] %v1934_v27  ;;  %v1392_v45 = vrot.slane %v1390_v31, 7  ;;  %v1375_v46 = vrot.slane %v1373_v33, 7  ;;  %v2833_v51 = vshrl.u32 %v10399_v44, 16  ;;  %v5349_v59 = vsel %vm3601_vm6, %v5347_v42, %v5348_v36 }
 0x17a   : > { %3708 = vrot.lane.b32.xlu1 %v3619_v34, %s10936_s21  ;;  %v1376_v34 = vshll.u32 %v9853_v24, 16  ;;  %v1927_v49 = vsel %vm11312_vm9, %v1370_v35, %v1926_v63  ;;  %v5344_v5 = vrot.slane %v10393_v58, 1  ;;  %v5345_v6 = vrot.slane %v10394_v61, 1  ;;  %v10396_v8 = vld [vmem:[#allocation2 + $0x5c] ss:$0 sps:$4 sm:$0x11]  }
 0x17b   : > { %1928 = vst [vmem:[#allocation2 + $0x6c] sm:$0xf] %v1927_v49  ;;  %v1395_v52 = vor.u32 %v1393_v32, %v1392_v45  ;;  %v1397_v54 = vrot.slane %v1392_v45, 4  ;;  %v1380_v56 = vrot.slane %v1375_v46, 4  ;;  %v6314_v9 = vrot.slane %v6312_v48, 1 }
 0x17c   : > { %6647 = vrot.lane.b32.xlu0 %v6284_v22, %s10938_s9  ;;  %v1378_v55 = vor.u32 %v1376_v34, %v1375_v46  ;;  %v3623_v12 = vrot.slane %v10395_v3, 1  ;;  %v2835_v13 = vshll.u32 %v10399_v44, 16  ;;  %v3624_v14 = vrot.slane %v10396_v8, 1  ;;  %v10398_v16 = vld [vmem:[#allocation2 + $0x50] ss:$0 sps:$4 sm:$0x11]  }
 0x17d   : > { %v1396_v62 = vsel %vm11319_vm11, %v1388_v21, %v1395_v52  ;;  %v1938_v0 = vsel %vm11191_vm3, %v1397_v54, %v1937_v39  ;;  %v1931_v2 = vsel %vm11191_vm3, %v1380_v56, %v1930_v40  ;;  %v5346_v17 = vsel %vm3601_vm6, %v5344_v5, %v5345_v6  ;;  %v10400_v20 = vld [vmem:[#allocation2 + $0x68] ss:$0 sps:$4 sm:$0x11]   ;;  %v10402_v26 = vld [vmem:[#allocation2 + $0x44] ss:$0 sps:$4 sm:$0x11]  }
 0x17e   : > { %3132 = vrot.lane.b32.xlu1 %v2819_v47, %s10937_s12  ;;  %v10392_v47 = vld [vmem:[#allocation2 + $0x68] ss:$0 sps:$4 sm:$0x11]   ;;  %v1379_v1 = vsel %vm11319_vm11, %v1371_v37, %v1378_v55  ;;  %1936 = vst.msk [vmem:[#allocation2 + $0x7c] sm:$0xf] %vm853_vm0, %v1396_v62  ;;  %v6315_v18 = vor.u32 %v6314_v9, %v6310_v30  ;;  %v2837_v21 = vrot.slane %v2835_v13, 1  ;;  %v3625_v63 = vsel %vm3601_vm6, %v3623_v12, %v3624_v14 }
 0x17f   : > { %v3627_v60 = vrot.slane %v10392_v47, 1  ;;  %1939 = vst [vmem:[#allocation2 + $0x80] sm:$0x1] %v1938_v0  ;;  %1929 = vst.msk [vmem:[#allocation2 + $0x70] sm:$0xf] %vm853_vm0, %v1379_v1  ;;  %v6298_v22 = vshrl.u32 %v10401_v10, 16 }
 0x180   : > { %5787 = vrot.lane.b32.xlu0 %v10387_v29, %s10936_s21  ;;  %1932 = vst [vmem:[#allocation2 + $0x74] sm:$0x1] %v1931_v2  ;;  %v2838_v24 = vor.u32 %v2837_v21, %v2833_v51  ;;  %v2840_v25 = vshll.u32 %v10400_v20, 16  ;;  %v6300_v27 = vshll.u32 %v10401_v10, 16  ;;  %v10403_v29 = vld [vmem:[#allocation2 + $0x54] sm:$0xff]   ;;  %v6305_v30 = vshll.u32 %v10402_v26, 16 }
 0x181   : > { %v11499_v34 = vld [vmem:[%s13567_s2] ss:$0 sm:$0xff]  ;;  %v10404_v37 = vld [vmem:[#allocation2 + $0x5c] ss:$0 sps:$4 sm:$0x11]   ;;  %v2821_v39 = vshrl.u32 %v10403_v29, 16 }
 0x182   : > { %3130 = vrot.lane.b32.xlu1 %v2807_v11, %s10937_s12  ;;  %v3628_v11 = vsel %vm3601_vm6, %v3626_v50, %v3627_v60  ;;  %v2842_v32 = vrot.slane %v2840_v25, 1  ;;  %v6302_v33 = vrot.slane %v6300_v27, 1  ;;  %v591_v35 = vadd.f32 %v11499_v34, %v10050_v28  ;;  %v1947_v6 = vld [vmem:[#allocation2 + $0x90] sm:$0xf]  ;;  %v1940_v13 = vld [vmem:[#allocation2 + $0x84] sm:$0xf] }
 0x183   : > { %v2823_v40 = vshll.u32 %v10403_v29, 16  ;;  %v6307_v43 = vrot.slane %v6305_v30, 1  ;;  %v2828_v48 = vshll.u32 %v10404_v37, 16  ;;  %v1944_v25 = vld [vmem:[#allocation2 + $0x8c] sm:$0x1]  ;;  %v10407_v26 = vld [vmem:[#allocation2 + $0x54] sm:$0xff]  }
 0x184   : > { %5438 = vrot.lane.b32.xlu0 %v5349_v59, %s10937_s12  ;;  %v2843_v42 = vsel %vm2735_vm7, %v2838_v24, %v2842_v32  ;;  %v6303_v36 = vor.u32 %v6302_v33, %v6298_v22  ;;  %v779_v46 = vmax.f32 %v591_v35, 0.0  ;;  %v10405_v59 = vld [vmem:[#allocation2 + $0x60] sm:$0xff]  }
 0x185   : > { %v2825_v47 = vrot.slane %v2823_v40, 1  ;;  %v2830_v58 = vrot.slane %v2828_v48, 1  ;;  %v10406_v0 = vld [vmem:[#allocation2 + $0x78] sm:$0xff]  }
 0x186   : > { %4065 = vrot.lane.b32.xlu1 %v10386_v19, %s10938_s9  ;;  %v6317_v19 = vshll.u32 %v10398_v16, 16  ;;  %v6308_v51 = vsel %vm2735_vm7, %v6303_v36, %v6307_v43  ;;  %v9858_v55 = vpack.c.bf16 %v779_v46, %v779_v46  ;;  %v10408_v32 = vld [vmem:[#allocation2 + $0x6c] sm:$0xff]   ;;  %v10412_v33 = vld [vmem:[#allocation2 + $0x78] sm:$0xfe]   ;;  %v10419_v43 = vld [vmem:[#allocation2 + $0x60] sm:$0xff]  }
 0x187   : > { %v2826_v56 = vor.u32 %v2825_v47, %v2821_v39  ;;  %v10413_v39 = vld [vmem:[#allocation2 + $0x80] ss:$0 sps:$4 sm:$0x11]   ;;  %v3632_v36 = vrot.slane %v10412_v33, 1  ;;  %v10414_v47 = vld [vmem:[#allocation2 + $0x54] sm:$0xfe]  }
 0x188   : > { %5436 = vrot.lane.b32.xlu0 %v5346_v17, %s10937_s12  ;;  %v6319_v23 = vrot.slane %v6317_v19, 1  ;;  %v1416_v1 = vshrl.u32 %v9858_v55, 16  ;;  %v1419_v2 = vshll.u32 %v9858_v55, 16  ;;  %v10410_v17 = vld [vmem:[#allocation2 + $0x68] ss:$0 sps:$4 sm:$0x11]  }
 0x189   : > { %v2831_v3 = vsel %vm2735_vm7, %v2826_v56, %v2830_v58  ;;  %v1951_v19 = vld [vmem:[#allocation2 + $0x98] sm:$0x1]  ;;  %v5354_v27 = vrot.slane %v10410_v17, 1  ;;  %v3633_v46 = vrot.slane %v10413_v39, 1  ;;  %v5350_v55 = vrot.slane %v10414_v47, 1 }
 0x18a   : > { %4063 = vrot.lane.b32.xlu1 %v10388_v41, %s10938_s9  ;;  %v6320_v31 = vsel %vm2735_vm7, %v6315_v18, %v6319_v23  ;;  %v582_v41 = vpop.f32.mrb[21].mxu0  ;;  %v1418_v12 = vrot.slane %v1416_v1, 7  ;;  %v10415_v48 = vld [vmem:[#allocation2 + $0x5c] ss:$0 sps:$4 sm:$0x11]  }
 0x18b   : > { %v583_v44 = vadd.f32 %v11499_v34, %v582_v41  ;;  %v10051_v45 = vpop.f32.mrb[22].mxu0  ;;  %v5351_v56 = vrot.slane %v10415_v48, 1  ;;  %v10417_v58 = vld [vmem:[#allocation2 + $0x6c] sm:$0xfe]  }
 0x18c   : > { %6653 = vrot.lane.b32.xlu0 %v6320_v31, %s10938_s9  ;;  %v594_v49 = vadd.f32 %v11499_v34, %v10051_v45  ;;  %v585_v50 = vpop.f32.mrb[23].mxu0  ;;  %v1422_v23 = vrot.slane %v1418_v12, 4  ;;  %v1009_v48 = vld [vmem:[#allocation2 + $0xb0] sm:$0x1] }
 0x18d   : > { %v777_v52 = vmax.f32 %v583_v44, 0.0  ;;  %v586_v54 = vadd.f32 %v11499_v34, %v585_v50  ;;  %v5352_v1 = vsel %vm3601_vm6, %v5350_v55, %v5351_v56  ;;  %v10429_v56 = vld [vmem:[#allocation2 + $0x78] sm:$0xff]  }
 0x18e   : > { %3714 = vrot.lane.b32.xlu1 %v3628_v11, %s10936_s21  ;;  %v780_v60 = vmax.f32 %v594_v49, 0.0  ;;  %v10409_v11 = vld [vmem:[#allocation2 + $0x60] sm:$0xfe]  }
 0x18f   : > { %v9856_v61 = vpack.c.bf16 %v777_v52, %v777_v52  ;;  %v778_v62 = vmax.f32 %v586_v54, 0.0  ;;  %v5353_v22 = vrot.slane %v10409_v11, 1  ;;  %v11529_v52 = vpop.permute.xlu1 %5811  ;;  %v10422_v54 = vld [vmem:[#allocation2 + $0x78] sm:$0xff]  }
 0x190   : > { %6651 = vrot.lane.b32.xlu0 %v6308_v51, %s10938_s9  ;;  %v9859_v5 = vpack.c.bf16 %v780_v60, %v780_v60  ;;  %v6334_v60 = vshrl.u32 %v10419_v43, 16  ;;  %v10424_v11 = vld [vmem:[#allocation2 + $0x54] sm:$0xff]  }
 0x191   : > { %v1399_v8 = vshrl.u32 %v9856_v61, 16  ;;  %v1402_v9 = vshll.u32 %v9856_v61, 16  ;;  %v9857_v10 = vpack.c.bf16 %v778_v62, %v778_v62  ;;  %v5355_v51 = vsel %vm3601_vm6, %v5353_v22, %v5354_v27 }
 0x192   : > { %3712 = vrot.lane.b32.xlu1 %v3625_v63, %s10936_s21  ;;  %v1424_v14 = vshrl.u32 %v9859_v5, 16  ;;  %v1427_v16 = vshll.u32 %v9859_v5, 16  ;;  %v1421_v63 = vor.u32 %v1419_v2, %v1418_v12  ;;  %v3634_v61 = vsel %vm3601_vm6, %v3632_v36, %v3633_v46 }
 0x193   : > { %v1401_v18 = vrot.slane %v1399_v8, 7  ;;  %v1407_v20 = vshrl.u32 %v9857_v10, 16  ;;  %v1410_v21 = vshll.u32 %v9857_v10, 16  ;;  %v3629_v62 = vrot.slane %v10417_v58, 1  ;;  %v11537_v12 = vpop.permute.xlu1 %3730 }
 0x194   : > { %5793 = vrot.lane.b32.xlu0 %v10405_v59, %s10936_s21  ;;  %v1426_v24 = vrot.slane %v1424_v14, 7  ;;  %v1948_v30 = vsel %vm11312_vm9, %v1421_v63, %v1947_v6  ;;  %v10418_v59 = vld [vmem:[#allocation2 + $0x74] ss:$0 sps:$4 sm:$0x11]   ;;  %v2859_v10 = vshll.u32 %v10422_v54, 16  ;;  %v10054_v63 = vpop.f32.mrb[24].mxu0 }
 0x195   : > { %v1404_v28 = vor.u32 %v1402_v9, %v1401_v18  ;;  %v1405_v29 = vrot.slane %v1401_v18, 4  ;;  %v1409_v31 = vrot.slane %v1407_v20, 7  ;;  %1949 = vst [vmem:[#allocation2 + $0x90] sm:$0xf] %v1948_v30  ;;  %v3630_v2 = vrot.slane %v10418_v59, 1 }
 0x196   : > { %3136 = vrot.lane.b32.xlu1 %v2843_v42, %s10937_s12  ;;  %v1429_v35 = vor.u32 %v1427_v16, %v1426_v24  ;;  %v1431_v37 = vrot.slane %v1426_v24, 4  ;;  %v10423_v6 = vld [vmem:[#allocation2 + $0x80] ss:$0 sps:$4 sm:$0x11]   ;;  %v2857_v9 = vshrl.u32 %v10422_v54, 16  ;;  %v2861_v18 = vrot.slane %v2859_v10, 1 }
 0x197   : > { %v1941_v40 = vsel %vm11312_vm9, %v1404_v28, %v1940_v13  ;;  %v1412_v41 = vor.u32 %v1410_v21, %v1409_v31  ;;  %v1414_v42 = vrot.slane %v1409_v31, 4  ;;  %v3631_v13 = vsel %vm3601_vm6, %v3629_v62, %v3630_v2  ;;  %v10428_v31 = vld [vmem:[#allocation2 + $0x74] ss:$0 sps:$4 sm:$0x11]   ;;  %v11547_v39 = vpop.permute.xlu1 %6675 }
 0x198   : > { %5791 = vrot.lane.b32.xlu0 %v10407_v26, %s10936_s21  ;;  %1942 = vst [vmem:[#allocation2 + $0x84] sm:$0xf] %v1941_v40  ;;  %v1430_v44 = vsel %vm11319_vm11, %v1422_v23, %v1429_v35  ;;  %v1952_v45 = vsel %vm11191_vm3, %v1431_v37, %v1951_v19  ;;  %v2864_v16 = vshll.u32 %v10423_v6, 16  ;;  %v10425_v19 = vld [vmem:[#allocation2 + $0x5c] ss:$0 sps:$4 sm:$0x11]   ;;  %v607_v28 = vadd.f32 %v11499_v34, %v10054_v63 }
 0x199   : > { %1950 = vst.msk [vmem:[#allocation2 + $0x94] sm:$0xf] %vm853_vm0, %v1430_v44  ;;  %1953 = vst [vmem:[#allocation2 + $0x98] sm:$0x1] %v1952_v45  ;;  %v1413_v49 = vsel %vm11319_vm11, %v1405_v29, %v1412_v41  ;;  %v1945_v50 = vsel %vm11191_vm3, %v1414_v42, %v1944_v25  ;;  %v6322_v20 = vshrl.u32 %v10424_v11, 16  ;;  %v6324_v21 = vshll.u32 %v10424_v11, 16 }
 0x19a   : > { %3134 = vrot.lane.b32.xlu1 %v2831_v3, %s10937_s12  ;;  %1943 = vst.msk [vmem:[#allocation2 + $0x88] sm:$0xf] %vm853_vm0, %v1413_v49  ;;  %1946 = vst [vmem:[#allocation2 + $0x8c] sm:$0x1] %v1945_v50  ;;  %v6336_v3 = vshll.u32 %v10419_v43, 16  ;;  %v2866_v22 = vrot.slane %v2864_v16, 1  ;;  %v2862_v25 = vor.u32 %v2861_v18, %v2857_v9 }
 0x19b   : > { %v908_v23 = vld [vmem:[#allocation2 + $0x9c] sm:$0x1]  ;;  %v6326_v26 = vrot.slane %v6324_v21, 1  ;;  %v6329_v27 = vshll.u32 %v10425_v19, 16  ;;  %v10427_v29 = vld [vmem:[#allocation2 + $0x6c] sm:$0xff]   ;;  %v598_v35 = vpop.f32.mrb[25].mxu0  ;;  %v3153_v10 = vpop.permute.xlu1 %3152 }
 0x19c   : > { %5442 = vrot.lane.b32.xlu0 %v5355_v51, %s10937_s12  ;;  %v6338_v8 = vrot.slane %v6336_v3, 1  ;;  %v909_v37 = vsel %vm11191_vm3, 0, %v908_v23  ;;  %v783_v40 = vmax.f32 %v607_v28, 0.0  ;;  %v2845_v41 = vshrl.u32 %v10427_v29, 16  ;;  %v10431_v43 = vld [vmem:[%s13568_s3 + $0x20] sm:$0xff]   ;;  %v10055_v44 = vpop.f32.mrb[26].mxu0 }
 0x19d   : > { %v6327_v33 = vor.u32 %v6326_v26, %v6322_v20  ;;  %v6331_v30 = vrot.slane %v6329_v27, 1  ;;  %v2847_v42 = vshll.u32 %v10427_v29, 16  ;;  %v2852_v36 = vshll.u32 %v10428_v31, 16  ;;  %910 = vst [vmem:[#allocation2 + $0x9c] sm:$0x1] %v909_v37  ;;  %v601_v49 = vpop.f32.mrb[27].mxu0  ;;  %7637 = vmatpush1.bf16.msra.mxu0 %v10431_v43  ;;  %10252 = vmatpush1.bf16.msra.mxu1 %v10431_v43 }
 0x19e   : > { %4069 = vrot.lane.b32.xlu1 %v10406_v0, %s10938_s9  ;;  %v10420_v0 = vld [vmem:[#allocation2 + $0x68] ss:$0 sps:$4 sm:$0x11]   ;;  %v6339_v17 = vor.u32 %v6338_v8, %v6334_v60  ;;  %v599_v46 = vadd.f32 %v11499_v34, %v598_v35  ;;  %v610_v47 = vadd.f32 %v11499_v34, %v10055_v44  ;;  %v1006_v50 = vld [vmem:[#allocation2 + $0xa4] sm:$0x1]  ;;  %v9862_v51 = vpack.c.bf16 %v783_v40, %v783_v40  ;;  %v10435_v11 = vld [vmem:[#allocation2 + $0xd8] sm:$0xff]  }
 0x19f   : > { %v6341_v5 = vshll.u32 %v10420_v0, 16  ;;  %v6332_v45 = vsel %vm2735_vm7, %v6327_v33, %v6331_v30  ;;  %v2849_v54 = vrot.slane %v2847_v42, 1  ;;  %v2854_v55 = vrot.slane %v2852_v36, 1  ;;  %7638 = vmatprep.subr.bf16.mxu0 %v10935_v4  ;;  %v10434_v0 = vld [vmem:[%s13568_s3 + $0x28] sm:$0xff]   ;;  %10237 = vmatprep.subr.bf16.mxu1 %v10935_v4  ;;  %2367 = vst.msk [vmem:[#allocation3 + $0x180] sm:$0xff] %vm2350_vm10, %v10435_v11  ;;  %v10439_v27 = vld [vmem:[%s13568_s3 + $0x30] sm:$0xff]  }
 0x1a0   : > { %5440 = vrot.lane.b32.xlu0 %v5352_v1, %s10937_s12  ;;  %v1010_v58 = vsel %vm11203_vm5, 0, %v1009_v48  ;;  %v781_v59 = vmax.f32 %v599_v46, 0.0  ;;  %v784_v60 = vmax.f32 %v610_v47, 0.0  ;;  %v1007_v62 = vsel %vm11203_vm5, 0, %v1006_v50  ;;  %v10432_v21 = vld [vmem:[#allocation2 + $0x90] sm:$0xff]   ;;  %3233 = vst.msk [vmem:[#allocation3 + $0x180] sm:$0xff] %vm3216_vm12, %v3153_v10 }
 0x1a1   : > { %v6343_v14 = vrot.slane %v6341_v5, 1  ;;  %1011 = vst [vmem:[#allocation2 + $0xb0] sm:$0x1] %v1010_v58  ;;  %v1450_v1 = vshrl.u32 %v9862_v51, 16  ;;  %v1453_v2 = vshll.u32 %v9862_v51, 16  ;;  %v2850_v3 = vor.u32 %v2849_v54, %v2845_v41  ;;  %7639 = vmatpush1.bf16.msra.mxu0 %v10434_v0  ;;  %10253 = vmatpush1.bf16.msra.mxu1 %v10434_v0  ;;  %v11587_v42 = vld [vmem:[#allocation2 + $0x78] sm:$0xff]  }
 0x1a2   : > { %4067 = vrot.lane.b32.xlu1 %v10408_v32, %s10938_s9  ;;  %v2867_v32 = vsel %vm2735_vm7, %v2862_v25, %v2866_v22  ;;  %1008 = vst [vmem:[#allocation2 + $0xa4] sm:$0x1] %v1007_v62  ;;  %v1961_v5 = vld [vmem:[#allocation2 + $0xa8] sm:$0xf]  ;;  %v9860_v6 = vpack.c.bf16 %v781_v59, %v781_v59  ;;  %v9863_v8 = vpack.c.bf16 %v784_v60, %v784_v60  ;;  %v10433_v22 = vld [vmem:[#allocation2 + $0x6c] sm:$0xff]   ;;  %v6358_v59 = vshrl.u32 %v11587_v42, 16 }
 0x1a3   : > { %v6344_v24 = vsel %vm2735_vm7, %v6339_v17, %v6343_v14  ;;  %v1452_v14 = vrot.slane %v1450_v1, 7  ;;  %v2855_v16 = vsel %vm2735_vm7, %v2850_v3, %v2854_v55  ;;  %7640 = vmatprep.subr.bf16.mxu0 %v10935_v4  ;;  %v10437_v26 = vld [vmem:[#allocation2 + $0x78] sm:$0xfe]   ;;  %v10438_v31 = vld [vmem:[#allocation2 + $0x80] ss:$0 sps:$4 sm:$0x11]   ;;  %10238 = vmatprep.subr.bf16.mxu1 %v10935_v4 }
 0x1a4   : > { %6657 = vrot.lane.b32.xlu0 %v6344_v24, %s10938_s9  ;;  %v1433_v17 = vshrl.u32 %v9860_v6, 16  ;;  %v1436_v18 = vshll.u32 %v9860_v6, 16  ;;  %v1458_v19 = vshrl.u32 %v9863_v8, 16  ;;  %v1461_v20 = vshll.u32 %v9863_v8, 16  ;;  %v1954_v24 = vld [vmem:[#allocation2 + $0x9c] sm:$0xf] }
 0x1a5   : > { %v1455_v63 = vor.u32 %v1453_v2, %v1452_v14  ;;  %v1456_v23 = vrot.slane %v1452_v14, 4  ;;  %v5359_v41 = vrot.slane %v10437_v26, 1  ;;  %7641 = vmatpush1.bf16.msra.mxu0 %v10439_v27  ;;  %v10436_v47 = vld [vmem:[#allocation2 + $0x84] sm:$0xff]   ;;  %10254 = vmatpush1.bf16.msra.mxu1 %v10439_v27  ;;  %v10440_v55 = vld [vmem:[#allocation2 + $0x90] sm:$0xfe]   ;;  %v6360_v1 = vshll.u32 %v11587_v42, 16 }
 0x1a6   : > { %3718 = vrot.lane.b32.xlu1 %v3634_v61, %s10936_s21  ;;  %v602_v61 = vadd.f32 %v11499_v34, %v601_v49  ;;  %v1435_v28 = vrot.slane %v1433_v17, 7  ;;  %v1460_v29 = vrot.slane %v1458_v19, 7  ;;  %7642 = vmatprep.subr.bf16.mxu0 %v10935_v4  ;;  %v5360_v49 = vrot.slane %v10438_v31, 1  ;;  %v10449_v14 = vld [vmem:[%s13568_s3 + $0x40] sm:$0xff]   ;;  %3811 = vst.msk [vmem:[#allocation3 + $0x180] sm:$0xff] %vm3794_vm13, %v11537_v12 }
 0x1a7   : > { %v1962_v30 = vsel %vm11312_vm9, %v1455_v63, %v1961_v5  ;;  %10239 = vmatprep.subr.bf16.mxu1 %v10935_v4  ;;  %v3638_v2 = vrot.slane %v10440_v55, 1  ;;  %v10442_v5 = vld [vmem:[#allocation2 + $0x6c] sm:$0xfe]   ;;  %v6362_v10 = vrot.slane %v6360_v1, 1  ;;  %v10445_v19 = vld [vmem:[#allocation2 + $0x84] sm:$0xfe]  }
 0x1a8   : > { %6655 = vrot.lane.b32.xlu0 %v6332_v45, %s10938_s9  ;;  %v782_v9 = vmax.f32 %v602_v61, 0.0  ;;  %v1965_v35 = vld [vmem:[#allocation2 + $0xb0] sm:$0x1]  ;;  %1963 = vst [vmem:[#allocation2 + $0xa8] sm:$0xf] %v1962_v30  ;;  %v1438_v36 = vor.u32 %v1436_v18, %v1435_v28  ;;  %v1439_v43 = vrot.slane %v1435_v28, 4  ;;  %v1463_v44 = vor.u32 %v1461_v20, %v1460_v29 }
 0x1a9   : > { %v1465_v45 = vrot.slane %v1460_v29, 4  ;;  %v1958_v46 = vld [vmem:[#allocation2 + $0xa4] sm:$0x1]  ;;  %v5361_v0 = vsel %vm3601_vm6, %v5359_v41, %v5360_v49  ;;  %v5356_v11 = vrot.slane %v10442_v5, 1  ;;  %v3635_v63 = vrot.slane %v10445_v19, 1 }
 0x1aa   : > { %3716 = vrot.lane.b32.xlu1 %v3631_v13, %s10936_s21  ;;  %v9861_v25 = vpack.c.bf16 %v782_v9, %v782_v9  ;;  %v1955_v50 = vsel %vm11312_vm9, %v1438_v36, %v1954_v24  ;;  %v1464_v51 = vsel %vm11319_vm11, %v1456_v23, %v1463_v44  ;;  %v10443_v9 = vld [vmem:[#allocation2 + $0x74] ss:$0 sps:$4 sm:$0x11]   ;;  %v10446_v20 = vld [vmem:[#allocation2 + $0x8c] ss:$0 sps:$4 sm:$0x11]   ;;  %v6363_v28 = vor.u32 %v6362_v10, %v6358_v59 }
 0x1ab   : > { %v1966_v54 = vsel %vm11191_vm3, %v1465_v45, %v1965_v35  ;;  %1956 = vst [vmem:[#allocation2 + $0x9c] sm:$0xf] %v1955_v50  ;;  %1964 = vst.msk [vmem:[#allocation2 + $0xac] sm:$0xf] %vm853_vm0, %v1464_v51  ;;  %v5357_v18 = vrot.slane %v10443_v9, 1  ;;  %v3636_v23 = vrot.slane %v10446_v20, 1 }
 0x1ac   : > { %5797 = vrot.lane.b32.xlu0 %v10429_v56, %s10936_s21  ;;  %v1441_v37 = vshrl.u32 %v9861_v25, 16  ;;  %v1444_v40 = vshll.u32 %v9861_v25, 16  ;;  %v10441_v56 = vld [vmem:[#allocation2 + $0x98] ss:$0 sps:$4 sm:$0x11]   ;;  %v10450_v25 = vld [vmem:[#allocation2 + $0x90] sm:$0xff]  }
 0x1ad   : > { %1967 = vst [vmem:[#allocation2 + $0xb0] sm:$0x1] %v1966_v54  ;;  %v3639_v3 = vrot.slane %v10441_v56, 1  ;;  %v10448_v24 = vld [vmem:[#allocation2 + $0x80] ss:$0 sps:$4 sm:$0x11]   ;;  %v3637_v27 = vsel %vm3601_vm6, %v3635_v63, %v3636_v23 }
 0x1ae   : > { %3140 = vrot.lane.b32.xlu1 %v2867_v32, %s10937_s12  ;;  %v10444_v32 = vld [vmem:[%s13568_s3 + $0x38] sm:$0xff]   ;;  %v1443_v48 = vrot.slane %v1441_v37, 7  ;;  %v6365_v29 = vshll.u32 %v10448_v24, 16  ;;  %v2883_v57 = vshll.u32 %v10450_v25, 16  ;;  %v10452_v37 = vld [vmem:[#allocation2 + $0x6c] sm:$0xff]   ;;  %v10058_v56 = vpop.f32.mrb[28].mxu0 }
 0x1af   : > { %7643 = vmatpush1.bf16.msra.mxu0 %v10444_v32  ;;  %10255 = vmatpush1.bf16.msra.mxu1 %v10444_v32  ;;  %v3640_v17 = vsel %vm3601_vm6, %v3638_v2, %v3639_v3  ;;  %v10451_v31 = vld [vmem:[#allocation2 + $0x98] ss:$0 sps:$4 sm:$0x11]   ;;  %v2881_v32 = vshrl.u32 %v10450_v25, 16  ;;  %v6346_v44 = vshrl.u32 %v10452_v37, 16  ;;  %v6348_v45 = vshll.u32 %v10452_v37, 16 }
 0x1b0   : > { %5795 = vrot.lane.b32.xlu0 %v10433_v22, %s10936_s21  ;;  %v1446_v61 = vor.u32 %v1444_v40, %v1443_v48  ;;  %v1448_v62 = vrot.slane %v1443_v48, 4  ;;  %7644 = vmatprep.subr.bf16.mxu0 %v10935_v4  ;;  %v5358_v22 = vsel %vm3601_vm6, %v5356_v11, %v5357_v18  ;;  %v6367_v35 = vrot.slane %v6365_v29, 1  ;;  %v10454_v40 = vld [vmem:[%s13568_s3 + $0x48] sm:$0xff]   ;;  %v10453_v42 = vld [vmem:[#allocation2 + $0x74] ss:$0 sps:$4 sm:$0x11]  }
 0x1b1   : > { %10240 = vmatprep.subr.bf16.mxu1 %v10935_v4  ;;  %v2888_v12 = vshll.u32 %v10451_v31, 16  ;;  %v2885_v41 = vrot.slane %v2883_v57, 1  ;;  %v6353_v48 = vshll.u32 %v10453_v42, 16  ;;  %v10456_v49 = vld [vmem:[#allocation2 + $0x20] ss:$0 sps:$4 sm:$0x11]  }
 0x1b2   : > { %3138 = vrot.lane.b32.xlu1 %v2855_v16, %s10937_s12  ;;  %v1447_v6 = vsel %vm11319_vm11, %v1439_v43, %v1446_v61  ;;  %v1959_v8 = vsel %vm11191_vm3, %v1448_v62, %v1958_v46  ;;  %v6368_v36 = vsel %vm2735_vm7, %v6363_v28, %v6367_v35  ;;  %v10455_v46 = vld [vmem:[#allocation2 + $0x18] sm:$0xff]   ;;  %v6350_v54 = vrot.slane %v6348_v45, 1  ;;  %v917_v59 = vld [vmem:[#allocation2 + $0xc0] sm:$0x1]  ;;  %v614_v11 = vpop.f32.mrb[29].mxu0  ;;  %v10459_v23 = vld [vmem:[#allocation2 + $0x90] sm:$0xff]  }
 0x1b3   : > { %1957 = vst.msk [vmem:[#allocation2 + $0xa0] sm:$0xf] %vm853_vm0, %v1447_v6  ;;  %1960 = vst [vmem:[#allocation2 + $0xa4] sm:$0x1] %v1959_v8  ;;  %7645 = vmatpush1.bf16.msra.mxu0 %v10449_v14  ;;  %10256 = vmatpush1.bf16.msra.mxu1 %v10449_v14  ;;  %v2890_v43 = vrot.slane %v2888_v12, 1  ;;  %v4547_v55 = vshll.u32 %v10455_v46, 16  ;;  %v615_v24 = vadd.f32 %v11499_v34, %v614_v11 }
 0x1b4   : > { %5446 = vrot.lane.b32.xlu0 %v5361_v0, %s10937_s12  ;;  %7646 = vmatprep.subr.bf16.mxu0 %v10935_v4  ;;  %v6355_v61 = vrot.slane %v6353_v48, 1  ;;  %v4552_v62 = vshll.u32 %v10456_v49, 16  ;;  %v623_v0 = vadd.f32 %v11499_v34, %v10058_v56  ;;  %v6351_v1 = vor.u32 %v6350_v54, %v6346_v44  ;;  %v10457_v6 = vld [vmem:[#allocation2 + $0x84] sm:$0xff]   ;;  %v10458_v10 = vld [vmem:[#allocation2 + $0x8c] ss:$0 sps:$4 sm:$0x11]  }
 0x1b5   : > { %10241 = vmatprep.subr.bf16.mxu1 %v10935_v4  ;;  %v4545_v2 = vshrl.u32 %v10455_v46, 16  ;;  %v4549_v3 = vrot.slane %v4547_v55, 1  ;;  %v918_v5 = vsel %vm11191_vm3, 0, %v917_v59  ;;  %v2869_v19 = vshrl.u32 %v10457_v6, 16  ;;  %v914_v25 = vld [vmem:[#allocation2 + $0xb4] sm:$0x1] }
 0x1b6   : > { %v11567_v13 = vpop.permute.xlu0 %5781  ;;  %4073 = vrot.lane.b32.xlu1 %v10432_v21, %s10938_s9  ;;  %v4554_v8 = vrot.slane %v4552_v62, 1  ;;  %v787_v9 = vmax.f32 %v623_v0, 0.0  ;;  %919 = vst [vmem:[#allocation2 + $0xc0] sm:$0x1] %v918_v5  ;;  %v2871_v20 = vshll.u32 %v10457_v6, 16  ;;  %v2876_v63 = vshll.u32 %v10458_v10, 16 }
 0x1b7   : > { %7647 = vmatpush1.bf16.msra.mxu0 %v10454_v40  ;;  %10257 = vmatpush1.bf16.msra.mxu1 %v10454_v40  ;;  %v4550_v18 = vor.u32 %v4549_v3, %v4545_v2  ;;  %v10059_v28 = vpop.f32.mrb[30].mxu0  ;;  %v10461_v29 = vld [vmem:[#allocation2 + $0xc] sm:$0xff]   ;;  %v915_v35 = vsel %vm11191_vm3, 0, %v914_v25  ;;  %v1015_v37 = vld [vmem:[#allocation2 + $0xc8] sm:$0x1] }
 0x1b8   : > { %5444 = vrot.lane.b32.xlu0 %v5358_v22, %s10937_s12  ;;  %7648 = vmatprep.subr.bf16.mxu0 %v10935_v4  ;;  %v9866_v22 = vpack.c.bf16 %v787_v9, %v787_v9  ;;  %v2873_v57 = vrot.slane %v2871_v20, 1  ;;  %v626_v12 = vadd.f32 %v11499_v34, %v10059_v28  ;;  %v2878_v42 = vrot.slane %v2876_v63, 1  ;;  %916 = vst [vmem:[#allocation2 + $0xb4] sm:$0x1] %v915_v35  ;;  %v617_v48 = vpop.f32.mrb[31].mxu0  ;;  %v10463_v59 = vld [vmem:[#allocation2 + $0xa8] sm:$0xff]  }
 0x1b9   : > { %10242 = vmatprep.subr.bf16.mxu1 %v10935_v4  ;;  %v1016_v46 = vsel %vm11203_vm5, 0, %v1015_v37  ;;  %v10462_v55 = vld [vmem:[#allocation2 + $0x14] ss:$0 sps:$4 sm:$0x11]   ;;  %v4535_v56 = vshll.u32 %v10461_v29, 16  ;;  %v10465_v63 = vld [vmem:[%s13568_s3 + $0x58] sm:$0xff]  }
 0x1ba   : > { %v11581_v33 = vpop.permute.xlu0 %4053  ;;  %4071 = vrot.lane.b32.xlu1 %v10436_v47, %s10938_s9  ;;  %v2886_v47 = vor.u32 %v2885_v41, %v2881_v32  ;;  %v4555_v32 = vsel %vm2735_vm7, %v4550_v18, %v4554_v8  ;;  %v1484_v40 = vshrl.u32 %v9866_v22, 16  ;;  %v1487_v41 = vshll.u32 %v9866_v22, 16  ;;  %1017 = vst [vmem:[#allocation2 + $0xc8] sm:$0x1] %v1016_v46  ;;  %v10464_v8 = vld [vmem:[#allocation2 + $0x84] sm:$0xff]  }
 0x1bb   : > { %v11597_v58 = vpop.permute.xlu1 %3702  ;;  %4949 = vst.msk [vmem:[#allocation3 + $0x20] sm:$0xff] %vm2350_vm10, %v4555_v32  ;;  %v2874_v44 = vor.u32 %v2873_v57, %v2869_v19  ;;  %v788_v45 = vmax.f32 %v626_v12, 0.0  ;;  %v10466_v57 = vld [vmem:[#allocation2 + $0x9c] sm:$0xff]  }
 0x1bc   : > { %6661 = vrot.lane.b32.xlu0 %v6368_v36, %s10938_s9  ;;  %v785_v36 = vmax.f32 %v615_v24, 0.0  ;;  %v1486_v49 = vrot.slane %v1484_v40, 7 }
 0x1bd   : > { %v2879_v62 = vsel %vm2735_vm7, %v2874_v44, %v2878_v42  ;;  %v9867_v0 = vpack.c.bf16 %v788_v45, %v788_v45 }
 0x1be   : > { %v4052_v60 = vpop.permute.xlu0 %4051  ;;  %3722 = vrot.lane.b32.xlu1 %v3640_v17, %s10936_s21  ;;  %v6356_v17 = vsel %vm2735_vm7, %v6351_v1, %v6355_v61  ;;  %v9864_v54 = vpack.c.bf16 %v785_v36, %v785_v36  ;;  %v1975_v61 = vld [vmem:[#allocation2 + $0xc0] sm:$0xf]  ;;  %v1012_v1 = vld [vmem:[#allocation2 + $0xbc] sm:$0x1]  ;;  %v1489_v2 = vor.u32 %v1487_v41, %v1486_v49  ;;  %v1490_v3 = vrot.slane %v1486_v49, 4 }
 0x1bf   : > { %4148 = vst.msk [vmem:[#allocation3] sm:$0xff] %vm4147_vm14, %v4052_v60  ;;  %v2891_v60 = vsel %vm2735_vm7, %v2886_v47, %v2890_v43  ;;  %v4533_v47 = vshrl.u32 %v10461_v29, 16  ;;  %v1492_v10 = vshrl.u32 %v9867_v0, 16  ;;  %v1495_v11 = vshll.u32 %v9867_v0, 16  ;;  %v10469_v36 = vld [vmem:[%s13568_s3 + $0x60] sm:$0xff]  }
 0x1c0   : > { %6659 = vrot.lane.b32.xlu0 %v6356_v17, %s10938_s9  ;;  %v1467_v5 = vshrl.u32 %v9864_v54, 16  ;;  %v1470_v6 = vshll.u32 %v9864_v54, 16  ;;  %v4540_v17 = vshll.u32 %v10462_v55, 16  ;;  %v1976_v18 = vsel %vm11312_vm9, %v1489_v2, %v1975_v61  ;;  %v10468_v54 = vld [vmem:[#allocation2 + $0x98] ss:$0 sps:$4 sm:$0x11]  }
 0x1c1   : > { %v1013_v22 = vsel %vm11203_vm5, 0, %v1012_v1  ;;  %1977 = vst [vmem:[#allocation2 + $0xc0] sm:$0xf] %v1976_v18  ;;  %v1494_v24 = vrot.slane %v1492_v10, 7  ;;  %v1979_v41 = vld [vmem:[#allocation2 + $0xc8] sm:$0x1] }
 0x1c2   : > { %v11615_v16 = vpop.permute.xlu0 %5430  ;;  %3720 = vrot.lane.b32.xlu1 %v3637_v27, %s10936_s21  ;;  %v10460_v27 = vld [vmem:[%s13568_s3 + $0x50] sm:$0xff]   ;;  %v11686_v19 = vrot.slane %v1467_v5, 7  ;;  %1014 = vst [vmem:[#allocation2 + $0xbc] sm:$0x1] %v1013_v22  ;;  %v10470_v55 = vld [vmem:[#allocation2 + $0x18] sm:$0xff]  }
 0x1c3   : > { %7649 = vmatpush1.bf16.msra.mxu0 %v10460_v27  ;;  %10258 = vmatpush1.bf16.msra.mxu1 %v10460_v27  ;;  %5525 = vst.msk [vmem:[#allocation3 + $0x20] sm:$0xff] %vm3216_vm12, %v11615_v16  ;;  %v618_v16 = vadd.f32 %v11499_v34, %v617_v48  ;;  %v4537_v34 = vrot.slane %v4535_v56, 1  ;;  %v4542_v27 = vrot.slane %v4540_v17, 1  ;;  %v1497_v37 = vor.u32 %v1495_v11, %v1494_v24  ;;  %v10471_v2 = vld [vmem:[#allocation2 + $0xa8] sm:$0xfe]   ;;  %v10479_v10 = vld [vmem:[#allocation2 + $0x90] sm:$0xff]  }
 0x1c4   : > { %v11620_v21 = vpop.permute.xlu1 %5785  ;;  %7650 = vmatprep.subr.bf16.mxu0 %v10935_v4  ;;  %10243 = vmatprep.subr.bf16.mxu1 %v10935_v4  ;;  %v1472_v28 = vor.u32 %v1470_v6, %v11686_v19  ;;  %v1473_v29 = vrot.slane %v11686_v19, 4  ;;  %v1499_v40 = vrot.slane %v1494_v24, 4  ;;  %2353 = vst.msk [vmem:[#allocation3 + $0x30] sm:$0xff] %vm2350_vm10, %v10470_v55  ;;  %v10472_v6 = vld [vmem:[#allocation2 + $0xb0] ss:$0 sps:$4 sm:$0x11]  }
 0x1c5   : > { %5801 = vrot.lane.b32.xlu0 %v10459_v23, %s10936_s21  ;;  %v786_v20 = vmax.f32 %v618_v16, 0.0  ;;  %v1968_v23 = vld [vmem:[#allocation2 + $0xb4] sm:$0xf]  ;;  %v4538_v25 = vor.u32 %v4537_v34, %v4533_v47  ;;  %v1498_v48 = vsel %vm11319_vm11, %v1490_v3, %v1497_v37  ;;  %v3645_v17 = vrot.slane %v10472_v6, 1  ;;  %v10473_v18 = vld [vmem:[#allocation2 + $0x84] sm:$0xfe]  }
 0x1c6   : > { %v11629_v26 = vpop.permute.xlu0 %5428  ;;  %3144 = vrot.lane.b32.xlu1 %v2891_v60, %s10937_s12  ;;  %v1969_v44 = vsel %vm11312_vm9, %v1472_v28, %v1968_v23  ;;  %v10467_v47 = vld [vmem:[#allocation2 + $0x90] sm:$0xfe]   ;;  %v1980_v49 = vsel %vm11191_vm3, %v1499_v40, %v1979_v41  ;;  %1978 = vst.msk [vmem:[#allocation2 + $0xc4] sm:$0xf] %vm853_vm0, %v1498_v48  ;;  %v6382_v24 = vshrl.u32 %v10479_v10, 16  ;;  %v10062_v37 = vpop.f32.mrb[32].mxu0 }
 0x1c7   : > { %v9865_v32 = vpack.c.bf16 %v786_v20, %v786_v20  ;;  %7651 = vmatpush1.bf16.msra.mxu0 %v10465_v63  ;;  %v4543_v42 = vsel %vm2735_vm7, %v4538_v25, %v4542_v27  ;;  %10259 = vmatpush1.bf16.msra.mxu1 %v10465_v63  ;;  %1970 = vst [vmem:[#allocation2 + $0xb4] sm:$0xf] %v1969_v44  ;;  %1981 = vst [vmem:[#allocation2 + $0xc8] sm:$0x1] %v1980_v49  ;;  %v5365_v16 = vrot.slane %v10467_v47, 1  ;;  %v10476_v3 = vld [vmem:[#allocation2 + $0x30] sm:$0xff]  }
 0x1c8   : > { %v11635_v30 = vpop.permute.xlu1 %4057  ;;  %7652 = vmatprep.subr.bf16.mxu0 %v10935_v4  ;;  %4948 = vst.msk [vmem:[#allocation3 + $0x8] sm:$0xff] %vm2350_vm10, %v4543_v42  ;;  %10244 = vmatprep.subr.bf16.mxu1 %v10935_v4  ;;  %2355 = vst.msk [vmem:[#allocation3 + $0x60] sm:$0xff] %vm2350_vm10, %v10476_v3  ;;  %v10474_v19 = vld [vmem:[#allocation2 + $0x8c] ss:$0 sps:$4 sm:$0x11]   ;;  %v5362_v20 = vrot.slane %v10473_v18, 1 }
 0x1c9   : > { %5799 = vrot.lane.b32.xlu0 %v10464_v8, %s10936_s21  ;;  %v1475_v45 = vshrl.u32 %v9865_v32, 16  ;;  %v1478_v46 = vshll.u32 %v9865_v32, 16  ;;  %5524 = vst.msk [vmem:[#allocation3 + $0x8] sm:$0xff] %vm3216_vm12, %v11629_v26  ;;  %v10475_v26 = vld [vmem:[%s13568_s3 + $0x68] sm:$0xff]   ;;  %v1972_v1 = vld [vmem:[#allocation2 + $0xbc] sm:$0x1] }
 0x1ca   : > { %v11645_v51 = vpop.permute.xlu0 %3700  ;;  %3142 = vrot.lane.b32.xlu1 %v2879_v62, %s10937_s12  ;;  %5877 = vst.msk [vmem:[#allocation3 + $0x8] sm:$0xff] %vm3794_vm13, %v11567_v13  ;;  %v5366_v62 = vrot.slane %v10468_v54, 1  ;;  %v5363_v22 = vrot.slane %v10474_v19, 1  ;;  %v10477_v63 = vld [vmem:[#allocation2 + $0x9c] sm:$0xfe]   ;;  %v6384_v32 = vshll.u32 %v10479_v10, 16 }
 0x1cb   : > { %v1477_v56 = vrot.slane %v1475_v45, 7  ;;  %7653 = vmatpush1.bf16.msra.mxu0 %v10469_v36  ;;  %10260 = vmatpush1.bf16.msra.mxu1 %v10469_v36  ;;  %v10478_v23 = vld [vmem:[#allocation2 + $0xa4] ss:$0 sps:$4 sm:$0x11]   ;;  %v3641_v27 = vrot.slane %v10477_v63, 1  ;;  %v10484_v54 = vld [vmem:[#allocation2 + $0xa8] sm:$0xff]  }
 0x1cc   : > { %v11643_v50 = vpop.permute.xlu1 %4055  ;;  %7654 = vmatprep.subr.bf16.mxu0 %v10935_v4  ;;  %10245 = vmatprep.subr.bf16.mxu1 %v10935_v4  ;;  %v5367_v5 = vsel %vm3601_vm6, %v5365_v16, %v5366_v62  ;;  %v3642_v28 = vrot.slane %v10478_v23, 1  ;;  %v6386_v41 = vrot.slane %v6384_v32, 1  ;;  %v11771_v36 = vld [vmem:[%s13567_s2] ss:$0 sm:$0xff]  ;;  %v10486_v16 = vld [vmem:[#allocation2 + $0x84] sm:$0xff]   ;;  %v2905_v62 = vshrl.u32 %v10484_v54, 16 }
 0x1cd   : > { %v1480_v13 = vor.u32 %v1478_v46, %v1477_v56  ;;  %v1482_v0 = vrot.slane %v1477_v56, 4  ;;  %5450 = vrot.lane.b32.xlu0 %v5367_v5, %s10937_s12  ;;  %v639_v44 = vadd.f32 %v11771_v36, %v10062_v37  ;;  %v630_v46 = vpop.f32.mrb[33].mxu0  ;;  %v10485_v56 = vld [vmem:[#allocation2 + $0xb0] ss:$0 sps:$4 sm:$0x11]  }
 0x1ce   : > { %v11661_v31 = vpop.permute.xlu0 %3124  ;;  %4077 = vrot.lane.b32.xlu1 %v10463_v59, %s10938_s9  ;;  %v3643_v40 = vsel %vm3601_vm6, %v3641_v27, %v3642_v28  ;;  %v6387_v48 = vor.u32 %v6386_v41, %v6382_v24  ;;  %v631_v55 = vadd.f32 %v11771_v36, %v630_v46  ;;  %v923_v5 = vld [vmem:[#allocation2 + $0xf0] sm:$0x1]  ;;  %v10490_v28 = vld [vmem:[#allocation2 + $0xa4] ss:$0 sps:$4 sm:$0x11]  }
 0x1cf   : > { %3219 = vst.msk [vmem:[#allocation3 + $0x30] sm:$0xff] %vm3216_vm12, %v11661_v31  ;;  %v1973_v8 = vsel %vm11191_vm3, %v1482_v0, %v1972_v1  ;;  %v3644_v31 = vrot.slane %v10471_v2, 1  ;;  %7655 = vmatpush1.bf16.msra.mxu0 %v10475_v26  ;;  %10261 = vmatpush1.bf16.msra.mxu1 %v10475_v26  ;;  %v10488_v26 = vld [vmem:[%s13568_s3 + $0x78] sm:$0xff]   ;;  %v2912_v0 = vshll.u32 %v10485_v56, 16  ;;  %v6372_v2 = vshll.u32 %v10486_v16, 16 }
 0x1d0   : > { %v11653_v14 = vpop.permute.xlu1 %3706  ;;  %3797 = vst.msk [vmem:[#allocation3 + $0x30] sm:$0xff] %vm3794_vm13, %v11597_v58  ;;  %v10481_v58 = vld [vmem:[%s13568_s3 + $0x70] sm:$0xff]   ;;  %1974 = vst [vmem:[#allocation2 + $0xbc] sm:$0x1] %v1973_v8  ;;  %7656 = vmatprep.subr.bf16.mxu0 %v10935_v4  ;;  %10246 = vmatprep.subr.bf16.mxu1 %v10935_v4  ;;  %v789_v8 = vmax.f32 %v631_v55, 0.0  ;;  %v2900_v46 = vshll.u32 %v10490_v28, 16 }
 0x1d1   : > { %4150 = vst.msk [vmem:[#allocation3 + $0x30] sm:$0xff] %vm4147_vm14, %v11643_v50  ;;  %v3646_v50 = vsel %vm3601_vm6, %v3644_v31, %v3645_v17  ;;  %v10487_v1 = vld [vmem:[#allocation2 + $0x8c] ss:$0 sps:$4 sm:$0x11]   ;;  %v10489_v31 = vld [vmem:[#allocation2 + $0x9c] sm:$0xff]   ;;  %v2914_v10 = vrot.slane %v2912_v0, 1 }
 0x1d2   : > { %v11678_v60 = vpop.permute.xlu0 %6645  ;;  %4075 = vrot.lane.b32.xlu1 %v10466_v57, %s10938_s9  ;;  %v10482_v57 = vld [vmem:[#allocation2 + $0x24] sm:$0xff]   ;;  %v9868_v24 = vpack.c.bf16 %v789_v8, %v789_v8  ;;  %v2895_v32 = vshll.u32 %v10489_v31, 16  ;;  %v2902_v0 = vrot.slane %v2900_v46, 1 }
 0x1d3   : > { %6741 = vst.msk [vmem:[#allocation3 + $0x8] sm:$0xff] %vm4147_vm14, %v11678_v60  ;;  %v1481_v60 = vsel %vm11319_vm11, %v1473_v29, %v1480_v13  ;;  %7657 = vmatpush1.bf16.msra.mxu0 %v10481_v58  ;;  %10262 = vmatpush1.bf16.msra.mxu1 %v10481_v58  ;;  %v10480_v29 = vld [vmem:[#allocation2 + $0x98] ss:$0 sps:$4 sm:$0x11]   ;;  %v791_v13 = vmax.f32 %v639_v44, 0.0  ;;  %v6374_v58 = vrot.slane %v6372_v2, 1 }
 0x1d4   : > { %v11668_v43 = vpop.permute.xlu1 %3704  ;;  %1971 = vst.msk [vmem:[#allocation2 + $0xb8] sm:$0xf] %vm853_vm0, %v1481_v60  ;;  %7658 = vmatprep.subr.bf16.mxu0 %v10935_v4  ;;  %10247 = vmatprep.subr.bf16.mxu1 %v10935_v4  ;;  %v6389_v42 = vshll.u32 %v10480_v29, 16  ;;  %v10483_v4 = vld [vmem:[#allocation2 + $0xc] sm:$0xff]   ;;  %v920_v17 = vld [vmem:[#allocation2 + $0xe4] sm:$0x1] }
 0x1d5   : > { %2354 = vst.msk [vmem:[#allocation3 + $0x48] sm:$0xff] %vm2350_vm10, %v10482_v57  ;;  %2352 = vst.msk [vmem:[#allocation3 + $0x18] sm:$0xff] %vm2350_vm10, %v10483_v4  ;;  %v9870_v6 = vpack.c.bf16 %v791_v13, %v791_v13  ;;  %v2893_v29 = vshrl.u32 %v10489_v31, 16  ;;  %v1504_v41 = vshll.u32 %v9868_v24, 16  ;;  %v2897_v4 = vrot.slane %v2895_v32, 1 }
 0x1d6   : > { %v11699_v12 = vpop.permute.xlu0 %3122  ;;  %3726 = vrot.lane.b32.xlu1 %v3646_v50, %s10936_s21  ;;  %v6391_v49 = vrot.slane %v6389_v42, 1  ;;  %v921_v50 = vsel %vm11191_vm3, 0, %v920_v17 }
 0x1d7   : > { %3218 = vst.msk [vmem:[#allocation3 + $0x18] sm:$0xff] %vm3216_vm12, %v11699_v12  ;;  %7659 = vmatpush1.bf16.msra.mxu0 %v10488_v26  ;;  %10263 = vmatpush1.bf16.msra.mxu1 %v10488_v26  ;;  %v1518_v19 = vshrl.u32 %v9870_v6, 16  ;;  %922 = vst [vmem:[#allocation2 + $0xe4] sm:$0x1] %v921_v50  ;;  %v10492_v26 = vld [vmem:[#allocation2 + $0x30] sm:$0xff]   ;;  %v2898_v13 = vor.u32 %v2897_v4, %v2893_v29  ;;  %v10495_v29 = vld [vmem:[#allocation2 + $0x9c] sm:$0xff]  }
 0x1d8   : > { %v11682_v9 = vpop.permute.xlu1 %3128  ;;  %3796 = vst.msk [vmem:[#allocation3 + $0x18] sm:$0xff] %vm3794_vm13, %v11645_v51  ;;  %v6377_v51 = vshll.u32 %v10487_v1, 16 }
 0x1d9   : > { %3221 = vst.msk [vmem:[#allocation3 + $0x60] sm:$0xff] %vm3216_vm12, %v11682_v9  ;;  %v11810_v27 = vrot.slane %v1518_v19, 7  ;;  %v4569_v19 = vshrl.u32 %v10492_v26, 16 }
 0x1da   : > { %v5784_v61 = vpop.permute.xlu0 %5783  ;;  %3799 = vst.msk [vmem:[#allocation3 + $0x60] sm:$0xff] %vm3794_vm13, %v11653_v14  ;;  %v5364_v14 = vsel %vm3601_vm6, %v5362_v20, %v5363_v22  ;;  %3724 = vrot.lane.b32.xlu1 %v3643_v40, %s10936_s21  ;;  %v7286_v60 = vld [vmem:[#allocation3 + $0x8] sm:$0xff]  ;;  %v7285_v20 = vld [vmem:[#allocation3] sm:$0xff]  ;;  %v6379_v23 = vrot.slane %v6377_v51, 1  ;;  %v1501_v40 = vshrl.u32 %v9868_v24, 16 }
 0x1db   : > { %5878 = vst.msk [vmem:[#allocation3 + $0x20] sm:$0xff] %vm3794_vm13, %v5784_v61  ;;  %5448 = vrot.lane.b32.xlu0 %v5364_v14, %s10937_s12  ;;  %v6392_v61 = vsel %vm2735_vm7, %v6387_v48, %v6391_v49  ;;  %7660 = vmatprep.mubr.bf16.mxu0 %v7286_v60  ;;  %v1524_v44 = vrot.slane %v11810_v27, 4  ;;  %v10491_v48 = vld [vmem:[#allocation2 + $0xa8] sm:$0xff]   ;;  %v10063_v49 = vpop.f32.mrb[34].mxu0 }
 0x1dc   : > { %v11697_v35 = vpop.permute.xlu1 %3126  ;;  %4149 = vst.msk [vmem:[#allocation3 + $0x18] sm:$0xff] %vm4147_vm14, %v11581_v33  ;;  %v1521_v33 = vshll.u32 %v9870_v6, 16  ;;  %7661 = vmatmul.mubr.bf16.vlgmr.msra.gmra.mrb[64].mxu0 %v7285_v20  ;;  %v11820_v56 = vrot.slane %v1501_v40, 7  ;;  %v10493_v51 = vld [vmem:[#allocation2 + $0x38] ss:$0 sps:$4 sm:$0x11]  }
 0x1dd   : > { %3220 = vst.msk [vmem:[#allocation3 + $0x48] sm:$0xff] %vm3216_vm12, %v11697_v35  ;;  %v2907_v35 = vshll.u32 %v10484_v54, 16  ;;  %v1021_v54 = vld [vmem:[#allocation2 + $0xf8] sm:$0x1]  ;;  %v4576_v20 = vshll.u32 %v10493_v51, 16  ;;  %v10496_v40 = vld [vmem:[#allocation2 + $0x24] sm:$0xff]  }
 0x1de   : > { %v11747_v34 = vpop.permute.xlu0 %5434  ;;  %3798 = vst.msk [vmem:[#allocation3 + $0x48] sm:$0xff] %vm3794_vm13, %v11668_v43  ;;  %v1523_v42 = vor.u32 %v1521_v33, %v11810_v27  ;;  %v1507_v6 = vrot.slane %v11820_v56, 4  ;;  %v1982_v31 = vld [vmem:[#allocation2 + $0xe4] sm:$0xf]  ;;  %v4571_v33 = vshll.u32 %v10492_v26, 16  ;;  %v4557_v26 = vshrl.u32 %v10496_v40, 16 }
 0x1df   : > { %4151 = vst.msk [vmem:[#allocation3 + $0x48] sm:$0xff] %vm4147_vm14, %v11635_v30  ;;  %6665 = vrot.lane.b32.xlu0 %v6392_v61, %s10938_s9  ;;  %v6370_v30 = vshrl.u32 %v10486_v16, 16  ;;  %v2909_v12 = vrot.slane %v2907_v35, 1  ;;  %v642_v16 = vadd.f32 %v11771_v36, %v10063_v49  ;;  %v1022_v61 = vsel %vm11203_vm5, 0, %v1021_v54  ;;  %v1018_v35 = vld [vmem:[#allocation2 + $0xec] sm:$0x1] }
 0x1e0   : > { %v11720_v59 = vpop.permute.xlu1 %4061  ;;  %1023 = vst [vmem:[#allocation2 + $0xf8] sm:$0x1] %v1022_v61  ;;  %v4573_v28 = vrot.slane %v4571_v33, 1  ;;  %v10500_v51 = vld [vmem:[#allocation2 + $0xb0] ss:$0 sps:$4 sm:$0x11]  }
 0x1e1   : > { %v2910_v18 = vor.u32 %v2909_v12, %v2905_v62  ;;  %v6375_v63 = vor.u32 %v6374_v58, %v6370_v30  ;;  %v633_v62 = vpop.f32.mrb[35].mxu0  ;;  %v1019_v30 = vsel %vm11203_vm5, 0, %v1018_v35  ;;  %v792_v60 = vmax.f32 %v642_v16, 0.0 }
 0x1e2   : > { %v11761_v25 = vpop.permute.xlu0 %5432  ;;  %v634_v1 = vadd.f32 %v11771_v36, %v633_v62  ;;  %1020 = vst [vmem:[#allocation2 + $0xec] sm:$0x1] %v1019_v30  ;;  %v4574_v46 = vor.u32 %v4573_v28, %v4569_v19 }
 0x1e3   : > { %v2915_v14 = vsel %vm2735_vm7, %v2910_v18, %v2914_v10  ;;  %v6380_v37 = vsel %vm2735_vm7, %v6375_v63, %v6379_v23  ;;  %v2903_v10 = vsel %vm2735_vm7, %v2898_v13, %v2902_v0  ;;  %v9871_v18 = vpack.c.bf16 %v792_v60, %v792_v60  ;;  %v10494_v63 = vld [vmem:[#allocation2 + $0xc0] sm:$0xff]  }
 0x1e4   : > { %v4060_v11 = vpop.permute.xlu1 %4059  ;;  %3148 = vrot.lane.b32.xlu1 %v2915_v14, %s10937_s12  ;;  %6663 = vrot.lane.b32.xlu0 %v6380_v37, %s10938_s9  ;;  %v790_v58 = vmax.f32 %v634_v1, 0.0  ;;  %v4578_v37 = vrot.slane %v4576_v20, 1  ;;  %v4559_v1 = vshll.u32 %v10496_v40, 16  ;;  %v926_v40 = vld [vmem:[#allocation2 + $0xfc] sm:$0x1] }
 0x1e5   : > { %4152 = vst.msk [vmem:[#allocation3 + $0x60] sm:$0xff] %vm4147_vm14, %v4060_v11  ;;  %v924_v11 = vsel %vm11191_vm3, 0, %v923_v5  ;;  %v1506_v5 = vor.u32 %v1504_v41, %v11820_v56  ;;  %v1526_v24 = vshrl.u32 %v9871_v18, 16  ;;  %v1529_v14 = vshll.u32 %v9871_v18, 16  ;;  %v10066_v18 = vpop.f32.mrb[36].mxu0 }
 0x1e6   : > { %v11778_v47 = vpop.permute.xlu0 %6649  ;;  %925 = vst [vmem:[#allocation2 + $0xf0] sm:$0x1] %v924_v11  ;;  %v9869_v50 = vpack.c.bf16 %v790_v58, %v790_v58  ;;  %v10497_v56 = vld [vmem:[#allocation2 + $0x2c] ss:$0 sps:$4 sm:$0x11]   ;;  %v4579_v35 = vsel %vm2735_vm7, %v4574_v46, %v4578_v37  ;;  %v646_v20 = vpop.f32.mrb[37].mxu0 }
 0x1e7   : > { %v1983_v17 = vsel %vm11312_vm9, %v1506_v5, %v1982_v31  ;;  %v1993_v4 = vld [vmem:[#allocation2 + $0xf8] sm:$0x1]  ;;  %4951 = vst.msk [vmem:[#allocation3 + $0x50] sm:$0xff] %vm2350_vm10, %v4579_v35  ;;  %v4564_v30 = vshll.u32 %v10497_v56, 16  ;;  %v929_v37 = vld [vmem:[#allocation2 + $0x108] sm:$0x1] }
 0x1e8   : > { %v11759_v9 = vpop.permute.xlu1 %3710  ;;  %5805 = vrot.lane.b32.xlu0 %v10491_v48, %s10936_s21  ;;  %3146 = vrot.lane.b32.xlu1 %v2903_v10, %s10937_s12  ;;  %1984 = vst [vmem:[#allocation2 + $0xe4] sm:$0xf] %v1983_v17  ;;  %v1509_v32 = vshrl.u32 %v9869_v50, 16  ;;  %v10498_v48 = vld [vmem:[#allocation2 + $0xc0] sm:$0xff]   ;;  %5527 = vst.msk [vmem:[#allocation3 + $0x50] sm:$0xff] %vm3216_vm12, %v11747_v34  ;;  %v10501_v31 = vld [vmem:[#allocation2 + $0xb4] sm:$0xff]  }
 0x1e9   : > { %v1986_v54 = vld [vmem:[#allocation2 + $0xec] sm:$0x1]  ;;  %v4566_v58 = vrot.slane %v4564_v30, 1 }
 0x1ea   : > { %v11799_v3 = vpop.permute.xlu0 %5789  ;;  %v1511_v49 = vrot.slane %v1509_v32, 7  ;;  %v10504_v17 = vld [vmem:[#allocation2 + $0x48] sm:$0xff]  }
 0x1eb   : > { %2357 = vst.msk [vmem:[#allocation3 + $0x90] sm:$0xff] %vm2350_vm10, %v10504_v17 }
 0x1ec   : > { %v11774_v45 = vpop.permute.xlu1 %3708  ;;  %5809 = vrot.lane.b32.xlu1 %v10494_v63, %s10936_s21  ;;  %5803 = vrot.lane.b32.xlu0 %v10495_v29, %s10936_s21  ;;  %v1516_v0 = vrot.slane %v1511_v49, 4  ;;  %v10502_v63 = vld [vmem:[#allocation2 + $0x9c] sm:$0xfe]   ;;  %v10503_v29 = vld [vmem:[#allocation2 + $0xa4] ss:$0 sps:$4 sm:$0x11]  }
 0x1ed   : > { %v1989_v12 = vld [vmem:[#allocation2 + $0xf0] sm:$0xf] }
 0x1ee   : > { %v6648_v57 = vpop.permute.xlu0 %6647  ;;  %v1990_v8 = vsel %vm11312_vm9, %v1523_v42, %v1989_v12  ;;  %v1528_v42 = vrot.slane %v1526_v24, 7  ;;  %v1987_v27 = vsel %vm11191_vm3, %v1516_v0, %v1986_v54  ;;  %v10505_v54 = vld [vmem:[#allocation2 + $0xc0] sm:$0xfe]  }
 0x1ef   : > { %6742 = vst.msk [vmem:[#allocation3 + $0x20] sm:$0xff] %vm4147_vm14, %v6648_v57  ;;  %1991 = vst [vmem:[#allocation2 + $0xf0] sm:$0xf] %v1990_v8  ;;  %v1512_v57 = vshll.u32 %v9869_v50, 16  ;;  %v10499_v8 = vld [vmem:[#allocation2 + $0xa8] sm:$0xfe]  }
 0x1f0   : > { %v11794_v43 = vpop.permute.xlu1 %3132  ;;  %v1531_v61 = vor.u32 %v1529_v14, %v1528_v42  ;;  %v1533_v62 = vrot.slane %v1528_v42, 4  ;;  %4081 = vrot.lane.b32.xlu1 %v10498_v48, %s10938_s9  ;;  %1988 = vst [vmem:[#allocation2 + $0xec] sm:$0x1] %v1987_v27  ;;  %v5371_v34 = vrot.slane %v10499_v8, 1  ;;  %v5372_v50 = vrot.slane %v10500_v51, 1 }
 0x1f1   : > { %v1514_v13 = vor.u32 %v1512_v57, %v1511_v49  ;;  %3223 = vst.msk [vmem:[#allocation3 + $0x90] sm:$0xff] %vm3216_vm12, %v11794_v43  ;;  %v5368_v57 = vrot.slane %v10502_v63, 1  ;;  %v927_v48 = vsel %vm11191_vm3, 0, %v926_v40  ;;  %v10507_v49 = vld [vmem:[#allocation2 + $0xa8] sm:$0xff]   ;;  %v1027_v51 = vld [vmem:[#allocation2 + $0x110] sm:$0x1] }
 0x1f2   : > { %v11828_v2 = vpop.permute.xlu0 %5787  ;;  %v1532_v5 = vsel %vm11319_vm11, %v1524_v44, %v1531_v61  ;;  %v1994_v60 = vsel %vm11191_vm3, %v1533_v62, %v1993_v4  ;;  %v4561_v44 = vrot.slane %v4559_v1, 1  ;;  %v5373_v28 = vsel %vm3601_vm6, %v5371_v34, %v5372_v50  ;;  %3801 = vst.msk [vmem:[#allocation3 + $0x90] sm:$0xff] %vm3794_vm13, %v11759_v9  ;;  %928 = vst [vmem:[#allocation2 + $0xfc] sm:$0x1] %v927_v48  ;;  %v1024_v34 = vld [vmem:[#allocation2 + $0x104] sm:$0x1] }
 0x1f3   : > { %1992 = vst.msk [vmem:[#allocation2 + $0xf4] sm:$0xf] %vm853_vm0, %v1532_v5  ;;  %1995 = vst [vmem:[#allocation2 + $0xf8] sm:$0x1] %v1994_v60  ;;  %v1515_v10 = vsel %vm11319_vm11, %v1507_v6, %v1514_v13  ;;  %v655_v6 = vadd.f32 %v11771_v36, %v10066_v18  ;;  %5454 = vrot.lane.b32.xlu0 %v5373_v28, %s10937_s12  ;;  %v5369_v4 = vrot.slane %v10503_v29, 1  ;;  %v930_v9 = vsel %vm11191_vm3, 0, %v929_v37 }
 0x1f4   : > { %v11807_v22 = vpop.permute.xlu1 %3130  ;;  %5880 = vst.msk [vmem:[#allocation3 + $0x50] sm:$0xff] %vm3794_vm13, %v11828_v2  ;;  %v4562_v33 = vor.u32 %v4561_v44, %v4557_v26  ;;  %4079 = vrot.lane.b32.xlu1 %v10501_v31, %s10938_s9  ;;  %v647_v2 = vadd.f32 %v11771_v36, %v646_v20  ;;  %931 = vst [vmem:[#allocation2 + $0x108] sm:$0x1] %v930_v9  ;;  %v10506_v62 = vld [vmem:[#allocation2 + $0xc8] ss:$0 sps:$4 sm:$0x11]  }
 0x1f5   : > { %1985 = vst.msk [vmem:[#allocation2 + $0xe8] sm:$0xf] %vm853_vm0, %v1515_v10  ;;  %v795_v32 = vmax.f32 %v655_v6, 0.0  ;;  %v6406_v35 = vshrl.u32 %v10507_v49, 16  ;;  %v6408_v1 = vshll.u32 %v10507_v49, 16  ;;  %v5378_v60 = vrot.slane %v10506_v62, 1 }
 0x1f6   : > { %v11841_v23 = vpop.permute.xlu0 %5438  ;;  %v4567_v14 = vsel %vm2735_vm7, %v4562_v33, %v4566_v58  ;;  %v793_v43 = vmax.f32 %v647_v2, 0.0  ;;  %v10508_v8 = vld [vmem:[#allocation2 + $0xb0] ss:$0 sps:$4 sm:$0x11]   ;;  %v10067_v10 = vpop.f32.mrb[38].mxu0  ;;  %v1028_v29 = vsel %vm11203_vm5, 0, %v1027_v51 }
 0x1f7   : > { %4950 = vst.msk [vmem:[#allocation3 + $0x38] sm:$0xff] %vm2350_vm10, %v4567_v14  ;;  %v9874_v46 = vpack.c.bf16 %v795_v32, %v795_v32  ;;  %v6410_v31 = vrot.slane %v6408_v1, 1  ;;  %v658_v58 = vadd.f32 %v11771_v36, %v10067_v10  ;;  %v649_v17 = vpop.f32.mrb[39].mxu0  ;;  %v6413_v20 = vshll.u32 %v10508_v8, 16  ;;  %1029 = vst [vmem:[#allocation2 + $0x110] sm:$0x1] %v1028_v29 }
 0x1f8   : > { %v11818_v55 = vpop.permute.xlu1 %4065  ;;  %5526 = vst.msk [vmem:[#allocation3 + $0x38] sm:$0xff] %vm3216_vm12, %v11761_v25  ;;  %v5370_v25 = vsel %vm3601_vm6, %v5368_v57, %v5369_v4  ;;  %v650_v32 = vadd.f32 %v11771_v36, %v649_v17  ;;  %v1025_v40 = vsel %vm11203_vm5, 0, %v1024_v34  ;;  %v10512_v48 = vld [vmem:[#allocation2 + $0x9c] sm:$0xff]  }
 0x1f9   : > { %5879 = vst.msk [vmem:[#allocation3 + $0x38] sm:$0xff] %vm3794_vm13, %v11620_v21  ;;  %v1552_v56 = vshrl.u32 %v9874_v46, 16  ;;  %v1555_v61 = vshll.u32 %v9874_v46, 16  ;;  %5452 = vrot.lane.b32.xlu0 %v5370_v25, %s10937_s12  ;;  %v5377_v21 = vrot.slane %v10505_v54, 1  ;;  %v6411_v6 = vor.u32 %v6410_v31, %v6406_v35  ;;  %v1996_v14 = vld [vmem:[#allocation2 + $0xfc] sm:$0xf] }
 0x1fa   : > { %v11847_v16 = vpop.permute.xlu0 %5436  ;;  %6743 = vst.msk [vmem:[#allocation3 + $0x38] sm:$0xff] %vm4147_vm14, %v11778_v47  ;;  %v796_v28 = vmax.f32 %v658_v58, 0.0  ;;  %v794_v46 = vmax.f32 %v650_v32, 0.0  ;;  %1026 = vst [vmem:[#allocation2 + $0x104] sm:$0x1] %v1025_v40  ;;  %v7291_v25 = vld [vmem:[#allocation3 + $0x30] sm:$0xff] }
 0x1fb   : > { %v11905_v5 = vrot.slane %v1552_v56, 7  ;;  %v5379_v44 = vsel %vm3601_vm6, %v5377_v21, %v5378_v60  ;;  %v2003_v2 = vld [vmem:[#allocation2 + $0x108] sm:$0xf]  ;;  %v10511_v54 = vld [vmem:[#allocation2 + $0xbc] ss:$0 sps:$4 sm:$0x11]  }
 0x1fc   : > { %v11836_v11 = vpop.permute.xlu1 %4063  ;;  %5458 = vrot.lane.b32.xlu1 %v5379_v44, %s10937_s12  ;;  %v9875_v9 = vpack.c.bf16 %v796_v28, %v796_v28  ;;  %v5375_v21 = vrot.slane %v10511_v54, 1  ;;  %v6394_v1 = vshrl.u32 %v10512_v48, 16  ;;  %v6396_v60 = vshll.u32 %v10512_v48, 16  ;;  %v10514_v28 = vld [vmem:[#allocation2 + $0xb4] sm:$0xfe]  }
 0x1fd   : > { %4154 = vst.msk [vmem:[#allocation3 + $0x90] sm:$0xff] %vm4147_vm14, %v11836_v11  ;;  %v9872_v11 = vpack.c.bf16 %v793_v43, %v793_v43  ;;  %v1557_v27 = vor.u32 %v1555_v61, %v11905_v5  ;;  %v1558_v33 = vrot.slane %v11905_v5, 4  ;;  %v6415_v43 = vrot.slane %v6413_v20, 1 }
 0x1fe   : > { %v11870_v19 = vpop.permute.xlu0 %6653  ;;  %v1560_v62 = vshrl.u32 %v9875_v9, 16  ;;  %v1563_v35 = vshll.u32 %v9875_v9, 16  ;;  %v2007_v34 = vld [vmem:[#allocation2 + $0x110] sm:$0x1]  ;;  %v3647_v40 = vrot.slane %v10514_v28, 1  ;;  %v10528_v28 = vld [vmem:[#allocation2 + $0xb4] sm:$0xff]  }
 0x1ff   : > { %v1535_v13 = vshrl.u32 %v9872_v11, 16  ;;  %v1538_v0 = vshll.u32 %v9872_v11, 16  ;;  %v2004_v57 = vsel %vm11312_vm9, %v1557_v27, %v2003_v2  ;;  %v6416_v49 = vsel %vm2735_vm7, %v6411_v6, %v6415_v43  ;;  %v10510_v11 = vld [vmem:[#allocation2 + $0xb4] sm:$0xfe]   ;;  %v10517_v6 = vld [vmem:[#allocation2 + $0x48] sm:$0xff]  }
 0x200   : > { %v11843_v41 = vpop.permute.xlu1 %3714  ;;  %2005 = vst [vmem:[#allocation2 + $0x108] sm:$0xf] %v2004_v57  ;;  %6669 = vrot.lane.b32.xlu0 %v6416_v49, %s10938_s9  ;;  %v1562_v8 = vrot.slane %v1560_v62, 7  ;;  %v10513_v27 = vld [vmem:[#allocation2 + $0xa4] ss:$0 sps:$4 sm:$0x11]  }
 0x201   : > { %v11907_v47 = vrot.slane %v1535_v13, 7  ;;  %v7292_v4 = vld [vmem:[#allocation3 + $0x38] sm:$0xff]  ;;  %v9873_v13 = vpack.c.bf16 %v794_v46, %v794_v46  ;;  %v2000_v2 = vld [vmem:[#allocation2 + $0x104] sm:$0x1]  ;;  %v4593_v9 = vshrl.u32 %v10517_v6, 16  ;;  %v4595_v48 = vshll.u32 %v10517_v6, 16 }
 0x202   : > { %v6652_v42 = vpop.permute.xlu0 %6651  ;;  %7676 = vmatprep.mubr.bf16.mxu1 %v7292_v4  ;;  %v1565_v51 = vor.u32 %v1563_v35, %v1562_v8  ;;  %v1567_v17 = vrot.slane %v1562_v8, 4  ;;  %v10518_v46 = vld [vmem:[#allocation2 + $0x50] ss:$0 sps:$4 sm:$0x11]  }
 0x203   : > { %6744 = vst.msk [vmem:[#allocation3 + $0x50] sm:$0xff] %vm4147_vm14, %v6652_v42  ;;  %v1540_v50 = vor.u32 %v1538_v0, %v11907_v47  ;;  %v10509_v42 = vld [vmem:[#allocation2 + $0x3c] sm:$0xff]   ;;  %7677 = vmatmul.mubr.bf16.vlgmr.msra.gmra.mrb[0].mxu1 %v7291_v25  ;;  %v5374_v0 = vrot.slane %v10510_v11, 1  ;;  %v1543_v31 = vshrl.u32 %v9873_v13, 16  ;;  %v1546_v10 = vshll.u32 %v9873_v13, 16  ;;  %v7289_v49 = vld [vmem:[#allocation3 + $0x20] sm:$0xff] }
 0x204   : > { %v11851_v12 = vpop.permute.xlu1 %3712  ;;  %2356 = vst.msk [vmem:[#allocation3 + $0x78] sm:$0xff] %vm2350_vm10, %v10509_v42  ;;  %v1541_v44 = vrot.slane %v11907_v47, 4  ;;  %v1566_v47 = vsel %vm11319_vm11, %v1558_v33, %v1565_v51  ;;  %v2008_v29 = vsel %vm11191_vm3, %v1567_v17, %v2007_v34  ;;  %v10519_v11 = vld [vmem:[%s13568_s3 + $0x80] sm:$0xff]   ;;  %v10516_v25 = vld [vmem:[#allocation2 + $0xb4] sm:$0xff]   ;;  %7668 = vmatprep.mubr.bf16.mxu0 %v7289_v49  ;;  %v4597_v35 = vrot.slane %v4595_v48, 1 }
 0x205   : > { %v1997_v37 = vsel %vm11312_vm9, %v1540_v50, %v1996_v14  ;;  %3222 = vst.msk [vmem:[#allocation3 + $0x78] sm:$0xff] %vm3216_vm12, %v11807_v22  ;;  %v5376_v58 = vsel %vm3601_vm6, %v5374_v0, %v5375_v21  ;;  %v6398_v22 = vrot.slane %v6396_v60, 1  ;;  %v6401_v50 = vshll.u32 %v10513_v27, 16  ;;  %2009 = vst [vmem:[#allocation2 + $0x110] sm:$0x1] %v2008_v29  ;;  %10092 = vmatprep.subr.bf16.mxu0 %v10519_v11  ;;  %v10520_v0 = vld [vmem:[#allocation2 + $0xc0] sm:$0xff]  }
 0x206   : > { %v11903_v30 = vpop.permute.xlu0 %5793  ;;  %1998 = vst [vmem:[#allocation2 + $0xfc] sm:$0xf] %v1997_v37  ;;  %3800 = vst.msk [vmem:[#allocation3 + $0x78] sm:$0xff] %vm3794_vm13, %v11774_v45  ;;  %v1545_v45 = vrot.slane %v1543_v31, 7  ;;  %5456 = vrot.lane.b32.xlu1 %v5376_v58, %s10937_s12  ;;  %v4600_v13 = vshll.u32 %v10518_v46, 16  ;;  %10093 = vmatpush3.bf16.msra.mxu0 %v10519_v11  ;;  %v4598_v60 = vor.u32 %v4597_v35, %v4593_v9  ;;  %v6430_v31 = vshrl.u32 %v10520_v0, 16 }
 0x207   : > { %4153 = vst.msk [vmem:[#allocation3 + $0x78] sm:$0xff] %vm4147_vm14, %v11720_v59  ;;  %v6399_v14 = vor.u32 %v6398_v22, %v6394_v1  ;;  %v10515_v37 = vld [vmem:[#allocation2 + $0xbc] ss:$0 sps:$4 sm:$0x11]   ;;  %v6403_v43 = vrot.slane %v6401_v50, 1  ;;  %v10522_v27 = vld [vmem:[#allocation2 + $0xb4] sm:$0xff]  }
 0x208   : > { %v11878_v24 = vpop.permute.xlu1 %3136  ;;  %v1548_v32 = vor.u32 %v1546_v10, %v1545_v45  ;;  %v1550_v57 = vrot.slane %v1545_v45, 4  ;;  %2006 = vst.msk [vmem:[#allocation2 + $0x10c] sm:$0xf] %vm853_vm0, %v1566_v47  ;;  %v3648_v4 = vrot.slane %v10515_v37, 1  ;;  %v4602_v8 = vrot.slane %v4600_v13, 1  ;;  %v10526_v50 = vld [vmem:[#allocation2 + $0x3c] sm:$0xff]  }
 0x209   : > { %v6404_v33 = vsel %vm2735_vm7, %v6399_v14, %v6403_v43  ;;  %v10521_v21 = vld [vmem:[#allocation2 + $0xc8] ss:$0 sps:$4 sm:$0x11]   ;;  %v6432_v10 = vshll.u32 %v10520_v0, 16  ;;  %v6418_v34 = vshrl.u32 %v10522_v27, 16  ;;  %v6420_v45 = vshll.u32 %v10522_v27, 16 }
 0x20a   : > { %v11917_v63 = vpop.permute.xlu0 %5791  ;;  %v1549_v42 = vsel %vm11319_vm11, %v1541_v44, %v1548_v32  ;;  %v2001_v5 = vsel %vm11191_vm3, %v1550_v57, %v2000_v2  ;;  %6667 = vrot.lane.b32.xlu0 %v6404_v33, %s10938_s9  ;;  %v3649_v54 = vsel %vm3601_vm6, %v3647_v40, %v3648_v4  ;;  %v7288_v44 = vld [vmem:[#allocation3 + $0x18] sm:$0xff]  ;;  %v6437_v58 = vshll.u32 %v10521_v21, 16  ;;  %v10523_v22 = vld [vmem:[#allocation2 + $0xbc] ss:$0 sps:$4 sm:$0x11]   ;;  %v10538_v27 = vld [vmem:[#allocation2 + $0x60] sm:$0xff]  }
 0x20b   : > { %1999 = vst.msk [vmem:[#allocation2 + $0x100] sm:$0xf] %vm853_vm0, %v1549_v42  ;;  %2002 = vst [vmem:[#allocation2 + $0x104] sm:$0x1] %v2001_v5  ;;  %3728 = vrot.lane.b32.xlu1 %v3649_v54, %s10936_s21  ;;  %7669 = vmatmul.mubr.bf16.gmra.mrb[68].mxu0 %v7288_v44  ;;  %v4603_v51 = vsel %vm2735_vm7, %v4598_v60, %v4602_v8  ;;  %v6434_v17 = vrot.slane %v6432_v10, 1  ;;  %v6425_v2 = vshll.u32 %v10523_v22, 16 }
 0x20c   : > { %v11900_v26 = vpop.permute.xlu1 %3134  ;;  %4953 = vst.msk [vmem:[#allocation3 + $0x80] sm:$0xff] %vm2350_vm10, %v4603_v51  ;;  %v6439_v6 = vrot.slane %v6437_v58, 1  ;;  %v10524_v14 = vld [vmem:[#allocation2 + $0x18] sm:$0xfe]   ;;  %v6422_v32 = vrot.slane %v6420_v45, 1  ;;  %v4581_v33 = vshrl.u32 %v10526_v50, 16 }
 0x20d   : > { %5529 = vst.msk [vmem:[#allocation3 + $0x80] sm:$0xff] %vm3216_vm12, %v11841_v23  ;;  %v6435_v29 = vor.u32 %v6434_v17, %v6430_v31  ;;  %v10525_v57 = vld [vmem:[#allocation2 + $0x20] ss:$0 sps:$4 sm:$0x11]   ;;  %v6427_v43 = vrot.slane %v6425_v2, 1  ;;  %v7125_v40 = vrot.slane %v10524_v14, 1 }
 0x20e   : > { %v11932_v61 = vpop.permute.xlu0 %5442  ;;  %5807 = vrot.lane.b32.xlu0 %v10516_v25, %s10936_s21  ;;  %5882 = vst.msk [vmem:[#allocation3 + $0x80] sm:$0xff] %vm3794_vm13, %v11917_v63  ;;  %v6423_v5 = vor.u32 %v6422_v32, %v6418_v34  ;;  %v7126_v4 = vrot.slane %v10525_v57, 1  ;;  %v10527_v9 = vld [vmem:[#allocation2 + $0x44] ss:$0 sps:$4 sm:$0x11]   ;;  %v10530_v23 = vld [vmem:[%s13568_s3 + $0x88] sm:$0xff]  }
 0x20f   : > { %v6440_v42 = vsel %vm2735_vm7, %v6435_v29, %v6439_v6  ;;  %v4583_v46 = vshll.u32 %v10526_v50, 16  ;;  %v2917_v48 = vshrl.u32 %v10528_v28, 16  ;;  %v10327_v49 = vld [vmem:[#allocation2 + $0x24] sm:$0xfe]   ;;  %v4588_v54 = vshll.u32 %v10527_v9, 16  ;;  %10094 = vmatprep.subr.bf16.mxu0 %v10530_v23  ;;  %v10531_v60 = vld [vmem:[#allocation2 + $0xf0] sm:$0xff]  }
 0x210   : > { %v11912_v18 = vpop.permute.xlu1 %4069  ;;  %6673 = vrot.lane.b32.xlu1 %v6440_v42, %s10938_s9  ;;  %v6428_v11 = vsel %vm2735_vm7, %v6423_v5, %v6427_v43  ;;  %v7127_v63 = vsel %vm3601_vm6, %v7125_v40, %v7126_v4  ;;  %v10529_v25 = vld [vmem:[#allocation2 + $0xbc] ss:$0 sps:$4 sm:$0x11]   ;;  %v2919_v13 = vshll.u32 %v10528_v28, 16  ;;  %10095 = vmatpush3.bf16.msra.mxu0 %v10530_v23  ;;  %v10070_v58 = vpop.f32.mrb[40].mxu0  ;;  %2359 = vst.msk [vmem:[#allocation3 + $0xc0] sm:$0xff] %vm2350_vm10, %v10538_v27 }
 0x211   : > { %7253 = vst.msk [vmem:[#allocation3 + $0x10] sm:$0xff] %vm2350_vm10, %v7127_v63  ;;  %v4585_v35 = vrot.slane %v4583_v46, 1  ;;  %v4590_v0 = vrot.slane %v4588_v54, 1  ;;  %v2924_v21 = vshll.u32 %v10529_v25, 16  ;;  %v10533_v17 = vld [vmem:[#allocation2 + $0xf0] sm:$0xfe]   ;;  %v671_v45 = vadd.f32 %v11771_v36, %v10070_v58 }
 0x212   : > { %v11944_v20 = vpop.permute.xlu0 %5440  ;;  %6671 = vrot.lane.b32.xlu0 %v6428_v11, %s10938_s9  ;;  %v2921_v10 = vrot.slane %v2919_v13, 1  ;;  %v10534_v34 = vld [vmem:[#allocation2 + $0xf8] ss:$0 sps:$4 sm:$0x11]   ;;  %v662_v50 = vpop.f32.mrb[41].mxu0  ;;  %v7128_v6 = vrot.slane %v10327_v49, 1 }
 0x213   : > { %v4586_v31 = vor.u32 %v4585_v35, %v4581_v33  ;;  %v2926_v44 = vrot.slane %v2924_v21, 1  ;;  %v10535_v2 = vld [vmem:[#allocation2 + $0x2c] ss:$0 sps:$4 sm:$0x11]   ;;  %3225 = vst.msk [vmem:[#allocation3 + $0xc0] sm:$0xff] %vm3216_vm12, %v11878_v24  ;;  %v663_v14 = vadd.f32 %v11771_v36, %v662_v50  ;;  %v5384_v29 = vrot.slane %v10534_v34, 1 }
 0x214   : > { %v11930_v56 = vpop.permute.xlu1 %4067  ;;  %v2922_v51 = vor.u32 %v2921_v10, %v2917_v48  ;;  %3803 = vst.msk [vmem:[#allocation3 + $0xc0] sm:$0xff] %vm3794_vm13, %v11843_v41  ;;  %v10532_v57 = vld [vmem:[#allocation2 + $0xf0] sm:$0xff]   ;;  %v7129_v24 = vrot.slane %v10535_v2, 1  ;;  %v799_v40 = vmax.f32 %v671_v45, 0.0  ;;  %v935_v5 = vld [vmem:[#allocation2 + $0x120] sm:$0x1] }
 0x215   : > { %v4591_v22 = vsel %vm2735_vm7, %v4586_v31, %v4590_v0  ;;  %v10536_v43 = vld [vmem:[#allocation2 + $0x30] sm:$0xfe]   ;;  %4156 = vst.msk [vmem:[#allocation3 + $0xc0] sm:$0xff] %vm4147_vm14, %v11930_v56  ;;  %v797_v4 = vmax.f32 %v663_v14, 0.0  ;;  %v936_v9 = vsel %vm11191_vm3, 0, %v935_v5  ;;  %v10539_v48 = vld [vmem:[#allocation2 + $0xe4] sm:$0xff]  }
 0x216   : > { %v11966_v62 = vpop.permute.xlu0 %6657  ;;  %5813 = vrot.lane.b32.xlu0 %v10531_v60, %s10936_s21  ;;  %4952 = vst.msk [vmem:[#allocation3 + $0x68] sm:$0xff] %vm2350_vm10, %v4591_v22  ;;  %v2927_v28 = vsel %vm2735_vm7, %v2922_v51, %v2926_v44  ;;  %v7131_v42 = vrot.slane %v10536_v43, 1  ;;  %v9878_v33 = vpack.c.bf16 %v799_v40, %v799_v40  ;;  %v932_v23 = vld [vmem:[#allocation2 + $0x114] sm:$0x1]  ;;  %937 = vst [vmem:[#allocation2 + $0x120] sm:$0x1] %v936_v9 }
 0x217   : > { %5528 = vst.msk [vmem:[#allocation3 + $0x68] sm:$0xff] %vm3216_vm12, %v11847_v16  ;;  %3150 = vrot.lane.b32.xlu1 %v2927_v28, %s10937_s12  ;;  %v10537_v16 = vld [vmem:[#allocation2 + $0x38] ss:$0 sps:$4 sm:$0x11]   ;;  %v9876_v46 = vpack.c.bf16 %v797_v4, %v797_v4  ;;  %v10071_v49 = vpop.f32.mrb[42].mxu0  ;;  %v10545_v43 = vld [vmem:[#allocation2 + $0xf0] sm:$0xff]  }
 0x218   : > { %v11946_v59 = vpop.permute.xlu1 %3718  ;;  %v7287_v32 = vld [vmem:[#allocation3 + $0x10] sm:$0xff]  ;;  %5881 = vst.msk [vmem:[#allocation3 + $0x68] sm:$0xff] %vm3794_vm13, %v11799_v3  ;;  %v7130_v3 = vsel %vm3601_vm6, %v7128_v6, %v7129_v24  ;;  %v7132_v56 = vrot.slane %v10537_v16, 1  ;;  %v1586_v63 = vshrl.u32 %v9878_v33, 16  ;;  %v1589_v54 = vshll.u32 %v9878_v33, 16  ;;  %v665_v34 = vpop.f32.mrb[43].mxu0 }
 0x219   : > { %10096 = vmatprep.mubr.msk.bf16.mxu0 %vm2350_vm10, %v7287_v32  ;;  %6745 = vst.msk [vmem:[#allocation3 + $0x68] sm:$0xff] %vm4147_vm14, %v11870_v19  ;;  %v933_v19 = vsel %vm11191_vm3, 0, %v932_v23  ;;  %v12028_v25 = vld [vmem:[%s13567_s2] ss:$0 sm:$0xff]  ;;  %v1569_v13 = vshrl.u32 %v9876_v46, 16  ;;  %v1572_v0 = vshll.u32 %v9876_v46, 16 }
 0x21a   : > { %v6656_v47 = vpop.permute.xlu0 %6655  ;;  %7254 = vst.msk [vmem:[#allocation3 + $0x28] sm:$0xff] %vm2350_vm10, %v7130_v3  ;;  %v7133_v11 = vsel %vm3601_vm6, %v7131_v42, %v7132_v56  ;;  %934 = vst [vmem:[#allocation2 + $0x114] sm:$0x1] %v933_v19  ;;  %v674_v35 = vadd.f32 %v12028_v25, %v10071_v49  ;;  %v10540_v21 = vld [vmem:[#allocation2 + $0xe4] sm:$0xfe]   ;;  %v1588_v27 = vrot.slane %v1586_v63, 7 }
 0x21b   : > { %6746 = vst.msk [vmem:[#allocation3 + $0x80] sm:$0xff] %vm4147_vm14, %v6656_v47  ;;  %v5383_v47 = vrot.slane %v10533_v17, 1  ;;  %4085 = vrot.lane.b32.xlu1 %v10532_v57, %s10938_s9  ;;  %v1033_v60 = vld [vmem:[#allocation2 + $0x128] sm:$0x1]  ;;  %v12038_v51 = vrot.slane %v1569_v13, 7  ;;  %v5380_v17 = vrot.slane %v10540_v21, 1  ;;  %v666_v57 = vadd.f32 %v12028_v25, %v665_v34 }
 0x21c   : > { %v11969_v1 = vpop.permute.xlu1 %3716  ;;  %7255 = vst.msk [vmem:[#allocation3 + $0x40] sm:$0xff] %vm2350_vm10, %v7133_v11  ;;  %v10541_v44 = vld [vmem:[#allocation2 + $0xec] ss:$0 sps:$4 sm:$0x11]   ;;  %v800_v58 = vmax.f32 %v674_v35, 0.0  ;;  %v1034_v22 = vsel %vm11203_vm5, 0, %v1033_v60  ;;  %v1591_v6 = vor.u32 %v1589_v54, %v1588_v27 }
 0x21d   : > { %v5385_v41 = vsel %vm3601_vm6, %v5383_v47, %v5384_v29  ;;  %1035 = vst [vmem:[#allocation2 + $0x128] sm:$0x1] %v1034_v22  ;;  %v1030_v45 = vld [vmem:[#allocation2 + $0x11c] sm:$0x1]  ;;  %v10542_v50 = vld [vmem:[#allocation2 + $0x54] sm:$0xff]   ;;  %v1592_v2 = vrot.slane %v1588_v27, 4  ;;  %v1574_v29 = vor.u32 %v1572_v0, %v12038_v51 }
 0x21e   : > { %5462 = vrot.lane.b32.xlu0 %v5385_v41, %s10937_s12  ;;  %v12032_v31 = vpop.permute.xlu0 %5797  ;;  %v5381_v14 = vrot.slane %v10541_v44, 1  ;;  %v9879_v28 = vpack.c.bf16 %v800_v58, %v800_v58  ;;  %v1575_v32 = vrot.slane %v12038_v51, 4  ;;  %v1031_v24 = vsel %vm11203_vm5, 0, %v1030_v45  ;;  %2358 = vst.msk [vmem:[#allocation3 + $0xa8] sm:$0xff] %vm2350_vm10, %v10542_v50  ;;  %v2017_v41 = vld [vmem:[#allocation2 + $0x120] sm:$0xf] }
 0x21f   : > { %4083 = vrot.lane.b32.xlu1 %v10539_v48, %s10938_s9  ;;  %1032 = vst [vmem:[#allocation2 + $0x11c] sm:$0x1] %v1031_v24  ;;  %3224 = vst.msk [vmem:[#allocation3 + $0xa8] sm:$0xff] %vm3216_vm12, %v11900_v26  ;;  %v2018_v42 = vsel %vm11312_vm9, %v1591_v6, %v2017_v41  ;;  %v798_v4 = vmax.f32 %v666_v57, 0.0  ;;  %v6454_v56 = vshrl.u32 %v10545_v43, 16  ;;  %v6456_v49 = vshll.u32 %v10545_v43, 16 }
 0x220   : > { %v11976_v37 = vpop.permute.xlu1 %3140  ;;  %v5382_v16 = vsel %vm3601_vm6, %v5380_v17, %v5381_v14  ;;  %v1594_v40 = vshrl.u32 %v9879_v28, 16  ;;  %v1597_v3 = vshll.u32 %v9879_v28, 16  ;;  %3802 = vst.msk [vmem:[#allocation3 + $0xa8] sm:$0xff] %vm3794_vm13, %v11851_v12  ;;  %2019 = vst [vmem:[#allocation2 + $0x120] sm:$0xf] %v2018_v42  ;;  %v7295_v58 = vld [vmem:[#allocation3 + $0x50] sm:$0xff] }
 0x221   : > { %v7290_v47 = vld [vmem:[#allocation3 + $0x28] sm:$0xff]  ;;  %v2010_v5 = vld [vmem:[#allocation2 + $0x114] sm:$0xf]  ;;  %4155 = vst.msk [vmem:[#allocation3 + $0xa8] sm:$0xff] %vm4147_vm14, %v11818_v55  ;;  %v9877_v48 = vpack.c.bf16 %v798_v4, %v798_v4  ;;  %v6458_v44 = vrot.slane %v6456_v49, 1  ;;  %7684 = vmatprep.mubr.bf16.mxu1 %v7295_v58  ;;  %v10731_v53 = vld [vmem:[#allocation2 + $0x108] sm:$0xff]  }
 0x222   : > { %10097 = vmatmul.mubr.msk.bf16.vlgmr.msra.gmra.mrb[72].mxu0 %vm2350_vm10, %v7290_v47  ;;  %5460 = vrot.lane.b32.xlu0 %v5382_v16, %s10937_s12  ;;  %v12056_v9 = vpop.permute.xlu0 %5795  ;;  %v2011_v26 = vsel %vm11312_vm9, %v1574_v29, %v2010_v5  ;;  %v1596_v19 = vrot.slane %v1594_v40, 7  ;;  %v10543_v46 = vld [vmem:[#allocation2 + $0xf0] sm:$0xfe]   ;;  %v10544_v12 = vld [vmem:[#allocation2 + $0xf8] ss:$0 sps:$4 sm:$0x11]  }
 0x223   : > { %v7293_v23 = vld [vmem:[#allocation3 + $0x40] sm:$0xff]  ;;  %2012 = vst [vmem:[#allocation2 + $0x114] sm:$0xf] %v2011_v26  ;;  %v3656_v35 = vrot.slane %v10543_v46, 1  ;;  %v1577_v13 = vshrl.u32 %v9877_v48, 16  ;;  %v1580_v0 = vshll.u32 %v9877_v48, 16 }
 0x224   : > { %v11990_v8 = vpop.permute.xlu1 %3138  ;;  %10100 = vmatprep.mubr.msk.bf16.mxu0 %vm2350_vm10, %v7293_v23  ;;  %v1599_v11 = vor.u32 %v1597_v3, %v1596_v19  ;;  %v1601_v63 = vrot.slane %v1596_v19, 4  ;;  %v2021_v54 = vld [vmem:[#allocation2 + $0x128] sm:$0x1]  ;;  %v3657_v21 = vrot.slane %v10544_v12, 1  ;;  %v10547_v14 = vld [vmem:[#allocation2 + $0x3c] sm:$0xfe]  }
 0x225   : > { %v10546_v60 = vld [vmem:[#allocation2 + $0xf8] ss:$0 sps:$4 sm:$0x11]   ;;  %v1579_v22 = vrot.slane %v1577_v13, 7  ;;  %v7134_v24 = vrot.slane %v10547_v14, 1  ;;  %v10553_v23 = vld [vmem:[#allocation2 + $0x108] sm:$0xff]  }
 0x226   : > { %v1600_v27 = vsel %vm11319_vm11, %v1592_v2, %v1599_v11  ;;  %v2022_v55 = vsel %vm11191_vm3, %v1601_v63, %v2021_v54  ;;  %v2014_v17 = vld [vmem:[#allocation2 + $0x11c] sm:$0x1]  ;;  %v3658_v34 = vsel %vm3601_vm6, %v3656_v35, %v3657_v21  ;;  %v6461_v45 = vshll.u32 %v10546_v60, 16  ;;  %v12071_v50 = vpop.permute.xlu0 %5446  ;;  %v10548_v28 = vld [vmem:[#allocation2 + $0x44] ss:$0 sps:$4 sm:$0x11]  }
 0x227   : > { %2020 = vst.msk [vmem:[#allocation2 + $0x124] sm:$0xf] %vm853_vm0, %v1600_v27  ;;  %2023 = vst [vmem:[#allocation2 + $0x128] sm:$0x1] %v2022_v55  ;;  %3734 = vrot.lane.b32.xlu1 %v3658_v34, %s10936_s21  ;;  %v6459_v2 = vor.u32 %v6458_v44, %v6454_v56  ;;  %v1582_v47 = vor.u32 %v1580_v0, %v1579_v22  ;;  %v1584_v29 = vrot.slane %v1579_v22, 4  ;;  %v7135_v43 = vrot.slane %v10548_v28, 1 }
 0x228   : > { %v12010_v36 = vpop.permute.xlu1 %4073  ;;  %v6463_v57 = vrot.slane %v6461_v45, 1  ;;  %v10549_v41 = vld [vmem:[#allocation2 + $0x48] sm:$0xfe]   ;;  %v10550_v42 = vld [vmem:[#allocation2 + $0x50] ss:$0 sps:$4 sm:$0x11]  }
 0x229   : > { %v1583_v16 = vsel %vm11319_vm11, %v1575_v32, %v1582_v47  ;;  %v2015_v40 = vsel %vm11191_vm3, %v1584_v29, %v2014_v17  ;;  %v7294_v5 = vld [vmem:[#allocation3 + $0x48] sm:$0xff]  ;;  %v7136_v4 = vsel %vm3601_vm6, %v7134_v24, %v7135_v43  ;;  %v7137_v56 = vrot.slane %v10549_v41, 1  ;;  %v10551_v26 = vld [vmem:[#allocation2 + $0xe4] sm:$0xfe]   ;;  %v10556_v13 = vld [vmem:[#allocation2 + $0xf0] sm:$0xff]   ;;  %v12095_v0 = vpop.f32.mrb[44].mxu0 }
 0x22a   : > { %v6464_v3 = vsel %vm2735_vm7, %v6459_v2, %v6463_v57  ;;  %2013 = vst.msk [vmem:[#allocation2 + $0x118] sm:$0xf] %vm853_vm0, %v1583_v16  ;;  %2016 = vst [vmem:[#allocation2 + $0x11c] sm:$0x1] %v2015_v40  ;;  %7685 = vmatmul.mubr.bf16.gmra.mrb[4].mxu1 %v7294_v5  ;;  %v7298_v51 = vld [vmem:[#allocation3 + $0x68] sm:$0xff]  ;;  %v7138_v32 = vrot.slane %v10550_v42, 1  ;;  %v12087_v46 = vpop.permute.xlu0 %5444 }
 0x22b   : > { %6677 = vrot.lane.b32.xlu0 %v6464_v3, %s10938_s9  ;;  %7256 = vst.msk [vmem:[#allocation3 + $0x58] sm:$0xff] %vm2350_vm10, %v7136_v4  ;;  %v10552_v19 = vld [vmem:[#allocation2 + $0xec] ss:$0 sps:$4 sm:$0x11]   ;;  %7692 = vmatprep.mubr.bf16.mxu1 %v7298_v51  ;;  %v3653_v49 = vrot.slane %v10551_v26, 1  ;;  %v10554_v63 = vld [vmem:[#allocation2 + $0x60] sm:$0xff]  }
 0x22c   : > { %v12034_v10 = vpop.permute.xlu1 %4071  ;;  %v7139_v12 = vsel %vm3601_vm6, %v7137_v56, %v7138_v32  ;;  %v3654_v11 = vrot.slane %v10552_v19, 1  ;;  %v10555_v54 = vld [vmem:[#allocation2 + $0x68] ss:$0 sps:$4 sm:$0x11]   ;;  %v4617_v21 = vshrl.u32 %v10554_v63, 16  ;;  %v4619_v60 = vshll.u32 %v10554_v63, 16 }
 0x22d   : > { %7257 = vst.msk [vmem:[#allocation3 + $0x70] sm:$0xff] %vm2350_vm10, %v7139_v12  ;;  %v4624_v27 = vshll.u32 %v10555_v54, 16  ;;  %v10557_v55 = vld [vmem:[#allocation2 + $0xf8] ss:$0 sps:$4 sm:$0x11]   ;;  %v2953_v44 = vshrl.u32 %v10556_v13, 16 }
 0x22e   : > { %v3655_v35 = vsel %vm3601_vm6, %v3653_v49, %v3654_v11  ;;  %v2955_v58 = vshll.u32 %v10556_v13, 16  ;;  %v12098_v22 = vpop.permute.xlu0 %6661  ;;  %v4621_v45 = vrot.slane %v4619_v60, 1  ;;  %v2960_v14 = vshll.u32 %v10557_v55, 16  ;;  %v10558_v28 = vld [vmem:[#allocation2 + $0xfc] sm:$0xff]   ;;  %v10563_v47 = vld [vmem:[#allocation2 + $0x54] sm:$0xff]   ;;  %v10565_v56 = vld [vmem:[#allocation2 + $0xe4] sm:$0xff]  }
 0x22f   : > { %5817 = vrot.lane.b32.xlu0 %v10553_v23, %s10936_s21  ;;  %3732 = vrot.lane.b32.xlu1 %v3655_v35, %s10936_s21  ;;  %v4626_v2 = vrot.slane %v4624_v27, 1  ;;  %v10559_v43 = vld [vmem:[#allocation2 + $0x54] sm:$0xfe]   ;;  %v4605_v41 = vshrl.u32 %v10563_v47, 16  ;;  %v4607_v4 = vshll.u32 %v10563_v47, 16  ;;  %v2941_v55 = vshrl.u32 %v10565_v56, 16 }
 0x230   : > { %v12058_v33 = vpop.permute.xlu1 %3722  ;;  %v2957_v29 = vrot.slane %v2955_v58, 1  ;;  %v4622_v57 = vor.u32 %v4621_v45, %v4617_v21  ;;  %v2962_v24 = vrot.slane %v2960_v14, 1  ;;  %v10560_v3 = vld [vmem:[#allocation2 + $0x5c] ss:$0 sps:$4 sm:$0x11]   ;;  %v7140_v5 = vrot.slane %v10559_v43, 1 }
 0x231   : > { %v7141_v51 = vrot.slane %v10560_v3, 1  ;;  %v10561_v32 = vld [vmem:[#allocation2 + $0x60] sm:$0xfe]   ;;  %v10562_v26 = vld [vmem:[#allocation2 + $0x68] ss:$0 sps:$4 sm:$0x11]  }
 0x232   : > { %v7296_v34 = vld [vmem:[#allocation3 + $0x58] sm:$0xff]  ;;  %v2958_v40 = vor.u32 %v2957_v29, %v2953_v44  ;;  %v4627_v42 = vsel %vm2735_vm7, %v4622_v57, %v4626_v2  ;;  %v6660_v19 = vpop.permute.xlu0 %6659  ;;  %v7143_v11 = vrot.slane %v10561_v32, 1  ;;  %v7144_v63 = vrot.slane %v10562_v26, 1  ;;  %v10564_v54 = vld [vmem:[#allocation2 + $0x5c] ss:$0 sps:$4 sm:$0x11]  }
 0x233   : > { %10101 = vmatmul.mubr.msk.bf16.gmra.mrb[76].mxu0 %vm2350_vm10, %v7296_v34  ;;  %5815 = vrot.lane.b32.xlu0 %v10558_v28, %s10936_s21  ;;  %4955 = vst.msk [vmem:[#allocation3 + $0xb0] sm:$0xff] %vm2350_vm10, %v4627_v42  ;;  %v7142_v49 = vsel %vm3601_vm6, %v7140_v5, %v7141_v51  ;;  %v4609_v35 = vrot.slane %v4607_v4, 1  ;;  %v4612_v60 = vshll.u32 %v10564_v54, 16  ;;  %v7297_v27 = vld [vmem:[#allocation3 + $0x60] sm:$0xff]  ;;  %v2943_v44 = vshll.u32 %v10565_v56, 16  ;;  %v678_v32 = vpop.f32.mrb[45].mxu0 }
 0x234   : > { %v12073_v6 = vpop.permute.xlu1 %3720  ;;  %v7299_v16 = vld [vmem:[#allocation3 + $0x70] sm:$0xff]  ;;  %v2963_v23 = vsel %vm2735_vm7, %v2958_v40, %v2962_v24  ;;  %5531 = vst.msk [vmem:[#allocation3 + $0xb0] sm:$0xff] %vm3216_vm12, %v11932_v61  ;;  %v7145_v13 = vsel %vm3601_vm6, %v7143_v11, %v7144_v63  ;;  %v10566_v61 = vld [vmem:[#allocation2 + $0xec] ss:$0 sps:$4 sm:$0x11]   ;;  %7693 = vmatmul.mubr.bf16.gmra.mrb[8].mxu1 %v7297_v27  ;;  %v687_v57 = vadd.f32 %v12028_v25, %v12095_v0 }
 0x235   : > { %10104 = vmatprep.mubr.msk.bf16.mxu0 %vm2350_vm10, %v7299_v16  ;;  %3156 = vrot.lane.b32.xlu1 %v2963_v23, %s10937_s12  ;;  %5884 = vst.msk [vmem:[#allocation3 + $0xb0] sm:$0xff] %vm3794_vm13, %v12056_v9  ;;  %v4610_v21 = vor.u32 %v4609_v35, %v4605_v41  ;;  %v4614_v58 = vrot.slane %v4612_v60, 1  ;;  %v2948_v34 = vshll.u32 %v10566_v61, 16  ;;  %v10567_v45 = vld [vmem:[#allocation2 + $0x108] sm:$0xfe]   ;;  %v2945_v9 = vrot.slane %v2943_v44, 1 }
 0x236   : > { %7258 = vst.msk [vmem:[#allocation3 + $0x88] sm:$0xff] %vm2350_vm10, %v7142_v49  ;;  %7259 = vst.msk [vmem:[#allocation3 + $0xa0] sm:$0xff] %vm2350_vm10, %v7145_v13  ;;  %v10568_v14 = vld [vmem:[#allocation2 + $0x110] ss:$0 sps:$4 sm:$0x11]   ;;  %v5389_v29 = vrot.slane %v10567_v45, 1 }
 0x237   : > { %6748 = vst.msk [vmem:[#allocation3 + $0xb0] sm:$0xff] %vm4147_vm14, %v6660_v19  ;;  %v4615_v28 = vsel %vm2735_vm7, %v4610_v21, %v4614_v58  ;;  %v2950_v47 = vrot.slane %v2948_v34, 1  ;;  %v2946_v24 = vor.u32 %v2945_v9, %v2941_v55  ;;  %v5390_v43 = vrot.slane %v10568_v14, 1  ;;  %v10576_v41 = vld [vmem:[#allocation2 + $0x78] sm:$0xff]   ;;  %v10572_v56 = vld [vmem:[#allocation2 + $0x6c] sm:$0xfe]   ;;  %v12160_v14 = vpop.permute.xlu0 %5801 }
 0x238   : > { %v12089_v48 = vpop.permute.xlu1 %3144  ;;  %4954 = vst.msk [vmem:[#allocation3 + $0x98] sm:$0xff] %vm2350_vm10, %v4615_v28  ;;  %v10570_v40 = vld [vmem:[#allocation2 + $0xfc] sm:$0xfe]   ;;  %v10571_v3 = vld [vmem:[#allocation2 + $0x104] ss:$0 sps:$4 sm:$0x11]  }
 0x239   : > { %5530 = vst.msk [vmem:[#allocation3 + $0x98] sm:$0xff] %vm3216_vm12, %v11944_v20  ;;  %v2951_v42 = vsel %vm2735_vm7, %v2946_v24, %v2950_v47  ;;  %v5391_v0 = vsel %vm3601_vm6, %v5389_v29, %v5390_v43  ;;  %v5386_v20 = vrot.slane %v10570_v40, 1  ;;  %v5387_v4 = vrot.slane %v10571_v3, 1  ;;  %v10573_v51 = vld [vmem:[#allocation2 + $0x74] ss:$0 sps:$4 sm:$0x11]  }
 0x23a   : > { %5883 = vst.msk [vmem:[#allocation3 + $0x98] sm:$0xff] %vm3794_vm13, %v11903_v30  ;;  %3154 = vrot.lane.b32.xlu1 %v2951_v42, %s10937_s12  ;;  %5466 = vrot.lane.b32.xlu0 %v5391_v0, %s10937_s12  ;;  %v803_v30 = vmax.f32 %v687_v57, 0.0  ;;  %v10569_v26 = vld [vmem:[#allocation2 + $0x108] sm:$0xff]   ;;  %v7146_v19 = vrot.slane %v10572_v56, 1  ;;  %v7147_v11 = vrot.slane %v10573_v51, 1  ;;  %v10075_v43 = vpop.f32.mrb[46].mxu0 }
 0x23b   : > { %2361 = vst.msk [vmem:[#allocation3 + $0xf0] sm:$0xff] %vm2350_vm10, %v10576_v41  ;;  %v10574_v63 = vld [vmem:[#allocation2 + $0x78] sm:$0xfe]   ;;  %v10575_v54 = vld [vmem:[#allocation2 + $0x80] ss:$0 sps:$4 sm:$0x11]   ;;  %v690_v56 = vadd.f32 %v12028_v25, %v10075_v43 }
 0x23c   : > { %v12100_v17 = vpop.permute.xlu1 %3142  ;;  %6747 = vst.msk [vmem:[#allocation3 + $0x98] sm:$0xff] %vm4147_vm14, %v11966_v62  ;;  %v9882_v49 = vpack.c.bf16 %v803_v30, %v803_v30  ;;  %v679_v62 = vadd.f32 %v12028_v25, %v678_v32  ;;  %v941_v35 = vld [vmem:[#allocation2 + $0x138] sm:$0x1]  ;;  %v7148_v13 = vsel %vm3601_vm6, %v7146_v19, %v7147_v11  ;;  %v7149_v21 = vrot.slane %v10574_v63, 1  ;;  %v938_v27 = vld [vmem:[#allocation2 + $0x12c] sm:$0x1] }
 0x23d   : > { %v7302_v16 = vld [vmem:[#allocation3 + $0x88] sm:$0xff]  ;;  %v7305_v5 = vld [vmem:[#allocation3 + $0xa0] sm:$0xff]  ;;  %3227 = vst.msk [vmem:[#allocation3 + $0xf0] sm:$0xff] %vm3216_vm12, %v11976_v37  ;;  %v5388_v37 = vsel %vm3601_vm6, %v5386_v20, %v5387_v4  ;;  %v7150_v60 = vrot.slane %v10575_v54, 1  ;;  %v942_v61 = vsel %vm11191_vm3, 0, %v941_v35  ;;  %v939_v34 = vsel %vm11191_vm3, 0, %v938_v27 }
 0x23e   : > { %10105 = vmatmul.mubr.msk.bf16.gmra.mrb[80].mxu0 %vm2350_vm10, %v7302_v16  ;;  %3805 = vst.msk [vmem:[#allocation3 + $0xf0] sm:$0xff] %vm3794_vm13, %v11946_v59  ;;  %4089 = vrot.lane.b32.xlu1 %v10569_v26, %s10938_s9  ;;  %v10577_v59 = vld [vmem:[#allocation2 + $0xfc] sm:$0xff]   ;;  %943 = vst [vmem:[#allocation2 + $0x138] sm:$0x1] %v942_v61  ;;  %v1620_v55 = vshrl.u32 %v9882_v49, 16  ;;  %v1623_v44 = vshll.u32 %v9882_v49, 16 }
 0x23f   : > { %10108 = vmatprep.mubr.msk.bf16.mxu0 %vm2350_vm10, %v7305_v5  ;;  %4158 = vst.msk [vmem:[#allocation3 + $0xf0] sm:$0xff] %vm4147_vm14, %v12034_v10  ;;  %5464 = vrot.lane.b32.xlu0 %v5388_v37, %s10937_s12  ;;  %v10578_v10 = vld [vmem:[#allocation2 + $0x108] sm:$0xff]   ;;  %v801_v58 = vmax.f32 %v679_v62, 0.0  ;;  %v7151_v9 = vsel %vm3601_vm6, %v7149_v21, %v7150_v60  ;;  %940 = vst [vmem:[#allocation2 + $0x12c] sm:$0x1] %v939_v34  ;;  %v681_v0 = vpop.f32.mrb[47].mxu0 }
 0x240   : > { %v12108_v12 = vpop.permute.xlu1 %4077  ;;  %7260 = vst.msk [vmem:[#allocation3 + $0xb8] sm:$0xff] %vm2350_vm10, %v7148_v13  ;;  %7261 = vst.msk [vmem:[#allocation3 + $0xd0] sm:$0xff] %vm2350_vm10, %v7151_v9  ;;  %v12163_v28 = vrot.slane %v1620_v55, 7  ;;  %v10579_v29 = vld [vmem:[#allocation2 + $0x110] ss:$0 sps:$4 sm:$0x11]   ;;  %v682_v26 = vadd.f32 %v12028_v25, %v681_v0  ;;  %v12183_v25 = vpop.permute.xlu0 %5799 }
 0x241   : > { %v9880_v47 = vpack.c.bf16 %v801_v58, %v801_v58  ;;  %v6478_v57 = vshrl.u32 %v10578_v10, 16  ;;  %v6480_v24 = vshll.u32 %v10578_v10, 16  ;;  %v1039_v41 = vld [vmem:[#allocation2 + $0x140] sm:$0x1]  ;;  %v10580_v16 = vld [vmem:[#allocation2 + $0x6c] sm:$0xff]   ;;  %v6485_v4 = vshll.u32 %v10579_v29, 16 }
 0x242   : > { %4087 = vrot.lane.b32.xlu1 %v10577_v59, %s10938_s9  ;;  %v1625_v40 = vor.u32 %v1623_v44, %v12163_v28  ;;  %v1036_v5 = vld [vmem:[#allocation2 + $0x134] sm:$0x1]  ;;  %v1040_v30 = vsel %vm11203_vm5, 0, %v1039_v41  ;;  %2360 = vst.msk [vmem:[#allocation3 + $0xd8] sm:$0xff] %vm2350_vm10, %v10580_v16  ;;  %v10583_v51 = vld [vmem:[#allocation2 + $0xfc] sm:$0xff]   ;;  %v1626_v37 = vrot.slane %v12163_v28, 4 }
 0x243   : > { %v1603_v3 = vshrl.u32 %v9880_v47, 16  ;;  %v1606_v42 = vshll.u32 %v9880_v47, 16  ;;  %v6482_v20 = vrot.slane %v6480_v24, 1  ;;  %1041 = vst [vmem:[#allocation2 + $0x140] sm:$0x1] %v1040_v30  ;;  %v1037_v19 = vsel %vm11203_vm5, 0, %v1036_v5 }
 0x244   : > { %v12120_v2 = vpop.permute.xlu1 %4075  ;;  %3226 = vst.msk [vmem:[#allocation3 + $0xd8] sm:$0xff] %vm3216_vm12, %v11990_v8  ;;  %v6487_v54 = vrot.slane %v6485_v4, 1  ;;  %v804_v35 = vmax.f32 %v690_v56, 0.0  ;;  %1038 = vst [vmem:[#allocation2 + $0x134] sm:$0x1] %v1037_v19  ;;  %v802_v21 = vmax.f32 %v682_v26, 0.0  ;;  %v12199_v0 = vpop.permute.xlu0 %5450 }
 0x245   : > { %v12171_v32 = vrot.slane %v1603_v3, 7  ;;  %v2031_v11 = vld [vmem:[#allocation2 + $0x138] sm:$0xf]  ;;  %v6483_v63 = vor.u32 %v6482_v20, %v6478_v57  ;;  %3804 = vst.msk [vmem:[#allocation3 + $0xd8] sm:$0xff] %vm3794_vm13, %v11969_v1  ;;  %v6466_v60 = vshrl.u32 %v10583_v51, 16  ;;  %v6468_v55 = vshll.u32 %v10583_v51, 16 }
 0x246   : > { %v2032_v8 = vsel %vm11312_vm9, %v1625_v40, %v2031_v11  ;;  %v2024_v13 = vld [vmem:[#allocation2 + $0x12c] sm:$0xf]  ;;  %4157 = vst.msk [vmem:[#allocation3 + $0xd8] sm:$0xff] %vm4147_vm14, %v11912_v18  ;;  %v9883_v1 = vpack.c.bf16 %v804_v35, %v804_v35  ;;  %v9881_v58 = vpack.c.bf16 %v802_v21, %v802_v21  ;;  %v10582_v34 = vld [vmem:[#allocation2 + $0x110] ss:$0 sps:$4 sm:$0x11]  }
 0x247   : > { %v7308_v62 = vld [vmem:[#allocation3 + $0xb8] sm:$0xff]  ;;  %v1608_v59 = vor.u32 %v1606_v42, %v12171_v32  ;;  %v7311_v61 = vld [vmem:[#allocation3 + $0xd0] sm:$0xff]  ;;  %2033 = vst [vmem:[#allocation2 + $0x138] sm:$0xf] %v2032_v8  ;;  %v6488_v27 = vsel %vm2735_vm7, %v6483_v63, %v6487_v54  ;;  %v7301_v9 = vld [vmem:[#allocation3 + $0x80] sm:$0xff]  ;;  %v6470_v29 = vrot.slane %v6468_v55, 1 }
 0x248   : > { %v12140_v23 = vpop.permute.xlu1 %3726  ;;  %10109 = vmatmul.mubr.msk.bf16.gmra.mrb[84].mxu0 %vm2350_vm10, %v7308_v62  ;;  %v10581_v10 = vld [vmem:[#allocation2 + $0x108] sm:$0xfe]   ;;  %6681 = vrot.lane.b32.xlu0 %v6488_v27, %s10938_s9  ;;  %v1628_v18 = vshrl.u32 %v9883_v1, 16  ;;  %v1631_v28 = vshll.u32 %v9883_v1, 16  ;;  %v1609_v57 = vrot.slane %v12171_v32, 4  ;;  %v1611_v24 = vshrl.u32 %v9881_v58, 16 }
 0x249   : > { %10112 = vmatprep.mubr.msk.bf16.mxu0 %vm2350_vm10, %v7311_v61  ;;  %v2025_v44 = vsel %vm11312_vm9, %v1608_v59, %v2024_v13  ;;  %v3662_v47 = vrot.slane %v10581_v10, 1  ;;  %7700 = vmatprep.mubr.bf16.mxu1 %v7301_v9  ;;  %v1614_v43 = vshll.u32 %v9881_v58, 16  ;;  %v3663_v41 = vrot.slane %v10582_v34, 1  ;;  %v10584_v42 = vld [vmem:[#allocation2 + $0x104] ss:$0 sps:$4 sm:$0x11]  }
 0x24a   : > { %2026 = vst [vmem:[#allocation2 + $0x12c] sm:$0xf] %v2025_v44  ;;  %v1630_v40 = vrot.slane %v1628_v18, 7  ;;  %v2035_v3 = vld [vmem:[#allocation2 + $0x140] sm:$0x1]  ;;  %v1613_v5 = vrot.slane %v1611_v24, 7  ;;  %v6471_v32 = vor.u32 %v6470_v29, %v6466_v60 }
 0x24b   : > { %v2028_v20 = vld [vmem:[#allocation2 + $0x134] sm:$0x1]  ;;  %v3664_v4 = vsel %vm3601_vm6, %v3662_v47, %v3663_v41  ;;  %v7300_v56 = vld [vmem:[#allocation3 + $0x78] sm:$0xff]  ;;  %v6473_v26 = vshll.u32 %v10584_v42, 16  ;;  %v10592_v55 = vld [vmem:[#allocation2 + $0x78] sm:$0xff]  }
 0x24c   : > { %v12157_v45 = vpop.permute.xlu1 %3724  ;;  %v1633_v30 = vor.u32 %v1631_v28, %v1630_v40  ;;  %v1635_v51 = vrot.slane %v1630_v40, 4  ;;  %3738 = vrot.lane.b32.xlu1 %v3664_v4, %s10936_s21  ;;  %7701 = vmatmul.mubr.bf16.gmra.mrb[12].mxu1 %v7300_v56  ;;  %v1616_v19 = vor.u32 %v1614_v43, %v1613_v5  ;;  %v1618_v62 = vrot.slane %v1613_v5, 4  ;;  %v10585_v11 = vld [vmem:[#allocation2 + $0x84] sm:$0xfe]   ;;  %v10587_v27 = vld [vmem:[#allocation2 + $0x90] sm:$0xfe]  }
 0x24d   : > { %v10586_v63 = vld [vmem:[#allocation2 + $0x8c] ss:$0 sps:$4 sm:$0x11]   ;;  %v6475_v8 = vrot.slane %v6473_v26, 1  ;;  %v7152_v60 = vrot.slane %v10585_v11, 1  ;;  %v12216_v44 = vpop.permute.xlu0 %5448  ;;  %v7155_v34 = vrot.slane %v10587_v27, 1 }
 0x24e   : > { %v1634_v54 = vsel %vm11319_vm11, %v1626_v37, %v1633_v30  ;;  %v2036_v35 = vsel %vm11191_vm3, %v1635_v51, %v2035_v3  ;;  %v7304_v59 = vld [vmem:[#allocation3 + $0x98] sm:$0xff]  ;;  %v1617_v13 = vsel %vm11319_vm11, %v1609_v57, %v1616_v19  ;;  %v2029_v21 = vsel %vm11191_vm3, %v1618_v62, %v2028_v20  ;;  %v10588_v10 = vld [vmem:[#allocation2 + $0x98] ss:$0 sps:$4 sm:$0x11]   ;;  %v10591_v9 = vld [vmem:[#allocation2 + $0x120] sm:$0xff]   ;;  %v10078_v19 = vpop.f32.mrb[48].mxu0 }
 0x24f   : > { %2034 = vst.msk [vmem:[#allocation2 + $0x13c] sm:$0xf] %vm853_vm0, %v1634_v54  ;;  %2037 = vst [vmem:[#allocation2 + $0x140] sm:$0x1] %v2036_v35  ;;  %v7153_v61 = vrot.slane %v10586_v63, 1  ;;  %7708 = vmatprep.mubr.bf16.mxu1 %v7304_v59  ;;  %v6476_v37 = vsel %vm2735_vm7, %v6471_v32, %v6475_v8  ;;  %v10594_v18 = vld [vmem:[#allocation2 + $0x108] sm:$0xff]  }
 0x250   : > { %2027 = vst.msk [vmem:[#allocation2 + $0x130] sm:$0xf] %vm853_vm0, %v1617_v13  ;;  %2030 = vst [vmem:[#allocation2 + $0x134] sm:$0x1] %v2029_v21  ;;  %6679 = vrot.lane.b32.xlu0 %v6476_v37, %s10938_s9  ;;  %v7156_v28 = vrot.slane %v10588_v10, 1  ;;  %v4641_v40 = vshrl.u32 %v10592_v55, 16 }
 0x251   : > { %v7154_v58 = vsel %vm3601_vm6, %v7152_v60, %v7153_v61  ;;  %v10589_v47 = vld [vmem:[#allocation2 + $0xfc] sm:$0xfe]   ;;  %v10590_v29 = vld [vmem:[#allocation2 + $0x104] ss:$0 sps:$4 sm:$0x11]   ;;  %v4643_v3 = vshll.u32 %v10592_v55, 16  ;;  %v12227_v4 = vpop.permute.xlu0 %6665 }
 0x252   : > { %7262 = vst.msk [vmem:[#allocation3 + $0xe8] sm:$0xff] %vm2350_vm10, %v7154_v58  ;;  %v7157_v57 = vsel %vm3601_vm6, %v7155_v34, %v7156_v28  ;;  %v3659_v24 = vrot.slane %v10589_v47, 1  ;;  %v3660_v43 = vrot.slane %v10590_v29, 1  ;;  %v10593_v41 = vld [vmem:[#allocation2 + $0x80] ss:$0 sps:$4 sm:$0x11]  }
 0x253   : > { %7263 = vst.msk [vmem:[#allocation3 + $0x100] sm:$0xff] %vm2350_vm10, %v7157_v57  ;;  %v2977_v42 = vshrl.u32 %v10594_v18, 16  ;;  %v4645_v56 = vrot.slane %v4643_v3, 1  ;;  %v4648_v30 = vshll.u32 %v10593_v41, 16  ;;  %v2979_v32 = vshll.u32 %v10594_v18, 16  ;;  %v10596_v26 = vld [vmem:[#allocation2 + $0x114] sm:$0xff]  }
 0x254   : > { %5821 = vrot.lane.b32.xlu0 %v10591_v9, %s10936_s21  ;;  %v3661_v20 = vsel %vm3601_vm6, %v3659_v24, %v3660_v43  ;;  %v10595_v51 = vld [vmem:[#allocation2 + $0x110] ss:$0 sps:$4 sm:$0x11]   ;;  %v10597_v8 = vld [vmem:[#allocation2 + $0x9c] sm:$0xfe]  }
 0x255   : > { %3736 = vrot.lane.b32.xlu1 %v3661_v20, %s10936_s21  ;;  %v4646_v11 = vor.u32 %v4645_v56, %v4641_v40  ;;  %v4650_v63 = vrot.slane %v4648_v30, 1  ;;  %v2981_v54 = vrot.slane %v2979_v32, 1  ;;  %v2984_v35 = vshll.u32 %v10595_v51, 16  ;;  %v10598_v60 = vld [vmem:[#allocation2 + $0xa4] ss:$0 sps:$4 sm:$0x11]  }
 0x256   : > { %v12178_v49 = vpop.permute.xlu1 %3148  ;;  %v7158_v37 = vrot.slane %v10597_v8, 1  ;;  %v6664_v10 = vpop.permute.xlu0 %6663  ;;  %v7159_v58 = vrot.slane %v10598_v60, 1  ;;  %v10599_v34 = vld [vmem:[#allocation2 + $0xa8] sm:$0xfe]   ;;  %v10603_v40 = vld [vmem:[#allocation2 + $0xfc] sm:$0xff]  }
 0x257   : > { %v4651_v59 = vsel %vm2735_vm7, %v4646_v11, %v4650_v63  ;;  %v2982_v13 = vor.u32 %v2981_v54, %v2977_v42  ;;  %v2986_v21 = vrot.slane %v2984_v35, 1  ;;  %v10600_v9 = vld [vmem:[#allocation2 + $0xb0] ss:$0 sps:$4 sm:$0x11]   ;;  %v7161_v28 = vrot.slane %v10599_v34, 1  ;;  %v7303_v42 = vld [vmem:[#allocation3 + $0x90] sm:$0xff] }
 0x258   : > { %5819 = vrot.lane.b32.xlu0 %v10596_v26, %s10936_s21  ;;  %4957 = vst.msk [vmem:[#allocation3 + $0xe0] sm:$0xff] %vm2350_vm10, %v4651_v59  ;;  %v7160_v18 = vsel %vm3601_vm6, %v7158_v37, %v7159_v58  ;;  %v7162_v47 = vrot.slane %v10600_v9, 1  ;;  %v10601_v29 = vld [vmem:[#allocation2 + $0x6c] sm:$0xff]   ;;  %v10602_v57 = vld [vmem:[#allocation2 + $0x74] ss:$0 sps:$4 sm:$0x11]   ;;  %7709 = vmatmul.mubr.bf16.gmra.mrb[16].mxu1 %v7303_v42 }
 0x259   : > { %v7314_v62 = vld [vmem:[#allocation3 + $0xe8] sm:$0xff]  ;;  %5533 = vst.msk [vmem:[#allocation3 + $0xe0] sm:$0xff] %vm3216_vm12, %v12071_v50  ;;  %v2987_v55 = vsel %vm2735_vm7, %v2982_v13, %v2986_v21  ;;  %v4629_v24 = vshrl.u32 %v10601_v29, 16  ;;  %v4631_v43 = vshll.u32 %v10601_v29, 16  ;;  %v4636_v41 = vshll.u32 %v10602_v57, 16  ;;  %v10607_v57 = vld [vmem:[#allocation2 + $0x120] sm:$0xff]  }
 0x25a   : > { %v12197_v16 = vpop.permute.xlu1 %3146  ;;  %10113 = vmatmul.mubr.msk.bf16.gmra.mrb[88].mxu0 %vm2350_vm10, %v7314_v62  ;;  %v7317_v27 = vld [vmem:[#allocation3 + $0x100] sm:$0xff]  ;;  %3160 = vrot.lane.b32.xlu1 %v2987_v55, %s10937_s12  ;;  %5886 = vst.msk [vmem:[#allocation3 + $0xe0] sm:$0xff] %vm3794_vm13, %v12183_v25  ;;  %v7163_v50 = vsel %vm3601_vm6, %v7161_v28, %v7162_v47  ;;  %v10604_v25 = vld [vmem:[#allocation2 + $0x104] ss:$0 sps:$4 sm:$0x11]   ;;  %v2965_v32 = vshrl.u32 %v10603_v40, 16 }
 0x25b   : > { %10116 = vmatprep.mubr.msk.bf16.mxu0 %vm2350_vm10, %v7317_v27  ;;  %6750 = vst.msk [vmem:[#allocation3 + $0xe0] sm:$0xff] %vm4147_vm14, %v6664_v10  ;;  %v12253_v20 = vld [vmem:[%s13567_s2] ss:$0 sm:$0xff]  ;;  %v4633_v30 = vrot.slane %v4631_v43, 1  ;;  %v4638_v51 = vrot.slane %v4636_v41, 1  ;;  %v2967_v26 = vshll.u32 %v10603_v40, 16 }
 0x25c   : > { %7264 = vst.msk [vmem:[#allocation3 + $0x118] sm:$0xff] %vm2350_vm10, %v7160_v18  ;;  %7265 = vst.msk [vmem:[#allocation3 + $0x130] sm:$0xff] %vm2350_vm10, %v7163_v50  ;;  %v703_v56 = vadd.f32 %v12253_v20, %v10078_v19  ;;  %v2972_v62 = vshll.u32 %v10604_v25, 16  ;;  %v10605_v11 = vld [vmem:[#allocation2 + $0x120] sm:$0xfe]   ;;  %v694_v10 = vpop.f32.mrb[49].mxu0 }
 0x25d   : > { %v10606_v63 = vld [vmem:[#allocation2 + $0x128] ss:$0 sps:$4 sm:$0x11]   ;;  %v4634_v54 = vor.u32 %v4633_v30, %v4629_v24  ;;  %v2969_v35 = vrot.slane %v2967_v26, 1  ;;  %v5395_v59 = vrot.slane %v10605_v11, 1  ;;  %v10614_v18 = vld [vmem:[#allocation2 + $0x90] sm:$0xff]  }
 0x25e   : > { %v12212_v1 = vpop.permute.xlu1 %5809  ;;  %v2974_v8 = vrot.slane %v2972_v62, 1  ;;  %v5396_v13 = vrot.slane %v10606_v63, 1  ;;  %v807_v21 = vmax.f32 %v703_v56, 0.0  ;;  %v10608_v58 = vld [vmem:[#allocation2 + $0x114] sm:$0xfe]   ;;  %v10079_v29 = vpop.f32.mrb[50].mxu0 }
 0x25f   : > { %v4639_v27 = vsel %vm2735_vm7, %v4634_v54, %v4638_v51  ;;  %v2970_v37 = vor.u32 %v2969_v35, %v2965_v32  ;;  %v10609_v34 = vld [vmem:[#allocation2 + $0x11c] ss:$0 sps:$4 sm:$0x11]   ;;  %v5392_v50 = vrot.slane %v10608_v58, 1  ;;  %v10610_v43 = vld [vmem:[#allocation2 + $0xb4] sm:$0xfe]   ;;  %v706_v56 = vadd.f32 %v12253_v20, %v10079_v29 }
 0x260   : > { %4956 = vst.msk [vmem:[#allocation3 + $0xc8] sm:$0xff] %vm2350_vm10, %v4639_v27  ;;  %v5397_v55 = vsel %vm3601_vm6, %v5395_v59, %v5396_v13  ;;  %v9886_v9 = vpack.c.bf16 %v807_v21, %v807_v21  ;;  %v5393_v24 = vrot.slane %v10609_v34, 1  ;;  %2363 = vst.msk [vmem:[#allocation3 + $0x120] sm:$0xff] %vm2350_vm10, %v10614_v18  ;;  %v10611_v41 = vld [vmem:[#allocation2 + $0xbc] ss:$0 sps:$4 sm:$0x11]   ;;  %v12292_v21 = vpop.permute.xlu0 %5805 }
 0x261   : > { %5532 = vst.msk [vmem:[#allocation3 + $0xc8] sm:$0xff] %vm3216_vm12, %v12087_v46  ;;  %v2975_v47 = vsel %vm2735_vm7, %v2970_v37, %v2974_v8  ;;  %5470 = vrot.lane.b32.xlu0 %v5397_v55, %s10937_s12  ;;  %v695_v46 = vadd.f32 %v12253_v20, %v694_v10  ;;  %3229 = vst.msk [vmem:[#allocation3 + $0x120] sm:$0xff] %vm3216_vm12, %v12089_v48  ;;  %v7164_v25 = vrot.slane %v10610_v43, 1  ;;  %v7165_v30 = vrot.slane %v10611_v41, 1  ;;  %v10612_v51 = vld [vmem:[#allocation2 + $0xc0] sm:$0xfe]  }
 0x262   : > { %v12224_v5 = vpop.permute.xlu1 %4081  ;;  %5885 = vst.msk [vmem:[#allocation3 + $0xc8] sm:$0xff] %vm3794_vm13, %v12032_v31  ;;  %3158 = vrot.lane.b32.xlu1 %v2975_v47, %s10937_s12  ;;  %v1654_v40 = vshrl.u32 %v9886_v9, 16  ;;  %v5394_v31 = vsel %vm3601_vm6, %v5392_v50, %v5393_v24  ;;  %v1657_v42 = vshll.u32 %v9886_v9, 16  ;;  %3807 = vst.msk [vmem:[#allocation3 + $0x120] sm:$0xff] %vm3794_vm13, %v12058_v33  ;;  %v947_v48 = vld [vmem:[#allocation2 + $0x150] sm:$0x1] }
 0x263   : > { %v7320_v60 = vld [vmem:[#allocation3 + $0x118] sm:$0xff]  ;;  %v7323_v28 = vld [vmem:[#allocation3 + $0x130] sm:$0xff]  ;;  %6749 = vst.msk [vmem:[#allocation3 + $0xc8] sm:$0xff] %vm4147_vm14, %v12098_v22  ;;  %4160 = vst.msk [vmem:[#allocation3 + $0x120] sm:$0xff] %vm4147_vm14, %v12120_v2  ;;  %v805_v62 = vmax.f32 %v695_v46, 0.0  ;;  %v7166_v33 = vsel %vm3601_vm6, %v7164_v25, %v7165_v30  ;;  %v7167_v11 = vrot.slane %v10612_v51, 1 }
 0x264   : > { %10117 = vmatmul.mubr.msk.bf16.gmra.mrb[92].mxu0 %vm2350_vm10, %v7320_v60  ;;  %v10613_v32 = vld [vmem:[#allocation2 + $0xc8] ss:$0 sps:$4 sm:$0x11]   ;;  %v12286_v26 = vrot.slane %v1654_v40, 7  ;;  %v948_v54 = vsel %vm11191_vm3, 0, %v947_v48  ;;  %7266 = vst.msk [vmem:[#allocation3 + $0x148] sm:$0xff] %vm2350_vm10, %v7166_v33 }
 0x265   : > { %10120 = vmatprep.mubr.msk.bf16.mxu0 %vm2350_vm10, %v7323_v28  ;;  %5468 = vrot.lane.b32.xlu0 %v5394_v31, %s10937_s12  ;;  %v7168_v63 = vrot.slane %v10613_v32, 1  ;;  %949 = vst [vmem:[#allocation2 + $0x150] sm:$0x1] %v948_v54  ;;  %v944_v35 = vld [vmem:[#allocation2 + $0x144] sm:$0x1]  ;;  %v9884_v2 = vpack.c.bf16 %v805_v62, %v805_v62  ;;  %v808_v8 = vmax.f32 %v706_v56, 0.0  ;;  %v12311_v32 = vpop.permute.xlu0 %5803 }
 0x266   : > { %v12233_v61 = vpop.permute.xlu1 %4079  ;;  %4093 = vrot.lane.b32.xlu1 %v10607_v57, %s10938_s9  ;;  %v1045_v59 = vld [vmem:[#allocation2 + $0x158] sm:$0x1]  ;;  %v945_v27 = vsel %vm11191_vm3, 0, %v944_v35  ;;  %v10616_v34 = vld [vmem:[#allocation2 + $0x120] sm:$0xff]   ;;  %v1659_v28 = vor.u32 %v1657_v42, %v12286_v26  ;;  %v697_v50 = vpop.f32.mrb[51].mxu0  ;;  %v1660_v25 = vrot.slane %v12286_v26, 4 }
 0x267   : > { %v10615_v13 = vld [vmem:[#allocation2 + $0x114] sm:$0xff]   ;;  %v7169_v60 = vsel %vm3601_vm6, %v7167_v11, %v7168_v63  ;;  %v1046_v37 = vsel %vm11203_vm5, 0, %v1045_v59  ;;  %946 = vst [vmem:[#allocation2 + $0x144] sm:$0x1] %v945_v27  ;;  %v1637_v10 = vshrl.u32 %v9884_v2, 16  ;;  %v1640_v55 = vshll.u32 %v9884_v2, 16 }
 0x268   : > { %7267 = vst.msk [vmem:[#allocation3 + $0x160] sm:$0xff] %vm2350_vm10, %v7169_v60  ;;  %1047 = vst [vmem:[#allocation2 + $0x158] sm:$0x1] %v1046_v37  ;;  %v9887_v58 = vpack.c.bf16 %v808_v8, %v808_v8  ;;  %v10617_v9 = vld [vmem:[#allocation2 + $0x128] ss:$0 sps:$4 sm:$0x11]   ;;  %v698_v40 = vadd.f32 %v12253_v20, %v697_v50 }
 0x269   : > { %v12304_v47 = vrot.slane %v1637_v10, 7  ;;  %v1042_v24 = vld [vmem:[#allocation2 + $0x14c] sm:$0x1]  ;;  %v6502_v43 = vshrl.u32 %v10616_v34, 16  ;;  %v6504_v46 = vshll.u32 %v10616_v34, 16  ;;  %v6509_v41 = vshll.u32 %v10617_v9, 16 }
 0x26a   : > { %4091 = vrot.lane.b32.xlu1 %v10615_v13, %s10938_s9  ;;  %v1662_v29 = vshrl.u32 %v9887_v58, 16  ;;  %v1665_v57 = vshll.u32 %v9887_v58, 16  ;;  %v10618_v31 = vld [vmem:[#allocation2 + $0x84] sm:$0xff]   ;;  %v1043_v42 = vsel %vm11203_vm5, 0, %v1042_v24  ;;  %v10621_v51 = vld [vmem:[#allocation2 + $0x114] sm:$0xff]   ;;  %v806_v63 = vmax.f32 %v698_v40, 0.0 }
 0x26b   : > { %v1642_v56 = vor.u32 %v1640_v55, %v12304_v47  ;;  %v7326_v48 = vld [vmem:[#allocation3 + $0x148] sm:$0xff]  ;;  %v6506_v33 = vrot.slane %v6504_v46, 1  ;;  %v6511_v11 = vrot.slane %v6509_v41, 1  ;;  %1044 = vst [vmem:[#allocation2 + $0x14c] sm:$0x1] %v1043_v42  ;;  %2362 = vst.msk [vmem:[#allocation3 + $0x108] sm:$0xff] %vm2350_vm10, %v10618_v31 }
 0x26c   : > { %v1664_v30 = vrot.slane %v1662_v29, 7  ;;  %v2045_v62 = vld [vmem:[#allocation2 + $0x150] sm:$0xf]  ;;  %10121 = vmatmul.mubr.msk.bf16.gmra.mrb[96].mxu0 %vm2350_vm10, %v7326_v48  ;;  %3228 = vst.msk [vmem:[#allocation3 + $0x108] sm:$0xff] %vm3216_vm12, %v12100_v17  ;;  %v6490_v2 = vshrl.u32 %v10621_v51, 16  ;;  %v9885_v27 = vpack.c.bf16 %v806_v63, %v806_v63  ;;  %v6492_v37 = vshll.u32 %v10621_v51, 16 }
 0x26d   : > { %v2046_v26 = vsel %vm11312_vm9, %v1659_v28, %v2045_v62  ;;  %v6507_v60 = vor.u32 %v6506_v33, %v6502_v43  ;;  %3806 = vst.msk [vmem:[#allocation3 + $0x108] sm:$0xff] %vm3794_vm13, %v12073_v6  ;;  %v10619_v34 = vld [vmem:[#allocation2 + $0x120] sm:$0xfe]   ;;  %v10620_v29 = vld [vmem:[#allocation2 + $0x128] ss:$0 sps:$4 sm:$0x11]   ;;  %v12335_v43 = vpop.permute.xlu0 %5454 }
 0x26e   : > { %v12247_v3 = vpop.permute.xlu1 %5458  ;;  %v1667_v54 = vor.u32 %v1665_v57, %v1664_v30  ;;  %v1669_v35 = vrot.slane %v1664_v30, 4  ;;  %2047 = vst [vmem:[#allocation2 + $0x150] sm:$0xf] %v2046_v26  ;;  %v2038_v59 = vld [vmem:[#allocation2 + $0x144] sm:$0xf]  ;;  %4159 = vst.msk [vmem:[#allocation3 + $0x108] sm:$0xff] %vm4147_vm14, %v12010_v36 }
 0x26f   : > { %v7329_v8 = vld [vmem:[#allocation3 + $0x160] sm:$0xff]  ;;  %v2049_v13 = vld [vmem:[#allocation2 + $0x158] sm:$0x1]  ;;  %v2039_v55 = vsel %vm11312_vm9, %v1642_v56, %v2038_v59  ;;  %v6512_v6 = vsel %vm2735_vm7, %v6507_v60, %v6511_v11  ;;  %v1645_v9 = vshrl.u32 %v9885_v27, 16  ;;  %v1648_v28 = vshll.u32 %v9885_v27, 16  ;;  %v7307_v24 = vld [vmem:[#allocation3 + $0xb0] sm:$0xff] }
 0x270   : > { %10124 = vmatprep.mubr.msk.bf16.mxu0 %vm2350_vm10, %v7329_v8  ;;  %v1668_v17 = vsel %vm11319_vm11, %v1660_v25, %v1667_v54  ;;  %v2050_v58 = vsel %vm11191_vm3, %v1669_v35, %v2049_v13  ;;  %2040 = vst [vmem:[#allocation2 + $0x144] sm:$0xf] %v2039_v55  ;;  %v6494_v57 = vrot.slane %v6492_v37, 1  ;;  %6685 = vrot.lane.b32.xlu0 %v6512_v6, %s10938_s9  ;;  %v3668_v50 = vrot.slane %v10619_v34, 1  ;;  %v10623_v30 = vld [vmem:[#allocation2 + $0xcc] sm:$0xfe]  }
 0x271   : > { %2048 = vst.msk [vmem:[#allocation2 + $0x154] sm:$0xf] %vm853_vm0, %v1668_v17  ;;  %2051 = vst [vmem:[#allocation2 + $0x158] sm:$0x1] %v2050_v58  ;;  %v1643_v46 = vrot.slane %v12304_v47, 4  ;;  %v1647_v36 = vrot.slane %v1645_v9, 7  ;;  %7716 = vmatprep.mubr.bf16.mxu1 %v7307_v24  ;;  %v12347_v27 = vpop.permute.xlu0 %5452 }
 0x272   : > { %v3669_v41 = vrot.slane %v10620_v29, 1  ;;  %v10622_v40 = vld [vmem:[#allocation2 + $0x11c] ss:$0 sps:$4 sm:$0x11]   ;;  %v2042_v25 = vld [vmem:[#allocation2 + $0x14c] sm:$0x1]  ;;  %v6495_v56 = vor.u32 %v6494_v57, %v6490_v2 }
 0x273   : > { %v1650_v42 = vor.u32 %v1648_v28, %v1647_v36  ;;  %v1652_v51 = vrot.slane %v1647_v36, 4  ;;  %v6497_v62 = vshll.u32 %v10622_v40, 16  ;;  %v10624_v33 = vld [vmem:[#allocation2 + $0xd4] ss:$0 sps:$4 sm:$0x11]   ;;  %v7306_v11 = vld [vmem:[#allocation3 + $0xa8] sm:$0xff] }
 0x274   : > { %v3670_v48 = vsel %vm3601_vm6, %v3668_v50, %v3669_v41  ;;  %v7170_v63 = vrot.slane %v10623_v30, 1  ;;  %7717 = vmatmul.mubr.bf16.gmra.mrb[20].mxu1 %v7306_v11  ;;  %v7310_v47 = vld [vmem:[#allocation3 + $0xc8] sm:$0xff]  ;;  %v7171_v2 = vrot.slane %v10624_v33, 1  ;;  %v10625_v8 = vld [vmem:[#allocation2 + $0xf0] sm:$0xfe]   ;;  %v10632_v34 = vld [vmem:[#allocation2 + $0x120] sm:$0xff]  }
 0x275   : > { %3742 = vrot.lane.b32.xlu1 %v3670_v48, %s10936_s21  ;;  %v1651_v26 = vsel %vm11319_vm11, %v1643_v46, %v1650_v42  ;;  %v2043_v54 = vsel %vm11191_vm3, %v1652_v51, %v2042_v25  ;;  %v6499_v35 = vrot.slane %v6497_v62, 1  ;;  %7724 = vmatprep.mubr.bf16.mxu1 %v7310_v47  ;;  %v10626_v13 = vld [vmem:[#allocation2 + $0xf8] ss:$0 sps:$4 sm:$0x11]   ;;  %v10630_v60 = vld [vmem:[#allocation2 + $0x90] sm:$0xff]   ;;  %v7173_v17 = vrot.slane %v10625_v8, 1  ;;  %v12358_v30 = vpop.permute.xlu0 %6669 }
 0x276   : > { %2041 = vst.msk [vmem:[#allocation2 + $0x148] sm:$0xf] %vm853_vm0, %v1651_v26  ;;  %2044 = vst [vmem:[#allocation2 + $0x14c] sm:$0x1] %v2043_v54  ;;  %v7172_v55 = vsel %vm3601_vm6, %v7170_v63, %v7171_v2  ;;  %v10627_v58 = vld [vmem:[#allocation2 + $0x114] sm:$0xfe]  }
 0x277   : > { %v6500_v37 = vsel %vm2735_vm7, %v6495_v56, %v6499_v35  ;;  %7268 = vst.msk [vmem:[#allocation3 + $0x178] sm:$0xff] %vm2350_vm10, %v7172_v55  ;;  %v7174_v6 = vrot.slane %v10626_v13, 1  ;;  %v10628_v9 = vld [vmem:[#allocation2 + $0x11c] ss:$0 sps:$4 sm:$0x11]   ;;  %v3665_v29 = vrot.slane %v10627_v58, 1 }
 0x278   : > { %v12257_v19 = vpop.permute.xlu1 %5456  ;;  %6683 = vrot.lane.b32.xlu0 %v6500_v37, %s10938_s9  ;;  %v10629_v28 = vld [vmem:[#allocation2 + $0x138] sm:$0xff]   ;;  %v4665_v57 = vshrl.u32 %v10630_v60, 16  ;;  %v3666_v24 = vrot.slane %v10628_v9, 1  ;;  %v4667_v46 = vshll.u32 %v10630_v60, 16  ;;  %v3001_v41 = vshrl.u32 %v10632_v34, 16  ;;  %v10634_v33 = vld [vmem:[#allocation2 + $0x12c] sm:$0xff]  }
 0x279   : > { %v7175_v50 = vsel %vm3601_vm6, %v7173_v17, %v7174_v6  ;;  %v10631_v36 = vld [vmem:[#allocation2 + $0x98] ss:$0 sps:$4 sm:$0x11]   ;;  %v3003_v56 = vshll.u32 %v10632_v34, 16  ;;  %v10639_v26 = vld [vmem:[#allocation2 + $0x84] sm:$0xff]  }
 0x27a   : > { %7269 = vst.msk [vmem:[#allocation3 + $0x190] sm:$0xff] %vm2350_vm10, %v7175_v50  ;;  %v3667_v40 = vsel %vm3601_vm6, %v3665_v29, %v3666_v24  ;;  %v4669_v25 = vrot.slane %v4667_v46, 1  ;;  %v4672_v42 = vshll.u32 %v10631_v36, 16  ;;  %v10633_v51 = vld [vmem:[#allocation2 + $0x128] ss:$0 sps:$4 sm:$0x11]  }
 0x27b   : > { %3740 = vrot.lane.b32.xlu1 %v3667_v40, %s10936_s21  ;;  %v3005_v62 = vrot.slane %v3003_v56, 1  ;;  %v3008_v47 = vshll.u32 %v10633_v51, 16  ;;  %v10635_v35 = vld [vmem:[#allocation2 + $0xfc] sm:$0xfe]   ;;  %v10637_v37 = vld [vmem:[#allocation2 + $0x108] sm:$0xfe]  }
 0x27c   : > { %5825 = vrot.lane.b32.xlu0 %v10629_v28, %s10936_s21  ;;  %v4670_v48 = vor.u32 %v4669_v25, %v4665_v57  ;;  %v4674_v63 = vrot.slane %v4672_v42, 1  ;;  %v7176_v60 = vrot.slane %v10635_v35, 1  ;;  %v6668_v55 = vpop.permute.xlu0 %6667  ;;  %v10638_v34 = vld [vmem:[#allocation2 + $0x110] ss:$0 sps:$4 sm:$0x11]   ;;  %v7179_v6 = vrot.slane %v10637_v37, 1 }
 0x27d   : > { %v12283_v22 = vpop.permute.xlu1 %3728  ;;  %v3006_v54 = vor.u32 %v3005_v62, %v3001_v41  ;;  %v3010_v8 = vrot.slane %v3008_v47, 1  ;;  %v4653_v9 = vshrl.u32 %v10639_v26, 16  ;;  %v7180_v29 = vrot.slane %v10638_v34, 1  ;;  %v10640_v57 = vld [vmem:[#allocation2 + $0x8c] ss:$0 sps:$4 sm:$0x11]  }
 0x27e   : > { %v7332_v11 = vld [vmem:[#allocation3 + $0x178] sm:$0xff]  ;;  %v4675_v2 = vsel %vm2735_vm7, %v4670_v48, %v4674_v63  ;;  %v4655_v50 = vshll.u32 %v10639_v26, 16  ;;  %v10641_v24 = vld [vmem:[#allocation2 + $0x114] sm:$0xff]   ;;  %v4660_v36 = vshll.u32 %v10640_v57, 16  ;;  %v10082_v26 = vpop.f32.mrb[52].mxu0 }
 0x27f   : > { %10125 = vmatmul.mubr.msk.bf16.gmra.mrb[100].mxu0 %vm2350_vm10, %v7332_v11  ;;  %4959 = vst.msk [vmem:[#allocation3 + $0x110] sm:$0xff] %vm2350_vm10, %v4675_v2  ;;  %v3011_v17 = vsel %vm2735_vm7, %v3006_v54, %v3010_v8  ;;  %v10642_v41 = vld [vmem:[#allocation2 + $0x11c] ss:$0 sps:$4 sm:$0x11]   ;;  %v2989_v40 = vshrl.u32 %v10641_v24, 16  ;;  %v2991_v25 = vshll.u32 %v10641_v24, 16  ;;  %v719_v2 = vadd.f32 %v12253_v20, %v10082_v26 }
 0x280   : > { %5823 = vrot.lane.b32.xlu0 %v10634_v33, %s10936_s21  ;;  %5535 = vst.msk [vmem:[#allocation3 + $0x110] sm:$0xff] %vm3216_vm12, %v12199_v0  ;;  %3164 = vrot.lane.b32.xlu1 %v3011_v17, %s10937_s12  ;;  %v7181_v0 = vsel %vm3601_vm6, %v7179_v6, %v7180_v29  ;;  %v4657_v46 = vrot.slane %v4655_v50, 1  ;;  %v4662_v42 = vrot.slane %v4660_v36, 1  ;;  %v2996_v51 = vshll.u32 %v10642_v41, 16  ;;  %v10643_v48 = vld [vmem:[#allocation2 + $0x138] sm:$0xfe]  }
 0x281   : > { %v7335_v13 = vld [vmem:[#allocation3 + $0x190] sm:$0xff]  ;;  %5888 = vst.msk [vmem:[#allocation3 + $0x110] sm:$0xff] %vm3794_vm13, %v12311_v32  ;;  %v7309_v32 = vld [vmem:[#allocation3 + $0xc0] sm:$0xff]  ;;  %v2993_v62 = vrot.slane %v2991_v25, 1  ;;  %v5401_v47 = vrot.slane %v10643_v48, 1  ;;  %v10652_v8 = vld [vmem:[#allocation2 + $0xa8] sm:$0xff]  }
 0x282   : > { %v12301_v18 = vpop.permute.xlu1 %6673  ;;  %10128 = vmatprep.mubr.msk.bf16.mxu0 %vm2350_vm10, %v7335_v13  ;;  %6752 = vst.msk [vmem:[#allocation3 + $0x110] sm:$0xff] %vm4147_vm14, %v6668_v55  ;;  %v4658_v56 = vor.u32 %v4657_v46, %v4653_v9  ;;  %7725 = vmatmul.mubr.bf16.gmra.mrb[24].mxu1 %v7309_v32  ;;  %v10644_v33 = vld [vmem:[#allocation2 + $0x140] ss:$0 sps:$4 sm:$0x11]   ;;  %v2998_v63 = vrot.slane %v2996_v51, 1  ;;  %v10653_v48 = vld [vmem:[#allocation2 + $0x12c] sm:$0xff]  }
 0x283   : > { %7271 = vst.msk [vmem:[#allocation3 + $0x1c0] sm:$0xff] %vm2350_vm10, %v7181_v0  ;;  %v2994_v54 = vor.u32 %v2993_v62, %v2989_v40  ;;  %v5402_v35 = vrot.slane %v10644_v33, 1  ;;  %v10646_v13 = vld [vmem:[#allocation2 + $0x12c] sm:$0xfe]   ;;  %2365 = vst.msk [vmem:[#allocation3 + $0x150] sm:$0xff] %vm2350_vm10, %v10652_v8 }
 0x284   : > { %v4663_v11 = vsel %vm2735_vm7, %v4658_v56, %v4662_v42  ;;  %v10647_v17 = vld [vmem:[#allocation2 + $0x134] ss:$0 sps:$4 sm:$0x11]   ;;  %v5398_v6 = vrot.slane %v10646_v13, 1  ;;  %3231 = vst.msk [vmem:[#allocation3 + $0x150] sm:$0xff] %vm3216_vm12, %v12178_v49 }
 0x285   : > { %4958 = vst.msk [vmem:[#allocation3 + $0xf8] sm:$0xff] %vm2350_vm10, %v4663_v11  ;;  %v2999_v37 = vsel %vm2735_vm7, %v2994_v54, %v2998_v63  ;;  %v5403_v55 = vsel %vm3601_vm6, %v5401_v47, %v5402_v35  ;;  %v10648_v9 = vld [vmem:[#allocation2 + $0x114] sm:$0xfe]   ;;  %v10650_v0 = vld [vmem:[#allocation2 + $0x120] sm:$0xfe]  }
 0x286   : > { %5534 = vst.msk [vmem:[#allocation3 + $0xf8] sm:$0xff] %vm3216_vm12, %v12216_v44  ;;  %3162 = vrot.lane.b32.xlu1 %v2999_v37, %s10937_s12  ;;  %5474 = vrot.lane.b32.xlu0 %v5403_v55, %s10937_s12  ;;  %v10645_v44 = vld [vmem:[#allocation2 + $0x138] sm:$0xff]   ;;  %v7182_v50 = vrot.slane %v10648_v9, 1  ;;  %v953_v49 = vld [vmem:[#allocation2 + $0x168] sm:$0x1]  ;;  %v7185_v25 = vrot.slane %v10650_v0, 1 }
 0x287   : > { %5887 = vst.msk [vmem:[#allocation3 + $0xf8] sm:$0xff] %vm3794_vm13, %v12160_v14  ;;  %v5399_v14 = vrot.slane %v10647_v17, 1  ;;  %3809 = vst.msk [vmem:[#allocation3 + $0x150] sm:$0xff] %vm3794_vm13, %v12140_v23  ;;  %v10651_v46 = vld [vmem:[#allocation2 + $0x128] ss:$0 sps:$4 sm:$0x11]  }
 0x288   : > { %6751 = vst.msk [vmem:[#allocation3 + $0xf8] sm:$0xff] %vm4147_vm14, %v12227_v4  ;;  %4162 = vst.msk [vmem:[#allocation3 + $0x150] sm:$0xff] %vm4147_vm14, %v12233_v61  ;;  %v954_v36 = vsel %vm11191_vm3, 0, %v953_v49  ;;  %v7186_v32 = vrot.slane %v10651_v46, 1  ;;  %v950_v42 = vld [vmem:[#allocation2 + $0x15c] sm:$0x1] }
 0x289   : > { %v12321_v10 = vpop.permute.xlu1 %3150  ;;  %v5400_v4 = vsel %vm3601_vm6, %v5398_v6, %v5399_v14  ;;  %955 = vst [vmem:[#allocation2 + $0x168] sm:$0x1] %v954_v36  ;;  %v951_v62 = vsel %vm11191_vm3, 0, %v950_v42  ;;  %v1051_v63 = vld [vmem:[#allocation2 + $0x170] sm:$0x1]  ;;  %v10654_v47 = vld [vmem:[#allocation2 + $0x138] sm:$0xff]  }
 0x28a   : > { %v7341_v34 = vld [vmem:[#allocation3 + $0x1c0] sm:$0xff]  ;;  %4097 = vrot.lane.b32.xlu1 %v10645_v44, %s10938_s9  ;;  %5472 = vrot.lane.b32.xlu0 %v5400_v4, %s10937_s12  ;;  %v7187_v26 = vsel %vm3601_vm6, %v7185_v25, %v7186_v32  ;;  %952 = vst [vmem:[#allocation2 + $0x15c] sm:$0x1] %v951_v62  ;;  %v10655_v37 = vld [vmem:[#allocation2 + $0x140] ss:$0 sps:$4 sm:$0x11]  }
 0x28b   : > { %7273 = vst.msk [vmem:[#allocation3 + $0x1f0] sm:$0xff] %vm2350_vm10, %v7187_v26  ;;  %v6528_v55 = vshll.u32 %v10654_v47, 16  ;;  %v1048_v44 = vld [vmem:[#allocation2 + $0x164] sm:$0x1]  ;;  %v6533_v9 = vshll.u32 %v10655_v37, 16  ;;  %v10659_v46 = vld [vmem:[#allocation2 + $0x12c] sm:$0xff]  }
 0x28c   : > { %v6514_v32 = vshrl.u32 %v10659_v46, 16  ;;  %v10658_v26 = vld [vmem:[#allocation2 + $0x140] ss:$0 sps:$4 sm:$0x11]  }
 0x28d   : > { %v12338_v31 = vpop.permute.xlu1 %4085  ;;  %v6530_v14 = vrot.slane %v6528_v55, 1  ;;  %v10660_v55 = vld [vmem:[#allocation2 + $0x134] ss:$0 sps:$4 sm:$0x11]  }
 0x28e   : > { %4095 = vrot.lane.b32.xlu1 %v10653_v48, %s10938_s9 }
 0x290   : > { %v2059_v6 = vld [vmem:[#allocation2 + $0x168] sm:$0xf] }
 0x291   : > { %v4084_v59 = vpop.permute.xlu1 %4083  ;;  %v2052_v25 = vld [vmem:[#allocation2 + $0x15c] sm:$0xf] }
 0x292   : > { %4164 = vst.msk [vmem:[#allocation3 + $0x180] sm:$0xff] %vm4147_vm14, %v4084_v59  ;;  %v10636_v59 = vld [vmem:[#allocation2 + $0x104] ss:$0 sps:$4 sm:$0x11]  }
 0x293   : > { %v7177_v58 = vrot.slane %v10636_v59, 1  ;;  %v7347_v42 = vld [vmem:[#allocation3 + $0x1f0] sm:$0xff] }
 0x295   : > { %v7178_v28 = vsel %vm3601_vm6, %v7176_v60, %v7177_v58  ;;  %v710_v60 = vpop.f32.mrb[53].mxu0  ;;  %v811_v58 = vmax.f32 %v719_v2, 0.0  ;;  %v1052_v2 = vsel %vm11203_vm5, 0, %v1051_v63 }
 0x296   : > { %7270 = vst.msk [vmem:[#allocation3 + $0x1a8] sm:$0xff] %vm2350_vm10, %v7178_v28  ;;  %v10649_v28 = vld [vmem:[#allocation2 + $0x11c] ss:$0 sps:$4 sm:$0x11]   ;;  %v711_v57 = vadd.f32 %v12253_v20, %v710_v60  ;;  %v10083_v51 = vpop.f32.mrb[54].mxu0  ;;  %v6526_v60 = vshrl.u32 %v10654_v47, 16 }
 0x297   : > { %v9890_v29 = vpack.c.bf16 %v811_v58, %v811_v58  ;;  %v7183_v24 = vrot.slane %v10649_v28, 1  ;;  %v722_v11 = vadd.f32 %v12253_v20, %v10083_v51  ;;  %1053 = vst [vmem:[#allocation2 + $0x170] sm:$0x1] %v1052_v2  ;;  %v10657_v47 = vld [vmem:[#allocation2 + $0x138] sm:$0xfe]  }
 0x298   : > { %v809_v61 = vmax.f32 %v711_v57, 0.0  ;;  %v10656_v57 = vld [vmem:[#allocation2 + $0x9c] sm:$0xff]  }
 0x299   : > { %v1688_v23 = vshrl.u32 %v9890_v29, 16  ;;  %v1691_v41 = vshll.u32 %v9890_v29, 16  ;;  %v7184_v40 = vsel %vm3601_vm6, %v7182_v50, %v7183_v24  ;;  %v812_v13 = vmax.f32 %v722_v11, 0.0  ;;  %2364 = vst.msk [vmem:[#allocation3 + $0x138] sm:$0xff] %vm2350_vm10, %v10656_v57 }
 0x29a   : > { %7272 = vst.msk [vmem:[#allocation3 + $0x1d8] sm:$0xff] %vm2350_vm10, %v7184_v40  ;;  %v9888_v33 = vpack.c.bf16 %v809_v61, %v809_v61  ;;  %v1049_v29 = vsel %vm11203_vm5, 0, %v1048_v44  ;;  %v7313_v40 = vld [vmem:[#allocation3 + $0xe0] sm:$0xff]  ;;  %v6516_v11 = vshll.u32 %v10659_v46, 16 }
 0x29b   : > { %v12407_v56 = vrot.slane %v1688_v23, 7  ;;  %v9891_v58 = vpack.c.bf16 %v812_v13, %v812_v13  ;;  %1050 = vst [vmem:[#allocation2 + $0x164] sm:$0x1] %v1049_v29  ;;  %v6535_v23 = vrot.slane %v6533_v9, 1  ;;  %3230 = vst.msk [vmem:[#allocation3 + $0x138] sm:$0xff] %vm3216_vm12, %v12197_v16  ;;  %7732 = vmatprep.mubr.bf16.mxu1 %v7313_v40  ;;  %v3675_v13 = vrot.slane %v10658_v26, 1 }
 0x29c   : > { %v1671_v8 = vshrl.u32 %v9888_v33, 16  ;;  %3808 = vst.msk [vmem:[#allocation3 + $0x138] sm:$0xff] %vm3794_vm13, %v12157_v45  ;;  %v10662_v9 = vld [vmem:[#allocation2 + $0x134] ss:$0 sps:$4 sm:$0x11]  }
 0x29d   : > { %v7338_v59 = vld [vmem:[#allocation3 + $0x1a8] sm:$0xff]  ;;  %v1693_v54 = vor.u32 %v1691_v41, %v12407_v56  ;;  %v1694_v35 = vrot.slane %v12407_v56, 4  ;;  %v1696_v49 = vshrl.u32 %v9891_v58, 16  ;;  %v1699_v36 = vshll.u32 %v9891_v58, 16  ;;  %v12432_v56 = vpop.permute.xlu0 %5807  ;;  %4161 = vst.msk [vmem:[#allocation3 + $0x138] sm:$0xff] %vm4147_vm14, %v12108_v12 }
 0x29e   : > { %10129 = vmatmul.mubr.msk.bf16.gmra.mrb[104].mxu0 %vm2350_vm10, %v7338_v59  ;;  %v1674_v59 = vshll.u32 %v9888_v33, 16  ;;  %v12419_v17 = vrot.slane %v1671_v8, 7  ;;  %v2063_v48 = vld [vmem:[#allocation2 + $0x170] sm:$0x1] }
 0x29f   : > { %10132 = vmatprep.mubr.msk.bf16.mxu0 %vm2350_vm10, %v7341_v34  ;;  %v713_v34 = vpop.f32.mrb[55].mxu0  ;;  %v2060_v50 = vsel %vm11312_vm9, %v1693_v54, %v2059_v6  ;;  %v1698_v61 = vrot.slane %v1696_v49, 7  ;;  %v10661_v6 = vld [vmem:[#allocation2 + $0x12c] sm:$0xfe]   ;;  %v7189_v49 = vrot.slane %v10662_v9, 1 }
 0x2a0   : > { %v714_v28 = vadd.f32 %v12253_v20, %v713_v34  ;;  %v1676_v24 = vor.u32 %v1674_v59, %v12419_v17  ;;  %v1677_v0 = vrot.slane %v12419_v17, 4  ;;  %2061 = vst [vmem:[#allocation2 + $0x168] sm:$0xf] %v2060_v50  ;;  %v6531_v20 = vor.u32 %v6530_v14, %v6526_v60  ;;  %v10664_v46 = vld [vmem:[#allocation2 + $0x140] ss:$0 sps:$4 sm:$0x11]  }
 0x2a1   : > { %v7344_v4 = vld [vmem:[#allocation3 + $0x1d8] sm:$0xff]  ;;  %v1701_v16 = vor.u32 %v1699_v36, %v1698_v61  ;;  %v1703_v63 = vrot.slane %v1698_v61, 4  ;;  %v3674_v59 = vrot.slane %v10657_v47, 1  ;;  %v6518_v17 = vrot.slane %v6516_v11, 1  ;;  %v12449_v58 = vpop.permute.xlu0 %6671  ;;  %v10667_v61 = vld [vmem:[#allocation2 + $0x150] sm:$0xff]  }
 0x2a2   : > { %v810_v41 = vmax.f32 %v714_v28, 0.0  ;;  %v2053_v51 = vsel %vm11312_vm9, %v1676_v24, %v2052_v25  ;;  %v6536_v62 = vsel %vm2735_vm7, %v6531_v20, %v6535_v23  ;;  %v2056_v37 = vld [vmem:[#allocation2 + $0x164] sm:$0x1]  ;;  %v7312_v28 = vld [vmem:[#allocation3 + $0xd8] sm:$0xff]  ;;  %v7188_v50 = vrot.slane %v10661_v6, 1 }
 0x2a3   : > { %2054 = vst [vmem:[#allocation2 + $0x15c] sm:$0xf] %v2053_v51  ;;  %6689 = vrot.lane.b32.xlu0 %v6536_v62, %s10938_s9  ;;  %v1702_v8 = vsel %vm11319_vm11, %v1694_v35, %v1701_v16  ;;  %v2064_v45 = vsel %vm11191_vm3, %v1703_v63, %v2063_v48  ;;  %v3676_v12 = vsel %vm3601_vm6, %v3674_v59, %v3675_v13  ;;  %v6521_v35 = vshll.u32 %v10660_v55, 16  ;;  %v10663_v24 = vld [vmem:[#allocation2 + $0x138] sm:$0xfe]   ;;  %v7316_v23 = vld [vmem:[#allocation3 + $0xf8] sm:$0xff] }
 0x2a4   : > { %v9889_v33 = vpack.c.bf16 %v810_v41, %v810_v41  ;;  %2062 = vst.msk [vmem:[#allocation2 + $0x16c] sm:$0xf] %vm853_vm0, %v1702_v8  ;;  %2065 = vst [vmem:[#allocation2 + $0x170] sm:$0x1] %v2064_v45  ;;  %3746 = vrot.lane.b32.xlu1 %v3676_v12, %s10936_s21  ;;  %v6519_v14 = vor.u32 %v6518_v17, %v6514_v32  ;;  %7733 = vmatmul.mubr.bf16.gmra.mrb[28].mxu1 %v7312_v28  ;;  %v7191_v20 = vrot.slane %v10663_v24, 1  ;;  %v10668_v62 = vld [vmem:[#allocation2 + $0xa8] sm:$0xff]  }
 0x2a5   : > { %v7192_v41 = vrot.slane %v10664_v46, 1  ;;  %v10665_v40 = vld [vmem:[#allocation2 + $0x12c] sm:$0xfe]   ;;  %v10666_v25 = vld [vmem:[#allocation2 + $0x134] ss:$0 sps:$4 sm:$0x11]   ;;  %7740 = vmatprep.mubr.bf16.mxu1 %v7316_v23  ;;  %v12460_v32 = vpop.permute.xlu0 %5813 }
 0x2a6   : > { %10133 = vmatmul.mubr.msk.bf16.gmra.mrb[108].mxu0 %vm2350_vm10, %v7344_v4  ;;  %v1679_v54 = vshrl.u32 %v9889_v33, 16  ;;  %v1682_v2 = vshll.u32 %v9889_v33, 16  ;;  %v6523_v4 = vrot.slane %v6521_v35, 1  ;;  %v3671_v51 = vrot.slane %v10665_v40, 1  ;;  %v10670_v16 = vld [vmem:[#allocation2 + $0x138] sm:$0xff]   ;;  %v10086_v63 = vpop.f32.mrb[56].mxu0 }
 0x2a7   : > { %10136 = vmatprep.mubr.msk.bf16.mxu0 %vm2350_vm10, %v7347_v42  ;;  %v7193_v42 = vsel %vm3601_vm6, %v7191_v20, %v7192_v41  ;;  %v3672_v48 = vrot.slane %v10666_v25, 1  ;;  %v10669_v33 = vld [vmem:[#allocation2 + $0xb0] ss:$0 sps:$4 sm:$0x11]   ;;  %v4689_v47 = vshrl.u32 %v10668_v62, 16  ;;  %v4691_v26 = vshll.u32 %v10668_v62, 16 }
 0x2a8   : > { %v1681_v60 = vrot.slane %v1679_v54, 7  ;;  %v6524_v36 = vsel %vm2735_vm7, %v6519_v14, %v6523_v4  ;;  %7275 = vst.msk [vmem:[#allocation3 + $0x220] sm:$0xff] %vm2350_vm10, %v7193_v42  ;;  %v4696_v54 = vshll.u32 %v10669_v33, 16  ;;  %v3025_v8 = vshrl.u32 %v10670_v16, 16  ;;  %v12471_v59 = vld [vmem:[%s13567_s2] ss:$0 sm:$0xff] }
 0x2a9   : > { %6687 = vrot.lane.b32.xlu0 %v6524_v36, %s10938_s9  ;;  %v3673_v11 = vsel %vm3601_vm6, %v3671_v51, %v3672_v48  ;;  %v3027_v45 = vshll.u32 %v10670_v16, 16  ;;  %v735_v13 = vadd.f32 %v12471_v59, %v10086_v63  ;;  %v10672_v17 = vld [vmem:[#allocation2 + $0x144] sm:$0xff]   ;;  %v10674_v9 = vld [vmem:[#allocation2 + $0x14c] ss:$0 sps:$4 sm:$0x11]   ;;  %v12493_v63 = vpop.permute.xlu1 %3734 }
 0x2aa   : > { %v1684_v34 = vor.u32 %v1682_v2, %v1681_v60  ;;  %v1686_v44 = vrot.slane %v1681_v60, 4  ;;  %3744 = vrot.lane.b32.xlu1 %v3673_v11, %s10936_s21  ;;  %v10671_v2 = vld [vmem:[#allocation2 + $0x140] ss:$0 sps:$4 sm:$0x11]   ;;  %v12474_v60 = vpop.permute.xlu0 %5462  ;;  %v4698_v55 = vrot.slane %v4696_v54, 1  ;;  %v7195_v24 = vrot.slane %v10674_v9, 1 }
 0x2ab   : > { %v3032_v12 = vshll.u32 %v10671_v2, 16  ;;  %v10673_v14 = vld [vmem:[#allocation2 + $0x144] sm:$0xfe]   ;;  %v10679_v46 = vld [vmem:[#allocation2 + $0x12c] sm:$0xff]  }
 0x2ac   : > { %v1685_v29 = vsel %vm11319_vm11, %v1677_v0, %v1684_v34  ;;  %v2057_v57 = vsel %vm11191_vm3, %v1686_v44, %v2056_v37  ;;  %v7190_v0 = vsel %vm3601_vm6, %v7188_v50, %v7189_v49  ;;  %v4693_v37 = vrot.slane %v4691_v26, 1  ;;  %v10675_v49 = vld [vmem:[#allocation2 + $0x9c] sm:$0xff]   ;;  %v10676_v20 = vld [vmem:[#allocation2 + $0xa4] ss:$0 sps:$4 sm:$0x11]  }
 0x2ad   : > { %2055 = vst.msk [vmem:[#allocation2 + $0x160] sm:$0xf] %vm853_vm0, %v1685_v29  ;;  %2058 = vst [vmem:[#allocation2 + $0x164] sm:$0x1] %v2057_v57  ;;  %5829 = vrot.lane.b32.xlu0 %v10667_v61, %s10936_s21  ;;  %v3029_v44 = vrot.slane %v3027_v45, 1  ;;  %v3034_v6 = vrot.slane %v3032_v12, 1 }
 0x2ae   : > { %7274 = vst.msk [vmem:[#allocation3 + $0x208] sm:$0xff] %vm2350_vm10, %v7190_v0  ;;  %v4694_v35 = vor.u32 %v4693_v37, %v4689_v47  ;;  %v815_v57 = vmax.f32 %v735_v13, 0.0  ;;  %v7194_v50 = vrot.slane %v10673_v14, 1  ;;  %v7315_v23 = vld [vmem:[#allocation3 + $0xf0] sm:$0xff]  ;;  %v12482_v0 = vpop.permute.xlu0 %5460  ;;  %v4677_v40 = vshrl.u32 %v10675_v49, 16 }
 0x2af   : > { %v7353_v28 = vld [vmem:[#allocation3 + $0x220] sm:$0xff]  ;;  %v3030_v29 = vor.u32 %v3029_v44, %v3025_v8  ;;  %v4679_v25 = vshll.u32 %v10675_v49, 16  ;;  %7741 = vmatmul.mubr.bf16.gmra.mrb[32].mxu1 %v7315_v23  ;;  %v4684_v61 = vshll.u32 %v10676_v20, 16  ;;  %v10678_v51 = vld [vmem:[#allocation2 + $0x158] ss:$0 sps:$4 sm:$0x11]  }
 0x2b0   : > { %v4699_v4 = vsel %vm2735_vm7, %v4694_v35, %v4698_v55  ;;  %v7196_v41 = vsel %vm3601_vm6, %v7194_v50, %v7195_v24  ;;  %v10677_v42 = vld [vmem:[#allocation2 + $0x150] sm:$0xfe]   ;;  %v3013_v62 = vshrl.u32 %v10679_v46, 16  ;;  %v7198_v11 = vrot.slane %v10678_v51, 1  ;;  %v10683_v8 = vld [vmem:[#allocation2 + $0xc0] sm:$0xff]  }
 0x2b1   : > { %5827 = vrot.lane.b32.xlu0 %v10672_v17, %s10936_s21  ;;  %4961 = vst.msk [vmem:[#allocation3 + $0x140] sm:$0xff] %vm2350_vm10, %v4699_v4  ;;  %v3035_v36 = vsel %vm2735_vm7, %v3030_v29, %v3034_v6  ;;  %7276 = vst.msk [vmem:[#allocation3 + $0x238] sm:$0xff] %vm2350_vm10, %v7196_v41  ;;  %v4681_v48 = vrot.slane %v4679_v25, 1  ;;  %v7197_v33 = vrot.slane %v10677_v42, 1  ;;  %v3015_v16 = vshll.u32 %v10679_v46, 16  ;;  %v12506_v29 = vpop.permute.xlu1 %3732  ;;  %v10685_v24 = vld [vmem:[#allocation2 + $0x150] sm:$0xff]  }
 0x2b2   : > { %5537 = vst.msk [vmem:[#allocation3 + $0x140] sm:$0xff] %vm3216_vm12, %v12335_v43  ;;  %3168 = vrot.lane.b32.xlu1 %v3035_v36, %s10937_s12  ;;  %v4686_v43 = vrot.slane %v4684_v61, 1  ;;  %v10680_v26 = vld [vmem:[#allocation2 + $0x134] ss:$0 sps:$4 sm:$0x11]   ;;  %v12496_v45 = vpop.permute.xlu0 %6677  ;;  %v9894_v12 = vpack.c.bf16 %v815_v57, %v815_v57  ;;  %v4713_v6 = vshrl.u32 %v10683_v8, 16 }
 0x2b3   : > { %5890 = vst.msk [vmem:[#allocation3 + $0x140] sm:$0xff] %vm3794_vm13, %v12432_v56  ;;  %v4682_v47 = vor.u32 %v4681_v48, %v4677_v40  ;;  %v7199_v54 = vsel %vm3601_vm6, %v7197_v33, %v7198_v11  ;;  %v3017_v2 = vrot.slane %v3015_v16, 1  ;;  %v3020_v13 = vshll.u32 %v10680_v26, 16  ;;  %v10682_v37 = vld [vmem:[#allocation2 + $0x158] ss:$0 sps:$4 sm:$0x11]  }
 0x2b4   : > { %6754 = vst.msk [vmem:[#allocation3 + $0x140] sm:$0xff] %vm4147_vm14, %v12449_v58  ;;  %v10681_v58 = vld [vmem:[#allocation2 + $0x150] sm:$0xfe]   ;;  %v5408_v35 = vrot.slane %v10682_v37, 1  ;;  %v4715_v9 = vshll.u32 %v10683_v8, 16  ;;  %v1722_v20 = vshrl.u32 %v9894_v12, 16 }
 0x2b5   : > { %v7350_v34 = vld [vmem:[#allocation3 + $0x208] sm:$0xff]  ;;  %v4687_v56 = vsel %vm2735_vm7, %v4682_v47, %v4686_v43  ;;  %7277 = vst.msk [vmem:[#allocation3 + $0x250] sm:$0xff] %vm2350_vm10, %v7199_v54  ;;  %v3018_v55 = vor.u32 %v3017_v2, %v3013_v62  ;;  %v5407_v44 = vrot.slane %v10681_v58, 1  ;;  %v10684_v14 = vld [vmem:[#allocation2 + $0xc8] ss:$0 sps:$4 sm:$0x11]   ;;  %v12523_v11 = vpop.permute.xlu1 %3156 }
 0x2b6   : > { %10137 = vmatmul.mubr.msk.bf16.gmra.mrb[112].mxu0 %vm2350_vm10, %v7350_v34  ;;  %4960 = vst.msk [vmem:[#allocation3 + $0x128] sm:$0xff] %vm2350_vm10, %v4687_v56  ;;  %v3022_v34 = vrot.slane %v3020_v13, 1  ;;  %v4720_v50 = vshll.u32 %v10684_v14, 16  ;;  %v12514_v49 = vpop.permute.xlu0 %5817  ;;  %v10687_v46 = vld [vmem:[#allocation2 + $0x14c] ss:$0 sps:$4 sm:$0x11]  }
 0x2b7   : > { %10140 = vmatprep.mubr.msk.bf16.mxu0 %vm2350_vm10, %v7353_v28  ;;  %5536 = vst.msk [vmem:[#allocation3 + $0x128] sm:$0xff] %vm3216_vm12, %v12347_v27  ;;  %v10688_v28 = vld [vmem:[#allocation2 + $0xb4] sm:$0xff]   ;;  %v5409_v4 = vsel %vm3601_vm6, %v5407_v44, %v5408_v35  ;;  %v4717_v27 = vrot.slane %v4715_v9, 1  ;;  %v959_v36 = vld [vmem:[#allocation2 + $0x180] sm:$0x1]  ;;  %v5405_v61 = vrot.slane %v10687_v46, 1 }
 0x2b8   : > { %v7356_v17 = vld [vmem:[#allocation3 + $0x238] sm:$0xff]  ;;  %5889 = vst.msk [vmem:[#allocation3 + $0x128] sm:$0xff] %vm3794_vm13, %v12292_v21  ;;  %v3023_v57 = vsel %vm2735_vm7, %v3018_v55, %v3022_v34  ;;  %5478 = vrot.lane.b32.xlu0 %v5409_v4, %s10937_s12  ;;  %v4722_v40 = vrot.slane %v4720_v50, 1  ;;  %v12519_v42 = vrot.slane %v1722_v20, 7  ;;  %v1725_v51 = vshll.u32 %v9894_v12, 16  ;;  %v726_v26 = vpop.f32.mrb[57].mxu0 }
 0x2b9   : > { %6753 = vst.msk [vmem:[#allocation3 + $0x128] sm:$0xff] %vm4147_vm14, %v12358_v30  ;;  %3166 = vrot.lane.b32.xlu1 %v3023_v57, %s10937_s12  ;;  %v10686_v21 = vld [vmem:[#allocation2 + $0x144] sm:$0xfe]   ;;  %v4718_v41 = vor.u32 %v4717_v27, %v4713_v6  ;;  %v960_v30 = vsel %vm11191_vm3, 0, %v959_v36  ;;  %v4701_v48 = vshrl.u32 %v10688_v28, 16  ;;  %v4703_v33 = vshll.u32 %v10688_v28, 16 }
 0x2ba   : > { %v5404_v25 = vrot.slane %v10686_v21, 1  ;;  %961 = vst [vmem:[#allocation2 + $0x180] sm:$0x1] %v960_v30  ;;  %v10689_v43 = vld [vmem:[#allocation2 + $0xbc] ss:$0 sps:$4 sm:$0x11]   ;;  %v727_v13 = vadd.f32 %v12471_v59, %v726_v26  ;;  %v12534_v55 = vpop.permute.xlu0 %5815  ;;  %v1727_v12 = vor.u32 %v1725_v51, %v12519_v42  ;;  %v12547_v21 = vpop.permute.xlu1 %3154 }
 0x2bb   : > { %v4723_v62 = vsel %vm2735_vm7, %v4718_v41, %v4722_v40  ;;  %v1728_v47 = vrot.slane %v12519_v42, 4  ;;  %v956_v54 = vld [vmem:[#allocation2 + $0x174] sm:$0x1]  ;;  %v1057_v2 = vld [vmem:[#allocation2 + $0x188] sm:$0x1]  ;;  %v4705_v8 = vrot.slane %v4703_v33, 1 }
 0x2bc   : > { %v7359_v23 = vld [vmem:[#allocation3 + $0x250] sm:$0xff]  ;;  %4963 = vst.msk [vmem:[#allocation3 + $0x170] sm:$0xff] %vm2350_vm10, %v4723_v62  ;;  %v5406_v16 = vsel %vm3601_vm6, %v5404_v25, %v5405_v61  ;;  %v4708_v56 = vshll.u32 %v10689_v43, 16  ;;  %v957_v58 = vsel %vm11191_vm3, 0, %v956_v54  ;;  %v10087_v37 = vpop.f32.mrb[58].mxu0  ;;  %v813_v6 = vmax.f32 %v727_v13, 0.0 }
 0x2bd   : > { %4101 = vrot.lane.b32.xlu1 %v10685_v24, %s10938_s9  ;;  %5539 = vst.msk [vmem:[#allocation3 + $0x170] sm:$0xff] %vm3216_vm12, %v12247_v3  ;;  %5476 = vrot.lane.b32.xlu0 %v5406_v16, %s10937_s12  ;;  %958 = vst [vmem:[#allocation2 + $0x174] sm:$0x1] %v957_v58  ;;  %v738_v3 = vadd.f32 %v12471_v59, %v10087_v37  ;;  %v10690_v34 = vld [vmem:[#allocation2 + $0x144] sm:$0xff]   ;;  %v4706_v44 = vor.u32 %v4705_v8, %v4701_v48  ;;  %v729_v28 = vpop.f32.mrb[59].mxu0 }
 0x2be   : > { %10141 = vmatmul.mubr.msk.bf16.gmra.mrb[116].mxu0 %vm2350_vm10, %v7356_v17  ;;  %5892 = vst.msk [vmem:[#allocation3 + $0x170] sm:$0xff] %vm3794_vm13, %v11529_v52  ;;  %v1058_v17 = vsel %vm11203_vm5, 0, %v1057_v2  ;;  %v4710_v35 = vrot.slane %v4708_v56, 1  ;;  %v10691_v52 = vld [vmem:[#allocation2 + $0x150] sm:$0xff]   ;;  %v9892_v27 = vpack.c.bf16 %v813_v6, %v813_v6  ;;  %v730_v50 = vadd.f32 %v12471_v59, %v729_v28  ;;  %v1054_v24 = vld [vmem:[#allocation2 + $0x17c] sm:$0x1]  ;;  %v12554_v61 = vpop.permute.xlu0 %5466 }
 0x2bf   : > { %10144 = vmatprep.mubr.msk.bf16.mxu0 %vm2350_vm10, %v7359_v23  ;;  %6756 = vst.msk [vmem:[#allocation3 + $0x170] sm:$0xff] %vm4147_vm14, %v11547_v39  ;;  %1059 = vst [vmem:[#allocation2 + $0x188] sm:$0x1] %v1058_v17  ;;  %v816_v14 = vmax.f32 %v738_v3, 0.0  ;;  %v6550_v36 = vshrl.u32 %v10691_v52, 16  ;;  %v6552_v20 = vshll.u32 %v10691_v52, 16 }
 0x2c0   : > { %v10692_v9 = vld [vmem:[#allocation2 + $0x158] ss:$0 sps:$4 sm:$0x11]   ;;  %v4711_v4 = vsel %vm2735_vm7, %v4706_v44, %v4710_v35  ;;  %v1705_v23 = vshrl.u32 %v9892_v27, 16  ;;  %v1708_v41 = vshll.u32 %v9892_v27, 16  ;;  %v814_v25 = vmax.f32 %v730_v50, 0.0 }
 0x2c1   : > { %4099 = vrot.lane.b32.xlu1 %v10690_v34, %s10938_s9  ;;  %v2073_v57 = vld [vmem:[#allocation2 + $0x180] sm:$0xf]  ;;  %4962 = vst.msk [vmem:[#allocation3 + $0x158] sm:$0xff] %vm2350_vm10, %v4711_v4  ;;  %v9895_v46 = vpack.c.bf16 %v816_v14, %v816_v14  ;;  %v6557_v40 = vshll.u32 %v10692_v9, 16  ;;  %v10693_v30 = vld [vmem:[#allocation2 + $0x150] sm:$0xfe]   ;;  %v12562_v34 = vpop.permute.xlu1 %4089 }
 0x2c2   : > { %v2074_v39 = vsel %vm11312_vm9, %v1727_v12, %v2073_v57  ;;  %5538 = vst.msk [vmem:[#allocation3 + $0x158] sm:$0xff] %vm3216_vm12, %v12257_v19  ;;  %v6554_v62 = vrot.slane %v6552_v20, 1  ;;  %v1055_v43 = vsel %vm11203_vm5, 0, %v1054_v24  ;;  %v1707_v33 = vrot.slane %v1705_v23, 7  ;;  %v10695_v2 = vld [vmem:[#allocation2 + $0x144] sm:$0xff]   ;;  %v12568_v4 = vpop.permute.xlu0 %5464 }
 0x2c3   : > { %2075 = vst [vmem:[#allocation2 + $0x180] sm:$0xf] %v2074_v39  ;;  %5891 = vst.msk [vmem:[#allocation3 + $0x158] sm:$0xff] %vm3794_vm13, %v12212_v1  ;;  %v1730_v51 = vshrl.u32 %v9895_v46, 16  ;;  %v1733_v48 = vshll.u32 %v9895_v46, 16  ;;  %v6559_v26 = vrot.slane %v6557_v40, 1  ;;  %v9893_v19 = vpack.c.bf16 %v814_v25, %v814_v25 }
 0x2c4   : > { %v2066_v16 = vld [vmem:[#allocation2 + $0x174] sm:$0xf]  ;;  %1056 = vst [vmem:[#allocation2 + $0x17c] sm:$0x1] %v1055_v43  ;;  %v3680_v54 = vrot.slane %v10693_v30, 1  ;;  %6755 = vst.msk [vmem:[#allocation3 + $0x158] sm:$0xff] %vm4147_vm14, %v12301_v18  ;;  %v6555_v13 = vor.u32 %v6554_v62, %v6550_v36  ;;  %v1710_v58 = vor.u32 %v1708_v41, %v1707_v33 }
 0x2c5   : > { %v1732_v8 = vrot.slane %v1730_v51, 7  ;;  %v10694_v1 = vld [vmem:[#allocation2 + $0x158] ss:$0 sps:$4 sm:$0x11]   ;;  %v1711_v37 = vrot.slane %v1707_v33, 4  ;;  %v1713_v12 = vshrl.u32 %v9893_v19, 16  ;;  %v12583_v33 = vpop.permute.xlu1 %4087 }
 0x2c6   : > { %v2077_v56 = vld [vmem:[#allocation2 + $0x188] sm:$0x1]  ;;  %v1716_v3 = vshll.u32 %v9893_v19, 16  ;;  %v7319_v17 = vld [vmem:[#allocation3 + $0x110] sm:$0xff]  ;;  %v6560_v6 = vsel %vm2735_vm7, %v6555_v13, %v6559_v26  ;;  %v3681_v14 = vrot.slane %v10694_v1, 1  ;;  %v2067_v18 = vsel %vm11312_vm9, %v1710_v58, %v2066_v16  ;;  %v7322_v62 = vld [vmem:[#allocation3 + $0x128] sm:$0xff] }
 0x2c7   : > { %v1735_v44 = vor.u32 %v1733_v48, %v1732_v8  ;;  %v1737_v35 = vrot.slane %v1732_v8, 4  ;;  %7748 = vmatprep.mubr.bf16.mxu1 %v7319_v17  ;;  %6693 = vrot.lane.b32.xlu0 %v6560_v6, %s10938_s9  ;;  %v1715_v52 = vrot.slane %v1713_v12, 7  ;;  %v10696_v9 = vld [vmem:[#allocation2 + $0x14c] ss:$0 sps:$4 sm:$0x11]   ;;  %v6538_v28 = vshrl.u32 %v10695_v2, 16 }
 0x2c8   : > { %v6540_v57 = vshll.u32 %v10695_v2, 16  ;;  %2068 = vst [vmem:[#allocation2 + $0x174] sm:$0xf] %v2067_v18  ;;  %v3682_v24 = vsel %vm3601_vm6, %v3680_v54, %v3681_v14  ;;  %v10697_v39 = vld [vmem:[#allocation2 + $0x144] sm:$0xfe]   ;;  %v6545_v23 = vshll.u32 %v10696_v9, 16  ;;  %v12590_v2 = vpop.permute.xlu0 %6681 }
 0x2c9   : > { %v1736_v27 = vsel %vm11319_vm11, %v1728_v47, %v1735_v44  ;;  %v2078_v50 = vsel %vm11191_vm3, %v1737_v35, %v2077_v56  ;;  %v1718_v46 = vor.u32 %v1716_v3, %v1715_v52  ;;  %v1720_v36 = vrot.slane %v1715_v52, 4  ;;  %3750 = vrot.lane.b32.xlu1 %v3682_v24, %s10936_s21  ;;  %v10698_v41 = vld [vmem:[#allocation2 + $0x14c] ss:$0 sps:$4 sm:$0x11]   ;;  %v7318_v48 = vld [vmem:[#allocation3 + $0x108] sm:$0xff]  ;;  %v10090_v43 = vpop.f32.mrb[60].mxu0  ;;  %v12603_v35 = vpop.permute.xlu1 %3738 }
 0x2ca   : > { %2076 = vst.msk [vmem:[#allocation2 + $0x184] sm:$0xf] %vm853_vm0, %v1736_v27  ;;  %2079 = vst [vmem:[#allocation2 + $0x188] sm:$0x1] %v2078_v50  ;;  %v6542_v20 = vrot.slane %v6540_v57, 1  ;;  %v3677_v40 = vrot.slane %v10697_v39, 1  ;;  %7749 = vmatmul.mubr.bf16.gmra.mrb[36].mxu1 %v7318_v48  ;;  %v12587_v19 = vadd.f32 %v12471_v59, %v10090_v43 }
 0x2cb   : > { %v2070_v42 = vld [vmem:[#allocation2 + $0x17c] sm:$0x1]  ;;  %v1719_v47 = vsel %vm11319_vm11, %v1711_v37, %v1718_v46  ;;  %v6547_v51 = vrot.slane %v6545_v23, 1  ;;  %v3678_v16 = vrot.slane %v10698_v41, 1  ;;  %v10700_v26 = vld [vmem:[#allocation2 + $0xb4] sm:$0xff]   ;;  %7756 = vmatprep.mubr.bf16.mxu1 %v7322_v62  ;;  %v10699_v1 = vld [vmem:[#allocation2 + $0x168] sm:$0xff]  }
 0x2cc   : > { %v2071_v25 = vsel %vm11191_vm3, %v1720_v36, %v2070_v42  ;;  %v6543_v30 = vor.u32 %v6542_v20, %v6538_v28  ;;  %2069 = vst.msk [vmem:[#allocation2 + $0x178] sm:$0xf] %vm853_vm0, %v1719_v47  ;;  %v10701_v56 = vld [vmem:[#allocation2 + $0x150] sm:$0xff]   ;;  %v10702_v13 = vld [vmem:[#allocation2 + $0x158] ss:$0 sps:$4 sm:$0x11]  }
 0x2cd   : > { %2072 = vst [vmem:[#allocation2 + $0x17c] sm:$0x1] %v2071_v25  ;;  %v3679_v8 = vsel %vm3601_vm6, %v3677_v40, %v3678_v16  ;;  %2366 = vst.msk [vmem:[#allocation3 + $0x168] sm:$0xff] %vm2350_vm10, %v10700_v26  ;;  %v819_v58 = vmax.f32 %v12587_v19, 0.0  ;;  %v3049_v37 = vshrl.u32 %v10701_v56, 16  ;;  %v3051_v12 = vshll.u32 %v10701_v56, 16  ;;  %v12611_v42 = vpop.permute.xlu1 %3736 }
 0x2ce   : > { %v6548_v54 = vsel %vm2735_vm7, %v6543_v30, %v6547_v51  ;;  %3748 = vrot.lane.b32.xlu1 %v3679_v8, %s10936_s21  ;;  %3232 = vst.msk [vmem:[#allocation3 + $0x168] sm:$0xff] %vm3216_vm12, %v12321_v10  ;;  %v3056_v3 = vshll.u32 %v10702_v13, 16  ;;  %v10706_v17 = vld [vmem:[#allocation2 + $0xf0] sm:$0xff]   ;;  %v10704_v44 = vld [vmem:[#allocation2 + $0x15c] sm:$0xfe]   ;;  %v10710_v39 = vld [vmem:[#allocation2 + $0x144] sm:$0xff]  }
 0x2cf   : > { %6691 = vrot.lane.b32.xlu0 %v6548_v54, %s10938_s9  ;;  %3810 = vst.msk [vmem:[#allocation3 + $0x168] sm:$0xff] %vm3794_vm13, %v12283_v22  ;;  %v3053_v6 = vrot.slane %v3051_v12, 1  ;;  %v10703_v10 = vld [vmem:[#allocation2 + $0x15c] sm:$0xff]   ;;  %v10705_v18 = vld [vmem:[#allocation2 + $0x164] ss:$0 sps:$4 sm:$0x11]   ;;  %v6680_v22 = vpop.permute.xlu0 %6679 }
 0x2d0   : > { %4163 = vst.msk [vmem:[#allocation3 + $0x168] sm:$0xff] %vm4147_vm14, %v12224_v5  ;;  %v3058_v14 = vrot.slane %v3056_v3, 1  ;;  %v4737_v52 = vshrl.u32 %v10706_v17, 16  ;;  %v7200_v9 = vrot.slane %v10704_v44, 1  ;;  %v4739_v28 = vshll.u32 %v10706_v17, 16  ;;  %v7321_v54 = vld [vmem:[#allocation3 + $0x120] sm:$0xff] }
 0x2d1   : > { %v3054_v57 = vor.u32 %v3053_v6, %v3049_v37  ;;  %v7201_v27 = vrot.slane %v10705_v18, 1  ;;  %v10707_v50 = vld [vmem:[#allocation2 + $0xf8] ss:$0 sps:$4 sm:$0x11]   ;;  %v10708_v20 = vld [vmem:[#allocation2 + $0x168] sm:$0xfe]   ;;  %v12619_v37 = vpack.c.bf16 %v819_v58, %v819_v58 }
 0x2d2   : > { %v4741_v24 = vrot.slane %v4739_v28, 1  ;;  %v4744_v36 = vshll.u32 %v10707_v50, 16  ;;  %v10709_v23 = vld [vmem:[#allocation2 + $0x170] ss:$0 sps:$4 sm:$0x11]   ;;  %v7203_v47 = vrot.slane %v10708_v20, 1  ;;  %7757 = vmatmul.mubr.bf16.gmra.mrb[40].mxu1 %v7321_v54 }
 0x2d3   : > { %5833 = vrot.lane.b32.xlu0 %v10699_v1, %s10936_s21  ;;  %v3059_v5 = vsel %vm2735_vm7, %v3054_v57, %v3058_v14  ;;  %v7202_v46 = vsel %vm3601_vm6, %v7200_v9, %v7201_v27  ;;  %v7204_v25 = vrot.slane %v10709_v23, 1  ;;  %v10711_v30 = vld [vmem:[#allocation2 + $0x14c] ss:$0 sps:$4 sm:$0x11]   ;;  %v3037_v51 = vshrl.u32 %v10710_v39, 16  ;;  %v12613_v62 = vpop.permute.xlu0 %5821  ;;  %v7325_v13 = vld [vmem:[#allocation3 + $0x140] sm:$0xff]  ;;  %v12625_v14 = vpop.permute.xlu1 %3160 }
 0x2d4   : > { %3172 = vrot.lane.b32.xlu1 %v3059_v5, %s10937_s12  ;;  %7278 = vst.msk [vmem:[#allocation3 + $0x268] sm:$0xff] %vm2350_vm10, %v7202_v46  ;;  %v4742_v41 = vor.u32 %v4741_v24, %v4737_v52  ;;  %v4746_v40 = vrot.slane %v4744_v36, 1  ;;  %v3039_v48 = vshll.u32 %v10710_v39, 16  ;;  %v3044_v26 = vshll.u32 %v10711_v30, 16  ;;  %v10712_v19 = vld [vmem:[#allocation2 + $0x168] sm:$0xfe]   ;;  %7764 = vmatprep.mubr.bf16.mxu1 %v7325_v13 }
 0x2d5   : > { %v7205_v16 = vsel %vm3601_vm6, %v7203_v47, %v7204_v25  ;;  %v10713_v56 = vld [vmem:[#allocation2 + $0x170] ss:$0 sps:$4 sm:$0x11]   ;;  %v10714_v1 = vld [vmem:[#allocation2 + $0xe4] sm:$0xff]   ;;  %v5413_v3 = vrot.slane %v10712_v19, 1  ;;  %v1756_v28 = vshrl.u32 %v12619_v37, 16 }
 0x2d6   : > { %v4747_v43 = vsel %vm2735_vm7, %v4742_v41, %v4746_v40  ;;  %7279 = vst.msk [vmem:[#allocation3 + $0x280] sm:$0xff] %vm2350_vm10, %v7205_v16  ;;  %v3041_v8 = vrot.slane %v3039_v48, 1  ;;  %v3046_v12 = vrot.slane %v3044_v26, 1  ;;  %v5414_v44 = vrot.slane %v10713_v56, 1  ;;  %v10716_v27 = vld [vmem:[#allocation2 + $0x168] sm:$0xff]   ;;  %v742_v23 = vpop.f32.mrb[61].mxu0 }
 0x2d7   : > { %5831 = vrot.lane.b32.xlu0 %v10703_v10, %s10936_s21  ;;  %4965 = vst.msk [vmem:[#allocation3 + $0x1a0] sm:$0xff] %vm2350_vm10, %v4747_v43  ;;  %v10715_v6 = vld [vmem:[#allocation2 + $0xec] ss:$0 sps:$4 sm:$0x11]   ;;  %v4725_v18 = vshrl.u32 %v10714_v1, 16  ;;  %v4727_v52 = vshll.u32 %v10714_v1, 16  ;;  %v12632_v57 = vpop.permute.xlu0 %5819  ;;  %v743_v25 = vadd.f32 %v12471_v59, %v742_v23  ;;  %v12643_v48 = vpop.permute.xlu1 %3158 }
 0x2d8   : > { %5541 = vst.msk [vmem:[#allocation3 + $0x1a0] sm:$0xff] %vm3216_vm12, %v12474_v60  ;;  %v3042_v17 = vor.u32 %v3041_v8, %v3037_v51  ;;  %v5415_v58 = vsel %vm3601_vm6, %v5413_v3, %v5414_v44  ;;  %v4732_v9 = vshll.u32 %v10715_v6, 16  ;;  %v10717_v24 = vld [vmem:[#allocation2 + $0x15c] sm:$0xfe]   ;;  %v965_v46 = vld [vmem:[#allocation2 + $0x198] sm:$0x1] }
 0x2d9   : > { %5894 = vst.msk [vmem:[#allocation3 + $0x1a0] sm:$0xff] %vm3794_vm13, %v12534_v55  ;;  %v4729_v55 = vrot.slane %v4727_v52, 1  ;;  %v12636_v36 = vrot.slane %v1756_v28, 7  ;;  %v1759_v20 = vshll.u32 %v12619_v37, 16  ;;  %v5410_v41 = vrot.slane %v10717_v24, 1  ;;  %v10091_v51 = vpop.f32.mrb[62].mxu0 }
 0x2da   : > { %6758 = vst.msk [vmem:[#allocation3 + $0x1a0] sm:$0xff] %vm4147_vm14, %v6680_v22  ;;  %v3047_v60 = vsel %vm2735_vm7, %v3042_v17, %v3046_v12  ;;  %v4734_v50 = vrot.slane %v4732_v9, 1  ;;  %v10718_v22 = vld [vmem:[#allocation2 + $0x164] ss:$0 sps:$4 sm:$0x11]   ;;  %v966_v47 = vsel %vm11191_vm3, 0, %v965_v46  ;;  %v754_v13 = vadd.f32 %v12471_v59, %v10091_v51 }
 0x2db   : > { %v7362_v10 = vld [vmem:[#allocation3 + $0x268] sm:$0xff]  ;;  %3170 = vrot.lane.b32.xlu1 %v3047_v60, %s10937_s12  ;;  %5482 = vrot.lane.b32.xlu0 %v5415_v58, %s10937_s12  ;;  %v4730_v5 = vor.u32 %v4729_v55, %v4725_v18  ;;  %v5411_v40 = vrot.slane %v10718_v22, 1  ;;  %v962_v30 = vld [vmem:[#allocation2 + $0x18c] sm:$0x1]  ;;  %967 = vst [vmem:[#allocation2 + $0x198] sm:$0x1] %v966_v47  ;;  %v12655_v37 = vpop.permute.xlu0 %5470  ;;  %v1761_v60 = vor.u32 %v1759_v20, %v12636_v36 }
 0x2dc   : > { %10145 = vmatmul.mubr.msk.bf16.gmra.mrb[120].mxu0 %vm2350_vm10, %v7362_v10  ;;  %v1762_v16 = vrot.slane %v12636_v36, 4  ;;  %v963_v26 = vsel %vm11191_vm3, 0, %v962_v30  ;;  %v1063_v19 = vld [vmem:[#allocation2 + $0x1a0] sm:$0x1]  ;;  %v817_v56 = vmax.f32 %v743_v25, 0.0  ;;  %v10720_v12 = vld [vmem:[#allocation2 + $0x168] sm:$0xff]  }
 0x2dd   : > { %v7365_v39 = vld [vmem:[#allocation3 + $0x280] sm:$0xff]  ;;  %v4735_v43 = vsel %vm2735_vm7, %v4730_v5, %v4734_v50  ;;  %v10719_v54 = vld [vmem:[#allocation2 + $0x15c] sm:$0xff]   ;;  %v5412_v8 = vsel %vm3601_vm6, %v5410_v41, %v5411_v40  ;;  %964 = vst [vmem:[#allocation2 + $0x18c] sm:$0x1] %v963_v26  ;;  %v1064_v1 = vsel %vm11203_vm5, 0, %v1063_v19  ;;  %v745_v3 = vpop.f32.mrb[63].mxu0  ;;  %v12667_v50 = vpop.permute.xlu1 %4093 }
 0x2de   : > { %10148 = vmatprep.mubr.msk.bf16.mxu0 %vm2350_vm10, %v7365_v39  ;;  %4964 = vst.msk [vmem:[#allocation3 + $0x188] sm:$0xff] %vm2350_vm10, %v4735_v43  ;;  %1065 = vst [vmem:[#allocation2 + $0x1a0] sm:$0x1] %v1064_v1  ;;  %v9896_v17 = vpack.c.bf16 %v817_v56, %v817_v56  ;;  %v820_v44 = vmax.f32 %v754_v13, 0.0  ;;  %v7324_v10 = vld [vmem:[#allocation3 + $0x138] sm:$0xff]  ;;  %v746_v18 = vadd.f32 %v12471_v59, %v745_v3  ;;  %v6576_v58 = vshll.u32 %v10720_v12, 16 }
 0x2df   : > { %4105 = vrot.lane.b32.xlu1 %v10716_v27, %s10938_s9  ;;  %5540 = vst.msk [vmem:[#allocation3 + $0x188] sm:$0xff] %vm3216_vm12, %v12482_v0  ;;  %5480 = vrot.lane.b32.xlu0 %v5412_v8, %s10937_s12  ;;  %v10721_v6 = vld [vmem:[#allocation2 + $0x170] ss:$0 sps:$4 sm:$0x11]   ;;  %v7328_v52 = vld [vmem:[#allocation3 + $0x158] sm:$0xff]  ;;  %v6574_v0 = vshrl.u32 %v10720_v12, 16  ;;  %v12671_v40 = vpop.permute.xlu0 %5468 }
 0x2e0   : > { %5893 = vst.msk [vmem:[#allocation3 + $0x188] sm:$0xff] %vm3794_vm13, %v12460_v32  ;;  %7765 = vmatmul.mubr.bf16.gmra.mrb[44].mxu1 %v7324_v10  ;;  %v1060_v9 = vld [vmem:[#allocation2 + $0x194] sm:$0x1]  ;;  %v1739_v28 = vshrl.u32 %v9896_v17, 16  ;;  %v1742_v32 = vshll.u32 %v9896_v17, 16  ;;  %v9899_v55 = vpack.c.bf16 %v820_v44, %v820_v44  ;;  %v6581_v27 = vshll.u32 %v10721_v6, 16 }
 0x2e1   : > { %6757 = vst.msk [vmem:[#allocation3 + $0x188] sm:$0xff] %vm4147_vm14, %v12496_v45  ;;  %7772 = vmatprep.mubr.bf16.mxu1 %v7328_v52  ;;  %v6578_v59 = vrot.slane %v6576_v58, 1  ;;  %v818_v24 = vmax.f32 %v746_v18, 0.0  ;;  %v1061_v22 = vsel %vm11203_vm5, 0, %v1060_v9  ;;  %v10724_v39 = vld [vmem:[#allocation2 + $0x15c] sm:$0xff]   ;;  %v10726_v45 = vld [vmem:[#allocation2 + $0xf0] sm:$0xff]  }
 0x2e2   : > { %v2087_v5 = vld [vmem:[#allocation2 + $0x198] sm:$0xf]  ;;  %v1741_v46 = vrot.slane %v1739_v28, 7  ;;  %v1764_v20 = vshrl.u32 %v9899_v55, 16  ;;  %v1767_v23 = vshll.u32 %v9899_v55, 16  ;;  %v6583_v41 = vrot.slane %v6581_v27, 1 }
 0x2e3   : > { %4103 = vrot.lane.b32.xlu1 %v10719_v54, %s10938_s9  ;;  %1062 = vst [vmem:[#allocation2 + $0x194] sm:$0x1] %v1061_v22  ;;  %v2088_v47 = vsel %vm11312_vm9, %v1761_v60, %v2087_v5  ;;  %v6579_v30 = vor.u32 %v6578_v59, %v6574_v0  ;;  %v9897_v51 = vpack.c.bf16 %v818_v24, %v818_v24  ;;  %v10722_v43 = vld [vmem:[#allocation2 + $0x168] sm:$0xfe]   ;;  %2369 = vst.msk [vmem:[#allocation3 + $0x1b0] sm:$0xff] %vm2350_vm10, %v10726_v45  ;;  %v12694_v58 = vpop.permute.xlu0 %6685  ;;  %v7331_v45 = vld [vmem:[#allocation3 + $0x170] sm:$0xff] }
 0x2e4   : > { %v2080_v25 = vld [vmem:[#allocation2 + $0x18c] sm:$0xf]  ;;  %2089 = vst [vmem:[#allocation2 + $0x198] sm:$0xf] %v2088_v47  ;;  %v1744_v15 = vor.u32 %v1742_v32, %v1741_v46  ;;  %v1745_v26 = vrot.slane %v1741_v46, 4  ;;  %v1766_v19 = vrot.slane %v1764_v20, 7 }
 0x2e5   : > { %v2091_v54 = vld [vmem:[#allocation2 + $0x1a0] sm:$0x1]  ;;  %3235 = vst.msk [vmem:[#allocation3 + $0x1b0] sm:$0xff] %vm3216_vm12, %v12523_v11  ;;  %v6584_v8 = vsel %vm2735_vm7, %v6579_v30, %v6583_v41  ;;  %v1747_v56 = vshrl.u32 %v9897_v51, 16  ;;  %v1750_v13 = vshll.u32 %v9897_v51, 16  ;;  %v3686_v12 = vrot.slane %v10722_v43, 1  ;;  %v12686_v11 = vpop.permute.xlu1 %4091 }
 0x2e6   : > { %v10723_v1 = vld [vmem:[#allocation2 + $0x170] ss:$0 sps:$4 sm:$0x11]   ;;  %3813 = vst.msk [vmem:[#allocation3 + $0x1b0] sm:$0xff] %vm3794_vm13, %v12493_v63  ;;  %v2081_v3 = vsel %vm11312_vm9, %v1744_v15, %v2080_v25  ;;  %v1769_v17 = vor.u32 %v1767_v23, %v1766_v19  ;;  %v1771_v44 = vrot.slane %v1766_v19, 4  ;;  %6697 = vrot.lane.b32.xlu0 %v6584_v8, %s10938_s9  ;;  %v6562_v52 = vshrl.u32 %v10724_v39, 16 }
 0x2e7   : > { %v10725_v6 = vld [vmem:[#allocation2 + $0x164] ss:$0 sps:$4 sm:$0x11]   ;;  %4166 = vst.msk [vmem:[#allocation3 + $0x1b0] sm:$0xff] %vm4147_vm14, %v12583_v33  ;;  %2082 = vst [vmem:[#allocation2 + $0x18c] sm:$0xf] %v2081_v3 }
 0x2e8   : > { %v1749_v10 = vrot.slane %v1747_v56, 7  ;;  %v3687_v18 = vrot.slane %v10723_v1, 1  ;;  %v6564_v60 = vshll.u32 %v10724_v39, 16  ;;  %v1770_v38 = vsel %vm11319_vm11, %v1762_v16, %v1769_v17  ;;  %v10727_v27 = vld [vmem:[#allocation2 + $0x15c] sm:$0xfe]   ;;  %v10730_v46 = vld [vmem:[#allocation2 + $0xe4] sm:$0xff]  }
 0x2e9   : > { %v2092_v63 = vsel %vm11191_vm3, %v1771_v44, %v2091_v54  ;;  %v6569_v0 = vshll.u32 %v10725_v6, 16  ;;  %2090 = vst.msk [vmem:[#allocation2 + $0x19c] sm:$0xf] %vm853_vm0, %v1770_v38  ;;  %v7327_v16 = vld [vmem:[#allocation3 + $0x150] sm:$0xff]  ;;  %v3683_v5 = vrot.slane %v10727_v27, 1  ;;  %v12704_v20 = vpop.permute.xlu1 %3742  ;;  %v4761_v51 = vshrl.u32 %v10731_v53, 16 }
 0x2ea   : > { %2093 = vst [vmem:[#allocation2 + $0x1a0] sm:$0x1] %v2092_v63  ;;  %v1752_v33 = vor.u32 %v1750_v13, %v1749_v10  ;;  %v1754_v9 = vrot.slane %v1749_v10, 4  ;;  %v2084_v28 = vld [vmem:[#allocation2 + $0x194] sm:$0x1]  ;;  %v3688_v32 = vsel %vm3601_vm6, %v3686_v12, %v3687_v18  ;;  %v6566_v55 = vrot.slane %v6564_v60, 1  ;;  %7773 = vmatmul.mubr.bf16.gmra.mrb[48].mxu1 %v7327_v16  ;;  %v6684_v47 = vpop.permute.xlu0 %6683 }
 0x2eb   : > { %3754 = vrot.lane.b32.xlu1 %v3688_v32, %s10936_s21  ;;  %v6571_v36 = vrot.slane %v6569_v0, 1  ;;  %v10728_v39 = vld [vmem:[#allocation2 + $0x164] ss:$0 sps:$4 sm:$0x11]   ;;  %7780 = vmatprep.mubr.bf16.mxu1 %v7331_v45  ;;  %2368 = vst.msk [vmem:[#allocation3 + $0x198] sm:$0xff] %vm2350_vm10, %v10730_v46  ;;  %v4763_v43 = vshll.u32 %v10731_v53, 16 }
 0x2ec   : > { %v1753_v59 = vsel %vm11319_vm11, %v1745_v26, %v1752_v33  ;;  %v2085_v24 = vsel %vm11191_vm3, %v1754_v9, %v2084_v28  ;;  %v6567_v22 = vor.u32 %v6566_v55, %v6562_v52  ;;  %v3684_v41 = vrot.slane %v10728_v39, 1  ;;  %v10729_v7 = vld [vmem:[#allocation2 + $0x180] sm:$0xff]   ;;  %3234 = vst.msk [vmem:[#allocation3 + $0x198] sm:$0xff] %vm3216_vm12, %v12547_v21  ;;  %v10732_v30 = vld [vmem:[#allocation2 + $0x110] ss:$0 sps:$4 sm:$0x11]  }
 0x2ed   : > { %2083 = vst.msk [vmem:[#allocation2 + $0x190] sm:$0xf] %vm853_vm0, %v1753_v59  ;;  %2086 = vst [vmem:[#allocation2 + $0x194] sm:$0x1] %v2085_v24  ;;  %v10733_v15 = vld [vmem:[#allocation2 + $0x168] sm:$0xff]   ;;  %v4765_v26 = vrot.slane %v4763_v43, 1  ;;  %v12718_v13 = vpop.permute.xlu1 %3740 }
 0x2ee   : > { %v6572_v23 = vsel %vm2735_vm7, %v6567_v22, %v6571_v36  ;;  %v3685_v25 = vsel %vm3601_vm6, %v3683_v5, %v3684_v41  ;;  %3812 = vst.msk [vmem:[#allocation3 + $0x198] sm:$0xff] %vm3794_vm13, %v12506_v29  ;;  %v4768_v19 = vshll.u32 %v10732_v30, 16  ;;  %v10734_v54 = vld [vmem:[#allocation2 + $0x170] ss:$0 sps:$4 sm:$0x11]   ;;  %v3073_v8 = vshrl.u32 %v10733_v15, 16  ;;  %v12720_v29 = vpop.permute.xlu0 %5825 }
 0x2ef   : > { %6695 = vrot.lane.b32.xlu0 %v6572_v23, %s10938_s9  ;;  %3752 = vrot.lane.b32.xlu1 %v3685_v25, %s10936_s21  ;;  %4165 = vst.msk [vmem:[#allocation3 + $0x198] sm:$0xff] %vm4147_vm14, %v12338_v31  ;;  %v3075_v56 = vshll.u32 %v10733_v15, 16  ;;  %v10735_v21 = vld [vmem:[#allocation2 + $0x174] sm:$0xff]   ;;  %v4766_v1 = vor.u32 %v4765_v26, %v4761_v51  ;;  %v3080_v3 = vshll.u32 %v10734_v54, 16  ;;  %v10738_v18 = vld [vmem:[#allocation2 + $0xfc] sm:$0xff]   ;;  %v12740_v30 = vpop.f32.mrb[64].mxu0 }
 0x2f0   : > { %v4770_v12 = vrot.slane %v4768_v19, 1  ;;  %v10736_v44 = vld [vmem:[#allocation2 + $0x174] sm:$0xfe]   ;;  %v10737_v6 = vld [vmem:[#allocation2 + $0x17c] ss:$0 sps:$4 sm:$0x11]  }
 0x2f1   : > { %v3077_v17 = vrot.slane %v3075_v56, 1  ;;  %v3082_v10 = vrot.slane %v3080_v3, 1  ;;  %v7206_v60 = vrot.slane %v10736_v44, 1  ;;  %v7207_v38 = vrot.slane %v10737_v6, 1  ;;  %v10742_v9 = vld [vmem:[#allocation2 + $0x15c] sm:$0xff]  }
 0x2f2   : > { %v4771_v31 = vsel %vm2735_vm7, %v4766_v1, %v4770_v12  ;;  %v10739_v63 = vld [vmem:[#allocation2 + $0x104] ss:$0 sps:$4 sm:$0x11]   ;;  %v4749_v0 = vshrl.u32 %v10738_v18, 16  ;;  %v4751_v33 = vshll.u32 %v10738_v18, 16  ;;  %v12731_v36 = vpop.permute.xlu1 %3164  ;;  %v3061_v59 = vshrl.u32 %v10742_v9, 16  ;;  %v12736_v39 = vpop.permute.xlu0 %5823 }
 0x2f3   : > { %5837 = vrot.lane.b32.xlu0 %v10729_v7, %s10936_s21  ;;  %4967 = vst.msk [vmem:[#allocation3 + $0x1d0] sm:$0xff] %vm2350_vm10, %v4771_v31  ;;  %v3078_v52 = vor.u32 %v3077_v17, %v3073_v8  ;;  %v7208_v32 = vsel %vm3601_vm6, %v7206_v60, %v7207_v38  ;;  %v10740_v55 = vld [vmem:[#allocation2 + $0x180] sm:$0xfe]   ;;  %v10741_v16 = vld [vmem:[#allocation2 + $0x188] ss:$0 sps:$4 sm:$0x11]  }
 0x2f4   : > { %5543 = vst.msk [vmem:[#allocation3 + $0x1d0] sm:$0xff] %vm3216_vm12, %v12554_v61  ;;  %v4753_v27 = vrot.slane %v4751_v33, 1  ;;  %v4756_v61 = vshll.u32 %v10739_v63, 16  ;;  %v7209_v24 = vrot.slane %v10740_v55, 1  ;;  %v3063_v22 = vshll.u32 %v10742_v9, 16  ;;  %v7330_v25 = vld [vmem:[#allocation3 + $0x168] sm:$0xff] }
 0x2f5   : > { %v3083_v28 = vsel %vm2735_vm7, %v3078_v52, %v3082_v10  ;;  %5896 = vst.msk [vmem:[#allocation3 + $0x1d0] sm:$0xff] %vm3794_vm13, %v12632_v57  ;;  %v7210_v46 = vrot.slane %v10741_v16, 1  ;;  %v10743_v57 = vld [vmem:[#allocation2 + $0x164] ss:$0 sps:$4 sm:$0x11]   ;;  %7781 = vmatmul.mubr.bf16.gmra.mrb[52].mxu1 %v7330_v25  ;;  %v7334_v15 = vld [vmem:[#allocation3 + $0x188] sm:$0xff] }
 0x2f6   : > { %3176 = vrot.lane.b32.xlu1 %v3083_v28, %s10937_s12  ;;  %7280 = vst.msk [vmem:[#allocation3 + $0x298] sm:$0xff] %vm2350_vm10, %v7208_v32  ;;  %v4754_v45 = vor.u32 %v4753_v27, %v4749_v0  ;;  %v4758_v5 = vrot.slane %v4756_v61, 1  ;;  %v3065_v23 = vrot.slane %v3063_v22, 1  ;;  %v10744_v7 = vld [vmem:[#allocation2 + $0x180] sm:$0xfe]   ;;  %v3068_v51 = vshll.u32 %v10743_v57, 16  ;;  %7788 = vmatprep.mubr.bf16.mxu1 %v7334_v15 }
 0x2f7   : > { %5835 = vrot.lane.b32.xlu0 %v10735_v21, %s10936_s21  ;;  %6760 = vst.msk [vmem:[#allocation3 + $0x1d0] sm:$0xff] %vm4147_vm14, %v6684_v47  ;;  %v7211_v53 = vsel %vm3601_vm6, %v7209_v24, %v7210_v46  ;;  %v10745_v43 = vld [vmem:[#allocation2 + $0x188] ss:$0 sps:$4 sm:$0x11]   ;;  %v5419_v19 = vrot.slane %v10744_v7, 1  ;;  %v10750_v21 = vld [vmem:[#allocation2 + $0x180] sm:$0xff]  }
 0x2f8   : > { %v4759_v41 = vsel %vm2735_vm7, %v4754_v45, %v4758_v5  ;;  %7281 = vst.msk [vmem:[#allocation3 + $0x2b0] sm:$0xff] %vm2350_vm10, %v7211_v53  ;;  %v3066_v47 = vor.u32 %v3065_v23, %v3061_v59  ;;  %v12744_v26 = vpop.permute.xlu1 %3162  ;;  %v3070_v8 = vrot.slane %v3068_v51, 1  ;;  %v5420_v56 = vrot.slane %v10745_v43, 1  ;;  %v12750_v1 = vpop.permute.xlu0 %5474  ;;  %v10747_v12 = vld [vmem:[#allocation2 + $0x174] sm:$0xfe]   ;;  %v10756_v23 = vld [vmem:[#allocation2 + $0x108] sm:$0xff]  }
 0x2f9   : > { %4966 = vst.msk [vmem:[#allocation3 + $0x1b8] sm:$0xff] %vm2350_vm10, %v4759_v41  ;;  %v10748_v17 = vld [vmem:[#allocation2 + $0x17c] ss:$0 sps:$4 sm:$0x11]   ;;  %v6598_v44 = vshrl.u32 %v10750_v21, 16  ;;  %v5416_v6 = vrot.slane %v10747_v12, 1 }
 0x2fa   : > { %5542 = vst.msk [vmem:[#allocation3 + $0x1b8] sm:$0xff] %vm3216_vm12, %v12568_v4  ;;  %v3071_v3 = vsel %vm2735_vm7, %v3066_v47, %v3070_v8  ;;  %v5421_v4 = vsel %vm3601_vm6, %v5419_v19, %v5420_v56  ;;  %v6600_v31 = vshll.u32 %v10750_v21, 16  ;;  %v5417_v10 = vrot.slane %v10748_v17, 1  ;;  %v7333_v18 = vld [vmem:[#allocation3 + $0x180] sm:$0xff]  ;;  %v7664_v53 = vpop.f32.mrb[65].mxu0  ;;  %v10757_v25 = vld [vmem:[#allocation2 + $0x180] sm:$0xff]  }
 0x2fb   : > { %5895 = vst.msk [vmem:[#allocation3 + $0x1b8] sm:$0xff] %vm3794_vm13, %v12514_v49  ;;  %3174 = vrot.lane.b32.xlu1 %v3071_v3, %s10937_s12  ;;  %5486 = vrot.lane.b32.xlu0 %v5421_v4, %s10937_s12  ;;  %v10746_v49 = vld [vmem:[#allocation2 + $0x180] sm:$0xff]   ;;  %v10754_v63 = vld [vmem:[#allocation2 + $0x174] sm:$0xff]   ;;  %v10753_v27 = vld [vmem:[#allocation2 + $0x17c] ss:$0 sps:$4 sm:$0x11]  }
 0x2fc   : > { %6759 = vst.msk [vmem:[#allocation3 + $0x1b8] sm:$0xff] %vm4147_vm14, %v12590_v2  ;;  %v12759_v52 = vpop.permute.xlu1 %4097  ;;  %v10751_v2 = vld [vmem:[#allocation2 + $0x188] ss:$0 sps:$4 sm:$0x11]   ;;  %v6602_v38 = vrot.slane %v6600_v31, 1  ;;  %v5418_v0 = vsel %vm3601_vm6, %v5416_v6, %v5417_v10  ;;  %v12763_v33 = vpop.permute.xlu0 %5472  ;;  %v10749_v9 = vld [vmem:[#allocation2 + $0x174] sm:$0xff]  }
 0x2fd   : > { %v7368_v54 = vld [vmem:[#allocation3 + $0x298] sm:$0xff]  ;;  %7789 = vmatmul.mubr.bf16.gmra.mrb[56].mxu1 %v7333_v18  ;;  %v6605_v32 = vshll.u32 %v10751_v2, 16  ;;  %v10752_v55 = vld [vmem:[#allocation2 + $0x174] sm:$0xfe]   ;;  %v3690_v59 = vrot.slane %v10753_v27, 1  ;;  %v6586_v22 = vshrl.u32 %v10754_v63, 16 }
 0x2fe   : > { %10149 = vmatmul.mubr.msk.bf16.gmra.mrb[124].mxu0 %vm2350_vm10, %v7368_v54  ;;  %v6603_v28 = vor.u32 %v6602_v38, %v6598_v44  ;;  %v3689_v16 = vrot.slane %v10752_v55, 1  ;;  %v10755_v24 = vld [vmem:[#allocation2 + $0x17c] ss:$0 sps:$4 sm:$0x11]   ;;  %v6588_v45 = vshll.u32 %v10754_v63, 16  ;;  %v7337_v41 = vld [vmem:[#allocation3 + $0x1a0] sm:$0xff] }
 0x2ff   : > { %v7371_v60 = vld [vmem:[#allocation3 + $0x2b0] sm:$0xff]  ;;  %4109 = vrot.lane.b32.xlu1 %v10746_v49, %s10938_s9  ;;  %5484 = vrot.lane.b32.xlu0 %v5418_v0, %s10937_s12  ;;  %v6607_v61 = vrot.slane %v6605_v32, 1  ;;  %v6593_v57 = vshll.u32 %v10755_v24, 16  ;;  %2371 = vst.msk [vmem:[#allocation3 + $0x1e0] sm:$0xff] %vm2350_vm10, %v10756_v23  ;;  %v3097_v54 = vshrl.u32 %v10757_v25, 16  ;;  %v3099_v8 = vshll.u32 %v10757_v25, 16 }
 0x300   : > { %10152 = vmatprep.mubr.msk.bf16.mxu0 %vm2350_vm10, %v7371_v60  ;;  %v12767_v5 = vpop.permute.xlu1 %4095  ;;  %v6590_v7 = vrot.slane %v6588_v45, 1  ;;  %7796 = vmatprep.mubr.bf16.mxu1 %v7337_v41  ;;  %v10758_v43 = vld [vmem:[#allocation2 + $0x188] ss:$0 sps:$4 sm:$0x11]   ;;  %v3691_v15 = vsel %vm3601_vm6, %v3689_v16, %v3690_v59  ;;  %3237 = vst.msk [vmem:[#allocation3 + $0x1e0] sm:$0xff] %vm3216_vm12, %v12625_v14  ;;  %v10760_v17 = vld [vmem:[#allocation2 + $0xfc] sm:$0xff]  }
 0x301   : > { %v6608_v46 = vsel %vm2735_vm7, %v6603_v28, %v6607_v61  ;;  %v6595_v51 = vrot.slane %v6593_v57, 1  ;;  %v7336_v56 = vld [vmem:[#allocation3 + $0x198] sm:$0xff]  ;;  %3815 = vst.msk [vmem:[#allocation3 + $0x1e0] sm:$0xff] %vm3794_vm13, %v12603_v35  ;;  %v3104_v21 = vshll.u32 %v10758_v43, 16  ;;  %v3101_v4 = vrot.slane %v3099_v8, 1  ;;  %v10759_v49 = vld [vmem:[#allocation2 + $0x198] sm:$0xff]  }
 0x302   : > { %v6591_v19 = vor.u32 %v6590_v7, %v6586_v22  ;;  %4168 = vst.msk [vmem:[#allocation3 + $0x1e0] sm:$0xff] %vm4147_vm14, %v12686_v11  ;;  %v10761_v6 = vld [vmem:[#allocation2 + $0x120] sm:$0xff]   ;;  %v10762_v35 = vld [vmem:[#allocation2 + $0x128] ss:$0 sps:$4 sm:$0x11]   ;;  %v10763_v10 = vld [vmem:[#allocation2 + $0x174] sm:$0xff]  }
 0x303   : > { %4107 = vrot.lane.b32.xlu1 %v10749_v9, %s10938_s9  ;;  %6701 = vrot.lane.b32.xlu0 %v6608_v46, %s10938_s9  ;;  %v7340_v12 = vld [vmem:[#allocation3 + $0x1b8] sm:$0xff]  ;;  %v3106_v44 = vrot.slane %v3104_v21, 1  ;;  %v3102_v31 = vor.u32 %v3101_v4, %v3097_v54  ;;  %2370 = vst.msk [vmem:[#allocation3 + $0x1c8] sm:$0xff] %vm2350_vm10, %v10760_v17  ;;  %v4785_v60 = vshrl.u32 %v10761_v6, 16  ;;  %v4787_v2 = vshll.u32 %v10761_v6, 16  ;;  %v10768_v61 = vld [vmem:[#allocation2 + $0x114] sm:$0xff]  }
 0x304   : > { %v6596_v3 = vsel %vm2735_vm7, %v6591_v19, %v6595_v51  ;;  %3236 = vst.msk [vmem:[#allocation3 + $0x1c8] sm:$0xff] %vm3216_vm12, %v12643_v48  ;;  %v4792_v38 = vshll.u32 %v10762_v35, 16  ;;  %v10764_v63 = vld [vmem:[#allocation2 + $0x17c] ss:$0 sps:$4 sm:$0x11]   ;;  %v3085_v0 = vshrl.u32 %v10763_v10, 16 }
 0x305   : > { %7797 = vmatmul.mubr.bf16.gmra.mrb[60].mxu1 %v7336_v56  ;;  %v3107_v11 = vsel %vm2735_vm7, %v3102_v31, %v3106_v44  ;;  %3814 = vst.msk [vmem:[#allocation3 + $0x1c8] sm:$0xff] %vm3794_vm13, %v12611_v42  ;;  %v3087_v9 = vshll.u32 %v10763_v10, 16  ;;  %v4789_v28 = vrot.slane %v4787_v2, 1  ;;  %v10765_v48 = vld [vmem:[#allocation2 + $0x18c] sm:$0xff]   ;;  %v3092_v27 = vshll.u32 %v10764_v63, 16  ;;  %v7339_v51 = vld [vmem:[#allocation3 + $0x1b0] sm:$0xff] }
 0x306   : > { %7804 = vmatprep.mubr.bf16.mxu1 %v7340_v12  ;;  %4167 = vst.msk [vmem:[#allocation3 + $0x1c8] sm:$0xff] %vm4147_vm14, %v12562_v34  ;;  %v4794_v32 = vrot.slane %v4792_v38, 1  ;;  %v10766_v59 = vld [vmem:[#allocation2 + $0x18c] sm:$0xfe]   ;;  %v4773_v7 = vshrl.u32 %v10768_v61, 16  ;;  %v4775_v25 = vshll.u32 %v10768_v61, 16 }
 0x307   : > { %3756 = vrot.lane.b32.xlu1 %v3691_v15, %s10936_s21  ;;  %6699 = vrot.lane.b32.xlu0 %v6596_v3, %s10938_s9  ;;  %v3089_v55 = vrot.slane %v3087_v9, 1  ;;  %v4790_v42 = vor.u32 %v4789_v28, %v4785_v60  ;;  %v3094_v22 = vrot.slane %v3092_v27, 1  ;;  %v10767_v45 = vld [vmem:[#allocation2 + $0x194] ss:$0 sps:$4 sm:$0x11]   ;;  %v7212_v34 = vrot.slane %v10766_v59, 1 }
 0x308   : > { %v10769_v23 = vld [vmem:[#allocation2 + $0x11c] ss:$0 sps:$4 sm:$0x11]   ;;  %v7213_v53 = vrot.slane %v10767_v45, 1  ;;  %v4777_v19 = vrot.slane %v4775_v25, 1  ;;  %v10777_v12 = vld [vmem:[#allocation2 + $0x18c] sm:$0xff]  }
 0x309   : > { %v3090_v24 = vor.u32 %v3089_v55, %v3085_v0  ;;  %v4795_v57 = vsel %vm2735_vm7, %v4790_v42, %v4794_v32  ;;  %v4780_v43 = vshll.u32 %v10769_v23, 16  ;;  %v10770_v54 = vld [vmem:[#allocation2 + $0x198] sm:$0xfe]   ;;  %v10771_v8 = vld [vmem:[#allocation2 + $0x1a0] ss:$0 sps:$4 sm:$0x11]  }
 0x30a   : > { %4969 = vst.msk [vmem:[#allocation3 + $0x200] sm:$0xff] %vm2350_vm10, %v4795_v57  ;;  %v7214_v15 = vsel %vm3601_vm6, %v7212_v34, %v7213_v53  ;;  %v7215_v3 = vrot.slane %v10770_v54, 1  ;;  %v7216_v4 = vrot.slane %v10771_v8, 1  ;;  %v10772_v17 = vld [vmem:[#allocation2 + $0x180] sm:$0xfe]   ;;  %v6610_v6 = vshrl.u32 %v10777_v12, 16 }
 0x30b   : > { %3180 = vrot.lane.b32.xlu1 %v3107_v11, %s10937_s12  ;;  %5841 = vrot.lane.b32.xlu0 %v10759_v49, %s10936_s21  ;;  %v3095_v41 = vsel %vm2735_vm7, %v3090_v24, %v3094_v22  ;;  %5545 = vst.msk [vmem:[#allocation3 + $0x200] sm:$0xff] %vm3216_vm12, %v12655_v37  ;;  %v4782_v21 = vrot.slane %v4780_v43, 1  ;;  %v4778_v37 = vor.u32 %v4777_v19, %v4773_v7  ;;  %v10773_v49 = vld [vmem:[#allocation2 + $0x188] ss:$0 sps:$4 sm:$0x11]   ;;  %v3692_v35 = vrot.slane %v10772_v17, 1 }
 0x30c   : > { %5898 = vst.msk [vmem:[#allocation3 + $0x200] sm:$0xff] %vm3794_vm13, %v12736_v39  ;;  %v7217_v39 = vsel %vm3601_vm6, %v7215_v3, %v7216_v4  ;;  %v6612_v10 = vshll.u32 %v10777_v12, 16  ;;  %v3693_v60 = vrot.slane %v10773_v49, 1  ;;  %v10775_v2 = vld [vmem:[#allocation2 + $0x194] ss:$0 sps:$4 sm:$0x11]  }
 0x30d   : > { %7805 = vmatmul.mubr.bf16.gmra.mrb[64].mxu1 %v7339_v51  ;;  %7282 = vst.msk [vmem:[#allocation3 + $0x2c8] sm:$0xff] %vm2350_vm10, %v7214_v15  ;;  %v4783_v31 = vsel %vm2735_vm7, %v4778_v37, %v4782_v21  ;;  %7283 = vst.msk [vmem:[#allocation3 + $0x2e0] sm:$0xff] %vm2350_vm10, %v7217_v39  ;;  %v5423_v0 = vrot.slane %v10775_v2, 1  ;;  %v10776_v28 = vld [vmem:[#allocation2 + $0x18c] sm:$0xff]   ;;  %v10781_v55 = vld [vmem:[#allocation2 + $0x198] sm:$0xff]   ;;  %v12846_v21 = vpop.f32.mrb[66].mxu0 }
 0x30e   : > { %4968 = vst.msk [vmem:[#allocation3 + $0x1e8] sm:$0xff] %vm2350_vm10, %v4783_v31  ;;  %v3694_v38 = vsel %vm3601_vm6, %v3692_v35, %v3693_v60  ;;  %v6614_v32 = vrot.slane %v6612_v10, 1  ;;  %v10779_v42 = vld [vmem:[#allocation2 + $0x18c] sm:$0xfe]   ;;  %v6624_v53 = vshll.u32 %v10781_v55, 16  ;;  %v10787_v10 = vld [vmem:[#allocation2 + $0x120] sm:$0xff]  }
 0x30f   : > { %5839 = vrot.lane.b32.xlu0 %v10765_v48, %s10936_s21  ;;  %3178 = vrot.lane.b32.xlu1 %v3095_v41, %s10937_s12  ;;  %5544 = vst.msk [vmem:[#allocation3 + $0x1e8] sm:$0xff] %vm3216_vm12, %v12671_v40  ;;  %v10778_v48 = vld [vmem:[#allocation2 + $0x194] ss:$0 sps:$4 sm:$0x11]   ;;  %v3695_v22 = vrot.slane %v10779_v42, 1  ;;  %v10783_v57 = vld [vmem:[#allocation2 + $0x18c] sm:$0xff]  }
 0x310   : > { %5897 = vst.msk [vmem:[#allocation3 + $0x1e8] sm:$0xff] %vm3794_vm13, %v12613_v62  ;;  %v6615_v27 = vor.u32 %v6614_v32, %v6610_v6  ;;  %v6617_v61 = vshll.u32 %v10778_v48, 16  ;;  %v10780_v59 = vld [vmem:[#allocation2 + $0x194] ss:$0 sps:$4 sm:$0x11]   ;;  %v6622_v41 = vshrl.u32 %v10781_v55, 16 }
 0x311   : > { %6761 = vst.msk [vmem:[#allocation3 + $0x1e8] sm:$0xff] %vm4147_vm14, %v12694_v58  ;;  %v3696_v45 = vrot.slane %v10780_v59, 1  ;;  %v10782_v23 = vld [vmem:[#allocation2 + $0x1a0] ss:$0 sps:$4 sm:$0x11]   ;;  %v6626_v43 = vrot.slane %v6624_v53, 1 }
 0x312   : > { %v6619_v58 = vrot.slane %v6617_v61, 1  ;;  %v6629_v15 = vshll.u32 %v10782_v23, 16  ;;  %v10784_v19 = vld [vmem:[#allocation2 + $0x194] ss:$0 sps:$4 sm:$0x11]   ;;  %v3109_v54 = vshrl.u32 %v10783_v57, 16 }
 0x313   : > { %3758 = vrot.lane.b32.xlu1 %v3694_v38, %s10936_s21  ;;  %v3697_v51 = vsel %vm3601_vm6, %v3695_v22, %v3696_v45  ;;  %v3111_v8 = vshll.u32 %v10783_v57, 16  ;;  %v6627_v12 = vor.u32 %v6626_v43, %v6622_v41  ;;  %v3116_v3 = vshll.u32 %v10784_v19, 16  ;;  %v10785_v4 = vld [vmem:[#allocation2 + $0x198] sm:$0xfe]   ;;  %v7667_v60 = vpop.f32.mrb[67].mxu0  ;;  %v7343_v38 = vld [vmem:[#allocation3 + $0x1d0] sm:$0xff] }
 0x314   : > { %v7374_v9 = vld [vmem:[#allocation3 + $0x2c8] sm:$0xff]  ;;  %v7377_v24 = vld [vmem:[#allocation3 + $0x2e0] sm:$0xff]  ;;  %v6620_v7 = vsel %vm2735_vm7, %v6615_v27, %v6619_v58  ;;  %v6631_v37 = vrot.slane %v6629_v15, 1  ;;  %v10786_v49 = vld [vmem:[#allocation2 + $0x1a0] ss:$0 sps:$4 sm:$0x11]   ;;  %7812 = vmatprep.mubr.bf16.mxu1 %v7343_v38 }
 0x315   : > { %v12772_v47 = vpop.permute.xlu0 %6689  ;;  %10153 = vmatmul.mubr.msk.bf16.gmra.mrb[128].mxu0 %vm2350_vm10, %v7374_v9  ;;  %v3113_v17 = vrot.slane %v3111_v8, 1  ;;  %v3118_v39 = vrot.slane %v3116_v3, 1  ;;  %v5425_v35 = vrot.slane %v10785_v4, 1  ;;  %v5426_v2 = vrot.slane %v10786_v49, 1  ;;  %2373 = vst.msk [vmem:[#allocation3 + $0x210] sm:$0xff] %vm2350_vm10, %v10787_v10  ;;  %v12855_v9 = vpop.f32.mrb[0].mxu1 }
 0x316   : > { %v12784_v14 = vpop.permute.xlu1 %3746  ;;  %10156 = vmatprep.mubr.msk.bf16.mxu0 %vm2350_vm10, %v7377_v24  ;;  %v6632_v31 = vsel %vm2735_vm7, %v6627_v12, %v6631_v37  ;;  %3239 = vst.msk [vmem:[#allocation3 + $0x210] sm:$0xff] %vm3216_vm12, %v12731_v36  ;;  %v10789_v32 = vld [vmem:[#allocation2 + $0x1a4] sm:$0xff]   ;;  %v10788_v61 = vld [vmem:[#allocation2 + $0x198] sm:$0xff]   ;;  %v10792_v36 = vld [vmem:[#allocation2 + $0x140] ss:$0 sps:$4 sm:$0x11]  }
 0x317   : > { %4111 = vrot.lane.b32.xlu1 %v10776_v28, %s10938_s9  ;;  %v12857_v28 = vpop.f32.mrb[68].mxu0  ;;  %v5427_v27 = vsel %vm3601_vm6, %v5425_v35, %v5426_v2  ;;  %3817 = vst.msk [vmem:[#allocation3 + $0x210] sm:$0xff] %vm3794_vm13, %v12704_v20  ;;  %v10790_v42 = vld [vmem:[#allocation2 + $0x114] sm:$0xff]   ;;  %v10793_v22 = vld [vmem:[#allocation2 + $0x1a4] sm:$0xff]   ;;  %v4816_v23 = vshll.u32 %v10792_v36, 16  ;;  %v10795_v41 = vld [vmem:[#allocation2 + $0x12c] sm:$0xff]  }
 0x318   : > { %v7346_v55 = vld [vmem:[#allocation3 + $0x1e8] sm:$0xff]  ;;  %4170 = vst.msk [vmem:[#allocation3 + $0x210] sm:$0xff] %vm4147_vm14, %v12767_v5  ;;  %v10794_v45 = vld [vmem:[#allocation2 + $0x1ac] ss:$0 sps:$4 sm:$0x11]   ;;  %v6634_v53 = vshrl.u32 %v10793_v22, 16 }
 0x319   : > { %v10791_v24 = vld [vmem:[#allocation2 + $0x138] sm:$0xff]   ;;  %2372 = vst.msk [vmem:[#allocation3 + $0x1f8] sm:$0xff] %vm2350_vm10, %v10790_v42  ;;  %v6636_v5 = vshll.u32 %v10793_v22, 16  ;;  %v4818_v15 = vrot.slane %v4816_v23, 1  ;;  %v12885_v8 = vld [vmem:[%s13569_s4] ss:$0 sm:$0xff] }
 0x31a   : > { %3238 = vst.msk [vmem:[#allocation3 + $0x1f8] sm:$0xff] %vm3216_vm12, %v12744_v26  ;;  %v4809_v20 = vshrl.u32 %v10791_v24, 16  ;;  %v4811_v57 = vshll.u32 %v10791_v24, 16  ;;  %v10796_v19 = vld [vmem:[#allocation2 + $0x134] ss:$0 sps:$4 sm:$0x11]  }
 0x31b   : > { %v6688_v18 = vpop.permute.xlu0 %6687  ;;  %3760 = vrot.lane.b32.xlu1 %v3697_v51, %s10936_s21  ;;  %3816 = vst.msk [vmem:[#allocation3 + $0x1f8] sm:$0xff] %vm3794_vm13, %v12718_v13  ;;  %v7345_v51 = vld [vmem:[#allocation3 + $0x1e0] sm:$0xff]  ;;  %v6638_v13 = vrot.slane %v6636_v5, 1  ;;  %v4799_v37 = vshll.u32 %v10795_v41, 16  ;;  %v10797_v49 = vld [vmem:[#allocation2 + $0x138] sm:$0xff]  }
 0x31c   : > { %v12797_v16 = vpop.permute.xlu1 %3744  ;;  %6762 = vst.msk [vmem:[#allocation3 + $0x200] sm:$0xff] %vm4147_vm14, %v6688_v18  ;;  %v10774_v18 = vld [vmem:[#allocation2 + $0x18c] sm:$0xfe]   ;;  %4169 = vst.msk [vmem:[#allocation3 + $0x1f8] sm:$0xff] %vm4147_vm14, %v12667_v50  ;;  %v4813_v26 = vrot.slane %v4811_v57, 1 }
 0x31d   : > { %v5422_v63 = vrot.slane %v10774_v18, 1  ;;  %v3114_v18 = vor.u32 %v3113_v17, %v3109_v54  ;;  %v4797_v54 = vshrl.u32 %v10795_v41, 16  ;;  %v4804_v17 = vshll.u32 %v10796_v19, 16  ;;  %2375 = vst.msk [vmem:[#allocation3 + $0x240] sm:$0xff] %vm2350_vm10, %v10797_v49  ;;  %v10803_v41 = vld [vmem:[%s13570_s5] sm:$0xff]  }
 0x31e   : > { %v4814_v4 = vor.u32 %v4813_v26, %v4809_v20  ;;  %v6639_v35 = vor.u32 %v6638_v13, %v6634_v53  ;;  %v4801_v10 = vrot.slane %v4799_v37, 1  ;;  %v10806_v53 = vld [vmem:[%s13570_s5 + $0x8] sm:$0xff]   ;;  %10160 = vmatprep.subr.bf16.mxu0 %v10803_v41 }
 0x31f   : > { %v12799_v46 = vpop.permute.xlu0 %5829  ;;  %v5424_v62 = vsel %vm3601_vm6, %v5422_v63, %v5423_v0  ;;  %v7342_v0 = vld [vmem:[#allocation3 + $0x1c8] sm:$0xff]  ;;  %v3119_v48 = vsel %vm2735_vm7, %v3114_v18, %v3118_v39  ;;  %v7672_v39 = vpop.f32.mrb[69].mxu0  ;;  %v4806_v38 = vrot.slane %v4804_v17, 1  ;;  %v10804_v26 = vld [vmem:[#allocation2 + $0x1a4] sm:$0xfe]   ;;  %10161 = vmatpush3.bf16.msra.mxu0 %v10803_v41 }
 0x320   : > { %5488 = vrot.lane.b32.xlu0 %v5424_v62, %s10937_s12  ;;  %7813 = vmatmul.mubr.bf16.gmra.mrb[68].mxu1 %v7342_v0  ;;  %v7680_v62 = vpop.f32.mrb[1].mxu1  ;;  %v7673_v60 = vpop.f32.mrb[70].mxu0  ;;  %v4819_v2 = vsel %vm2735_vm7, %v4814_v4, %v4818_v15  ;;  %v10798_v0 = vld [vmem:[#allocation2 + $0x12c] sm:$0xff]  }
 0x321   : > { %3182 = vrot.lane.b32.xlu1 %v3119_v48, %s10937_s12  ;;  %7820 = vmatprep.mubr.bf16.mxu1 %v7346_v55  ;;  %v12866_v59 = vpop.f32.mrb[2].mxu1  ;;  %4971 = vst.msk [vmem:[#allocation3 + $0x230] sm:$0xff] %vm2350_vm10, %v4819_v2  ;;  %v10799_v55 = vld [vmem:[#allocation2 + $0x150] sm:$0xff]   ;;  %v10800_v62 = vld [vmem:[#allocation2 + $0x158] ss:$0 sps:$4 sm:$0x11]  }
 0x322   : > { %v7683_v3 = vpop.f32.mrb[3].mxu1  ;;  %5547 = vst.msk [vmem:[#allocation3 + $0x230] sm:$0xff] %vm3216_vm12, %v12750_v1  ;;  %v7675_v42 = vpop.f32.mrb[71].mxu0  ;;  %v4835_v1 = vshll.u32 %v10799_v55, 16  ;;  %v4840_v36 = vshll.u32 %v10800_v62, 16  ;;  %10162 = vmatprep.subr.bf16.mxu0 %v10806_v53  ;;  %v10807_v62 = vld [vmem:[#allocation2 + $0x150] sm:$0xff]  }
 0x323   : > { %v12815_v44 = vpop.permute.xlu0 %5827  ;;  %2374 = vst.msk [vmem:[#allocation3 + $0x228] sm:$0xff] %vm2350_vm10, %v10798_v0  ;;  %v7686_v15 = vpop.f32.mrb[4].mxu1  ;;  %v10805_v37 = vld [vmem:[#allocation2 + $0x1ac] ss:$0 sps:$4 sm:$0x11]   ;;  %10163 = vmatpush3.bf16.msra.mxu0 %v10806_v53  ;;  %2377 = vst.msk [vmem:[#allocation3 + $0x270] sm:$0xff] %vm2350_vm10, %v10807_v62 }
 0x324   : > { %v12811_v56 = vpop.permute.xlu1 %3168  ;;  %6703 = vrot.lane.b32.xlu0 %v6620_v7, %s10938_s9  ;;  %v6641_v7 = vshll.u32 %v10794_v45, 16  ;;  %5900 = vst.msk [vmem:[#allocation3 + $0x230] sm:$0xff] %vm3794_vm13, %v12815_v44  ;;  %v10802_v44 = vld [vmem:[#allocation2 + $0x14c] ss:$0 sps:$4 sm:$0x11]   ;;  %v10098_v45 = vpop.f32.mrb[72].mxu0 }
 0x325   : > { %4113 = vrot.lane.b32.xlu1 %v10788_v61, %s10938_s9  ;;  %3241 = vst.msk [vmem:[#allocation3 + $0x240] sm:$0xff] %vm3216_vm12, %v12811_v56  ;;  %v7671_v61 = vadd.f32 %v12885_v8, %v12857_v28  ;;  %v10801_v56 = vld [vmem:[#allocation2 + $0x144] sm:$0xff]   ;;  %v7679_v28 = vadd.f32 %v12885_v8, %v12855_v9  ;;  %v4837_v9 = vrot.slane %v4835_v1, 1  ;;  %v4842_v57 = vrot.slane %v4840_v36, 1  ;;  %v7951_v23 = vpop.f32.mrb[73].mxu0  ;;  %v7688_v3 = vpop.f32.mrb[5].mxu1 }
 0x326   : > { %v6643_v12 = vrot.slane %v6641_v7, 1  ;;  %3819 = vst.msk [vmem:[#allocation3 + $0x240] sm:$0xff] %vm3794_vm13, %v12784_v14  ;;  %v7666_v14 = vadd.f32 %v12885_v8, %v12846_v21  ;;  %v4821_v22 = vshrl.u32 %v10801_v56, 16  ;;  %v7348_v21 = vld [vmem:[#allocation3 + $0x1f8] sm:$0xff]  ;;  %v4828_v7 = vshll.u32 %v10802_v44, 16  ;;  %v7689_v39 = vpop.f32.mrb[6].mxu1 }
 0x328   : > { %6705 = vrot.lane.b32.xlu0 %v6632_v31, %s10938_s9  ;;  %7821 = vmatmul.mubr.bf16.gmra.mrb[72].mxu1 %v7345_v51  ;;  %v7349_v31 = vld [vmem:[#allocation3 + $0x200] sm:$0xff]  ;;  %v6644_v48 = vsel %vm2735_vm7, %v6639_v35, %v6643_v12  ;;  %v4830_v4 = vrot.slane %v4828_v7, 1 }
 0x329   : > { %7828 = vmatprep.mubr.bf16.mxu1 %v7349_v31 }
 0x32a   : > { %v12831_v40 = vpop.permute.xlu0 %5478 }
 0x32b   : > { %v12823_v11 = vpop.permute.xlu1 %3166 }
 0x32c   : > { %5490 = vrot.lane.b32.xlu0 %v5427_v27, %s10937_s12  ;;  %v7663_v27 = vadd.f32 %v12885_v8, %v12740_v30  ;;  %3240 = vst.msk [vmem:[#allocation3 + $0x228] sm:$0xff] %vm3216_vm12, %v12823_v11  ;;  %v4833_v30 = vshrl.u32 %v10799_v55, 16  ;;  %v4823_v11 = vshll.u32 %v10801_v56, 16 }
 0x32d   : > { %3818 = vst.msk [vmem:[#allocation3 + $0x228] sm:$0xff] %vm3794_vm13, %v12797_v16  ;;  %v7960_v16 = vadd.f32 %v10098_v45, %v7671_v61 }
 0x32e   : > { %4171 = vst.msk [vmem:[#allocation3 + $0x228] sm:$0xff] %vm4147_vm14, %v12759_v52  ;;  %v4825_v52 = vrot.slane %v4823_v11, 1  ;;  %v7952_v51 = vadd.f32 %v7951_v23, %v7663_v27  ;;  %v4838_v19 = vor.u32 %v4837_v9, %v4833_v30  ;;  %v7691_v27 = vpop.f32.mrb[7].mxu1  ;;  %v10808_v30 = vld [vmem:[#allocation2 + $0x144] sm:$0xff]  }
 0x32f   : > { %v12837_v34 = vpop.permute.xlu1 %4101  ;;  %v12841_v25 = vpop.permute.xlu0 %5476  ;;  %2376 = vst.msk [vmem:[#allocation3 + $0x258] sm:$0xff] %vm2350_vm10, %v10808_v30 }
 0x330   : > { %5843 = vrot.lane.b32.xlu0 %v10789_v32, %s10936_s21  ;;  %v4802_v32 = vor.u32 %v4801_v10, %v4797_v54  ;;  %7829 = vmatmul.mubr.bf16.gmra.mrb[76].mxu1 %v7348_v21  ;;  %v8208_v54 = vmax.f32 %v7960_v16, 0.0  ;;  %v8206_v17 = vmax.f32 %v7952_v51, 0.0  ;;  %v4843_v35 = vsel %vm2735_vm7, %v4838_v19, %v4842_v57  ;;  %v7694_v1 = vpop.f32.mrb[8].mxu1  ;;  %v10810_v16 = vld [vmem:[#allocation2 + $0x170] ss:$0 sps:$4 sm:$0x11]  }
 0x331   : > { %4973 = vst.msk [vmem:[#allocation3 + $0x260] sm:$0xff] %vm2350_vm10, %v4843_v35  ;;  %v7695_v9 = vadd.f32 %v12885_v8, %v7694_v1  ;;  %v4864_v51 = vshll.u32 %v10810_v16, 16 }
 0x332   : > { %v4807_v24 = vsel %vm2735_vm7, %v4802_v32, %v4806_v38  ;;  %5549 = vst.msk [vmem:[#allocation3 + $0x260] sm:$0xff] %vm3216_vm12, %v12831_v40 }
 0x333   : > { %v12848_v6 = vpop.permute.xlu1 %4099  ;;  %4970 = vst.msk [vmem:[#allocation3 + $0x218] sm:$0xff] %vm2350_vm10, %v4807_v24  ;;  %v7690_v24 = vadd.f32 %v12885_v8, %v7689_v39 }
 0x334   : > { %6707 = vrot.lane.b32.xlu0 %v6644_v48, %s10938_s9  ;;  %4172 = vst.msk [vmem:[#allocation3 + $0x240] sm:$0xff] %vm4147_vm14, %v12848_v6  ;;  %v7674_v6 = vadd.f32 %v12885_v8, %v7673_v60  ;;  %v7219_v60 = vrot.slane %v10805_v37, 1  ;;  %s13289_s9 = scalar_lea.vmem [#allocation7], %s9120_s17  ;;  %s9901_s17 = sshll.u32 %s11003_s28, 13 }
 0x335   : > { %5546 = vst.msk [vmem:[#allocation3 + $0x218] sm:$0xff] %vm3216_vm12, %v12763_v33  ;;  %v7682_v33 = vadd.f32 %v12885_v8, %v12866_v59  ;;  %v4826_v59 = vor.u32 %v4825_v52, %v4821_v22  ;;  %s9039_s11 = sshll.u32 %s13289_s9, 4  ;;  %s13517_s22 = scalar_lea.hbm %s13572_s7, %s9901_s17  ;;  %s13519_s11 = int_to_ptr.vmem [resolvable:$true] %s9039_s11 }
 0x336   : > { %5899 = vst.msk [vmem:[#allocation3 + $0x218] sm:$0xff] %vm3794_vm13, %v12720_v29  ;;  %v7687_v29 = vadd.f32 %v12885_v8, %v7686_v15  ;;  %s9025_s28 = scalar_lea.sflag [#allocation6], %s11085_s16  ;;  %p10871_p8 = scmp.lt.s32.totalorder %s13519_s11, %s10869_s29 }
 0x337   : > { %6763 = vst.msk [vmem:[#allocation3 + $0x218] sm:$0xff] %vm4147_vm14, %v12772_v47  ;;  %v7218_v47 = vrot.slane %v10804_v26, 1  ;;  %v4831_v38 = vsel %vm2735_vm7, %v4826_v59, %v4830_v4 }
 0x338   : > { %4972 = vst.msk [vmem:[#allocation3 + $0x248] sm:$0xff] %vm2350_vm10, %v4831_v38 }
 0x339   : > { %v12852_v63 = vpop.permute.xlu0 %6693  ;;  %v7220_v42 = vsel %vm3601_vm6, %v7218_v47, %v7219_v60  ;;  %5548 = vst.msk [vmem:[#allocation3 + $0x248] sm:$0xff] %vm3216_vm12, %v12841_v25  ;;  %v7351_v25 = vld [vmem:[#allocation3 + $0x210] sm:$0xff]  ;;  %v10814_v60 = vld [vmem:[#allocation2 + $0x168] sm:$0xff]  }
 0x33a   : > { %7284 = vst.msk [vmem:[#allocation3 + $0x2f8] sm:$0xff] %vm2350_vm10, %v7220_v42  ;;  %2379 = vst.msk [vmem:[#allocation3 + $0x2a0] sm:$0xff] %vm2350_vm10, %v10814_v60 }
 0x33b   : > { %v12871_v58 = vpop.permute.xlu1 %3750  ;;  %5901 = vst.msk [vmem:[#allocation3 + $0x248] sm:$0xff] %vm3794_vm13, %v12799_v46 }
 0x33c   : > { %6765 = vst.msk [vmem:[#allocation3 + $0x248] sm:$0xff] %vm4147_vm14, %v12852_v63  ;;  %v7696_v63 = vpop.f32.mrb[9].mxu1 }
 0x33e   : > { %v7352_v57 = vld [vmem:[#allocation3 + $0x218] sm:$0xff] }
 0x33f   : > { %7836 = vmatprep.mubr.bf16.mxu1 %v7352_v57  ;;  %v10817_v57 = vld [vmem:[#allocation2 + $0x188] ss:$0 sps:$4 sm:$0x11]  }
 0x340   : > { %v12887_v50 = vpop.permute.xlu1 %3748  ;;  %7837 = vmatmul.mubr.bf16.gmra.mrb[80].mxu1 %v7351_v25 }
 0x341   : > { %v6692_v43 = vpop.permute.xlu0 %6691 }
 0x342   : > { %6764 = vst.msk [vmem:[#allocation3 + $0x230] sm:$0xff] %vm4147_vm14, %v6692_v43  ;;  %v10099_v43 = vpop.f32.mrb[74].mxu0 }
 0x343   : > { %v7963_v13 = vadd.f32 %v10099_v43, %v7674_v6  ;;  %v7954_v12 = vpop.f32.mrb[75].mxu0  ;;  %v10809_v6 = vld [vmem:[#allocation2 + $0x168] sm:$0xff]   ;;  %v7697_v43 = vpop.f32.mrb[10].mxu1  ;;  %v7358_v30 = vld [vmem:[#allocation3 + $0x248] sm:$0xff] }
 0x344   : > { %v7955_v49 = vadd.f32 %v7954_v12, %v7666_v14  ;;  %v10102_v31 = vpop.f32.mrb[76].mxu0  ;;  %v4857_v53 = vshrl.u32 %v10809_v6, 16  ;;  %v7698_v15 = vadd.f32 %v12885_v8, %v7697_v43  ;;  %v4866_v12 = vrot.slane %v4864_v51, 1 }
 0x345   : > { %v12889_v18 = vpop.permute.xlu0 %5833  ;;  %v8209_v10 = vmax.f32 %v7963_v13, 0.0  ;;  %v7967_v2 = vpop.f32.mrb[77].mxu0  ;;  %v7976_v55 = vadd.f32 %v10102_v31, %v7687_v29  ;;  %v10812_v13 = vld [vmem:[#allocation2 + $0x15c] sm:$0xff]   ;;  %v10813_v29 = vld [vmem:[#allocation2 + $0x164] ss:$0 sps:$4 sm:$0x11]  }
 0x346   : > { %v3173_v5 = vpop.permute.xlu1 %3172  ;;  %v8207_v0 = vmax.f32 %v7955_v49, 0.0  ;;  %v7968_v48 = vadd.f32 %v7967_v2, %v7679_v28  ;;  %v10103_v32 = vpop.f32.mrb[78].mxu0  ;;  %v4847_v49 = vshll.u32 %v10812_v13, 16  ;;  %v4852_v35 = vshll.u32 %v10813_v29, 16  ;;  %v7354_v2 = vld [vmem:[#allocation3 + $0x228] sm:$0xff] }
 0x347   : > { %v12948_v61 = vpack.c.bf16 %v8209_v10, %v8208_v54  ;;  %v7970_v56 = vpop.f32.mrb[79].mxu0  ;;  %v8212_v28 = vmax.f32 %v7976_v55, 0.0  ;;  %v7979_v11 = vadd.f32 %v10103_v32, %v7690_v24  ;;  %3243 = vst.msk [vmem:[#allocation3 + $0x270] sm:$0xff] %vm3216_vm12, %v3173_v5  ;;  %v4859_v5 = vshll.u32 %v10809_v6, 16  ;;  %v7699_v54 = vpop.f32.mrb[11].mxu1  ;;  %v10815_v24 = vld [vmem:[#allocation2 + $0x15c] sm:$0xff]  }
 0x348   : > { %v12954_v36 = vpack.c.bf16 %v8207_v0, %v8206_v17  ;;  %v8210_v40 = vmax.f32 %v7968_v48, 0.0  ;;  %v7971_v14 = vadd.f32 %v7970_v56, %v7682_v33  ;;  %v12960_v22 = vpop.f32.mrb[80].mxu0  ;;  %3821 = vst.msk [vmem:[#allocation3 + $0x270] sm:$0xff] %vm3794_vm13, %v12871_v58  ;;  %v10811_v58 = vld [vmem:[%s13570_s5] sm:$0xff]   ;;  %v4845_v17 = vshrl.u32 %v10812_v13, 16  ;;  %v7702_v47 = vpop.f32.mrb[12].mxu1 }
 0x349   : > { %v12922_v20 = vpop.permute.xlu0 %5831  ;;  %v7355_v44 = vld [vmem:[#allocation3 + $0x230] sm:$0xff]  ;;  %v7983_v45 = vpop.f32.mrb[81].mxu0  ;;  %v8213_v41 = vmax.f32 %v7979_v11, 0.0  ;;  %10196 = vmatprep.subr.bf16.mxu1 %v10811_v58  ;;  %v4849_v48 = vrot.slane %v4847_v49, 1  ;;  %v7703_v62 = vadd.f32 %v12885_v8, %v7702_v47  ;;  %v4854_v27 = vrot.slane %v4852_v35, 1  ;;  %2378 = vst.msk [vmem:[#allocation3 + $0x288] sm:$0xff] %vm2350_vm10, %v10815_v24 }
 0x34a   : > { %5902 = vst.msk [vmem:[#allocation3 + $0x260] sm:$0xff] %vm3794_vm13, %v12922_v20  ;;  %v8211_v20 = vmax.f32 %v7971_v14, 0.0  ;;  %v12971_v46 = vpop.f32.mrb[82].mxu0  ;;  %v7984_v52 = vadd.f32 %v7983_v45, %v7695_v9  ;;  %7844 = vmatprep.mubr.bf16.mxu1 %v7355_v44  ;;  %10197 = vmatpush3.bf16.msra.mxu1 %v10811_v58  ;;  %v7704_v56 = vpop.f32.mrb[13].mxu1  ;;  %v10816_v44 = vld [vmem:[#allocation2 + $0x180] sm:$0xff]  }
 0x34b   : > { %v7986_v33 = vpop.f32.mrb[83].mxu0  ;;  %v12983_v26 = vpack.c.bf16 %v8213_v41, %v8212_v28  ;;  %v7992_v14 = vadd.f32 %v12960_v22, %v7703_v62  ;;  %v7705_v28 = vpop.f32.mrb[14].mxu1  ;;  %7845 = vmatmul.mubr.bf16.gmra.mrb[84].mxu1 %v7354_v2  ;;  %v10820_v58 = vld [vmem:[#allocation2 + $0x180] sm:$0xff]   ;;  %v10821_v56 = vld [vmem:[#allocation2 + $0x174] sm:$0xff]  }
 0x34c   : > { %v12979_v7 = vpack.c.bf16 %v8211_v20, %v8210_v40  ;;  %v8214_v37 = vmax.f32 %v7984_v52, 0.0  ;;  %v12988_v3 = vpop.f32.mrb[84].mxu0  ;;  %v7987_v4 = vadd.f32 %v7986_v33, %v7698_v15  ;;  %v7706_v11 = vadd.f32 %v12885_v8, %v7705_v28  ;;  %v7707_v45 = vpop.f32.mrb[15].mxu1  ;;  %7852 = vmatprep.mubr.bf16.mxu1 %v7358_v30  ;;  %2381 = vst.msk [vmem:[#allocation3 + $0x2d0] sm:$0xff] %vm2350_vm10, %v10820_v58 }
 0x34d   : > { %v3171_v21 = vpop.permute.xlu1 %3170  ;;  %v5483_v23 = vpop.permute.xlu0 %5482  ;;  %v8216_v9 = vmax.f32 %v7992_v14, 0.0  ;;  %v4881_v20 = vshrl.u32 %v10816_v44, 16  ;;  %v4888_v33 = vshll.u32 %v10817_v57, 16  ;;  %2380 = vst.msk [vmem:[#allocation3 + $0x2b8] sm:$0xff] %vm2350_vm10, %v10821_v56 }
 0x34e   : > { %3242 = vst.msk [vmem:[#allocation3 + $0x258] sm:$0xff] %vm3216_vm12, %v3171_v21  ;;  %v12990_v39 = vpop.f32.mrb[85].mxu0  ;;  %v8215_v0 = vmax.f32 %v7987_v4, 0.0  ;;  %v7995_v22 = vadd.f32 %v12971_v46, %v7706_v11  ;;  %v7710_v41 = vpop.f32.mrb[16].mxu1 }
 0x34f   : > { %3820 = vst.msk [vmem:[#allocation3 + $0x258] sm:$0xff] %vm3794_vm13, %v12887_v50  ;;  %v4861_v50 = vrot.slane %v4859_v5, 1  ;;  %v12993_v10 = vpop.f32.mrb[86].mxu0  ;;  %v7711_v52 = vadd.f32 %v12885_v8, %v7710_v41  ;;  %v7712_v63 = vpop.f32.mrb[17].mxu1  ;;  %v4890_v54 = vrot.slane %v4888_v33, 1 }
 0x350   : > { %4173 = vst.msk [vmem:[#allocation3 + $0x258] sm:$0xff] %vm4147_vm14, %v12837_v34  ;;  %v7380_v34 = vld [vmem:[#allocation3 + $0x2f8] sm:$0xff]  ;;  %v12998_v55 = vpop.f32.mrb[87].mxu0  ;;  %v13007_v1 = vpack.c.bf16 %v8215_v0, %v8214_v37  ;;  %v8217_v51 = vmax.f32 %v7995_v22, 0.0 }
 0x351   : > { %v12986_v19 = vpop.permute.xlu1 %4105  ;;  %v4862_v59 = vor.u32 %v4861_v50, %v4857_v53  ;;  %v5481_v31 = vpop.permute.xlu0 %5480  ;;  %10157 = vmatmul.mubr.msk.bf16.gmra.mrb[132].mxu0 %vm2350_vm10, %v7380_v34  ;;  %v10818_v53 = vld [vmem:[#allocation2 + $0x174] sm:$0xff]   ;;  %v10819_v37 = vld [vmem:[#allocation2 + $0x17c] ss:$0 sps:$4 sm:$0x11]  }
 0x352   : > { %10164 = vmatprep.mubr.msk.bf16.mxu0 %vm2350_vm10, %v12954_v36  ;;  %v13003_v42 = vpop.f32.mrb[88].mxu0  ;;  %v4850_v36 = vor.u32 %v4849_v48, %v4845_v17  ;;  %v4869_v15 = vshrl.u32 %v10818_v53, 16  ;;  %v13040_v29 = vpack.c.bf16 %v8217_v51, %v8216_v9  ;;  %v4871_v17 = vshll.u32 %v10818_v53, 16  ;;  %v10823_v22 = vld [vmem:[#allocation2 + $0x194] ss:$0 sps:$4 sm:$0x11]  }
 0x353   : > { %v4867_v38 = vsel %vm2735_vm7, %v4862_v59, %v4866_v12  ;;  %v13009_v40 = vpop.f32.mrb[89].mxu0  ;;  %v8000_v12 = vadd.f32 %v12990_v39, %v7711_v52  ;;  %v4900_v58 = vshll.u32 %v10823_v22, 16  ;;  %v10824_v51 = vld [vmem:[#allocation2 + $0x18c] sm:$0xff]  }
 0x354   : > { %4975 = vst.msk [vmem:[#allocation3 + $0x290] sm:$0xff] %vm2350_vm10, %v4867_v38  ;;  %v13012_v25 = vpop.f32.mrb[90].mxu0  ;;  %v4855_v21 = vsel %vm2735_vm7, %v4850_v36, %v4854_v27  ;;  %v4873_v38 = vrot.slane %v4871_v17, 1  ;;  %2382 = vst.msk [vmem:[#allocation3 + $0x2e8] sm:$0xff] %vm2350_vm10, %v10824_v51 }
 0x355   : > { %v4104_v32 = vpop.permute.xlu1 %4103  ;;  %5551 = vst.msk [vmem:[#allocation3 + $0x290] sm:$0xff] %vm3216_vm12, %v5483_v23  ;;  %v13017_v6 = vpop.f32.mrb[91].mxu0  ;;  %v4883_v23 = vshll.u32 %v10816_v44, 16  ;;  %v8218_v49 = vmax.f32 %v8000_v12, 0.0 }
 0x356   : > { %4174 = vst.msk [vmem:[#allocation3 + $0x270] sm:$0xff] %vm4147_vm14, %v4104_v32  ;;  %v13021_v16 = vpop.f32.mrb[92].mxu0  ;;  %v4874_v30 = vor.u32 %v4873_v38, %v4869_v15 }
 0x357   : > { %4974 = vst.msk [vmem:[#allocation3 + $0x278] sm:$0xff] %vm2350_vm10, %v4855_v21  ;;  %v13024_v5 = vpop.f32.mrb[93].mxu0  ;;  %v4885_v50 = vrot.slane %v4883_v23, 1 }
 0x358   : > { %5550 = vst.msk [vmem:[#allocation3 + $0x278] sm:$0xff] %vm3216_vm12, %v5481_v31  ;;  %v6698_v46 = vpop.permute.xlu0 %6697  ;;  %v13031_v43 = vpop.f32.mrb[94].mxu0  ;;  %v4876_v31 = vshll.u32 %v10819_v37, 16  ;;  %v4902_v37 = vrot.slane %v4900_v58, 1 }
 0x359   : > { %10165 = vmatmul.mubr.msk.bf16.vlgmr.msra.gmra.mrb[136].mxu0 %vm2350_vm10, %v12948_v61  ;;  %5903 = vst.msk [vmem:[#allocation3 + $0x278] sm:$0xff] %vm3794_vm13, %v12889_v18  ;;  %v13036_v13 = vpop.f32.mrb[95].mxu0  ;;  %v7713_v61 = vpop.f32.mrb[18].mxu1  ;;  %v7357_v18 = vld [vmem:[#allocation3 + $0x240] sm:$0xff]  ;;  %v4886_v34 = vor.u32 %v4885_v50, %v4881_v20  ;;  %v10825_v50 = vld [vmem:[#allocation2 + $0x198] sm:$0xff]  }
 0x35a   : > { %10168 = vmatprep.mubr.msk.bf16.mxu0 %vm2350_vm10, %v12979_v7  ;;  %6767 = vst.msk [vmem:[#allocation3 + $0x278] sm:$0xff] %vm4147_vm14, %v6698_v46  ;;  %v7714_v59 = vadd.f32 %v12885_v8, %v7713_v61  ;;  %v7715_v4 = vpop.f32.mrb[19].mxu1  ;;  %v13043_v7 = vpop.f32.mrb[96].mxu0  ;;  %7853 = vmatmul.mubr.bf16.gmra.mrb[88].mxu1 %v7357_v18  ;;  %v4878_v32 = vrot.slane %v4876_v31, 1 }
 0x35b   : > { %v13045_v35 = vpop.f32.mrb[97].mxu0  ;;  %v7718_v47 = vpop.f32.mrb[20].mxu1  ;;  %v4891_v60 = vsel %vm2735_vm7, %v4886_v34, %v4890_v54  ;;  %v4905_v34 = vshrl.u32 %v10825_v50, 16 }
 0x35c   : > { %v8003_v2 = vadd.f32 %v12998_v55, %v7714_v59  ;;  %v13051_v0 = vpop.f32.mrb[98].mxu0  ;;  %v7719_v48 = vadd.f32 %v12885_v8, %v7718_v47  ;;  %4977 = vst.msk [vmem:[#allocation3 + $0x2c0] sm:$0xff] %vm2350_vm10, %v4891_v60  ;;  %v7720_v27 = vpop.f32.mrb[21].mxu1  ;;  %v10822_v55 = vld [vmem:[#allocation2 + $0x18c] sm:$0xff]   ;;  %v4879_v57 = vsel %vm2735_vm7, %v4874_v30, %v4878_v32  ;;  %v4907_v59 = vshll.u32 %v10825_v50, 16 }
 0x35d   : > { %v13047_v39 = vpop.permute.xlu1 %3754  ;;  %v13055_v62 = vpop.f32.mrb[99].mxu0  ;;  %4976 = vst.msk [vmem:[#allocation3 + $0x2a8] sm:$0xff] %vm2350_vm10, %v4879_v57  ;;  %v4895_v53 = vshll.u32 %v10822_v55, 16  ;;  %v10826_v47 = vld [vmem:[#allocation2 + $0x1a0] ss:$0 sps:$4 sm:$0x11]  }
 0x35e   : > { %v8219_v24 = vmax.f32 %v8003_v2, 0.0  ;;  %v8008_v36 = vadd.f32 %v12988_v3, %v7719_v48  ;;  %v13058_v14 = vpop.f32.mrb[100].mxu0  ;;  %v7721_v28 = vpop.f32.mrb[22].mxu1  ;;  %v10827_v60 = vld [vmem:[%s13570_s5 + $0x8] sm:$0xff]   ;;  %v4912_v56 = vshll.u32 %v10826_v47, 16 }
 0x35f   : > { %v13060_v44 = vpop.f32.mrb[101].mxu0  ;;  %v7722_v11 = vadd.f32 %v12885_v8, %v7721_v28  ;;  %v7723_v45 = vpop.f32.mrb[23].mxu1  ;;  %v4897_v54 = vrot.slane %v4895_v53, 1  ;;  %10198 = vmatprep.subr.bf16.mxu1 %v10827_v60 }
 0x360   : > { %v8276_v9 = vpack.c.bf16 %v8219_v24, %v8218_v49  ;;  %v8220_v20 = vmax.f32 %v8008_v36, 0.0  ;;  %v13067_v3 = vpop.f32.mrb[102].mxu0  ;;  %v7726_v33 = vpop.f32.mrb[24].mxu1  ;;  %10199 = vmatpush3.bf16.msra.mxu1 %v10827_v60 }
 0x361   : > { %10169 = vmatmul.mubr.msk.bf16.gmra.mrb[140].mxu0 %vm2350_vm10, %v12983_v26  ;;  %v6696_v21 = vpop.permute.xlu0 %6695  ;;  %v8011_v23 = vadd.f32 %v12993_v10, %v7722_v11  ;;  %v13074_v41 = vpop.f32.mrb[103].mxu0  ;;  %v4893_v26 = vshrl.u32 %v10822_v55, 16  ;;  %v7727_v46 = vadd.f32 %v12885_v8, %v7726_v33  ;;  %v7364_v22 = vld [vmem:[#allocation3 + $0x278] sm:$0xff] }
 0x362   : > { %6766 = vst.msk [vmem:[#allocation3 + $0x260] sm:$0xff] %vm4147_vm14, %v6696_v21  ;;  %10172 = vmatprep.mubr.msk.bf16.mxu0 %vm2350_vm10, %v13007_v1  ;;  %v13076_v52 = vpop.permute.xlu1 %3752  ;;  %v7728_v12 = vpop.f32.mrb[25].mxu1  ;;  %v7360_v21 = vld [vmem:[#allocation3 + $0x258] sm:$0xff] }
 0x363   : > { %v8221_v15 = vmax.f32 %v8011_v23, 0.0  ;;  %v8016_v18 = vadd.f32 %v13009_v40, %v7727_v46  ;;  %v4898_v17 = vor.u32 %v4897_v54, %v4893_v26  ;;  %v7729_v31 = vpop.f32.mrb[26].mxu1  ;;  %v4909_v40 = vrot.slane %v4907_v59, 1  ;;  %v7363_v12 = vld [vmem:[#allocation3 + $0x270] sm:$0xff] }
 0x364   : > { %v7730_v2 = vadd.f32 %v12885_v8, %v7729_v31  ;;  %v7731_v38 = vpop.f32.mrb[27].mxu1 }
 0x365   : > { %v13083_v10 = vpop.permute.xlu0 %5837  ;;  %v8277_v4 = vpack.c.bf16 %v8221_v15, %v8220_v20  ;;  %v4903_v32 = vsel %vm2735_vm7, %v4898_v17, %v4902_v37  ;;  %v4910_v11 = vor.u32 %v4909_v40, %v4905_v34  ;;  %v4914_v20 = vrot.slane %v4912_v56, 1 }
 0x366   : > { %4978 = vst.msk [vmem:[#allocation3 + $0x2d8] sm:$0xff] %vm2350_vm10, %v4903_v32  ;;  %v8019_v28 = vadd.f32 %v13017_v6, %v7730_v2  ;;  %v8222_v23 = vmax.f32 %v8016_v18, 0.0 }
 0x367   : > { %v4915_v58 = vsel %vm2735_vm7, %v4910_v11, %v4914_v20 }
 0x368   : > { %v8223_v6 = vmax.f32 %v8019_v28, 0.0  ;;  %v3177_v33 = vpop.permute.xlu1 %3176  ;;  %4979 = vst.msk [vmem:[#allocation3 + $0x2f0] sm:$0xff] %vm2350_vm10, %v4915_v58 }
 0x369   : > { %v5836_v30 = vpop.permute.xlu0 %5835  ;;  %v7361_v36 = vld [vmem:[#allocation3 + $0x260] sm:$0xff]  ;;  %10173 = vmatmul.mubr.msk.bf16.gmra.mrb[144].mxu0 %vm2350_vm10, %v13040_v29  ;;  %3245 = vst.msk [vmem:[#allocation3 + $0x2a0] sm:$0xff] %vm3216_vm12, %v3177_v33 }
 0x36a   : > { %5904 = vst.msk [vmem:[#allocation3 + $0x290] sm:$0xff] %vm3794_vm13, %v5836_v30  ;;  %7860 = vmatprep.mubr.bf16.mxu1 %v7361_v36  ;;  %10176 = vmatprep.mubr.msk.bf16.mxu0 %vm2350_vm10, %v8276_v9  ;;  %v8278_v9 = vpack.c.bf16 %v8223_v6, %v8222_v23  ;;  %3823 = vst.msk [vmem:[#allocation3 + $0x2a0] sm:$0xff] %vm3794_vm13, %v13047_v39 }
 0x36b   : > { %7861 = vmatmul.mubr.bf16.gmra.mrb[92].mxu1 %v7360_v21 }
 0x36c   : > { %7868 = vmatprep.mubr.bf16.mxu1 %v7364_v22 }
 0x36d   : > { %v3175_v17 = vpop.permute.xlu1 %3174 }
 0x36e   : > { %3244 = vst.msk [vmem:[#allocation3 + $0x288] sm:$0xff] %vm3216_vm12, %v3175_v17 }
 0x36f   : > { %3822 = vst.msk [vmem:[#allocation3 + $0x288] sm:$0xff] %vm3794_vm13, %v13076_v52 }
 0x370   : > { %4175 = vst.msk [vmem:[#allocation3 + $0x288] sm:$0xff] %vm4147_vm14, %v12986_v19 }
 0x371   : > { %v13078_v63 = vpop.f32.mrb[104].mxu0  ;;  %10177 = vmatmul.mubr.msk.bf16.gmra.mrb[148].mxu0 %vm2350_vm10, %v8277_v4  ;;  %v4110_v40 = vpop.permute.xlu1 %4109 }
 0x372   : > { %v13081_v1 = vpop.f32.mrb[105].mxu0  ;;  %10180 = vmatprep.mubr.msk.bf16.mxu0 %vm2350_vm10, %v8278_v9 }
 0x373   : > { %v13085_v61 = vpop.f32.mrb[106].mxu0  ;;  %7869 = vmatmul.mubr.bf16.gmra.mrb[96].mxu1 %v7363_v12 }
 0x374   : > { %v13089_v49 = vpop.f32.mrb[107].mxu0 }
 0x377   : > { %v7734_v24 = vpop.f32.mrb[28].mxu1  ;;  %v7366_v23 = vld [vmem:[#allocation3 + $0x288] sm:$0xff] }
 0x378   : > { %v7735_v45 = vadd.f32 %v12885_v8, %v7734_v24  ;;  %v7736_v29 = vpop.f32.mrb[29].mxu1  ;;  %v4108_v24 = vpop.permute.xlu1 %4107 }
 0x379   : > { %v13095_v48 = vpop.f32.mrb[108].mxu0  ;;  %v7737_v53 = vpop.f32.mrb[30].mxu1  ;;  %4176 = vst.msk [vmem:[#allocation3 + $0x2a0] sm:$0xff] %vm4147_vm14, %v4108_v24 }
 0x37a   : > { %v13098_v27 = vpop.f32.mrb[109].mxu0  ;;  %v8024_v26 = vadd.f32 %v13003_v42, %v7735_v45  ;;  %v7738_v46 = vadd.f32 %v12885_v8, %v7737_v53  ;;  %v7739_v51 = vpop.f32.mrb[31].mxu1 }
 0x37b   : > { %v13104_v55 = vpop.f32.mrb[110].mxu0 }
 0x37c   : > { %v13109_v57 = vpop.f32.mrb[111].mxu0  ;;  %v8027_v50 = vadd.f32 %v13012_v25, %v7738_v46  ;;  %v8224_v15 = vmax.f32 %v8024_v26, 0.0  ;;  %v5487_v25 = vpop.permute.xlu0 %5486 }
 0x37d   : > { %5553 = vst.msk [vmem:[#allocation3 + $0x2c0] sm:$0xff] %vm3216_vm12, %v5487_v25 }
 0x37e   : > { %v8225_v42 = vmax.f32 %v8027_v50, 0.0 }
 0x380   : > { %v8279_v18 = vpack.c.bf16 %v8225_v42, %v8224_v15  ;;  %v5485_v32 = vpop.permute.xlu0 %5484  ;;  %v7369_v53 = vld [vmem:[#allocation3 + $0x2a0] sm:$0xff] }
 0x381   : > { %5552 = vst.msk [vmem:[#allocation3 + $0x2a8] sm:$0xff] %vm3216_vm12, %v5485_v32 }
 0x382   : > { %v7742_v39 = vpop.f32.mrb[32].mxu1  ;;  %10181 = vmatmul.mubr.msk.bf16.gmra.mrb[152].mxu0 %vm2350_vm10, %v8279_v18  ;;  %5905 = vst.msk [vmem:[#allocation3 + $0x2a8] sm:$0xff] %vm3794_vm13, %v13083_v10 }
 0x383   : > { %v7743_v31 = vadd.f32 %v12885_v8, %v7742_v39  ;;  %v7744_v4 = vpop.f32.mrb[33].mxu1 }
 0x384   : > { %v7745_v60 = vpop.f32.mrb[34].mxu1  ;;  %v6702_v19 = vpop.permute.xlu0 %6701 }
 0x385   : > { %v8032_v47 = vadd.f32 %v13024_v5, %v7743_v31  ;;  %v7746_v2 = vadd.f32 %v12885_v8, %v7745_v60  ;;  %v7747_v38 = vpop.f32.mrb[35].mxu1  ;;  %6769 = vst.msk [vmem:[#allocation3 + $0x2a8] sm:$0xff] %vm4147_vm14, %v6702_v19 }
 0x387   : > { %v8035_v56 = vadd.f32 %v13036_v13, %v7746_v2  ;;  %v8226_v52 = vmax.f32 %v8032_v47, 0.0  ;;  %v3757_v13 = vpop.permute.xlu1 %3756 }
 0x388   : > { %v6700_v10 = vpop.permute.xlu0 %6699 }
 0x389   : > { %v13120_v54 = vpop.f32.mrb[112].mxu0  ;;  %v8227_v5 = vmax.f32 %v8035_v56, 0.0  ;;  %6768 = vst.msk [vmem:[#allocation3 + $0x290] sm:$0xff] %vm4147_vm14, %v6700_v10 }
 0x38a   : > { %v13123_v37 = vpop.f32.mrb[113].mxu0 }
 0x38b   : > { %v13125_v34 = vpop.f32.mrb[114].mxu0  ;;  %v8280_v28 = vpack.c.bf16 %v8227_v5, %v8226_v52  ;;  %v3181_v21 = vpop.permute.xlu1 %3180 }
 0x38c   : > { %v13127_v59 = vpop.f32.mrb[115].mxu0  ;;  %v5842_v20 = vpop.permute.xlu0 %5841  ;;  %3247 = vst.msk [vmem:[#allocation3 + $0x2d0] sm:$0xff] %vm3216_vm12, %v3181_v21  ;;  %v7370_v26 = vld [vmem:[#allocation3 + $0x2a8] sm:$0xff] }
 0x38d   : > { %10184 = vmatprep.mubr.msk.bf16.mxu0 %vm2350_vm10, %v8280_v28 }
 0x38f   : > { %v3179_v6 = vpop.permute.xlu1 %3178 }
 0x390   : > { %v5840_v29 = vpop.permute.xlu0 %5839  ;;  %v7367_v22 = vld [vmem:[#allocation3 + $0x290] sm:$0xff]  ;;  %3246 = vst.msk [vmem:[#allocation3 + $0x2b8] sm:$0xff] %vm3216_vm12, %v3179_v6 }
 0x391   : > { %v13143_v30 = vpop.f32.mrb[116].mxu0  ;;  %5906 = vst.msk [vmem:[#allocation3 + $0x2c0] sm:$0xff] %vm3794_vm13, %v5840_v29  ;;  %7876 = vmatprep.mubr.bf16.mxu1 %v7367_v22  ;;  %3824 = vst.msk [vmem:[#allocation3 + $0x2b8] sm:$0xff] %vm3794_vm13, %v3757_v13 }
 0x392   : > { %v13146_v36 = vpop.f32.mrb[117].mxu0  ;;  %7877 = vmatmul.mubr.bf16.gmra.mrb[100].mxu1 %v7366_v23  ;;  %4177 = vst.msk [vmem:[#allocation3 + $0x2b8] sm:$0xff] %vm4147_vm14, %v4110_v40 }
 0x393   : > { %v13149_v11 = vpop.f32.mrb[118].mxu0  ;;  %7884 = vmatprep.mubr.bf16.mxu1 %v7370_v26  ;;  %v3759_v33 = vpop.permute.xlu1 %3758 }
 0x394   : > { %v13151_v45 = vpop.f32.mrb[119].mxu0  ;;  %3825 = vst.msk [vmem:[#allocation3 + $0x2d0] sm:$0xff] %vm3794_vm13, %v3759_v33  ;;  %v5489_v9 = vpop.permute.xlu0 %5488 }
 0x395   : > { %5554 = vst.msk [vmem:[#allocation3 + $0x2d8] sm:$0xff] %vm3216_vm12, %v5489_v9 }
 0x396   : > { %5907 = vst.msk [vmem:[#allocation3 + $0x2d8] sm:$0xff] %vm3794_vm13, %v5842_v20 }
 0x397   : > { %v4112_v18 = vpop.permute.xlu1 %4111 }
 0x398   : > { %4178 = vst.msk [vmem:[#allocation3 + $0x2d0] sm:$0xff] %vm4147_vm14, %v4112_v18  ;;  %v6704_v17 = vpop.permute.xlu0 %6703 }
 0x399   : > { %6770 = vst.msk [vmem:[#allocation3 + $0x2c0] sm:$0xff] %vm4147_vm14, %v6704_v17 }
 0x39a   : > { %7885 = vmatmul.mubr.bf16.gmra.mrb[104].mxu1 %v7369_v53 }
 0x39b   : > { %v3761_v4 = vpop.permute.xlu1 %3760 }
 0x39d   : > { %v7750_v58 = vpop.f32.mrb[36].mxu1 }
 0x39e   : > { %v7751_v46 = vadd.f32 %v12885_v8, %v7750_v58  ;;  %v7752_v51 = vpop.f32.mrb[37].mxu1 }
 0x39f   : > { %v7753_v50 = vpop.f32.mrb[38].mxu1  ;;  %v3183_v60 = vpop.permute.xlu1 %3182  ;;  %v7375_v6 = vld [vmem:[#allocation3 + $0x2d0] sm:$0xff] }
 0x3a0   : > { %v8040_v15 = vadd.f32 %v13021_v16, %v7751_v46  ;;  %v7754_v42 = vadd.f32 %v12885_v8, %v7753_v50  ;;  %v7755_v12 = vpop.f32.mrb[39].mxu1  ;;  %v6706_v16 = vpop.permute.xlu0 %6705  ;;  %v7373_v2 = vld [vmem:[#allocation3 + $0x2c0] sm:$0xff]  ;;  %3248 = vst.msk [vmem:[#allocation3 + $0x2e8] sm:$0xff] %vm3216_vm12, %v3183_v60 }
 0x3a1   : > { %6771 = vst.msk [vmem:[#allocation3 + $0x2d8] sm:$0xff] %vm4147_vm14, %v6706_v16  ;;  %7892 = vmatprep.mubr.bf16.mxu1 %v7373_v2 }
 0x3a2   : > { %v8043_v39 = vadd.f32 %v13031_v43, %v7754_v42  ;;  %v8228_v25 = vmax.f32 %v8040_v15, 0.0  ;;  %v7372_v43 = vld [vmem:[#allocation3 + $0x2b8] sm:$0xff]  ;;  %3826 = vst.msk [vmem:[#allocation3 + $0x2e8] sm:$0xff] %vm3794_vm13, %v3761_v4 }
 0x3a3   : > { %7893 = vmatmul.mubr.bf16.gmra.mrb[108].mxu1 %v7372_v43  ;;  %v4114_v28 = vpop.permute.xlu1 %4113 }
 0x3a4   : > { %v8229_v31 = vmax.f32 %v8043_v39, 0.0  ;;  %v5491_v40 = vpop.permute.xlu0 %5490  ;;  %4179 = vst.msk [vmem:[#allocation3 + $0x2e8] sm:$0xff] %vm4147_vm14, %v4114_v28 }
 0x3a5   : > { %v7758_v38 = vpop.f32.mrb[40].mxu1  ;;  %5555 = vst.msk [vmem:[#allocation3 + $0x2f0] sm:$0xff] %vm3216_vm12, %v5491_v40 }
 0x3a6   : > { %v8281_v47 = vpack.c.bf16 %v8229_v31, %v8228_v25  ;;  %v7759_v32 = vadd.f32 %v12885_v8, %v7758_v38  ;;  %v7760_v56 = vpop.f32.mrb[41].mxu1 }
 0x3a7   : > { %v7761_v52 = vpop.f32.mrb[42].mxu1 }
 0x3a8   : > { %10185 = vmatmul.mubr.msk.bf16.gmra.mrb[156].mxu0 %vm2350_vm10, %v8281_v47  ;;  %v8048_v5 = vadd.f32 %v13045_v35, %v7759_v32  ;;  %v7762_v24 = vadd.f32 %v12885_v8, %v7761_v52  ;;  %v7763_v19 = vpop.f32.mrb[43].mxu1  ;;  %v5844_v10 = vpop.permute.xlu0 %5843  ;;  %v7376_v21 = vld [vmem:[#allocation3 + $0x2d8] sm:$0xff] }
 0x3a9   : > { %5908 = vst.msk [vmem:[#allocation3 + $0x2f0] sm:$0xff] %vm3794_vm13, %v5844_v10  ;;  %7900 = vmatprep.mubr.bf16.mxu1 %v7376_v21 }
 0x3aa   : > { %v8051_v29 = vadd.f32 %v13055_v62, %v7762_v24  ;;  %v8230_v8 = vmax.f32 %v8048_v5, 0.0  ;;  %v13193_v62 = vld [vmem:[%s13569_s4] ss:$0 sm:$0xff] }
 0x3ab   : > { %7901 = vmatmul.mubr.bf16.gmra.mrb[112].mxu1 %v7375_v6  ;;  %v7378_v18 = vld [vmem:[#allocation3 + $0x2e8] sm:$0xff] }
 0x3ac   : > { %v8231_v23 = vmax.f32 %v8051_v29, 0.0  ;;  %v6708_v53 = vpop.permute.xlu0 %6707 }
 0x3ad   : > { %6772 = vst.msk [vmem:[#allocation3 + $0x2f0] sm:$0xff] %vm4147_vm14, %v6708_v53 }
 0x3ae   : > { %v8282_v26 = vpack.c.bf16 %v8231_v23, %v8230_v8 }
 0x3af   : > { %v13177_v13 = vpop.f32.mrb[120].mxu0 }
 0x3b0   : > { %v13180_v20 = vpop.f32.mrb[121].mxu0  ;;  %10188 = vmatprep.mubr.msk.bf16.mxu0 %vm2350_vm10, %v8282_v26 }
 0x3b1   : > { %v13184_v22 = vpop.f32.mrb[122].mxu0 }
 0x3b2   : > { %v13186_v35 = vpop.f32.mrb[123].mxu0 }
 0x3b3   : > { %v7766_v33 = vpop.f32.mrb[44].mxu1 }
 0x3b4   : > { %v7767_v58 = vadd.f32 %v13193_v62, %v7766_v33  ;;  %v7768_v46 = vpop.f32.mrb[45].mxu1  ;;  %v7379_v12 = vld [vmem:[#allocation3 + $0x2f0] sm:$0xff] }
 0x3b5   : > { %v7769_v51 = vpop.f32.mrb[46].mxu1  ;;  %7908 = vmatprep.mubr.bf16.mxu1 %v7379_v12 }
 0x3b6   : > { %v8056_v9 = vadd.f32 %v13043_v7, %v7767_v58  ;;  %v7770_v50 = vadd.f32 %v13193_v62, %v7769_v51  ;;  %v7771_v15 = vpop.f32.mrb[47].mxu1  ;;  %7909 = vmatmul.mubr.bf16.gmra.mrb[116].mxu1 %v7378_v18 }
 0x3b8   : > { %v8059_v42 = vadd.f32 %v13051_v0, %v7770_v50  ;;  %v8232_v39 = vmax.f32 %v8056_v9, 0.0 }
 0x3ba   : > { %v8233_v17 = vmax.f32 %v8059_v42, 0.0 }
 0x3bc   : > { %v8283_v25 = vpack.c.bf16 %v8233_v17, %v8232_v39 }
 0x3bd   : > { %v7774_v31 = vpop.f32.mrb[48].mxu1 }
 0x3be   : > { %10189 = vmatmul.mubr.msk.bf16.gmra.mrb[160].mxu0 %vm2350_vm10, %v8283_v25  ;;  %v7775_v4 = vadd.f32 %v13193_v62, %v7774_v31  ;;  %v7776_v47 = vpop.f32.mrb[49].mxu1 }
 0x3bf   : > { %v7777_v16 = vpop.f32.mrb[50].mxu1 }
 0x3c0   : > { %v8064_v7 = vadd.f32 %v13060_v44, %v7775_v4  ;;  %v7778_v60 = vadd.f32 %v13193_v62, %v7777_v16  ;;  %v7779_v2 = vpop.f32.mrb[51].mxu1 }
 0x3c2   : > { %v8067_v0 = vadd.f32 %v13074_v41, %v7778_v60  ;;  %v8234_v38 = vmax.f32 %v8064_v7, 0.0 }
 0x3c4   : > { %v8235_v40 = vmax.f32 %v8067_v0, 0.0 }
 0x3c6   : > { %v8284_v43 = vpack.c.bf16 %v8235_v40, %v8234_v38 }
 0x3c8   : > { %10192 = vmatprep.mubr.msk.bf16.mxu0 %vm2350_vm10, %v8284_v43  ;;  %v7782_v32 = vpop.f32.mrb[52].mxu1 }
 0x3c9   : > { %v7783_v56 = vadd.f32 %v13193_v62, %v7782_v32  ;;  %v7784_v52 = vpop.f32.mrb[53].mxu1 }
 0x3ca   : > { %v7785_v5 = vpop.f32.mrb[54].mxu1 }
 0x3cb   : > { %v8072_v19 = vadd.f32 %v13058_v14, %v7783_v56  ;;  %v7786_v44 = vadd.f32 %v13193_v62, %v7785_v5  ;;  %v7787_v28 = vpop.f32.mrb[55].mxu1 }
 0x3cd   : > { %v8075_v21 = vadd.f32 %v13067_v3, %v7786_v44  ;;  %v8236_v8 = vmax.f32 %v8072_v19, 0.0 }
 0x3cf   : > { %v8237_v23 = vmax.f32 %v8075_v21, 0.0 }
 0x3d0   : > { %v7790_v6 = vpop.f32.mrb[56].mxu1 }
 0x3d1   : > { %v13206_v24 = vpop.f32.mrb[124].mxu0  ;;  %v8285_v26 = vpack.c.bf16 %v8237_v23, %v8236_v8  ;;  %v7791_v53 = vadd.f32 %v13193_v62, %v7790_v6  ;;  %v7792_v33 = vpop.f32.mrb[57].mxu1 }
 0x3d2   : > { %v13210_v10 = vpop.f32.mrb[125].mxu0  ;;  %v7793_v58 = vpop.f32.mrb[58].mxu1 }
 0x3d3   : > { %v13212_v41 = vpop.f32.mrb[126].mxu0  ;;  %v8080_v14 = vadd.f32 %v13081_v1, %v7791_v53  ;;  %v7794_v46 = vadd.f32 %v13193_v62, %v7793_v58  ;;  %v7795_v51 = vpop.f32.mrb[59].mxu1  ;;  %10193 = vmatmul.mubr.msk.bf16.gmra.mrb[164].mxu0 %vm2350_vm10, %v8285_v26 }
 0x3d4   : > { %v13215_v29 = vpop.f32.mrb[127].mxu0 }
 0x3d5   : > { %v8083_v9 = vadd.f32 %v13089_v49, %v7794_v46  ;;  %v8238_v3 = vmax.f32 %v8080_v14, 0.0 }
 0x3d7   : > { %v8239_v50 = vmax.f32 %v8083_v9, 0.0 }
 0x3d8   : > { %v7798_v42 = vpop.f32.mrb[60].mxu1 }
 0x3d9   : > { %v8286_v15 = vpack.c.bf16 %v8239_v50, %v8238_v3  ;;  %v7799_v12 = vadd.f32 %v13193_v62, %v7798_v42  ;;  %v7800_v18 = vpop.f32.mrb[61].mxu1 }
 0x3da   : > { %v7801_v39 = vpop.f32.mrb[62].mxu1 }
 0x3db   : > { %10200 = vmatprep.mubr.msk.bf16.mxu1 %vm2350_vm10, %v8286_v15  ;;  %v8088_v17 = vadd.f32 %v13078_v63, %v7799_v12  ;;  %v7802_v1 = vadd.f32 %v13193_v62, %v7801_v39  ;;  %v7803_v25 = vpop.f32.mrb[63].mxu1 }
 0x3dd   : > { %v8091_v31 = vadd.f32 %v13085_v61, %v7802_v1  ;;  %v8240_v4 = vmax.f32 %v8088_v17, 0.0 }
 0x3df   : > { %v8241_v47 = vmax.f32 %v8091_v31, 0.0 }
 0x3e0   : > { %v7806_v16 = vpop.f32.mrb[64].mxu1 }
 0x3e1   : > { %v8287_v49 = vpack.c.bf16 %v8241_v47, %v8240_v4  ;;  %v7807_v7 = vadd.f32 %v13193_v62, %v7806_v16  ;;  %v7808_v60 = vpop.f32.mrb[65].mxu1 }
 0x3e2   : > { %v7809_v2 = vpop.f32.mrb[66].mxu1 }
 0x3e3   : > { %10201 = vmatmul.mubr.msk.bf16.vlgmr.msra.gmra.mrb[120].mxu1 %vm2350_vm10, %v8287_v49  ;;  %v8096_v0 = vadd.f32 %v13098_v27, %v7807_v7  ;;  %v7810_v38 = vadd.f32 %v13193_v62, %v7809_v2  ;;  %v7811_v63 = vpop.f32.mrb[67].mxu1 }
 0x3e5   : > { %v8099_v40 = vadd.f32 %v13109_v57, %v7810_v38  ;;  %v8242_v43 = vmax.f32 %v8096_v0, 0.0 }
 0x3e7   : > { %v8243_v32 = vmax.f32 %v8099_v40, 0.0 }
 0x3e8   : > { %v13232_v56 = vpop.f32.mrb[128].mxu0 }
 0x3e9   : > { %v8288_v61 = vpack.c.bf16 %v8243_v32, %v8242_v43  ;;  %v13234_v52 = vpop.f32.mrb[129].mxu0 }
 0x3ea   : > { %v13237_v5 = vpop.f32.mrb[130].mxu0 }
 0x3eb   : > { %10204 = vmatprep.mubr.msk.bf16.mxu1 %vm2350_vm10, %v8288_v61  ;;  %v13239_v19 = vpop.f32.mrb[131].mxu0 }
 0x3f3   : > { %v7814_v44 = vpop.f32.mrb[68].mxu1 }
 0x3f4   : > { %v7815_v27 = vadd.f32 %v13193_v62, %v7814_v44  ;;  %v7816_v28 = vpop.f32.mrb[69].mxu1 }
 0x3f5   : > { %v7817_v21 = vpop.f32.mrb[70].mxu1 }
 0x3f6   : > { %v8104_v57 = vadd.f32 %v13095_v48, %v7815_v27  ;;  %v7818_v8 = vadd.f32 %v13193_v62, %v7817_v21  ;;  %v7819_v23 = vpop.f32.mrb[71].mxu1 }
 0x3f8   : > { %v8107_v6 = vadd.f32 %v13104_v55, %v7818_v8  ;;  %v8244_v26 = vmax.f32 %v8104_v57, 0.0 }
 0x3fa   : > { %v8245_v53 = vmax.f32 %v8107_v6, 0.0 }
 0x3fb   : > { %v7822_v33 = vpop.f32.mrb[72].mxu1 }
 0x3fc   : > { %v8289_v58 = vpack.c.bf16 %v8245_v53, %v8244_v26  ;;  %v7823_v14 = vadd.f32 %v13193_v62, %v7822_v33  ;;  %v7824_v46 = vpop.f32.mrb[73].mxu1  ;;  %v8536_v26 = vld [vmem:[%s11091_s15 + $0x10] sm:$0xff] }
 0x3fd   : > { %v7825_v51 = vpop.f32.mrb[74].mxu1 }
 0x3fe   : > { %v8112_v9 = vadd.f32 %v13123_v37, %v7823_v14  ;;  %v7826_v3 = vadd.f32 %v13193_v62, %v7825_v51  ;;  %v7827_v50 = vpop.f32.mrb[75].mxu1  ;;  %10205 = vmatmul.mubr.msk.bf16.gmra.mrb[124].mxu1 %vm2350_vm10, %v8289_v58  ;;  %v8534_v58 = vld [vmem:[%s11091_s15] sm:$0xff] }
 0x400   : > { %v8115_v48 = vadd.f32 %v13127_v59, %v7826_v3  ;;  %v8246_v15 = vmax.f32 %v8112_v9, 0.0  ;;  %v8537_v9 = vld [vmem:[%s11091_s15 + $0x18] sm:$0xff] }
 0x402   : > { %v8247_v42 = vmax.f32 %v8115_v48, 0.0  ;;  %v8535_v48 = vld [vmem:[%s11091_s15 + $0x8] sm:$0xff] }
 0x403   : > { %v7830_v55 = vpop.f32.mrb[76].mxu1 }
 0x404   : > { %v8290_v12 = vpack.c.bf16 %v8247_v42, %v8246_v15  ;;  %v7831_v18 = vadd.f32 %v13193_v62, %v7830_v55  ;;  %v7832_v39 = vpop.f32.mrb[77].mxu1 }
 0x405   : > { %v7833_v17 = vpop.f32.mrb[78].mxu1 }
 0x406   : > { %10208 = vmatprep.mubr.msk.bf16.mxu1 %vm2350_vm10, %v8290_v12  ;;  %v8120_v1 = vadd.f32 %v13120_v54, %v7831_v18  ;;  %v7834_v37 = vadd.f32 %v13193_v62, %v7833_v17  ;;  %v7835_v25 = vpop.f32.mrb[79].mxu1 }
 0x408   : > { %v8123_v31 = vadd.f32 %v13125_v34, %v7834_v37  ;;  %v8248_v4 = vmax.f32 %v8120_v1, 0.0 }
 0x40a   : > { %v8249_v47 = vmax.f32 %v8123_v31, 0.0 }
 0x40c   : > { %v8291_v59 = vpack.c.bf16 %v8249_v47, %v8248_v4 }
 0x40e   : > { %10209 = vmatmul.mubr.msk.bf16.gmra.mrb[128].mxu1 %vm2350_vm10, %v8291_v59 }
 0x413   : > { %v7838_v49 = vpop.f32.mrb[80].mxu1 }
 0x414   : > { %v7839_v16 = vadd.f32 %v13193_v62, %v7838_v49  ;;  %v7840_v7 = vpop.f32.mrb[81].mxu1 }
 0x415   : > { %v7841_v60 = vpop.f32.mrb[82].mxu1 }
 0x416   : > { %v8128_v2 = vadd.f32 %v13146_v36, %v7839_v16  ;;  %v7842_v0 = vadd.f32 %v13193_v62, %v7841_v60  ;;  %v7843_v54 = vpop.f32.mrb[83].mxu1 }
 0x418   : > { %v8131_v63 = vadd.f32 %v13151_v45, %v7842_v0  ;;  %v8250_v43 = vmax.f32 %v8128_v2, 0.0  ;;  %v13272_v45 = vld [vmem:[%s13571_s6] ss:$0 sm:$0xff] }
 0x419   : > { %v8540_v2 = vld [vmem:[%s11091_s15 + $0x30] sm:$0xff] }
 0x41a   : > { %v8251_v32 = vmax.f32 %v8131_v63, 0.0  ;;  %v8538_v63 = vld [vmem:[%s11091_s15 + $0x20] sm:$0xff] }
 0x41c   : > { %v8292_v27 = vpack.c.bf16 %v8251_v32, %v8250_v43 }
 0x41e   : > { %v7846_v44 = vpop.f32.mrb[84].mxu1  ;;  %10212 = vmatprep.mubr.msk.bf16.mxu1 %vm2350_vm10, %v8292_v27 }
 0x41f   : > { %v7847_v36 = vadd.f32 %v13193_v62, %v7846_v44  ;;  %v7848_v28 = vpop.f32.mrb[85].mxu1  ;;  %v8541_v44 = vld [vmem:[%s11091_s15 + $0x38] sm:$0xff] }
 0x420   : > { %v7849_v21 = vpop.f32.mrb[86].mxu1 }
 0x421   : > { %v8136_v57 = vadd.f32 %v13143_v30, %v7847_v36  ;;  %v7850_v8 = vadd.f32 %v13193_v62, %v7849_v21  ;;  %v7851_v23 = vpop.f32.mrb[87].mxu1 }
 0x423   : > { %v8139_v14 = vadd.f32 %v13149_v11, %v7850_v8  ;;  %v8252_v15 = vmax.f32 %v8136_v57, 0.0  ;;  %v8539_v57 = vld [vmem:[%s11091_s15 + $0x28] sm:$0xff] }
 0x424   : > { %v13259_v38 = vpop.f32.mrb[132].mxu0 }
 0x425   : > { %v13262_v34 = vpop.f32.mrb[133].mxu0  ;;  %v8253_v42 = vmax.f32 %v8139_v14, 0.0 }
 0x426   : > { %v13264_v40 = vpop.f32.mrb[134].mxu0 }
 0x427   : > { %v13266_v61 = vpop.f32.mrb[135].mxu0  ;;  %v8293_v1 = vpack.c.bf16 %v8253_v42, %v8252_v15 }
 0x429   : > { %10213 = vmatmul.mubr.msk.bf16.gmra.mrb[132].mxu1 %vm2350_vm10, %v8293_v1 }
 0x42c   : > { %v10166_v6 = vpop.f32.mrb[136].mxu0 }
 0x42d   : > { %v8416_v53 = vadd.f32 %v10166_v6, %v13272_v45  ;;  %v8407_v33 = vpop.f32.mrb[137].mxu0  ;;  %v7854_v18 = vpop.f32.mrb[88].mxu1 }
 0x42e   : > { %v8408_v46 = vadd.f32 %v13272_v45, %v8407_v33  ;;  %v10167_v51 = vpop.f32.mrb[138].mxu0  ;;  %v7855_v11 = vadd.f32 %v13193_v62, %v7854_v18  ;;  %v7856_v37 = vpop.f32.mrb[89].mxu1 }
 0x42f   : > { %v8568_v3 = vadd.f32 %v8536_v26, %v8416_v53  ;;  %v8419_v50 = vadd.f32 %v10167_v51, %v13272_v45  ;;  %v8410_v30 = vpop.f32.mrb[139].mxu0  ;;  %v7857_v4 = vpop.f32.mrb[90].mxu1 }
 0x430   : > { %v8566_v55 = vadd.f32 %v8534_v58, %v8408_v46  ;;  %v8411_v12 = vadd.f32 %v13272_v45, %v8410_v30  ;;  %v8144_v59 = vadd.f32 %v13180_v20, %v7855_v11  ;;  %v7858_v49 = vadd.f32 %v13193_v62, %v7857_v4  ;;  %v7859_v16 = vpop.f32.mrb[91].mxu1  ;;  %v8542_v30 = vld [vmem:[%s11091_s15 + $0x40] sm:$0xff]  ;;  %v8543_v11 = vld [vmem:[%s11091_s15 + $0x48] sm:$0xff] }
 0x431   : > { %v8600_v39 = vmax.f32 %v8568_v3, 0.0  ;;  %v8569_v17 = vadd.f32 %v8537_v9, %v8419_v50  ;;  %v8544_v9 = vld [vmem:[%s11091_s15 + $0x50] sm:$0xff] }
 0x432   : > { %v8598_v25 = vmax.f32 %v8566_v55, 0.0  ;;  %v8567_v31 = vadd.f32 %v8535_v48, %v8411_v12  ;;  %v8147_v43 = vadd.f32 %v13186_v35, %v7858_v49  ;;  %v8254_v36 = vmax.f32 %v8144_v59, 0.0  ;;  %v8545_v55 = vld [vmem:[%s11091_s15 + $0x58] sm:$0xff] }
 0x433   : > { %8632 = vst [vmem:[%s13289_s9 + $0x10] sm:$0xff] %v8600_v39  ;;  %v8601_v47 = vmax.f32 %v8569_v17, 0.0 }
 0x434   : > { %8630 = vst [vmem:[%s13289_s9] sm:$0xff] %v8598_v25  ;;  %v8599_v7 = vmax.f32 %v8567_v31, 0.0  ;;  %v10170_v60 = vpop.f32.mrb[140].mxu0  ;;  %v8255_v8 = vmax.f32 %v8147_v43, 0.0  ;;  %v8548_v43 = vld [vmem:[%s11091_s15 + $0x70] sm:$0xff] }
 0x435   : > { %8633 = vst [vmem:[%s13289_s9 + $0x18] sm:$0xff] %v8601_v47  ;;  %v8432_v0 = vadd.f32 %v10170_v60, %v13272_v45  ;;  %v8423_v54 = vpop.f32.mrb[141].mxu0 }
 0x436   : > { %8631 = vst [vmem:[%s13289_s9 + $0x8] sm:$0xff] %v8599_v7  ;;  %v8424_v20 = vadd.f32 %v13272_v45, %v8423_v54  ;;  %v10171_v32 = vpop.f32.mrb[142].mxu0  ;;  %v8294_v53 = vpack.c.bf16 %v8255_v8, %v8254_v36 }
 0x437   : > { %v8572_v27 = vadd.f32 %v8540_v2, %v8432_v0  ;;  %v8435_v28 = vadd.f32 %v10171_v32, %v13272_v45  ;;  %v8426_v21 = vpop.f32.mrb[143].mxu0 }
 0x438   : > { %v8570_v23 = vadd.f32 %v8538_v63, %v8424_v20  ;;  %v8427_v6 = vadd.f32 %v13272_v45, %v8426_v21  ;;  %10216 = vmatprep.mubr.msk.bf16.mxu1 %vm2350_vm10, %v8294_v53  ;;  %v8549_v21 = vld [vmem:[%s11091_s15 + $0x78] sm:$0xff]  ;;  %v8547_v53 = vld [vmem:[%s11091_s15 + $0x68] sm:$0xff] }
 0x439   : > { %v8604_v35 = vmax.f32 %v8572_v27, 0.0  ;;  %v8573_v26 = vadd.f32 %v8541_v44, %v8435_v28  ;;  %v8546_v27 = vld [vmem:[%s11091_s15 + $0x60] sm:$0xff] }
 0x43a   : > { %v8602_v33 = vmax.f32 %v8570_v23, 0.0  ;;  %v8571_v58 = vadd.f32 %v8539_v57, %v8427_v6 }
 0x43b   : > { %8636 = vst [vmem:[%s13289_s9 + $0x30] sm:$0xff] %v8604_v35  ;;  %v8605_v14 = vmax.f32 %v8573_v26, 0.0 }
 0x43c   : > { %8634 = vst [vmem:[%s13289_s9 + $0x20] sm:$0xff] %v8602_v33  ;;  %v8603_v46 = vmax.f32 %v8571_v58, 0.0  ;;  %v10174_v51 = vpop.f32.mrb[144].mxu0 }
 0x43d   : > { %8637 = vst [vmem:[%s13289_s9 + $0x38] sm:$0xff] %v8605_v14  ;;  %v8448_v3 = vadd.f32 %v10174_v51, %v13272_v45  ;;  %v8439_v50 = vpop.f32.mrb[145].mxu0 }
 0x43e   : > { %8635 = vst [vmem:[%s13289_s9 + $0x28] sm:$0xff] %v8603_v46  ;;  %v7862_v48 = vpop.f32.mrb[92].mxu1  ;;  %v8440_v15 = vadd.f32 %v13272_v45, %v8439_v50  ;;  %v10175_v42 = vpop.f32.mrb[146].mxu0 }
 0x43f   : > { %v7863_v12 = vadd.f32 %v13193_v62, %v7862_v48  ;;  %v7864_v18 = vpop.f32.mrb[93].mxu1  ;;  %v8576_v39 = vadd.f32 %v8544_v9, %v8448_v3  ;;  %v8451_v17 = vadd.f32 %v10175_v42, %v13272_v45  ;;  %v8442_v1 = vpop.f32.mrb[147].mxu0 }
 0x440   : > { %v7865_v37 = vpop.f32.mrb[94].mxu1  ;;  %v8574_v25 = vadd.f32 %v8542_v30, %v8440_v15  ;;  %v8443_v31 = vadd.f32 %v13272_v45, %v8442_v1 }
 0x441   : > { %v8152_v4 = vadd.f32 %v13177_v13, %v7863_v12  ;;  %v7866_v47 = vadd.f32 %v13193_v62, %v7865_v37  ;;  %v7867_v59 = vpop.f32.mrb[95].mxu1  ;;  %v8608_v49 = vmax.f32 %v8576_v39, 0.0  ;;  %v8577_v16 = vadd.f32 %v8545_v55, %v8451_v17  ;;  %v8552_v12 = vld [vmem:[%s11091_s15 + $0x90] sm:$0xff] }
 0x442   : > { %v8606_v7 = vmax.f32 %v8574_v25, 0.0  ;;  %v8575_v60 = vadd.f32 %v8543_v11, %v8443_v31  ;;  %v8550_v11 = vld [vmem:[%s11091_s15 + $0x80] sm:$0xff]  ;;  %v8553_v25 = vld [vmem:[%s11091_s15 + $0x98] sm:$0xff] }
 0x443   : > { %v8155_v2 = vadd.f32 %v13184_v22, %v7866_v47  ;;  %8640 = vst [vmem:[%s13289_s9 + $0x50] sm:$0xff] %v8608_v49  ;;  %v8609_v0 = vmax.f32 %v8577_v16, 0.0  ;;  %v8256_v13 = vmax.f32 %v8152_v4, 0.0  ;;  %v8551_v49 = vld [vmem:[%s11091_s15 + $0x88] sm:$0xff] }
 0x444   : > { %8638 = vst [vmem:[%s13289_s9 + $0x40] sm:$0xff] %v8606_v7  ;;  %v8607_v54 = vmax.f32 %v8575_v60, 0.0  ;;  %v10178_v63 = vpop.f32.mrb[148].mxu0 }
 0x445   : > { %v8257_v20 = vmax.f32 %v8155_v2, 0.0  ;;  %8641 = vst [vmem:[%s13289_s9 + $0x58] sm:$0xff] %v8609_v0  ;;  %v8464_v32 = vadd.f32 %v10178_v63, %v13272_v45  ;;  %v8455_v44 = vpop.f32.mrb[149].mxu0 }
 0x446   : > { %v7870_v36 = vpop.f32.mrb[96].mxu1  ;;  %8639 = vst [vmem:[%s13289_s9 + $0x48] sm:$0xff] %v8607_v54  ;;  %v8456_v28 = vadd.f32 %v13272_v45, %v8455_v44  ;;  %v10179_v22 = vpop.f32.mrb[150].mxu0 }
 0x447   : > { %v8295_v57 = vpack.c.bf16 %v8257_v20, %v8256_v13  ;;  %v7871_v8 = vadd.f32 %v13193_v62, %v7870_v36  ;;  %v7872_v23 = vpop.f32.mrb[97].mxu1  ;;  %v8580_v6 = vadd.f32 %v8548_v43, %v8464_v32  ;;  %v8467_v35 = vadd.f32 %v10179_v22, %v13272_v45  ;;  %v8458_v26 = vpop.f32.mrb[151].mxu0 }
 0x448   : > { %v7873_v33 = vpop.f32.mrb[98].mxu1  ;;  %v8578_v58 = vadd.f32 %v8546_v27, %v8456_v28  ;;  %v8459_v14 = vadd.f32 %v13272_v45, %v8458_v26 }
 0x449   : > { %v8160_v46 = vadd.f32 %v13210_v10, %v7871_v8  ;;  %v7874_v51 = vadd.f32 %v13193_v62, %v7873_v33  ;;  %v7875_v9 = vpop.f32.mrb[99].mxu1  ;;  %10217 = vmatmul.mubr.msk.bf16.gmra.mrb[136].mxu1 %vm2350_vm10, %v8295_v57  ;;  %v8612_v3 = vmax.f32 %v8580_v6, 0.0  ;;  %v8581_v50 = vadd.f32 %v8549_v21, %v8467_v35 }
 0x44a   : > { %v8610_v30 = vmax.f32 %v8578_v58, 0.0  ;;  %v8579_v48 = vadd.f32 %v8547_v53, %v8459_v14  ;;  %v8556_v9 = vld [vmem:[%s11091_s15 + $0xb0] sm:$0xff] }
 0x44b   : > { %v8163_v15 = vadd.f32 %v13215_v29, %v7874_v51  ;;  %8644 = vst [vmem:[%s13289_s9 + $0x70] sm:$0xff] %v8612_v3  ;;  %v8613_v42 = vmax.f32 %v8581_v50, 0.0  ;;  %v8258_v18 = vmax.f32 %v8160_v46, 0.0 }
 0x44c   : > { %8642 = vst [vmem:[%s13289_s9 + $0x60] sm:$0xff] %v8610_v30  ;;  %v8611_v55 = vmax.f32 %v8579_v48, 0.0 }
 0x44d   : > { %v8259_v39 = vmax.f32 %v8163_v15, 0.0  ;;  %8645 = vst [vmem:[%s13289_s9 + $0x78] sm:$0xff] %v8613_v42  ;;  %v8557_v15 = vld [vmem:[%s11091_s15 + $0xb8] sm:$0xff] }
 0x44e   : > { %8643 = vst [vmem:[%s13289_s9 + $0x68] sm:$0xff] %v8611_v55 }
 0x44f   : > { %v8296_v31 = vpack.c.bf16 %v8259_v39, %v8258_v18 }
 0x451   : > { %10220 = vmatprep.mubr.msk.bf16.mxu1 %vm2350_vm10, %v8296_v31 }
 0x455   : > { %v10182_v10 = vpop.f32.mrb[152].mxu0 }
 0x456   : > { %v8480_v17 = vadd.f32 %v10182_v10, %v13272_v45  ;;  %v8471_v1 = vpop.f32.mrb[153].mxu0  ;;  %v8555_v10 = vld [vmem:[%s11091_s15 + $0xa8] sm:$0xff] }
 0x457   : > { %v8472_v37 = vadd.f32 %v13272_v45, %v8471_v1  ;;  %v10183_v29 = vpop.f32.mrb[154].mxu0 }
 0x458   : > { %v8584_v4 = vadd.f32 %v8552_v12, %v8480_v17  ;;  %v8483_v47 = vadd.f32 %v10183_v29, %v13272_v45  ;;  %v8474_v59 = vpop.f32.mrb[155].mxu0 }
 0x459   : > { %v8582_v16 = vadd.f32 %v8550_v11, %v8472_v37  ;;  %v8475_v7 = vadd.f32 %v13272_v45, %v8474_v59 }
 0x45a   : > { %v8616_v60 = vmax.f32 %v8584_v4, 0.0  ;;  %v8585_v2 = vadd.f32 %v8553_v25, %v8483_v47 }
 0x45b   : > { %v8614_v0 = vmax.f32 %v8582_v16, 0.0  ;;  %v8583_v54 = vadd.f32 %v8551_v49, %v8475_v7 }
 0x45c   : > { %8648 = vst [vmem:[%s13289_s9 + $0x90] sm:$0xff] %v8616_v60  ;;  %v8617_v63 = vmax.f32 %v8585_v2, 0.0 }
 0x45d   : > { %8646 = vst [vmem:[%s13289_s9 + $0x80] sm:$0xff] %v8614_v0  ;;  %v8615_v43 = vmax.f32 %v8583_v54, 0.0 }
 0x45e   : > { %8649 = vst [vmem:[%s13289_s9 + $0x98] sm:$0xff] %v8617_v63 }
 0x45f   : > { %8647 = vst [vmem:[%s13289_s9 + $0x88] sm:$0xff] %v8615_v43 }
 0x465   : > { %v7878_v13 = vpop.f32.mrb[100].mxu1 }
 0x466   : > { %v7879_v20 = vadd.f32 %v13193_v62, %v7878_v13  ;;  %v7880_v32 = vpop.f32.mrb[101].mxu1 }
 0x467   : > { %v7881_v44 = vpop.f32.mrb[102].mxu1 }
 0x468   : > { %v8168_v27 = vadd.f32 %v13206_v24, %v7879_v20  ;;  %v7882_v36 = vadd.f32 %v13193_v62, %v7881_v44  ;;  %v7883_v28 = vpop.f32.mrb[103].mxu1 }
 0x46a   : > { %v8171_v22 = vadd.f32 %v13212_v41, %v7882_v36  ;;  %v8260_v21 = vmax.f32 %v8168_v27, 0.0 }
 0x46c   : > { %v8261_v57 = vmax.f32 %v8171_v22, 0.0 }
 0x46d   : > { %v7886_v8 = vpop.f32.mrb[104].mxu1 }
 0x46e   : > { %v8297_v23 = vpack.c.bf16 %v8261_v57, %v8260_v21  ;;  %v7887_v6 = vadd.f32 %v13193_v62, %v7886_v8  ;;  %v7888_v35 = vpop.f32.mrb[105].mxu1 }
 0x46f   : > { %v7889_v26 = vpop.f32.mrb[106].mxu1 }
 0x470   : > { %v8176_v53 = vadd.f32 %v13234_v52, %v7887_v6  ;;  %v7890_v24 = vadd.f32 %v13193_v62, %v7889_v26  ;;  %v7891_v33 = vpop.f32.mrb[107].mxu1  ;;  %10221 = vmatmul.mubr.msk.bf16.gmra.mrb[140].mxu1 %vm2350_vm10, %v8297_v23  ;;  %v8554_v52 = vld [vmem:[%s11091_s15 + $0xa0] sm:$0xff] }
 0x472   : > { %v8179_v41 = vadd.f32 %v13239_v19, %v7890_v24  ;;  %v8262_v58 = vmax.f32 %v8176_v53, 0.0  ;;  %v8558_v53 = vld [vmem:[%s11091_s15 + $0xc0] sm:$0xff] }
 0x474   : > { %v8263_v14 = vmax.f32 %v8179_v41, 0.0 }
 0x476   : > { %v8298_v46 = vpack.c.bf16 %v8263_v14, %v8262_v58  ;;  %v7894_v1 = vpop.f32.mrb[108].mxu1  ;;  %v8561_v58 = vld [vmem:[%s11091_s15 + $0xd8] sm:$0xff] }
 0x477   : > { %v7895_v29 = vadd.f32 %v13193_v62, %v7894_v1  ;;  %v7896_v25 = vpop.f32.mrb[109].mxu1 }
 0x478   : > { %10224 = vmatprep.mubr.msk.bf16.mxu1 %vm2350_vm10, %v8298_v46  ;;  %v7897_v4 = vpop.f32.mrb[110].mxu1 }
 0x479   : > { %v8184_v59 = vadd.f32 %v13232_v56, %v7895_v29  ;;  %v7898_v49 = vadd.f32 %v13193_v62, %v7897_v4  ;;  %v7899_v16 = vpop.f32.mrb[111].mxu1 }
 0x47b   : > { %v10186_v51 = vpop.f32.mrb[156].mxu0  ;;  %v8187_v7 = vadd.f32 %v13237_v5, %v7898_v49  ;;  %v8264_v60 = vmax.f32 %v8184_v59, 0.0 }
 0x47c   : > { %v8496_v3 = vadd.f32 %v10186_v51, %v13272_v45  ;;  %v8487_v50 = vpop.f32.mrb[157].mxu0 }
 0x47d   : > { %v8488_v30 = vadd.f32 %v13272_v45, %v8487_v50  ;;  %v10187_v48 = vpop.f32.mrb[158].mxu0  ;;  %v8265_v2 = vmax.f32 %v8187_v7, 0.0 }
 0x47e   : > { %v8588_v42 = vadd.f32 %v8556_v9, %v8496_v3  ;;  %v8499_v19 = vadd.f32 %v10187_v48, %v13272_v45  ;;  %v8490_v55 = vpop.f32.mrb[159].mxu0  ;;  %v7902_v0 = vpop.f32.mrb[112].mxu1 }
 0x47f   : > { %v8586_v12 = vadd.f32 %v8554_v52, %v8488_v30  ;;  %v8491_v18 = vadd.f32 %v13272_v45, %v8490_v55  ;;  %v8299_v54 = vpack.c.bf16 %v8265_v2, %v8264_v60  ;;  %v7903_v63 = vadd.f32 %v13193_v62, %v7902_v0  ;;  %v7904_v43 = vpop.f32.mrb[113].mxu1 }
 0x480   : > { %v8620_v39 = vmax.f32 %v8588_v42, 0.0  ;;  %v8589_v17 = vadd.f32 %v8557_v15, %v8499_v19  ;;  %v7905_v13 = vpop.f32.mrb[114].mxu1 }
 0x481   : > { %v8618_v11 = vmax.f32 %v8586_v12, 0.0  ;;  %v8587_v37 = vadd.f32 %v8555_v10, %v8491_v18  ;;  %v8192_v20 = vadd.f32 %v13262_v34, %v7903_v63  ;;  %v7906_v32 = vadd.f32 %v13193_v62, %v7905_v13  ;;  %v7907_v56 = vpop.f32.mrb[115].mxu1  ;;  %10225 = vmatmul.mubr.msk.bf16.gmra.mrb[144].mxu1 %vm2350_vm10, %v8299_v54  ;;  %v8564_v10 = vld [vmem:[%s11091_s15 + $0xf0] sm:$0xff]  ;;  %v9764_v13 = vld [vmem:[%s11091_s15 + $0x100] sm:$0xff] }
 0x482   : > { %8652 = vst [vmem:[%s13289_s9 + $0xb0] sm:$0xff] %v8620_v39  ;;  %v8621_v31 = vmax.f32 %v8589_v17, 0.0  ;;  %v8562_v39 = vld [vmem:[%s11091_s15 + $0xe0] sm:$0xff]  ;;  %v9766_v54 = vld [vmem:[%s11091_s15 + $0x110] sm:$0xff]  ;;  %v9767_v56 = vld [vmem:[%s11091_s15 + $0x118] sm:$0xff] }
 0x483   : > { %8650 = vst [vmem:[%s13289_s9 + $0xa0] sm:$0xff] %v8618_v11  ;;  %v8619_v47 = vmax.f32 %v8587_v37, 0.0  ;;  %v8195_v44 = vadd.f32 %v13266_v61, %v7906_v32  ;;  %v8266_v5 = vmax.f32 %v8192_v20, 0.0  ;;  %v8560_v61 = vld [vmem:[%s11091_s15 + $0xd0] sm:$0xff]  ;;  %v8565_v11 = vld [vmem:[%s11091_s15 + $0xf8] sm:$0xff] }
 0x484   : > { %8653 = vst [vmem:[%s13289_s9 + $0xb8] sm:$0xff] %v8621_v31  ;;  %v8563_v31 = vld [vmem:[%s11091_s15 + $0xe8] sm:$0xff] }
 0x485   : > { %8651 = vst [vmem:[%s13289_s9 + $0xa8] sm:$0xff] %v8619_v47  ;;  %v8267_v27 = vmax.f32 %v8195_v44, 0.0 }
 0x487   : > { %v8300_v36 = vpack.c.bf16 %v8267_v27, %v8266_v5 }
 0x489   : > { %v7910_v28 = vpop.f32.mrb[116].mxu1  ;;  %10228 = vmatprep.mubr.msk.bf16.mxu1 %vm2350_vm10, %v8300_v36  ;;  %v9765_v36 = vld [vmem:[%s11091_s15 + $0x108] sm:$0xff] }
 0x48a   : > { %v7911_v22 = vadd.f32 %v13193_v62, %v7910_v28  ;;  %v7912_v21 = vpop.f32.mrb[117].mxu1 }
 0x48b   : > { %v7913_v34 = vpop.f32.mrb[118].mxu1 }
 0x48c   : > { %v8200_v57 = vadd.f32 %v13259_v38, %v7911_v22  ;;  %v7914_v8 = vadd.f32 %v13193_v62, %v7913_v34  ;;  %v7915_v23 = vpop.f32.mrb[119].mxu1  ;;  %v8559_v62 = vld [vmem:[%s11091_s15 + $0xc8] sm:$0xff] }
 0x48e   : > { %v8203_v24 = vadd.f32 %v13264_v40, %v7914_v8  ;;  %v8268_v51 = vmax.f32 %v8200_v57, 0.0 }
 0x490   : > { %v8269_v9 = vmax.f32 %v8203_v24, 0.0  ;;  %v9768_v24 = vld [vmem:[%s11091_s15 + $0x120] sm:$0xff] }
 0x491   : > { %v10190_v6 = vpop.f32.mrb[160].mxu0 }
 0x492   : > { %v8512_v35 = vadd.f32 %v10190_v6, %v13272_v45  ;;  %v8503_v26 = vpop.f32.mrb[161].mxu0  ;;  %v8301_v30 = vpack.c.bf16 %v8269_v9, %v8268_v51 }
 0x493   : > { %v8504_v33 = vadd.f32 %v13272_v45, %v8503_v26  ;;  %v10191_v41 = vpop.f32.mrb[162].mxu0 }
 0x494   : > { %v8592_v14 = vadd.f32 %v8560_v61, %v8512_v35  ;;  %v8515_v38 = vadd.f32 %v10191_v41, %v13272_v45  ;;  %v8506_v46 = vpop.f32.mrb[163].mxu0  ;;  %10229 = vmatmul.mubr.msk.bf16.gmra.mrb[148].mxu1 %vm2350_vm10, %v8301_v30  ;;  %v9770_v35 = vld [vmem:[%s11091_s15 + $0x130] sm:$0xff] }
 0x495   : > { %v8590_v3 = vadd.f32 %v8558_v53, %v8504_v33  ;;  %v8507_v50 = vadd.f32 %v13272_v45, %v8506_v46 }
 0x496   : > { %v8624_v40 = vmax.f32 %v8592_v14, 0.0  ;;  %v8593_v52 = vadd.f32 %v8561_v58, %v8515_v38  ;;  %v9771_v58 = vld [vmem:[%s11091_s15 + $0x138] sm:$0xff] }
 0x497   : > { %v8622_v48 = vmax.f32 %v8590_v3, 0.0  ;;  %v8591_v15 = vadd.f32 %v8559_v62, %v8507_v50  ;;  %v9769_v62 = vld [vmem:[%s11091_s15 + $0x128] sm:$0xff] }
 0x498   : > { %8656 = vst [vmem:[%s13289_s9 + $0xd0] sm:$0xff] %v8624_v40  ;;  %v8625_v42 = vmax.f32 %v8593_v52, 0.0 }
 0x499   : > { %8654 = vst [vmem:[%s13289_s9 + $0xc0] sm:$0xff] %v8622_v48  ;;  %v8623_v19 = vmax.f32 %v8591_v15, 0.0 }
 0x49a   : > { %8657 = vst [vmem:[%s13289_s9 + $0xd8] sm:$0xff] %v8625_v42  ;;  %v9774_v42 = vld [vmem:[%s11091_s15 + $0x150] sm:$0xff] }
 0x49b   : > { %8655 = vst [vmem:[%s13289_s9 + $0xc8] sm:$0xff] %v8623_v19 }
 0x4a6   : > { %v10194_v55 = vpop.f32.mrb[164].mxu0 }
 0x4a7   : > { %v8528_v12 = vadd.f32 %v10194_v55, %v13272_v45  ;;  %v8519_v18 = vpop.f32.mrb[165].mxu0 }
 0x4a8   : > { %v8520_v17 = vadd.f32 %v13272_v45, %v8519_v18  ;;  %v10195_v1 = vpop.f32.mrb[166].mxu0 }
 0x4a9   : > { %v8596_v37 = vadd.f32 %v8564_v10, %v8528_v12  ;;  %v8531_v29 = vadd.f32 %v10195_v1, %v13272_v45  ;;  %v8522_v25 = vpop.f32.mrb[167].mxu0  ;;  %v9772_v10 = vld [vmem:[%s11091_s15 + $0x140] sm:$0xff] }
 0x4aa   : > { %v8594_v4 = vadd.f32 %v8562_v39, %v8520_v17  ;;  %v8523_v47 = vadd.f32 %v13272_v45, %v8522_v25  ;;  %v9775_v39 = vld [vmem:[%s11091_s15 + $0x158] sm:$0xff] }
 0x4ab   : > { %v8628_v59 = vmax.f32 %v8596_v37, 0.0  ;;  %v8597_v49 = vadd.f32 %v8565_v11, %v8531_v29  ;;  %v9773_v37 = vld [vmem:[%s11091_s15 + $0x148] sm:$0xff] }
 0x4ac   : > { %v8626_v16 = vmax.f32 %v8594_v4, 0.0  ;;  %v8595_v7 = vadd.f32 %v8563_v31, %v8523_v47 }
 0x4ad   : > { %8660 = vst [vmem:[%s13289_s9 + $0xf0] sm:$0xff] %v8628_v59  ;;  %v8629_v60 = vmax.f32 %v8597_v49, 0.0 }
 0x4ae   : > { %8658 = vst [vmem:[%s13289_s9 + $0xe0] sm:$0xff] %v8626_v16  ;;  %v8627_v2 = vmax.f32 %v8595_v7, 0.0 }
 0x4af   : > { %8661 = vst [vmem:[%s13289_s9 + $0xf8] sm:$0xff] %v8629_v60  ;;  %v9778_v60 = vld [vmem:[%s11091_s15 + $0x170] sm:$0xff] }
 0x4b0   : > { %8659 = vst [vmem:[%s13289_s9 + $0xe8] sm:$0xff] %v8627_v2 }
 0x4b6   : > { %v10202_v0 = vpop.f32.mrb[120].mxu1 }
 0x4b7   : > { %v8776_v63 = vadd.f32 %v10202_v0, %v13272_v45  ;;  %v8767_v43 = vpop.f32.mrb[121].mxu1 }
 0x4b8   : > { %v8768_v20 = vadd.f32 %v13272_v45, %v8767_v43  ;;  %v10203_v32 = vpop.f32.mrb[122].mxu1 }
 0x4b9   : > { %v8929_v44 = vadd.f32 %v9766_v54, %v8776_v63  ;;  %v8779_v5 = vadd.f32 %v10203_v32, %v13272_v45  ;;  %v8770_v27 = vpop.f32.mrb[123].mxu1  ;;  %v9776_v54 = vld [vmem:[%s11091_s15 + $0x160] sm:$0xff] }
 0x4ba   : > { %v8927_v28 = vadd.f32 %v9764_v13, %v8768_v20  ;;  %v8771_v22 = vadd.f32 %v13272_v45, %v8770_v27  ;;  %v9779_v13 = vld [vmem:[%s11091_s15 + $0x178] sm:$0xff] }
 0x4bb   : > { %v8961_v21 = vmax.f32 %v8929_v44, 0.0  ;;  %v8930_v34 = vadd.f32 %v9767_v56, %v8779_v5  ;;  %v9777_v44 = vld [vmem:[%s11091_s15 + $0x168] sm:$0xff] }
 0x4bc   : > { %v8959_v57 = vmax.f32 %v8927_v28, 0.0  ;;  %v8928_v8 = vadd.f32 %v9765_v36, %v8771_v22 }
 0x4bd   : > { %9798 = vst [vmem:[%s13289_s9 + $0x110] sm:$0xff] %v8961_v21  ;;  %v8962_v23 = vmax.f32 %v8930_v34, 0.0 }
 0x4be   : > { %9796 = vst [vmem:[%s13289_s9 + $0x100] sm:$0xff] %v8959_v57  ;;  %v8960_v6 = vmax.f32 %v8928_v8, 0.0 }
 0x4bf   : > { %9799 = vst [vmem:[%s13289_s9 + $0x118] sm:$0xff] %v8962_v23  ;;  %v9782_v23 = vld [vmem:[%s11091_s15 + $0x190] sm:$0xff] }
 0x4c0   : > { %9797 = vst [vmem:[%s13289_s9 + $0x108] sm:$0xff] %v8960_v6 }
 0x4d1   : > { %v10206_v61 = vpop.f32.mrb[124].mxu1 }
 0x4d2   : > { %v8792_v26 = vadd.f32 %v10206_v61, %v13272_v45  ;;  %v8783_v53 = vpop.f32.mrb[125].mxu1 }
 0x4d3   : > { %v8784_v33 = vadd.f32 %v13272_v45, %v8783_v53  ;;  %v10207_v41 = vpop.f32.mrb[126].mxu1 }
 0x4d4   : > { %v8933_v14 = vadd.f32 %v9770_v35, %v8792_v26  ;;  %v8795_v38 = vadd.f32 %v10207_v41, %v13272_v45  ;;  %v8786_v46 = vpop.f32.mrb[127].mxu1  ;;  %v9780_v35 = vld [vmem:[%s11091_s15 + $0x180] sm:$0xff] }
 0x4d5   : > { %v8931_v51 = vadd.f32 %v9768_v24, %v8784_v33  ;;  %v8787_v9 = vadd.f32 %v13272_v45, %v8786_v46  ;;  %v9783_v24 = vld [vmem:[%s11091_s15 + $0x198] sm:$0xff] }
 0x4d6   : > { %v8965_v3 = vmax.f32 %v8933_v14, 0.0  ;;  %v8934_v50 = vadd.f32 %v9771_v58, %v8795_v38  ;;  %v9781_v14 = vld [vmem:[%s11091_s15 + $0x188] sm:$0xff] }
 0x4d7   : > { %v8963_v40 = vmax.f32 %v8931_v51, 0.0  ;;  %v8932_v52 = vadd.f32 %v9769_v62, %v8787_v9 }
 0x4d8   : > { %9802 = vst [vmem:[%s13289_s9 + $0x130] sm:$0xff] %v8965_v3  ;;  %v8966_v30 = vmax.f32 %v8934_v50, 0.0 }
 0x4d9   : > { %9800 = vst [vmem:[%s13289_s9 + $0x120] sm:$0xff] %v8963_v40  ;;  %v8964_v48 = vmax.f32 %v8932_v52, 0.0 }
 0x4da   : > { %9803 = vst [vmem:[%s13289_s9 + $0x138] sm:$0xff] %v8966_v30  ;;  %v9786_v30 = vld [vmem:[%s11091_s15 + $0x1b0] sm:$0xff] }
 0x4db   : > { %9801 = vst [vmem:[%s13289_s9 + $0x128] sm:$0xff] %v8964_v48 }
 0x4e1   : > { %v10210_v15 = vpop.f32.mrb[128].mxu1 }
 0x4e2   : > { %v8808_v19 = vadd.f32 %v10210_v15, %v13272_v45  ;;  %v8799_v55 = vpop.f32.mrb[129].mxu1 }
 0x4e3   : > { %v8800_v12 = vadd.f32 %v13272_v45, %v8799_v55  ;;  %v10211_v18 = vpop.f32.mrb[130].mxu1 }
 0x4e4   : > { %v8937_v17 = vadd.f32 %v9774_v42, %v8808_v19  ;;  %v8811_v1 = vadd.f32 %v10211_v18, %v13272_v45  ;;  %v8802_v11 = vpop.f32.mrb[131].mxu1  ;;  %v9784_v42 = vld [vmem:[%s11091_s15 + $0x1a0] sm:$0xff] }
 0x4e5   : > { %v8935_v29 = vadd.f32 %v9772_v10, %v8800_v12  ;;  %v8803_v25 = vadd.f32 %v13272_v45, %v8802_v11  ;;  %v9787_v10 = vld [vmem:[%s11091_s15 + $0x1b8] sm:$0xff] }
 0x4e6   : > { %v8969_v31 = vmax.f32 %v8937_v17, 0.0  ;;  %v8938_v4 = vadd.f32 %v9775_v39, %v8811_v1  ;;  %v9785_v17 = vld [vmem:[%s11091_s15 + $0x1a8] sm:$0xff] }
 0x4e7   : > { %v8967_v47 = vmax.f32 %v8935_v29, 0.0  ;;  %v8936_v59 = vadd.f32 %v9773_v37, %v8803_v25 }
 0x4e8   : > { %9806 = vst [vmem:[%s13289_s9 + $0x150] sm:$0xff] %v8969_v31  ;;  %v8970_v49 = vmax.f32 %v8938_v4, 0.0 }
 0x4e9   : > { %9804 = vst [vmem:[%s13289_s9 + $0x140] sm:$0xff] %v8967_v47  ;;  %v8968_v16 = vmax.f32 %v8936_v59, 0.0 }
 0x4ea   : > { %9807 = vst [vmem:[%s13289_s9 + $0x158] sm:$0xff] %v8970_v49  ;;  %v9790_v49 = vld [vmem:[%s11091_s15 + $0x1d0] sm:$0xff] }
 0x4eb   : > { %9805 = vst [vmem:[%s13289_s9 + $0x148] sm:$0xff] %v8968_v16 }
 0x4fc   : > { %v10214_v7 = vpop.f32.mrb[132].mxu1 }
 0x4fd   : > { %v8824_v2 = vadd.f32 %v10214_v7, %v13272_v45  ;;  %v8815_v0 = vpop.f32.mrb[133].mxu1 }
 0x4fe   : > { %v8816_v63 = vadd.f32 %v13272_v45, %v8815_v0  ;;  %v10215_v43 = vpop.f32.mrb[134].mxu1 }
 0x4ff   : > { %v8941_v20 = vadd.f32 %v9778_v60, %v8824_v2  ;;  %v8827_v32 = vadd.f32 %v10215_v43, %v13272_v45  ;;  %v8818_v56 = vpop.f32.mrb[135].mxu1  ;;  %v9788_v60 = vld [vmem:[%s11091_s15 + $0x1c0] sm:$0xff] }
 0x500   : > { %v8939_v5 = vadd.f32 %v9776_v54, %v8816_v63  ;;  %v8819_v27 = vadd.f32 %v13272_v45, %v8818_v56  ;;  %v9791_v54 = vld [vmem:[%s11091_s15 + $0x1d8] sm:$0xff] }
 0x501   : > { %v8973_v36 = vmax.f32 %v8941_v20, 0.0  ;;  %v8942_v28 = vadd.f32 %v9779_v13, %v8827_v32  ;;  %v9789_v20 = vld [vmem:[%s11091_s15 + $0x1c8] sm:$0xff] }
 0x502   : > { %v8971_v22 = vmax.f32 %v8939_v5, 0.0  ;;  %v8940_v21 = vadd.f32 %v9777_v44, %v8819_v27 }
 0x503   : > { %9810 = vst [vmem:[%s13289_s9 + $0x170] sm:$0xff] %v8973_v36  ;;  %v8974_v34 = vmax.f32 %v8942_v28, 0.0 }
 0x504   : > { %9808 = vst [vmem:[%s13289_s9 + $0x160] sm:$0xff] %v8971_v22  ;;  %v8972_v57 = vmax.f32 %v8940_v21, 0.0 }
 0x505   : > { %9811 = vst [vmem:[%s13289_s9 + $0x178] sm:$0xff] %v8974_v34  ;;  %v9794_v34 = vld [vmem:[%s11091_s15 + $0x1f0] sm:$0xff] }
 0x506   : > { %9809 = vst [vmem:[%s13289_s9 + $0x168] sm:$0xff] %v8972_v57 }
 0x51c   : > { %v10218_v8 = vpop.f32.mrb[136].mxu1 }
 0x51d   : > { %v8840_v6 = vadd.f32 %v10218_v8, %v13272_v45  ;;  %v8831_v61 = vpop.f32.mrb[137].mxu1 }
 0x51e   : > { %v8832_v26 = vadd.f32 %v13272_v45, %v8831_v61  ;;  %v10219_v53 = vpop.f32.mrb[138].mxu1 }
 0x51f   : > { %v8945_v33 = vadd.f32 %v9782_v23, %v8840_v6  ;;  %v8843_v41 = vadd.f32 %v10219_v53, %v13272_v45  ;;  %v8834_v58 = vpop.f32.mrb[139].mxu1  ;;  %v9792_v23 = vld [vmem:[%s11091_s15 + $0x1e0] sm:$0xff] }
 0x520   : > { %v8943_v38 = vadd.f32 %v9780_v35, %v8832_v26  ;;  %v8835_v46 = vadd.f32 %v13272_v45, %v8834_v58  ;;  %v9795_v35 = vld [vmem:[%s11091_s15 + $0x1f8] sm:$0xff] }
 0x521   : > { %v8977_v62 = vmax.f32 %v8945_v33, 0.0  ;;  %v8946_v51 = vadd.f32 %v9783_v24, %v8843_v41  ;;  %v9793_v33 = vld [vmem:[%s11091_s15 + $0x1e8] sm:$0xff]  ;;  %s10864_s15 = scalar_lea.vmem %s13519_s11, 8192 }
 0x522   : > { %v8975_v9 = vmax.f32 %v8943_v38, 0.0  ;;  %v8944_v3 = vadd.f32 %v9781_v14, %v8835_v46  ;;  %p10865_p6 = scmp.ne.s32.totalorder %s13519_s11, %s10864_s15  ;;  %p10872_p9 = scmp.lt.s32.totalorder %s10870_s19, %s10864_s15 }
 0x523   : > { %9814 = vst [vmem:[%s13289_s9 + $0x190] sm:$0xff] %v8977_v62  ;;  %v8978_v50 = vmax.f32 %v8946_v51, 0.0 }
 0x524   : > { %9812 = vst [vmem:[%s13289_s9 + $0x180] sm:$0xff] %v8975_v9  ;;  %v8976_v40 = vmax.f32 %v8944_v3, 0.0  ;;  %p10866_p11 = pnand %p10865_p6, %p13587_p10  ;;  %p10873_p13 = por %p10872_p9, %p10871_p8 }
 0x525   : > { %9815 = vst [vmem:[%s13289_s9 + $0x198] sm:$0xff] %v8978_v50 }
 0x526   : > { %9813 = vst [vmem:[%s13289_s9 + $0x188] sm:$0xff] %v8976_v40  ;;  %p10867_p12 = pneg %p10866_p11 }
 0x528   : > { %p10874_p1 = pnand %p10873_p13, %p10867_p12 }
 0x543   : > { %v10222_v52 = vpop.f32.mrb[140].mxu1 }
 0x544   : > { %v8856_v48 = vadd.f32 %v10222_v52, %v13272_v45  ;;  %v8847_v15 = vpop.f32.mrb[141].mxu1 }
 0x545   : > { %v8848_v19 = vadd.f32 %v13272_v45, %v8847_v15  ;;  %v10223_v55 = vpop.f32.mrb[142].mxu1 }
 0x546   : > { %v8949_v12 = vadd.f32 %v9786_v30, %v8856_v48  ;;  %v8859_v18 = vadd.f32 %v10223_v55, %v13272_v45  ;;  %v8850_v39 = vpop.f32.mrb[143].mxu1 }
 0x547   : > { %v8947_v1 = vadd.f32 %v9784_v42, %v8848_v19  ;;  %v8851_v11 = vadd.f32 %v13272_v45, %v8850_v39 }
 0x548   : > { %v8981_v37 = vmax.f32 %v8949_v12, 0.0  ;;  %v8950_v29 = vadd.f32 %v9787_v10, %v8859_v18 }
 0x549   : > { %v8979_v25 = vmax.f32 %v8947_v1, 0.0  ;;  %v8948_v31 = vadd.f32 %v9785_v17, %v8851_v11 }
 0x54a   : > { %9818 = vst [vmem:[%s13289_s9 + $0x1b0] sm:$0xff] %v8981_v37  ;;  %v8982_v4 = vmax.f32 %v8950_v29, 0.0 }
 0x54b   : > { %9816 = vst [vmem:[%s13289_s9 + $0x1a0] sm:$0xff] %v8979_v25  ;;  %v8980_v47 = vmax.f32 %v8948_v31, 0.0 }
 0x54c   : > { %9819 = vst [vmem:[%s13289_s9 + $0x1b8] sm:$0xff] %v8982_v4 }
 0x54d   : > { %9817 = vst [vmem:[%s13289_s9 + $0x1a8] sm:$0xff] %v8980_v47 }
 0x554   : > { %v10226_v59 = vpop.f32.mrb[144].mxu1 }
 0x555   : > { %v8872_v16 = vadd.f32 %v10226_v59, %v13272_v45  ;;  %v8863_v7 = vpop.f32.mrb[145].mxu1 }
 0x556   : > { %v8864_v2 = vadd.f32 %v13272_v45, %v8863_v7  ;;  %v10227_v0 = vpop.f32.mrb[146].mxu1 }
 0x557   : > { %v8953_v63 = vadd.f32 %v9790_v49, %v8872_v16  ;;  %v8875_v43 = vadd.f32 %v10227_v0, %v13272_v45  ;;  %v8866_v13 = vpop.f32.mrb[147].mxu1 }
 0x558   : > { %v8951_v32 = vadd.f32 %v9788_v60, %v8864_v2  ;;  %v8867_v56 = vadd.f32 %v13272_v45, %v8866_v13 }
 0x559   : > { %v8985_v44 = vmax.f32 %v8953_v63, 0.0  ;;  %v8954_v5 = vadd.f32 %v9791_v54, %v8875_v43 }
 0x55a   : > { %v8983_v27 = vmax.f32 %v8951_v32, 0.0  ;;  %v8952_v36 = vadd.f32 %v9789_v20, %v8867_v56 }
 0x55b   : > { %9822 = vst [vmem:[%s13289_s9 + $0x1d0] sm:$0xff] %v8985_v44  ;;  %v8986_v28 = vmax.f32 %v8954_v5, 0.0 }
 0x55c   : > { %9820 = vst [vmem:[%s13289_s9 + $0x1c0] sm:$0xff] %v8983_v27  ;;  %v8984_v22 = vmax.f32 %v8952_v36, 0.0 }
 0x55d   : > { %9823 = vst [vmem:[%s13289_s9 + $0x1d8] sm:$0xff] %v8986_v28 }
 0x55e   : > { %9821 = vst [vmem:[%s13289_s9 + $0x1c8] sm:$0xff] %v8984_v22 }
 0x567   : > { %v10230_v21 = vpop.f32.mrb[148].mxu1 }
 0x568   : > { %v8888_v57 = vadd.f32 %v10230_v21, %v13272_v45  ;;  %v8879_v8 = vpop.f32.mrb[149].mxu1 }
 0x569   : > { %v8880_v6 = vadd.f32 %v13272_v45, %v8879_v8  ;;  %v10231_v61 = vpop.f32.mrb[150].mxu1 }
 0x56a   : > { %v8957_v26 = vadd.f32 %v9794_v34, %v8888_v57  ;;  %v8891_v53 = vadd.f32 %v10231_v61, %v13272_v45  ;;  %v8882_v24 = vpop.f32.mrb[151].mxu1 }
 0x56b   : > { %v8955_v41 = vadd.f32 %v9792_v23, %v8880_v6  ;;  %v8883_v58 = vadd.f32 %v13272_v45, %v8882_v24 }
 0x56c   : > { %v8989_v14 = vmax.f32 %v8957_v26, 0.0  ;;  %v8958_v38 = vadd.f32 %v9795_v35, %v8891_v53 }
 0x56d   : > { %v8987_v46 = vmax.f32 %v8955_v41, 0.0  ;;  %v8956_v62 = vadd.f32 %v9793_v33, %v8883_v58 }
 0x56e   : > { %9826 = vst [vmem:[%s13289_s9 + $0x1f0] sm:$0xff] %v8989_v14  ;;  %v8990_v51 = vmax.f32 %v8958_v38, 0.0 }
 0x56f   : > { %9824 = vst [vmem:[%s13289_s9 + $0x1e0] sm:$0xff] %v8987_v46  ;;  %v8988_v45 = vmax.f32 %v8956_v62, 0.0 }
 0x570   : > { %9827 = vst [vmem:[%s13289_s9 + $0x1f8] sm:$0xff] %v8990_v51 }
 0x571   : > { %9825 = vst [vmem:[%s13289_s9 + $0x1e8] sm:$0xff] %v8988_v45 }
 0x572   : > { %10877 = shalt.err (!%p10874_p1)
}
 0x573   : > { %s10878_s12 = scalar_lea.hbm %s13517_s22, 8192  ;;  %s10882_s9 = scalar_lea.hbm %s13572_s7, 32768 }
 0x574   : > { %p10879_p3 = scmp.ne.s32.totalorder %s13517_s22, %s10878_s12  ;;  %p10883_p0 = scmp.lt.u32.totalorder %s13517_s22, %s13572_s7 }
 0x575   : > { %p10884_p2 = scmp.lt.u32.totalorder %s10882_s9, %s10878_s12  ;;  %p10886_p6 = scmp.lt.u32.totalorder %s10878_s12, %s13517_s22 }
 0x576   : > { %p10880_p4 = pnand %p10879_p3, %p13587_p10 }
 0x577   : > { %p10885_p7 = por %p10884_p2, %p10883_p0 }
 0x578   : > { %p10881_p5 = pneg %p10880_p4 }
 0x579   : > { %p10887_p11 = por %p10886_p6, %p10885_p7 }
 0x57b   : > { %p10888_p12 = pnand %p10887_p11, %p10881_p5 }
 0x57d   : > { %10891 = shalt.err (!%p10888_p12)
}
 0x57e   : > { %s10940_s20 = smov 128   ;;  %s10941_s15 = smov 8  }
 0x57f   : > { %10266 = dma.vmem_to_hbm [thread:$0]  (%p13587_p10), %s13519_s11, 8192, %s13517_s22, %s9025_s28, %s10940_s20, %s10940_s20, %s10941_s15  }
 0x580 PF: > { %p10277_p8 = scmp.ge.s32.totalorder %s10930_s27, 2  ;;  %s9054_s23 = sand.u32 1, %s10918_s24  }
 0x581   : > { %p13588_p9 = scmp.ne.s32.totalorder %s13577_s14, 0  ;;  %s9055_s29 = scalar_lea.sflag [#allocation6], %s9054_s23 }
 0x583   : > { %p10273_p13 = pnand %p10277_p8, %p13588_p9 }
 0x585   : > { %10913 = dma.done.wait (!%p10273_p13), %s9055_s29, 8192  }
 0x586   : > { %10915 = vsyncadd (!%p10273_p13), %s9055_s29, 4294959104  ;;  %p20_p1 = scmp.ge.s32.totalorder %s11007_s30, 6   ;;  %s13589_s24 = smov %s10922_s25 }
 0x587   : > { %s13590_s25 = smov %s10926_s26  ;;  %s13591_s26 = smov %s11019_s10 }
 0x588   : > { %s13592_s27 = smov %s11007_s30  ;;  %22 = sbr.rel (!%p20_p1) target bundleno = 5 (0x5), region = 98 }
 0x58f   :  { %9060 = vsyncpa [#allocation5], 1 }
 0x590   :  { %9062 = vsyncpa [#allocation5 + $0x1], 1 }
 0x591   :  { %9063 = vsyncpa [#allocation6], 1 }
 0x592   :  { %9065 = vsyncpa [#allocation6 + $0x1], 1 }

</bundles_post_ra>
